<compile_context>
chip_gen: v7x
topology: tpu7x:2x2x1
jax: 0.10.0
libtpu: 0.0.40
codegen_flags: <defaults>
</compile_context>

<pallas_src>
import functools

import jax
import jax.numpy as jnp
import numpy as np
from jax.experimental import pallas as pl
from jax.experimental.pallas import tpu as pltpu


def _sigmoid(x):
    # exp goes to the EUP; the divide is negligible at these sizes.  Kept
    # exact so the 2e-5 numerical check stays tight (pl.reciprocal with
    # approx=True is a further free EUP win if a looser tolerance is OK).
    return 1.0 / (1.0 + jnp.exp(-x))


def _cbam_kernel(wsp_ref, x_ref, w1_ref, w2_ref, o_ref, *, H, W):
    """Processes Bt images per grid step.

    wsp_ref : SMEM (2, 49)     7x7 spatial-conv weights (ch0 = avg, ch1 = max)
    x_ref   : VMEM (Bt, C, H*W)
    w1_ref  : VMEM (Cr, C)     fc1 weight (torch layout)
    w2_ref  : VMEM (C, Cr)     fc2 weight (torch layout)
    o_ref   : VMEM (Bt, C, H*W)
    """
    Bt, C, HW = x_ref.shape
    P = 3  # padding of the 7x7 conv

    w1 = w1_ref[...]                                   # (Cr, C)
    w2 = w2_ref[...]                                   # (C, Cr)

    # Row/column index of every flattened spatial position (shared by all
    # images in the block); used to mask conv taps that land in the padding.
    hw_i = jax.lax.broadcasted_iota(jnp.int32, (1, HW), 1)
    if (W & (W - 1)) == 0:                             # power-of-two fast path
        col_i = jnp.bitwise_and(hw_i, W - 1)
        row_i = jnp.right_shift(hw_i, W.bit_length() - 1)
    else:
        col_i = jax.lax.rem(hw_i, jnp.int32(W))
        row_i = jax.lax.div(hw_i, jnp.int32(W))
    row_ok = {di: (row_i >= -di) & (row_i < H - di) for di in range(-P, P + 1)}
    col_ok = {dj: (col_i >= -dj) & (col_i < W - dj) for dj in range(-P, P + 1)}

    lane2 = jax.lax.broadcasted_iota(jnp.int32, (1, 2), 1)

    for b in range(Bt):                                # static unroll over block batch
        x_img = x_ref[b]                               # (C, HW)

        # ---------------- channel attention ----------------
        avg_c = jnp.mean(x_img, axis=1, keepdims=True)        # (C, 1)
        max_c = jnp.max(x_img, axis=1, keepdims=True)         # (C, 1)
        pooled = jnp.where(lane2 == 0, avg_c, max_c)          # (C, 2): fused avg/max branches
        h = jnp.maximum(
            jnp.dot(w1, pooled, preferred_element_type=jnp.float32), 0.0)  # (Cr, 2)
        y = jnp.dot(w2, h, preferred_element_type=jnp.float32)             # (C, 2)
        ca = _sigmoid(jnp.sum(y, axis=1, keepdims=True))      # avg_out + max_out -> (C, 1)
        x_ch = x_img * ca                                     # (C, HW)

        # ---------------- spatial attention -----------------
        avg_s = jnp.mean(x_ch, axis=0, keepdims=True)         # (1, HW) lane-dense map
        max_s = jnp.max(x_ch, axis=0, keepdims=True)          # (1, HW)

        acc = jnp.zeros((1, HW), jnp.float32)
        for di in range(-P, P + 1):
            for dj in range(-P, P + 1):
                kidx = (di + P) * 7 + (dj + P)
                w_avg = wsp_ref[0, kidx]                      # SMEM scalars
                w_max = wsp_ref[1, kidx]
                tap = w_avg * avg_s + w_max * max_s           # (1, HW) VPU FMA
                # source pixel = flat index + di*W + dj (when inside the image)
                shift = (-(di * W + dj)) % HW
                if shift:
                    tap = pltpu.roll(tap, shift, axis=1)      # XLU lane rotate
                acc = acc + jnp.where(row_ok[di] & col_ok[dj], tap, 0.0)

        sa = _sigmoid(acc)                                    # (1, HW)
        o_ref[b] = (x_ch * sa).astype(o_ref.dtype)


def cbam_pallas(x_nchw, w1_t, w2_t, wsp_t, *, max_images_per_block=8):
    """x_nchw: (B, C, H, W) f32.
    w1_t: (Cr, C, 1, 1), w2_t: (C, Cr, 1, 1), wsp_t: (1, 2, 7, 7) (torch layout).
    Returns (B, C, H, W)."""
    B, C, H, W = x_nchw.shape
    Cr = w1_t.shape[0]
    HW = H * W

    # Natural NCHW layout, flattened -> (B, C, H*W).  No HBM transposes.
    x_flat = x_nchw.reshape(B, C, HW).astype(jnp.float32)
    w1k = w1_t[:, :, 0, 0].astype(jnp.float32)    # (Cr, C)
    w2k = w2_t[:, :, 0, 0].astype(jnp.float32)    # (C, Cr)
    wsp = wsp_t.reshape(2, 49).astype(jnp.float32)

    # Images per grid step: amortize the ~0.35us per-step overhead while the
    # double-buffered I/O blocks stay far below the tightest (v7x) VMEM budget.
    img_bytes = C * HW * 4
    target_block_bytes = 2 * 1024 * 1024
    bt = 1
    for cand in range(1, min(B, max_images_per_block) + 1):
        if B % cand == 0 and cand * img_bytes <= target_block_bytes:
            bt = cand
    block_bytes = bt * img_bytes

    grid_spec = pltpu.PrefetchScalarGridSpec(
        num_scalar_prefetch=1,                      # wsp -> SMEM scalars
        grid=(B // bt,),
        in_specs=[
            pl.BlockSpec((bt, C, HW), lambda i, _: (i, 0, 0)),
            pl.BlockSpec((Cr, C), lambda i, _: (0, 0)),
            pl.BlockSpec((C, Cr), lambda i, _: (0, 0)),
        ],
        out_specs=pl.BlockSpec((bt, C, HW), lambda i, _: (i, 0, 0)),
    )

    out_flat = pl.pallas_call(
        functools.partial(_cbam_kernel, H=H, W=W),
        out_shape=jax.ShapeDtypeStruct((B, C, HW), jnp.float32),
        grid_spec=grid_spec,
        compiler_params=pltpu.CompilerParams(
            # Independent batch axis -> shard across v7x's 2 TensorCores.
            dimension_semantics=("parallel",),
            # Double-buffered in+out blocks + headroom; well under 64 MiB.
            vmem_limit_bytes=min(4 * block_bytes + (8 << 20), 32 << 20),
        ),
    )(wsp, x_flat, w1k, w2k)

    return out_flat.reshape(B, C, H, W)


def cbam_ref(x, w1_t, w2_t, wsp_t):
    """Pure-JAX reference, NCHW, mirrors the PyTorch module."""
    w1m = w1_t[:, :, 0, 0]                 # (Cr, C)
    w2m = w2_t[:, :, 0, 0]                 # (C, Cr)

    avg_p = jnp.mean(x, axis=(2, 3))       # (B, C)
    max_p = jnp.max(x, axis=(2, 3))        # (B, C)

    def mlp(p):
        h = jnp.maximum(p @ w1m.T, 0.0)
        return h @ w2m.T

    ca = _sigmoid(mlp(avg_p) + mlp(max_p))[:, :, None, None]
    x_ch = x * ca

    avg_m = jnp.mean(x_ch, axis=1, keepdims=True)
    max_m = jnp.max(x_ch, axis=1, keepdims=True)
    cat = jnp.concatenate([avg_m, max_m], axis=1)          # (B, 2, H, W)
    conv = jax.lax.conv_general_dilated(
        cat, wsp_t, window_strides=(1, 1), padding=((3, 3), (3, 3)),
        dimension_numbers=("NCHW", "OIHW", "NCHW"))        # (B, 1, H, W)
    sa = _sigmoid(conv)
    return x_ch * sa


if __name__ == "__main__":
    B, C, H, W = 2, 32, 16, 16
    reduction_ratio = 16
    Cr = C // reduction_ratio

    key = jax.random.PRNGKey(0)
    kx, k1, k2, k3 = jax.random.split(key, 4)
    x = jax.random.normal(kx, (B, C, H, W), dtype=jnp.float32)
    w1 = 0.20 * jax.random.normal(k1, (Cr, C, 1, 1), dtype=jnp.float32)   # fc1
    w2 = 0.20 * jax.random.normal(k2, (C, Cr, 1, 1), dtype=jnp.float32)   # fc2
    wsp = 0.05 * jax.random.normal(k3, (1, 2, 7, 7), dtype=jnp.float32)   # 7x7 conv

    out = jax.block_until_ready(cbam_pallas(x, w1, w2, wsp))
    ref = jax.block_until_ready(cbam_ref(x, w1, w2, wsp))

    np.testing.assert_allclose(np.asarray(out), np.asarray(ref),
                               rtol=2e-5, atol=2e-5)
    print("KERNEL_OK")
</pallas_src>

<mosaic_0001>
module attributes {stable_mosaic.version = 11 : i64} {
  func.func @_cbam_kernel(%arg0: i32, %arg1: memref<2x49xf32, #tpu.memory_space<smem>>, %arg2: memref<2x32x256xf32, #tpu.memory_space<vmem>>, %arg3: memref<2x32xf32, #tpu.memory_space<vmem>>, %arg4: memref<32x2xf32, #tpu.memory_space<vmem>>, %arg5: memref<2x32x256xf32, #tpu.memory_space<vmem>>) attributes {dimension_semantics = [#tpu.dimension_semantics<parallel>], iteration_bounds = array<i64: 1>, scalar_prefetch = 1 : i64, scratch_operands = 0 : i64, tpu.core_type = #tpu.core_type<tc>, window_params = [{transform_indices = @transform_0, window_bounds = array<i64: 2, 32, 256>}, {pipeline_mode = #tpu.pipeline_mode<synchronous>, transform_indices = @transform_1, window_bounds = array<i64: 2, 32>}, {pipeline_mode = #tpu.pipeline_mode<synchronous>, transform_indices = @transform_2, window_bounds = array<i64: 32, 2>}, {transform_indices = @transform_3, window_bounds = array<i64: 2, 32, 256>}]} {
    %c0 = arith.constant 0 : index
    %c0_0 = arith.constant 0 : index
    %0 = vector.load %arg3[%c0, %c0_0] : memref<2x32xf32, #tpu.memory_space<vmem>>, vector<2x32xf32>
    %c0_1 = arith.constant 0 : index
    %c0_2 = arith.constant 0 : index
    %1 = vector.load %arg4[%c0_1, %c0_2] : memref<32x2xf32, #tpu.memory_space<vmem>>, vector<32x2xf32>
    %2 = tpu.iota {dimensions = array<i32: 1>} : vector<1x256xi32>
    %c15_i32 = arith.constant 15 : i32
    %3 = vector.broadcast %c15_i32 : i32 to vector<1x256xi32>
    %4 = arith.andi %2, %3 : vector<1x256xi32>
    %c4_i32 = arith.constant 4 : i32
    %5 = vector.broadcast %c4_i32 : i32 to vector<1x256xi32>
    %6 = arith.shrsi %2, %5 : vector<1x256xi32>
    %c3_i32 = arith.constant 3 : i32
    %7 = vector.broadcast %c3_i32 : i32 to vector<1x256xi32>
    %8 = arith.cmpi sge, %6, %7 : vector<1x256xi32>
    %c19_i32 = arith.constant 19 : i32
    %9 = vector.broadcast %c19_i32 : i32 to vector<1x256xi32>
    %10 = arith.cmpi slt, %6, %9 : vector<1x256xi32>
    %11 = arith.andi %8, %10 : vector<1x256xi1>
    %c2_i32 = arith.constant 2 : i32
    %12 = vector.broadcast %c2_i32 : i32 to vector<1x256xi32>
    %13 = arith.cmpi sge, %6, %12 : vector<1x256xi32>
    %c18_i32 = arith.constant 18 : i32
    %14 = vector.broadcast %c18_i32 : i32 to vector<1x256xi32>
    %15 = arith.cmpi slt, %6, %14 : vector<1x256xi32>
    %16 = arith.andi %13, %15 : vector<1x256xi1>
    %c1_i32 = arith.constant 1 : i32
    %17 = vector.broadcast %c1_i32 : i32 to vector<1x256xi32>
    %18 = arith.cmpi sge, %6, %17 : vector<1x256xi32>
    %c17_i32 = arith.constant 17 : i32
    %19 = vector.broadcast %c17_i32 : i32 to vector<1x256xi32>
    %20 = arith.cmpi slt, %6, %19 : vector<1x256xi32>
    %21 = arith.andi %18, %20 : vector<1x256xi1>
    %c0_i32 = arith.constant 0 : i32
    %22 = vector.broadcast %c0_i32 : i32 to vector<1x256xi32>
    %23 = arith.cmpi sge, %6, %22 : vector<1x256xi32>
    %c16_i32 = arith.constant 16 : i32
    %24 = vector.broadcast %c16_i32 : i32 to vector<1x256xi32>
    %25 = arith.cmpi slt, %6, %24 : vector<1x256xi32>
    %26 = arith.andi %23, %25 : vector<1x256xi1>
    %c-1_i32 = arith.constant -1 : i32
    %27 = vector.broadcast %c-1_i32 : i32 to vector<1x256xi32>
    %28 = arith.cmpi sge, %6, %27 : vector<1x256xi32>
    %c15_i32_3 = arith.constant 15 : i32
    %29 = vector.broadcast %c15_i32_3 : i32 to vector<1x256xi32>
    %30 = arith.cmpi slt, %6, %29 : vector<1x256xi32>
    %31 = arith.andi %28, %30 : vector<1x256xi1>
    %c-2_i32 = arith.constant -2 : i32
    %32 = vector.broadcast %c-2_i32 : i32 to vector<1x256xi32>
    %33 = arith.cmpi sge, %6, %32 : vector<1x256xi32>
    %c14_i32 = arith.constant 14 : i32
    %34 = vector.broadcast %c14_i32 : i32 to vector<1x256xi32>
    %35 = arith.cmpi slt, %6, %34 : vector<1x256xi32>
    %36 = arith.andi %33, %35 : vector<1x256xi1>
    %c-3_i32 = arith.constant -3 : i32
    %37 = vector.broadcast %c-3_i32 : i32 to vector<1x256xi32>
    %38 = arith.cmpi sge, %6, %37 : vector<1x256xi32>
    %c13_i32 = arith.constant 13 : i32
    %39 = vector.broadcast %c13_i32 : i32 to vector<1x256xi32>
    %40 = arith.cmpi slt, %6, %39 : vector<1x256xi32>
    %41 = arith.andi %38, %40 : vector<1x256xi1>
    %c3_i32_4 = arith.constant 3 : i32
    %42 = vector.broadcast %c3_i32_4 : i32 to vector<1x256xi32>
    %43 = arith.cmpi sge, %4, %42 : vector<1x256xi32>
    %c19_i32_5 = arith.constant 19 : i32
    %44 = vector.broadcast %c19_i32_5 : i32 to vector<1x256xi32>
    %45 = arith.cmpi slt, %4, %44 : vector<1x256xi32>
    %46 = arith.andi %43, %45 : vector<1x256xi1>
    %c2_i32_6 = arith.constant 2 : i32
    %47 = vector.broadcast %c2_i32_6 : i32 to vector<1x256xi32>
    %48 = arith.cmpi sge, %4, %47 : vector<1x256xi32>
    %c18_i32_7 = arith.constant 18 : i32
    %49 = vector.broadcast %c18_i32_7 : i32 to vector<1x256xi32>
    %50 = arith.cmpi slt, %4, %49 : vector<1x256xi32>
    %51 = arith.andi %48, %50 : vector<1x256xi1>
    %c1_i32_8 = arith.constant 1 : i32
    %52 = vector.broadcast %c1_i32_8 : i32 to vector<1x256xi32>
    %53 = arith.cmpi sge, %4, %52 : vector<1x256xi32>
    %c17_i32_9 = arith.constant 17 : i32
    %54 = vector.broadcast %c17_i32_9 : i32 to vector<1x256xi32>
    %55 = arith.cmpi slt, %4, %54 : vector<1x256xi32>
    %56 = arith.andi %53, %55 : vector<1x256xi1>
    %c0_i32_10 = arith.constant 0 : i32
    %57 = vector.broadcast %c0_i32_10 : i32 to vector<1x256xi32>
    %58 = arith.cmpi sge, %4, %57 : vector<1x256xi32>
    %c16_i32_11 = arith.constant 16 : i32
    %59 = vector.broadcast %c16_i32_11 : i32 to vector<1x256xi32>
    %60 = arith.cmpi slt, %4, %59 : vector<1x256xi32>
    %61 = arith.andi %58, %60 : vector<1x256xi1>
    %c-1_i32_12 = arith.constant -1 : i32
    %62 = vector.broadcast %c-1_i32_12 : i32 to vector<1x256xi32>
    %63 = arith.cmpi sge, %4, %62 : vector<1x256xi32>
    %c15_i32_13 = arith.constant 15 : i32
    %64 = vector.broadcast %c15_i32_13 : i32 to vector<1x256xi32>
    %65 = arith.cmpi slt, %4, %64 : vector<1x256xi32>
    %66 = arith.andi %63, %65 : vector<1x256xi1>
    %c-2_i32_14 = arith.constant -2 : i32
    %67 = vector.broadcast %c-2_i32_14 : i32 to vector<1x256xi32>
    %68 = arith.cmpi sge, %4, %67 : vector<1x256xi32>
    %c14_i32_15 = arith.constant 14 : i32
    %69 = vector.broadcast %c14_i32_15 : i32 to vector<1x256xi32>
    %70 = arith.cmpi slt, %4, %69 : vector<1x256xi32>
    %71 = arith.andi %68, %70 : vector<1x256xi1>
    %c-3_i32_16 = arith.constant -3 : i32
    %72 = vector.broadcast %c-3_i32_16 : i32 to vector<1x256xi32>
    %73 = arith.cmpi sge, %4, %72 : vector<1x256xi32>
    %c13_i32_17 = arith.constant 13 : i32
    %74 = vector.broadcast %c13_i32_17 : i32 to vector<1x256xi32>
    %75 = arith.cmpi slt, %4, %74 : vector<1x256xi32>
    %76 = arith.andi %73, %75 : vector<1x256xi1>
    %77 = tpu.iota {dimensions = array<i32: 1>} : vector<1x2xi32>
    %c0_18 = arith.constant 0 : index
    %c0_19 = arith.constant 0 : index
    %c0_20 = arith.constant 0 : index
    %78 = vector.load %arg2[%c0_18, %c0_19, %c0_20] : memref<2x32x256xf32, #tpu.memory_space<vmem>>, vector<1x32x256xf32>
    %79 = vector.shape_cast %78 : vector<1x32x256xf32> to vector<32x256xf32>
    %cst = arith.constant dense<0.000000e+00> : vector<32xf32>
    %80 = vector.multi_reduction <add>, %79, %cst [1] : vector<32x256xf32> to vector<32xf32>
    %81 = vector.shape_cast %80 : vector<32xf32> to vector<32x1xf32>
    %cst_21 = arith.constant 2.560000e+02 : f32
    %82 = vector.broadcast %cst_21 : f32 to vector<32x1xf32>
    %83 = arith.divf %81, %82 : vector<32x1xf32>
    %cst_22 = arith.constant dense<0xFF800000> : vector<32xf32>
    %84 = vector.multi_reduction <maximumf>, %79, %cst_22 [1] : vector<32x256xf32> to vector<32xf32>
    %85 = vector.shape_cast %84 : vector<32xf32> to vector<32x1xf32>
    %c0_i32_23 = arith.constant 0 : i32
    %86 = vector.broadcast %c0_i32_23 : i32 to vector<1x2xi32>
    %87 = arith.cmpi eq, %77, %86 : vector<1x2xi32>
    %88 = vector.shape_cast %87 : vector<1x2xi1> to vector<1x2xi1>
    %89 = vector.broadcast %88 : vector<1x2xi1> to vector<32x2xi1>
    %90 = vector.shape_cast %83 : vector<32x1xf32> to vector<32x1xf32>
    %91 = vector.broadcast %90 : vector<32x1xf32> to vector<32x2xf32>
    %92 = vector.shape_cast %85 : vector<32x1xf32> to vector<32x1xf32>
    %93 = vector.broadcast %92 : vector<32x1xf32> to vector<32x2xf32>
    %94 = arith.select %89, %91, %93 : vector<32x2xi1>, vector<32x2xf32>
    %cst_24 = arith.constant dense<0.000000e+00> : vector<2x2xf32>
    %95 = tpu.matmul %0, %94, %cst_24 {dimension_numbers = #tpu.dot_dimension_numbers<[1], [0], [0], [1], [0, 0, 1, 1], [], []>} : vector<2x32xf32>, vector<32x2xf32>, vector<2x2xf32> -> vector<2x2xf32>
    %cst_25 = arith.constant 0.000000e+00 : f32
    %96 = vector.broadcast %cst_25 : f32 to vector<2x2xf32>
    %97 = arith.maximumf %95, %96 : vector<2x2xf32>
    %cst_26 = arith.constant dense<0.000000e+00> : vector<32x2xf32>
    %98 = tpu.matmul %1, %97, %cst_26 {dimension_numbers = #tpu.dot_dimension_numbers<[1], [0], [0], [1], [0, 0, 1, 1], [], []>} : vector<32x2xf32>, vector<2x2xf32>, vector<32x2xf32> -> vector<32x2xf32>
    %cst_27 = arith.constant dense<0.000000e+00> : vector<32xf32>
    %99 = vector.multi_reduction <add>, %98, %cst_27 [1] : vector<32x2xf32> to vector<32xf32>
    %100 = vector.shape_cast %99 : vector<32xf32> to vector<32x1xf32>
    %cst_28 = arith.constant 0.000000e+00 : f32
    %101 = vector.broadcast %cst_28 : f32 to vector<32x1xf32>
    %102 = arith.subf %101, %100 : vector<32x1xf32>
    %103 = math.exp %102 : vector<32x1xf32>
    %cst_29 = arith.constant 1.000000e+00 : f32
    %104 = vector.broadcast %cst_29 : f32 to vector<32x1xf32>
    %105 = arith.addf %104, %103 : vector<32x1xf32>
    %cst_30 = arith.constant 1.000000e+00 : f32
    %106 = vector.broadcast %cst_30 : f32 to vector<32x1xf32>
    %107 = arith.divf %106, %105 : vector<32x1xf32>
    %108 = vector.broadcast %107 : vector<32x1xf32> to vector<32x256xf32>
    %109 = arith.mulf %79, %108 : vector<32x256xf32>
    %cst_31 = arith.constant dense<0.000000e+00> : vector<256xf32>
    %110 = vector.multi_reduction <add>, %109, %cst_31 [0] : vector<32x256xf32> to vector<256xf32>
    %111 = vector.shape_cast %110 : vector<256xf32> to vector<1x256xf32>
    %cst_32 = arith.constant 3.200000e+01 : f32
    %112 = vector.broadcast %cst_32 : f32 to vector<1x256xf32>
    %113 = arith.divf %111, %112 : vector<1x256xf32>
    %cst_33 = arith.constant dense<0xFF800000> : vector<256xf32>
    %114 = vector.multi_reduction <maximumf>, %109, %cst_33 [0] : vector<32x256xf32> to vector<256xf32>
    %115 = vector.shape_cast %114 : vector<256xf32> to vector<1x256xf32>
    %cst_34 = arith.constant 0.000000e+00 : f32
    %116 = vector.broadcast %cst_34 : f32 to vector<1x256xf32>
    %c0_35 = arith.constant 0 : index
    %c0_36 = arith.constant 0 : index
    %117 = memref.load %arg1[%c0_35, %c0_36] : memref<2x49xf32, #tpu.memory_space<smem>>
    %c1 = arith.constant 1 : index
    %c0_37 = arith.constant 0 : index
    %118 = memref.load %arg1[%c1, %c0_37] : memref<2x49xf32, #tpu.memory_space<smem>>
    %119 = vector.broadcast %117 : f32 to vector<1x256xf32>
    %120 = arith.mulf %119, %113 : vector<1x256xf32>
    %121 = vector.broadcast %118 : f32 to vector<1x256xf32>
    %122 = arith.mulf %121, %115 : vector<1x256xf32>
    %123 = arith.addf %120, %122 : vector<1x256xf32>
    %c51_i32 = arith.constant 51 : i32
    %124 = tpu.dynamic_rotate %123 by %c51_i32 dim 1 : vector<1x256xf32>, i32 -> vector<1x256xf32>
    %125 = arith.andi %11, %46 : vector<1x256xi1>
    %cst_38 = arith.constant 0.000000e+00 : f32
    %126 = vector.broadcast %cst_38 : f32 to vector<1x256xf32>
    %127 = arith.select %125, %124, %126 : vector<1x256xi1>, vector<1x256xf32>
    %128 = arith.addf %116, %127 : vector<1x256xf32>
    %c0_39 = arith.constant 0 : index
    %c1_40 = arith.constant 1 : index
    %129 = memref.load %arg1[%c0_39, %c1_40] : memref<2x49xf32, #tpu.memory_space<smem>>
    %c1_41 = arith.constant 1 : index
    %c1_42 = arith.constant 1 : index
    %130 = memref.load %arg1[%c1_41, %c1_42] : memref<2x49xf32, #tpu.memory_space<smem>>
    %131 = vector.broadcast %129 : f32 to vector<1x256xf32>
    %132 = arith.mulf %131, %113 : vector<1x256xf32>
    %133 = vector.broadcast %130 : f32 to vector<1x256xf32>
    %134 = arith.mulf %133, %115 : vector<1x256xf32>
    %135 = arith.addf %132, %134 : vector<1x256xf32>
    %c50_i32 = arith.constant 50 : i32
    %136 = tpu.dynamic_rotate %135 by %c50_i32 dim 1 : vector<1x256xf32>, i32 -> vector<1x256xf32>
    %137 = arith.andi %11, %51 : vector<1x256xi1>
    %cst_43 = arith.constant 0.000000e+00 : f32
    %138 = vector.broadcast %cst_43 : f32 to vector<1x256xf32>
    %139 = arith.select %137, %136, %138 : vector<1x256xi1>, vector<1x256xf32>
    %140 = arith.addf %128, %139 : vector<1x256xf32>
    %c0_44 = arith.constant 0 : index
    %c2 = arith.constant 2 : index
    %141 = memref.load %arg1[%c0_44, %c2] : memref<2x49xf32, #tpu.memory_space<smem>>
    %c1_45 = arith.constant 1 : index
    %c2_46 = arith.constant 2 : index
    %142 = memref.load %arg1[%c1_45, %c2_46] : memref<2x49xf32, #tpu.memory_space<smem>>
    %143 = vector.broadcast %141 : f32 to vector<1x256xf32>
    %144 = arith.mulf %143, %113 : vector<1x256xf32>
    %145 = vector.broadcast %142 : f32 to vector<1x256xf32>
    %146 = arith.mulf %145, %115 : vector<1x256xf32>
    %147 = arith.addf %144, %146 : vector<1x256xf32>
    %c49_i32 = arith.constant 49 : i32
    %148 = tpu.dynamic_rotate %147 by %c49_i32 dim 1 : vector<1x256xf32>, i32 -> vector<1x256xf32>
    %149 = arith.andi %11, %56 : vector<1x256xi1>
    %cst_47 = arith.constant 0.000000e+00 : f32
    %150 = vector.broadcast %cst_47 : f32 to vector<1x256xf32>
    %151 = arith.select %149, %148, %150 : vector<1x256xi1>, vector<1x256xf32>
    %152 = arith.addf %140, %151 : vector<1x256xf32>
    %c0_48 = arith.constant 0 : index
    %c3 = arith.constant 3 : index
    %153 = memref.load %arg1[%c0_48, %c3] : memref<2x49xf32, #tpu.memory_space<smem>>
    %c1_49 = arith.constant 1 : index
    %c3_50 = arith.constant 3 : index
    %154 = memref.load %arg1[%c1_49, %c3_50] : memref<2x49xf32, #tpu.memory_space<smem>>
    %155 = vector.broadcast %153 : f32 to vector<1x256xf32>
    %156 = arith.mulf %155, %113 : vector<1x256xf32>
    %157 = vector.broadcast %154 : f32 to vector<1x256xf32>
    %158 = arith.mulf %157, %115 : vector<1x256xf32>
    %159 = arith.addf %156, %158 : vector<1x256xf32>
    %c48_i32 = arith.constant 48 : i32
    %160 = tpu.dynamic_rotate %159 by %c48_i32 dim 1 : vector<1x256xf32>, i32 -> vector<1x256xf32>
    %161 = arith.andi %11, %61 : vector<1x256xi1>
    %cst_51 = arith.constant 0.000000e+00 : f32
    %162 = vector.broadcast %cst_51 : f32 to vector<1x256xf32>
    %163 = arith.select %161, %160, %162 : vector<1x256xi1>, vector<1x256xf32>
    %164 = arith.addf %152, %163 : vector<1x256xf32>
    %c0_52 = arith.constant 0 : index
    %c4 = arith.constant 4 : index
    %165 = memref.load %arg1[%c0_52, %c4] : memref<2x49xf32, #tpu.memory_space<smem>>
    %c1_53 = arith.constant 1 : index
    %c4_54 = arith.constant 4 : index
    %166 = memref.load %arg1[%c1_53, %c4_54] : memref<2x49xf32, #tpu.memory_space<smem>>
    %167 = vector.broadcast %165 : f32 to vector<1x256xf32>
    %168 = arith.mulf %167, %113 : vector<1x256xf32>
    %169 = vector.broadcast %166 : f32 to vector<1x256xf32>
    %170 = arith.mulf %169, %115 : vector<1x256xf32>
    %171 = arith.addf %168, %170 : vector<1x256xf32>
    %c47_i32 = arith.constant 47 : i32
    %172 = tpu.dynamic_rotate %171 by %c47_i32 dim 1 : vector<1x256xf32>, i32 -> vector<1x256xf32>
    %173 = arith.andi %11, %66 : vector<1x256xi1>
    %cst_55 = arith.constant 0.000000e+00 : f32
    %174 = vector.broadcast %cst_55 : f32 to vector<1x256xf32>
    %175 = arith.select %173, %172, %174 : vector<1x256xi1>, vector<1x256xf32>
    %176 = arith.addf %164, %175 : vector<1x256xf32>
    %c0_56 = arith.constant 0 : index
    %c5 = arith.constant 5 : index
    %177 = memref.load %arg1[%c0_56, %c5] : memref<2x49xf32, #tpu.memory_space<smem>>
    %c1_57 = arith.constant 1 : index
    %c5_58 = arith.constant 5 : index
    %178 = memref.load %arg1[%c1_57, %c5_58] : memref<2x49xf32, #tpu.memory_space<smem>>
    %179 = vector.broadcast %177 : f32 to vector<1x256xf32>
    %180 = arith.mulf %179, %113 : vector<1x256xf32>
    %181 = vector.broadcast %178 : f32 to vector<1x256xf32>
    %182 = arith.mulf %181, %115 : vector<1x256xf32>
    %183 = arith.addf %180, %182 : vector<1x256xf32>
    %c46_i32 = arith.constant 46 : i32
    %184 = tpu.dynamic_rotate %183 by %c46_i32 dim 1 : vector<1x256xf32>, i32 -> vector<1x256xf32>
    %185 = arith.andi %11, %71 : vector<1x256xi1>
    %cst_59 = arith.constant 0.000000e+00 : f32
    %186 = vector.broadcast %cst_59 : f32 to vector<1x256xf32>
    %187 = arith.select %185, %184, %186 : vector<1x256xi1>, vector<1x256xf32>
    %188 = arith.addf %176, %187 : vector<1x256xf32>
    %c0_60 = arith.constant 0 : index
    %c6 = arith.constant 6 : index
    %189 = memref.load %arg1[%c0_60, %c6] : memref<2x49xf32, #tpu.memory_space<smem>>
    %c1_61 = arith.constant 1 : index
    %c6_62 = arith.constant 6 : index
    %190 = memref.load %arg1[%c1_61, %c6_62] : memref<2x49xf32, #tpu.memory_space<smem>>
    %191 = vector.broadcast %189 : f32 to vector<1x256xf32>
    %192 = arith.mulf %191, %113 : vector<1x256xf32>
    %193 = vector.broadcast %190 : f32 to vector<1x256xf32>
    %194 = arith.mulf %193, %115 : vector<1x256xf32>
    %195 = arith.addf %192, %194 : vector<1x256xf32>
    %c45_i32 = arith.constant 45 : i32
    %196 = tpu.dynamic_rotate %195 by %c45_i32 dim 1 : vector<1x256xf32>, i32 -> vector<1x256xf32>
    %197 = arith.andi %11, %76 : vector<1x256xi1>
    %cst_63 = arith.constant 0.000000e+00 : f32
    %198 = vector.broadcast %cst_63 : f32 to vector<1x256xf32>
    %199 = arith.select %197, %196, %198 : vector<1x256xi1>, vector<1x256xf32>
    %200 = arith.addf %188, %199 : vector<1x256xf32>
    %c0_64 = arith.constant 0 : index
    %c7 = arith.constant 7 : index
    %201 = memref.load %arg1[%c0_64, %c7] : memref<2x49xf32, #tpu.memory_space<smem>>
    %c1_65 = arith.constant 1 : index
    %c7_66 = arith.constant 7 : index
    %202 = memref.load %arg1[%c1_65, %c7_66] : memref<2x49xf32, #tpu.memory_space<smem>>
    %203 = vector.broadcast %201 : f32 to vector<1x256xf32>
    %204 = arith.mulf %203, %113 : vector<1x256xf32>
    %205 = vector.broadcast %202 : f32 to vector<1x256xf32>
    %206 = arith.mulf %205, %115 : vector<1x256xf32>
    %207 = arith.addf %204, %206 : vector<1x256xf32>
    %c35_i32 = arith.constant 35 : i32
    %208 = tpu.dynamic_rotate %207 by %c35_i32 dim 1 : vector<1x256xf32>, i32 -> vector<1x256xf32>
    %209 = arith.andi %16, %46 : vector<1x256xi1>
    %cst_67 = arith.constant 0.000000e+00 : f32
    %210 = vector.broadcast %cst_67 : f32 to vector<1x256xf32>
    %211 = arith.select %209, %208, %210 : vector<1x256xi1>, vector<1x256xf32>
    %212 = arith.addf %200, %211 : vector<1x256xf32>
    %c0_68 = arith.constant 0 : index
    %c8 = arith.constant 8 : index
    %213 = memref.load %arg1[%c0_68, %c8] : memref<2x49xf32, #tpu.memory_space<smem>>
    %c1_69 = arith.constant 1 : index
    %c8_70 = arith.constant 8 : index
    %214 = memref.load %arg1[%c1_69, %c8_70] : memref<2x49xf32, #tpu.memory_space<smem>>
    %215 = vector.broadcast %213 : f32 to vector<1x256xf32>
    %216 = arith.mulf %215, %113 : vector<1x256xf32>
    %217 = vector.broadcast %214 : f32 to vector<1x256xf32>
    %218 = arith.mulf %217, %115 : vector<1x256xf32>
    %219 = arith.addf %216, %218 : vector<1x256xf32>
    %c34_i32 = arith.constant 34 : i32
    %220 = tpu.dynamic_rotate %219 by %c34_i32 dim 1 : vector<1x256xf32>, i32 -> vector<1x256xf32>
    %221 = arith.andi %16, %51 : vector<1x256xi1>
    %cst_71 = arith.constant 0.000000e+00 : f32
    %222 = vector.broadcast %cst_71 : f32 to vector<1x256xf32>
    %223 = arith.select %221, %220, %222 : vector<1x256xi1>, vector<1x256xf32>
    %224 = arith.addf %212, %223 : vector<1x256xf32>
    %c0_72 = arith.constant 0 : index
    %c9 = arith.constant 9 : index
    %225 = memref.load %arg1[%c0_72, %c9] : memref<2x49xf32, #tpu.memory_space<smem>>
    %c1_73 = arith.constant 1 : index
    %c9_74 = arith.constant 9 : index
    %226 = memref.load %arg1[%c1_73, %c9_74] : memref<2x49xf32, #tpu.memory_space<smem>>
    %227 = vector.broadcast %225 : f32 to vector<1x256xf32>
    %228 = arith.mulf %227, %113 : vector<1x256xf32>
    %229 = vector.broadcast %226 : f32 to vector<1x256xf32>
    %230 = arith.mulf %229, %115 : vector<1x256xf32>
    %231 = arith.addf %228, %230 : vector<1x256xf32>
    %c33_i32 = arith.constant 33 : i32
    %232 = tpu.dynamic_rotate %231 by %c33_i32 dim 1 : vector<1x256xf32>, i32 -> vector<1x256xf32>
    %233 = arith.andi %16, %56 : vector<1x256xi1>
    %cst_75 = arith.constant 0.000000e+00 : f32
    %234 = vector.broadcast %cst_75 : f32 to vector<1x256xf32>
    %235 = arith.select %233, %232, %234 : vector<1x256xi1>, vector<1x256xf32>
    %236 = arith.addf %224, %235 : vector<1x256xf32>
    %c0_76 = arith.constant 0 : index
    %c10 = arith.constant 10 : index
    %237 = memref.load %arg1[%c0_76, %c10] : memref<2x49xf32, #tpu.memory_space<smem>>
    %c1_77 = arith.constant 1 : index
    %c10_78 = arith.constant 10 : index
    %238 = memref.load %arg1[%c1_77, %c10_78] : memref<2x49xf32, #tpu.memory_space<smem>>
    %239 = vector.broadcast %237 : f32 to vector<1x256xf32>
    %240 = arith.mulf %239, %113 : vector<1x256xf32>
    %241 = vector.broadcast %238 : f32 to vector<1x256xf32>
    %242 = arith.mulf %241, %115 : vector<1x256xf32>
    %243 = arith.addf %240, %242 : vector<1x256xf32>
    %c32_i32 = arith.constant 32 : i32
    %244 = tpu.dynamic_rotate %243 by %c32_i32 dim 1 : vector<1x256xf32>, i32 -> vector<1x256xf32>
    %245 = arith.andi %16, %61 : vector<1x256xi1>
    %cst_79 = arith.constant 0.000000e+00 : f32
    %246 = vector.broadcast %cst_79 : f32 to vector<1x256xf32>
    %247 = arith.select %245, %244, %246 : vector<1x256xi1>, vector<1x256xf32>
    %248 = arith.addf %236, %247 : vector<1x256xf32>
    %c0_80 = arith.constant 0 : index
    %c11 = arith.constant 11 : index
    %249 = memref.load %arg1[%c0_80, %c11] : memref<2x49xf32, #tpu.memory_space<smem>>
    %c1_81 = arith.constant 1 : index
    %c11_82 = arith.constant 11 : index
    %250 = memref.load %arg1[%c1_81, %c11_82] : memref<2x49xf32, #tpu.memory_space<smem>>
    %251 = vector.broadcast %249 : f32 to vector<1x256xf32>
    %252 = arith.mulf %251, %113 : vector<1x256xf32>
    %253 = vector.broadcast %250 : f32 to vector<1x256xf32>
    %254 = arith.mulf %253, %115 : vector<1x256xf32>
    %255 = arith.addf %252, %254 : vector<1x256xf32>
    %c31_i32 = arith.constant 31 : i32
    %256 = tpu.dynamic_rotate %255 by %c31_i32 dim 1 : vector<1x256xf32>, i32 -> vector<1x256xf32>
    %257 = arith.andi %16, %66 : vector<1x256xi1>
    %cst_83 = arith.constant 0.000000e+00 : f32
    %258 = vector.broadcast %cst_83 : f32 to vector<1x256xf32>
    %259 = arith.select %257, %256, %258 : vector<1x256xi1>, vector<1x256xf32>
    %260 = arith.addf %248, %259 : vector<1x256xf32>
    %c0_84 = arith.constant 0 : index
    %c12 = arith.constant 12 : index
    %261 = memref.load %arg1[%c0_84, %c12] : memref<2x49xf32, #tpu.memory_space<smem>>
    %c1_85 = arith.constant 1 : index
    %c12_86 = arith.constant 12 : index
    %262 = memref.load %arg1[%c1_85, %c12_86] : memref<2x49xf32, #tpu.memory_space<smem>>
    %263 = vector.broadcast %261 : f32 to vector<1x256xf32>
    %264 = arith.mulf %263, %113 : vector<1x256xf32>
    %265 = vector.broadcast %262 : f32 to vector<1x256xf32>
    %266 = arith.mulf %265, %115 : vector<1x256xf32>
    %267 = arith.addf %264, %266 : vector<1x256xf32>
    %c30_i32 = arith.constant 30 : i32
    %268 = tpu.dynamic_rotate %267 by %c30_i32 dim 1 : vector<1x256xf32>, i32 -> vector<1x256xf32>
    %269 = arith.andi %16, %71 : vector<1x256xi1>
    %cst_87 = arith.constant 0.000000e+00 : f32
    %270 = vector.broadcast %cst_87 : f32 to vector<1x256xf32>
    %271 = arith.select %269, %268, %270 : vector<1x256xi1>, vector<1x256xf32>
    %272 = arith.addf %260, %271 : vector<1x256xf32>
    %c0_88 = arith.constant 0 : index
    %c13 = arith.constant 13 : index
    %273 = memref.load %arg1[%c0_88, %c13] : memref<2x49xf32, #tpu.memory_space<smem>>
    %c1_89 = arith.constant 1 : index
    %c13_90 = arith.constant 13 : index
    %274 = memref.load %arg1[%c1_89, %c13_90] : memref<2x49xf32, #tpu.memory_space<smem>>
    %275 = vector.broadcast %273 : f32 to vector<1x256xf32>
    %276 = arith.mulf %275, %113 : vector<1x256xf32>
    %277 = vector.broadcast %274 : f32 to vector<1x256xf32>
    %278 = arith.mulf %277, %115 : vector<1x256xf32>
    %279 = arith.addf %276, %278 : vector<1x256xf32>
    %c29_i32 = arith.constant 29 : i32
    %280 = tpu.dynamic_rotate %279 by %c29_i32 dim 1 : vector<1x256xf32>, i32 -> vector<1x256xf32>
    %281 = arith.andi %16, %76 : vector<1x256xi1>
    %cst_91 = arith.constant 0.000000e+00 : f32
    %282 = vector.broadcast %cst_91 : f32 to vector<1x256xf32>
    %283 = arith.select %281, %280, %282 : vector<1x256xi1>, vector<1x256xf32>
    %284 = arith.addf %272, %283 : vector<1x256xf32>
    %c0_92 = arith.constant 0 : index
    %c14 = arith.constant 14 : index
    %285 = memref.load %arg1[%c0_92, %c14] : memref<2x49xf32, #tpu.memory_space<smem>>
    %c1_93 = arith.constant 1 : index
    %c14_94 = arith.constant 14 : index
    %286 = memref.load %arg1[%c1_93, %c14_94] : memref<2x49xf32, #tpu.memory_space<smem>>
    %287 = vector.broadcast %285 : f32 to vector<1x256xf32>
    %288 = arith.mulf %287, %113 : vector<1x256xf32>
    %289 = vector.broadcast %286 : f32 to vector<1x256xf32>
    %290 = arith.mulf %289, %115 : vector<1x256xf32>
    %291 = arith.addf %288, %290 : vector<1x256xf32>
    %c19_i32_95 = arith.constant 19 : i32
    %292 = tpu.dynamic_rotate %291 by %c19_i32_95 dim 1 : vector<1x256xf32>, i32 -> vector<1x256xf32>
    %293 = arith.andi %21, %46 : vector<1x256xi1>
    %cst_96 = arith.constant 0.000000e+00 : f32
    %294 = vector.broadcast %cst_96 : f32 to vector<1x256xf32>
    %295 = arith.select %293, %292, %294 : vector<1x256xi1>, vector<1x256xf32>
    %296 = arith.addf %284, %295 : vector<1x256xf32>
    %c0_97 = arith.constant 0 : index
    %c15 = arith.constant 15 : index
    %297 = memref.load %arg1[%c0_97, %c15] : memref<2x49xf32, #tpu.memory_space<smem>>
    %c1_98 = arith.constant 1 : index
    %c15_99 = arith.constant 15 : index
    %298 = memref.load %arg1[%c1_98, %c15_99] : memref<2x49xf32, #tpu.memory_space<smem>>
    %299 = vector.broadcast %297 : f32 to vector<1x256xf32>
    %300 = arith.mulf %299, %113 : vector<1x256xf32>
    %301 = vector.broadcast %298 : f32 to vector<1x256xf32>
    %302 = arith.mulf %301, %115 : vector<1x256xf32>
    %303 = arith.addf %300, %302 : vector<1x256xf32>
    %c18_i32_100 = arith.constant 18 : i32
    %304 = tpu.dynamic_rotate %303 by %c18_i32_100 dim 1 : vector<1x256xf32>, i32 -> vector<1x256xf32>
    %305 = arith.andi %21, %51 : vector<1x256xi1>
    %cst_101 = arith.constant 0.000000e+00 : f32
    %306 = vector.broadcast %cst_101 : f32 to vector<1x256xf32>
    %307 = arith.select %305, %304, %306 : vector<1x256xi1>, vector<1x256xf32>
    %308 = arith.addf %296, %307 : vector<1x256xf32>
    %c0_102 = arith.constant 0 : index
    %c16 = arith.constant 16 : index
    %309 = memref.load %arg1[%c0_102, %c16] : memref<2x49xf32, #tpu.memory_space<smem>>
    %c1_103 = arith.constant 1 : index
    %c16_104 = arith.constant 16 : index
    %310 = memref.load %arg1[%c1_103, %c16_104] : memref<2x49xf32, #tpu.memory_space<smem>>
    %311 = vector.broadcast %309 : f32 to vector<1x256xf32>
    %312 = arith.mulf %311, %113 : vector<1x256xf32>
    %313 = vector.broadcast %310 : f32 to vector<1x256xf32>
    %314 = arith.mulf %313, %115 : vector<1x256xf32>
    %315 = arith.addf %312, %314 : vector<1x256xf32>
    %c17_i32_105 = arith.constant 17 : i32
    %316 = tpu.dynamic_rotate %315 by %c17_i32_105 dim 1 : vector<1x256xf32>, i32 -> vector<1x256xf32>
    %317 = arith.andi %21, %56 : vector<1x256xi1>
    %cst_106 = arith.constant 0.000000e+00 : f32
    %318 = vector.broadcast %cst_106 : f32 to vector<1x256xf32>
    %319 = arith.select %317, %316, %318 : vector<1x256xi1>, vector<1x256xf32>
    %320 = arith.addf %308, %319 : vector<1x256xf32>
    %c0_107 = arith.constant 0 : index
    %c17 = arith.constant 17 : index
    %321 = memref.load %arg1[%c0_107, %c17] : memref<2x49xf32, #tpu.memory_space<smem>>
    %c1_108 = arith.constant 1 : index
    %c17_109 = arith.constant 17 : index
    %322 = memref.load %arg1[%c1_108, %c17_109] : memref<2x49xf32, #tpu.memory_space<smem>>
    %323 = vector.broadcast %321 : f32 to vector<1x256xf32>
    %324 = arith.mulf %323, %113 : vector<1x256xf32>
    %325 = vector.broadcast %322 : f32 to vector<1x256xf32>
    %326 = arith.mulf %325, %115 : vector<1x256xf32>
    %327 = arith.addf %324, %326 : vector<1x256xf32>
    %c16_i32_110 = arith.constant 16 : i32
    %328 = tpu.dynamic_rotate %327 by %c16_i32_110 dim 1 : vector<1x256xf32>, i32 -> vector<1x256xf32>
    %329 = arith.andi %21, %61 : vector<1x256xi1>
    %cst_111 = arith.constant 0.000000e+00 : f32
    %330 = vector.broadcast %cst_111 : f32 to vector<1x256xf32>
    %331 = arith.select %329, %328, %330 : vector<1x256xi1>, vector<1x256xf32>
    %332 = arith.addf %320, %331 : vector<1x256xf32>
    %c0_112 = arith.constant 0 : index
    %c18 = arith.constant 18 : index
    %333 = memref.load %arg1[%c0_112, %c18] : memref<2x49xf32, #tpu.memory_space<smem>>
    %c1_113 = arith.constant 1 : index
    %c18_114 = arith.constant 18 : index
    %334 = memref.load %arg1[%c1_113, %c18_114] : memref<2x49xf32, #tpu.memory_space<smem>>
    %335 = vector.broadcast %333 : f32 to vector<1x256xf32>
    %336 = arith.mulf %335, %113 : vector<1x256xf32>
    %337 = vector.broadcast %334 : f32 to vector<1x256xf32>
    %338 = arith.mulf %337, %115 : vector<1x256xf32>
    %339 = arith.addf %336, %338 : vector<1x256xf32>
    %c15_i32_115 = arith.constant 15 : i32
    %340 = tpu.dynamic_rotate %339 by %c15_i32_115 dim 1 : vector<1x256xf32>, i32 -> vector<1x256xf32>
    %341 = arith.andi %21, %66 : vector<1x256xi1>
    %cst_116 = arith.constant 0.000000e+00 : f32
    %342 = vector.broadcast %cst_116 : f32 to vector<1x256xf32>
    %343 = arith.select %341, %340, %342 : vector<1x256xi1>, vector<1x256xf32>
    %344 = arith.addf %332, %343 : vector<1x256xf32>
    %c0_117 = arith.constant 0 : index
    %c19 = arith.constant 19 : index
    %345 = memref.load %arg1[%c0_117, %c19] : memref<2x49xf32, #tpu.memory_space<smem>>
    %c1_118 = arith.constant 1 : index
    %c19_119 = arith.constant 19 : index
    %346 = memref.load %arg1[%c1_118, %c19_119] : memref<2x49xf32, #tpu.memory_space<smem>>
    %347 = vector.broadcast %345 : f32 to vector<1x256xf32>
    %348 = arith.mulf %347, %113 : vector<1x256xf32>
    %349 = vector.broadcast %346 : f32 to vector<1x256xf32>
    %350 = arith.mulf %349, %115 : vector<1x256xf32>
    %351 = arith.addf %348, %350 : vector<1x256xf32>
    %c14_i32_120 = arith.constant 14 : i32
    %352 = tpu.dynamic_rotate %351 by %c14_i32_120 dim 1 : vector<1x256xf32>, i32 -> vector<1x256xf32>
    %353 = arith.andi %21, %71 : vector<1x256xi1>
    %cst_121 = arith.constant 0.000000e+00 : f32
    %354 = vector.broadcast %cst_121 : f32 to vector<1x256xf32>
    %355 = arith.select %353, %352, %354 : vector<1x256xi1>, vector<1x256xf32>
    %356 = arith.addf %344, %355 : vector<1x256xf32>
    %c0_122 = arith.constant 0 : index
    %c20 = arith.constant 20 : index
    %357 = memref.load %arg1[%c0_122, %c20] : memref<2x49xf32, #tpu.memory_space<smem>>
    %c1_123 = arith.constant 1 : index
    %c20_124 = arith.constant 20 : index
    %358 = memref.load %arg1[%c1_123, %c20_124] : memref<2x49xf32, #tpu.memory_space<smem>>
    %359 = vector.broadcast %357 : f32 to vector<1x256xf32>
    %360 = arith.mulf %359, %113 : vector<1x256xf32>
    %361 = vector.broadcast %358 : f32 to vector<1x256xf32>
    %362 = arith.mulf %361, %115 : vector<1x256xf32>
    %363 = arith.addf %360, %362 : vector<1x256xf32>
    %c13_i32_125 = arith.constant 13 : i32
    %364 = tpu.dynamic_rotate %363 by %c13_i32_125 dim 1 : vector<1x256xf32>, i32 -> vector<1x256xf32>
    %365 = arith.andi %21, %76 : vector<1x256xi1>
    %cst_126 = arith.constant 0.000000e+00 : f32
    %366 = vector.broadcast %cst_126 : f32 to vector<1x256xf32>
    %367 = arith.select %365, %364, %366 : vector<1x256xi1>, vector<1x256xf32>
    %368 = arith.addf %356, %367 : vector<1x256xf32>
    %c0_127 = arith.constant 0 : index
    %c21 = arith.constant 21 : index
    %369 = memref.load %arg1[%c0_127, %c21] : memref<2x49xf32, #tpu.memory_space<smem>>
    %c1_128 = arith.constant 1 : index
    %c21_129 = arith.constant 21 : index
    %370 = memref.load %arg1[%c1_128, %c21_129] : memref<2x49xf32, #tpu.memory_space<smem>>
    %371 = vector.broadcast %369 : f32 to vector<1x256xf32>
    %372 = arith.mulf %371, %113 : vector<1x256xf32>
    %373 = vector.broadcast %370 : f32 to vector<1x256xf32>
    %374 = arith.mulf %373, %115 : vector<1x256xf32>
    %375 = arith.addf %372, %374 : vector<1x256xf32>
    %c3_i32_130 = arith.constant 3 : i32
    %376 = tpu.dynamic_rotate %375 by %c3_i32_130 dim 1 : vector<1x256xf32>, i32 -> vector<1x256xf32>
    %377 = arith.andi %26, %46 : vector<1x256xi1>
    %cst_131 = arith.constant 0.000000e+00 : f32
    %378 = vector.broadcast %cst_131 : f32 to vector<1x256xf32>
    %379 = arith.select %377, %376, %378 : vector<1x256xi1>, vector<1x256xf32>
    %380 = arith.addf %368, %379 : vector<1x256xf32>
    %c0_132 = arith.constant 0 : index
    %c22 = arith.constant 22 : index
    %381 = memref.load %arg1[%c0_132, %c22] : memref<2x49xf32, #tpu.memory_space<smem>>
    %c1_133 = arith.constant 1 : index
    %c22_134 = arith.constant 22 : index
    %382 = memref.load %arg1[%c1_133, %c22_134] : memref<2x49xf32, #tpu.memory_space<smem>>
    %383 = vector.broadcast %381 : f32 to vector<1x256xf32>
    %384 = arith.mulf %383, %113 : vector<1x256xf32>
    %385 = vector.broadcast %382 : f32 to vector<1x256xf32>
    %386 = arith.mulf %385, %115 : vector<1x256xf32>
    %387 = arith.addf %384, %386 : vector<1x256xf32>
    %c2_i32_135 = arith.constant 2 : i32
    %388 = tpu.dynamic_rotate %387 by %c2_i32_135 dim 1 : vector<1x256xf32>, i32 -> vector<1x256xf32>
    %389 = arith.andi %26, %51 : vector<1x256xi1>
    %cst_136 = arith.constant 0.000000e+00 : f32
    %390 = vector.broadcast %cst_136 : f32 to vector<1x256xf32>
    %391 = arith.select %389, %388, %390 : vector<1x256xi1>, vector<1x256xf32>
    %392 = arith.addf %380, %391 : vector<1x256xf32>
    %c0_137 = arith.constant 0 : index
    %c23 = arith.constant 23 : index
    %393 = memref.load %arg1[%c0_137, %c23] : memref<2x49xf32, #tpu.memory_space<smem>>
    %c1_138 = arith.constant 1 : index
    %c23_139 = arith.constant 23 : index
    %394 = memref.load %arg1[%c1_138, %c23_139] : memref<2x49xf32, #tpu.memory_space<smem>>
    %395 = vector.broadcast %393 : f32 to vector<1x256xf32>
    %396 = arith.mulf %395, %113 : vector<1x256xf32>
    %397 = vector.broadcast %394 : f32 to vector<1x256xf32>
    %398 = arith.mulf %397, %115 : vector<1x256xf32>
    %399 = arith.addf %396, %398 : vector<1x256xf32>
    %c1_i32_140 = arith.constant 1 : i32
    %400 = tpu.dynamic_rotate %399 by %c1_i32_140 dim 1 : vector<1x256xf32>, i32 -> vector<1x256xf32>
    %401 = arith.andi %26, %56 : vector<1x256xi1>
    %cst_141 = arith.constant 0.000000e+00 : f32
    %402 = vector.broadcast %cst_141 : f32 to vector<1x256xf32>
    %403 = arith.select %401, %400, %402 : vector<1x256xi1>, vector<1x256xf32>
    %404 = arith.addf %392, %403 : vector<1x256xf32>
    %c0_142 = arith.constant 0 : index
    %c24 = arith.constant 24 : index
    %405 = memref.load %arg1[%c0_142, %c24] : memref<2x49xf32, #tpu.memory_space<smem>>
    %c1_143 = arith.constant 1 : index
    %c24_144 = arith.constant 24 : index
    %406 = memref.load %arg1[%c1_143, %c24_144] : memref<2x49xf32, #tpu.memory_space<smem>>
    %407 = vector.broadcast %405 : f32 to vector<1x256xf32>
    %408 = arith.mulf %407, %113 : vector<1x256xf32>
    %409 = vector.broadcast %406 : f32 to vector<1x256xf32>
    %410 = arith.mulf %409, %115 : vector<1x256xf32>
    %411 = arith.addf %408, %410 : vector<1x256xf32>
    %412 = arith.andi %26, %61 : vector<1x256xi1>
    %cst_145 = arith.constant 0.000000e+00 : f32
    %413 = vector.broadcast %cst_145 : f32 to vector<1x256xf32>
    %414 = arith.select %412, %411, %413 : vector<1x256xi1>, vector<1x256xf32>
    %415 = arith.addf %404, %414 : vector<1x256xf32>
    %c0_146 = arith.constant 0 : index
    %c25 = arith.constant 25 : index
    %416 = memref.load %arg1[%c0_146, %c25] : memref<2x49xf32, #tpu.memory_space<smem>>
    %c1_147 = arith.constant 1 : index
    %c25_148 = arith.constant 25 : index
    %417 = memref.load %arg1[%c1_147, %c25_148] : memref<2x49xf32, #tpu.memory_space<smem>>
    %418 = vector.broadcast %416 : f32 to vector<1x256xf32>
    %419 = arith.mulf %418, %113 : vector<1x256xf32>
    %420 = vector.broadcast %417 : f32 to vector<1x256xf32>
    %421 = arith.mulf %420, %115 : vector<1x256xf32>
    %422 = arith.addf %419, %421 : vector<1x256xf32>
    %c255_i32 = arith.constant 255 : i32
    %423 = tpu.dynamic_rotate %422 by %c255_i32 dim 1 : vector<1x256xf32>, i32 -> vector<1x256xf32>
    %424 = arith.andi %26, %66 : vector<1x256xi1>
    %cst_149 = arith.constant 0.000000e+00 : f32
    %425 = vector.broadcast %cst_149 : f32 to vector<1x256xf32>
    %426 = arith.select %424, %423, %425 : vector<1x256xi1>, vector<1x256xf32>
    %427 = arith.addf %415, %426 : vector<1x256xf32>
    %c0_150 = arith.constant 0 : index
    %c26 = arith.constant 26 : index
    %428 = memref.load %arg1[%c0_150, %c26] : memref<2x49xf32, #tpu.memory_space<smem>>
    %c1_151 = arith.constant 1 : index
    %c26_152 = arith.constant 26 : index
    %429 = memref.load %arg1[%c1_151, %c26_152] : memref<2x49xf32, #tpu.memory_space<smem>>
    %430 = vector.broadcast %428 : f32 to vector<1x256xf32>
    %431 = arith.mulf %430, %113 : vector<1x256xf32>
    %432 = vector.broadcast %429 : f32 to vector<1x256xf32>
    %433 = arith.mulf %432, %115 : vector<1x256xf32>
    %434 = arith.addf %431, %433 : vector<1x256xf32>
    %c254_i32 = arith.constant 254 : i32
    %435 = tpu.dynamic_rotate %434 by %c254_i32 dim 1 : vector<1x256xf32>, i32 -> vector<1x256xf32>
    %436 = arith.andi %26, %71 : vector<1x256xi1>
    %cst_153 = arith.constant 0.000000e+00 : f32
    %437 = vector.broadcast %cst_153 : f32 to vector<1x256xf32>
    %438 = arith.select %436, %435, %437 : vector<1x256xi1>, vector<1x256xf32>
    %439 = arith.addf %427, %438 : vector<1x256xf32>
    %c0_154 = arith.constant 0 : index
    %c27 = arith.constant 27 : index
    %440 = memref.load %arg1[%c0_154, %c27] : memref<2x49xf32, #tpu.memory_space<smem>>
    %c1_155 = arith.constant 1 : index
    %c27_156 = arith.constant 27 : index
    %441 = memref.load %arg1[%c1_155, %c27_156] : memref<2x49xf32, #tpu.memory_space<smem>>
    %442 = vector.broadcast %440 : f32 to vector<1x256xf32>
    %443 = arith.mulf %442, %113 : vector<1x256xf32>
    %444 = vector.broadcast %441 : f32 to vector<1x256xf32>
    %445 = arith.mulf %444, %115 : vector<1x256xf32>
    %446 = arith.addf %443, %445 : vector<1x256xf32>
    %c253_i32 = arith.constant 253 : i32
    %447 = tpu.dynamic_rotate %446 by %c253_i32 dim 1 : vector<1x256xf32>, i32 -> vector<1x256xf32>
    %448 = arith.andi %26, %76 : vector<1x256xi1>
    %cst_157 = arith.constant 0.000000e+00 : f32
    %449 = vector.broadcast %cst_157 : f32 to vector<1x256xf32>
    %450 = arith.select %448, %447, %449 : vector<1x256xi1>, vector<1x256xf32>
    %451 = arith.addf %439, %450 : vector<1x256xf32>
    %c0_158 = arith.constant 0 : index
    %c28 = arith.constant 28 : index
    %452 = memref.load %arg1[%c0_158, %c28] : memref<2x49xf32, #tpu.memory_space<smem>>
    %c1_159 = arith.constant 1 : index
    %c28_160 = arith.constant 28 : index
    %453 = memref.load %arg1[%c1_159, %c28_160] : memref<2x49xf32, #tpu.memory_space<smem>>
    %454 = vector.broadcast %452 : f32 to vector<1x256xf32>
    %455 = arith.mulf %454, %113 : vector<1x256xf32>
    %456 = vector.broadcast %453 : f32 to vector<1x256xf32>
    %457 = arith.mulf %456, %115 : vector<1x256xf32>
    %458 = arith.addf %455, %457 : vector<1x256xf32>
    %c243_i32 = arith.constant 243 : i32
    %459 = tpu.dynamic_rotate %458 by %c243_i32 dim 1 : vector<1x256xf32>, i32 -> vector<1x256xf32>
    %460 = arith.andi %31, %46 : vector<1x256xi1>
    %cst_161 = arith.constant 0.000000e+00 : f32
    %461 = vector.broadcast %cst_161 : f32 to vector<1x256xf32>
    %462 = arith.select %460, %459, %461 : vector<1x256xi1>, vector<1x256xf32>
    %463 = arith.addf %451, %462 : vector<1x256xf32>
    %c0_162 = arith.constant 0 : index
    %c29 = arith.constant 29 : index
    %464 = memref.load %arg1[%c0_162, %c29] : memref<2x49xf32, #tpu.memory_space<smem>>
    %c1_163 = arith.constant 1 : index
    %c29_164 = arith.constant 29 : index
    %465 = memref.load %arg1[%c1_163, %c29_164] : memref<2x49xf32, #tpu.memory_space<smem>>
    %466 = vector.broadcast %464 : f32 to vector<1x256xf32>
    %467 = arith.mulf %466, %113 : vector<1x256xf32>
    %468 = vector.broadcast %465 : f32 to vector<1x256xf32>
    %469 = arith.mulf %468, %115 : vector<1x256xf32>
    %470 = arith.addf %467, %469 : vector<1x256xf32>
    %c242_i32 = arith.constant 242 : i32
    %471 = tpu.dynamic_rotate %470 by %c242_i32 dim 1 : vector<1x256xf32>, i32 -> vector<1x256xf32>
    %472 = arith.andi %31, %51 : vector<1x256xi1>
    %cst_165 = arith.constant 0.000000e+00 : f32
    %473 = vector.broadcast %cst_165 : f32 to vector<1x256xf32>
    %474 = arith.select %472, %471, %473 : vector<1x256xi1>, vector<1x256xf32>
    %475 = arith.addf %463, %474 : vector<1x256xf32>
    %c0_166 = arith.constant 0 : index
    %c30 = arith.constant 30 : index
    %476 = memref.load %arg1[%c0_166, %c30] : memref<2x49xf32, #tpu.memory_space<smem>>
    %c1_167 = arith.constant 1 : index
    %c30_168 = arith.constant 30 : index
    %477 = memref.load %arg1[%c1_167, %c30_168] : memref<2x49xf32, #tpu.memory_space<smem>>
    %478 = vector.broadcast %476 : f32 to vector<1x256xf32>
    %479 = arith.mulf %478, %113 : vector<1x256xf32>
    %480 = vector.broadcast %477 : f32 to vector<1x256xf32>
    %481 = arith.mulf %480, %115 : vector<1x256xf32>
    %482 = arith.addf %479, %481 : vector<1x256xf32>
    %c241_i32 = arith.constant 241 : i32
    %483 = tpu.dynamic_rotate %482 by %c241_i32 dim 1 : vector<1x256xf32>, i32 -> vector<1x256xf32>
    %484 = arith.andi %31, %56 : vector<1x256xi1>
    %cst_169 = arith.constant 0.000000e+00 : f32
    %485 = vector.broadcast %cst_169 : f32 to vector<1x256xf32>
    %486 = arith.select %484, %483, %485 : vector<1x256xi1>, vector<1x256xf32>
    %487 = arith.addf %475, %486 : vector<1x256xf32>
    %c0_170 = arith.constant 0 : index
    %c31 = arith.constant 31 : index
    %488 = memref.load %arg1[%c0_170, %c31] : memref<2x49xf32, #tpu.memory_space<smem>>
    %c1_171 = arith.constant 1 : index
    %c31_172 = arith.constant 31 : index
    %489 = memref.load %arg1[%c1_171, %c31_172] : memref<2x49xf32, #tpu.memory_space<smem>>
    %490 = vector.broadcast %488 : f32 to vector<1x256xf32>
    %491 = arith.mulf %490, %113 : vector<1x256xf32>
    %492 = vector.broadcast %489 : f32 to vector<1x256xf32>
    %493 = arith.mulf %492, %115 : vector<1x256xf32>
    %494 = arith.addf %491, %493 : vector<1x256xf32>
    %c240_i32 = arith.constant 240 : i32
    %495 = tpu.dynamic_rotate %494 by %c240_i32 dim 1 : vector<1x256xf32>, i32 -> vector<1x256xf32>
    %496 = arith.andi %31, %61 : vector<1x256xi1>
    %cst_173 = arith.constant 0.000000e+00 : f32
    %497 = vector.broadcast %cst_173 : f32 to vector<1x256xf32>
    %498 = arith.select %496, %495, %497 : vector<1x256xi1>, vector<1x256xf32>
    %499 = arith.addf %487, %498 : vector<1x256xf32>
    %c0_174 = arith.constant 0 : index
    %c32 = arith.constant 32 : index
    %500 = memref.load %arg1[%c0_174, %c32] : memref<2x49xf32, #tpu.memory_space<smem>>
    %c1_175 = arith.constant 1 : index
    %c32_176 = arith.constant 32 : index
    %501 = memref.load %arg1[%c1_175, %c32_176] : memref<2x49xf32, #tpu.memory_space<smem>>
    %502 = vector.broadcast %500 : f32 to vector<1x256xf32>
    %503 = arith.mulf %502, %113 : vector<1x256xf32>
    %504 = vector.broadcast %501 : f32 to vector<1x256xf32>
    %505 = arith.mulf %504, %115 : vector<1x256xf32>
    %506 = arith.addf %503, %505 : vector<1x256xf32>
    %c239_i32 = arith.constant 239 : i32
    %507 = tpu.dynamic_rotate %506 by %c239_i32 dim 1 : vector<1x256xf32>, i32 -> vector<1x256xf32>
    %508 = arith.andi %31, %66 : vector<1x256xi1>
    %cst_177 = arith.constant 0.000000e+00 : f32
    %509 = vector.broadcast %cst_177 : f32 to vector<1x256xf32>
    %510 = arith.select %508, %507, %509 : vector<1x256xi1>, vector<1x256xf32>
    %511 = arith.addf %499, %510 : vector<1x256xf32>
    %c0_178 = arith.constant 0 : index
    %c33 = arith.constant 33 : index
    %512 = memref.load %arg1[%c0_178, %c33] : memref<2x49xf32, #tpu.memory_space<smem>>
    %c1_179 = arith.constant 1 : index
    %c33_180 = arith.constant 33 : index
    %513 = memref.load %arg1[%c1_179, %c33_180] : memref<2x49xf32, #tpu.memory_space<smem>>
    %514 = vector.broadcast %512 : f32 to vector<1x256xf32>
    %515 = arith.mulf %514, %113 : vector<1x256xf32>
    %516 = vector.broadcast %513 : f32 to vector<1x256xf32>
    %517 = arith.mulf %516, %115 : vector<1x256xf32>
    %518 = arith.addf %515, %517 : vector<1x256xf32>
    %c238_i32 = arith.constant 238 : i32
    %519 = tpu.dynamic_rotate %518 by %c238_i32 dim 1 : vector<1x256xf32>, i32 -> vector<1x256xf32>
    %520 = arith.andi %31, %71 : vector<1x256xi1>
    %cst_181 = arith.constant 0.000000e+00 : f32
    %521 = vector.broadcast %cst_181 : f32 to vector<1x256xf32>
    %522 = arith.select %520, %519, %521 : vector<1x256xi1>, vector<1x256xf32>
    %523 = arith.addf %511, %522 : vector<1x256xf32>
    %c0_182 = arith.constant 0 : index
    %c34 = arith.constant 34 : index
    %524 = memref.load %arg1[%c0_182, %c34] : memref<2x49xf32, #tpu.memory_space<smem>>
    %c1_183 = arith.constant 1 : index
    %c34_184 = arith.constant 34 : index
    %525 = memref.load %arg1[%c1_183, %c34_184] : memref<2x49xf32, #tpu.memory_space<smem>>
    %526 = vector.broadcast %524 : f32 to vector<1x256xf32>
    %527 = arith.mulf %526, %113 : vector<1x256xf32>
    %528 = vector.broadcast %525 : f32 to vector<1x256xf32>
    %529 = arith.mulf %528, %115 : vector<1x256xf32>
    %530 = arith.addf %527, %529 : vector<1x256xf32>
    %c237_i32 = arith.constant 237 : i32
    %531 = tpu.dynamic_rotate %530 by %c237_i32 dim 1 : vector<1x256xf32>, i32 -> vector<1x256xf32>
    %532 = arith.andi %31, %76 : vector<1x256xi1>
    %cst_185 = arith.constant 0.000000e+00 : f32
    %533 = vector.broadcast %cst_185 : f32 to vector<1x256xf32>
    %534 = arith.select %532, %531, %533 : vector<1x256xi1>, vector<1x256xf32>
    %535 = arith.addf %523, %534 : vector<1x256xf32>
    %c0_186 = arith.constant 0 : index
    %c35 = arith.constant 35 : index
    %536 = memref.load %arg1[%c0_186, %c35] : memref<2x49xf32, #tpu.memory_space<smem>>
    %c1_187 = arith.constant 1 : index
    %c35_188 = arith.constant 35 : index
    %537 = memref.load %arg1[%c1_187, %c35_188] : memref<2x49xf32, #tpu.memory_space<smem>>
    %538 = vector.broadcast %536 : f32 to vector<1x256xf32>
    %539 = arith.mulf %538, %113 : vector<1x256xf32>
    %540 = vector.broadcast %537 : f32 to vector<1x256xf32>
    %541 = arith.mulf %540, %115 : vector<1x256xf32>
    %542 = arith.addf %539, %541 : vector<1x256xf32>
    %c227_i32 = arith.constant 227 : i32
    %543 = tpu.dynamic_rotate %542 by %c227_i32 dim 1 : vector<1x256xf32>, i32 -> vector<1x256xf32>
    %544 = arith.andi %36, %46 : vector<1x256xi1>
    %cst_189 = arith.constant 0.000000e+00 : f32
    %545 = vector.broadcast %cst_189 : f32 to vector<1x256xf32>
    %546 = arith.select %544, %543, %545 : vector<1x256xi1>, vector<1x256xf32>
    %547 = arith.addf %535, %546 : vector<1x256xf32>
    %c0_190 = arith.constant 0 : index
    %c36 = arith.constant 36 : index
    %548 = memref.load %arg1[%c0_190, %c36] : memref<2x49xf32, #tpu.memory_space<smem>>
    %c1_191 = arith.constant 1 : index
    %c36_192 = arith.constant 36 : index
    %549 = memref.load %arg1[%c1_191, %c36_192] : memref<2x49xf32, #tpu.memory_space<smem>>
    %550 = vector.broadcast %548 : f32 to vector<1x256xf32>
    %551 = arith.mulf %550, %113 : vector<1x256xf32>
    %552 = vector.broadcast %549 : f32 to vector<1x256xf32>
    %553 = arith.mulf %552, %115 : vector<1x256xf32>
    %554 = arith.addf %551, %553 : vector<1x256xf32>
    %c226_i32 = arith.constant 226 : i32
    %555 = tpu.dynamic_rotate %554 by %c226_i32 dim 1 : vector<1x256xf32>, i32 -> vector<1x256xf32>
    %556 = arith.andi %36, %51 : vector<1x256xi1>
    %cst_193 = arith.constant 0.000000e+00 : f32
    %557 = vector.broadcast %cst_193 : f32 to vector<1x256xf32>
    %558 = arith.select %556, %555, %557 : vector<1x256xi1>, vector<1x256xf32>
    %559 = arith.addf %547, %558 : vector<1x256xf32>
    %c0_194 = arith.constant 0 : index
    %c37 = arith.constant 37 : index
    %560 = memref.load %arg1[%c0_194, %c37] : memref<2x49xf32, #tpu.memory_space<smem>>
    %c1_195 = arith.constant 1 : index
    %c37_196 = arith.constant 37 : index
    %561 = memref.load %arg1[%c1_195, %c37_196] : memref<2x49xf32, #tpu.memory_space<smem>>
    %562 = vector.broadcast %560 : f32 to vector<1x256xf32>
    %563 = arith.mulf %562, %113 : vector<1x256xf32>
    %564 = vector.broadcast %561 : f32 to vector<1x256xf32>
    %565 = arith.mulf %564, %115 : vector<1x256xf32>
    %566 = arith.addf %563, %565 : vector<1x256xf32>
    %c225_i32 = arith.constant 225 : i32
    %567 = tpu.dynamic_rotate %566 by %c225_i32 dim 1 : vector<1x256xf32>, i32 -> vector<1x256xf32>
    %568 = arith.andi %36, %56 : vector<1x256xi1>
    %cst_197 = arith.constant 0.000000e+00 : f32
    %569 = vector.broadcast %cst_197 : f32 to vector<1x256xf32>
    %570 = arith.select %568, %567, %569 : vector<1x256xi1>, vector<1x256xf32>
    %571 = arith.addf %559, %570 : vector<1x256xf32>
    %c0_198 = arith.constant 0 : index
    %c38 = arith.constant 38 : index
    %572 = memref.load %arg1[%c0_198, %c38] : memref<2x49xf32, #tpu.memory_space<smem>>
    %c1_199 = arith.constant 1 : index
    %c38_200 = arith.constant 38 : index
    %573 = memref.load %arg1[%c1_199, %c38_200] : memref<2x49xf32, #tpu.memory_space<smem>>
    %574 = vector.broadcast %572 : f32 to vector<1x256xf32>
    %575 = arith.mulf %574, %113 : vector<1x256xf32>
    %576 = vector.broadcast %573 : f32 to vector<1x256xf32>
    %577 = arith.mulf %576, %115 : vector<1x256xf32>
    %578 = arith.addf %575, %577 : vector<1x256xf32>
    %c224_i32 = arith.constant 224 : i32
    %579 = tpu.dynamic_rotate %578 by %c224_i32 dim 1 : vector<1x256xf32>, i32 -> vector<1x256xf32>
    %580 = arith.andi %36, %61 : vector<1x256xi1>
    %cst_201 = arith.constant 0.000000e+00 : f32
    %581 = vector.broadcast %cst_201 : f32 to vector<1x256xf32>
    %582 = arith.select %580, %579, %581 : vector<1x256xi1>, vector<1x256xf32>
    %583 = arith.addf %571, %582 : vector<1x256xf32>
    %c0_202 = arith.constant 0 : index
    %c39 = arith.constant 39 : index
    %584 = memref.load %arg1[%c0_202, %c39] : memref<2x49xf32, #tpu.memory_space<smem>>
    %c1_203 = arith.constant 1 : index
    %c39_204 = arith.constant 39 : index
    %585 = memref.load %arg1[%c1_203, %c39_204] : memref<2x49xf32, #tpu.memory_space<smem>>
    %586 = vector.broadcast %584 : f32 to vector<1x256xf32>
    %587 = arith.mulf %586, %113 : vector<1x256xf32>
    %588 = vector.broadcast %585 : f32 to vector<1x256xf32>
    %589 = arith.mulf %588, %115 : vector<1x256xf32>
    %590 = arith.addf %587, %589 : vector<1x256xf32>
    %c223_i32 = arith.constant 223 : i32
    %591 = tpu.dynamic_rotate %590 by %c223_i32 dim 1 : vector<1x256xf32>, i32 -> vector<1x256xf32>
    %592 = arith.andi %36, %66 : vector<1x256xi1>
    %cst_205 = arith.constant 0.000000e+00 : f32
    %593 = vector.broadcast %cst_205 : f32 to vector<1x256xf32>
    %594 = arith.select %592, %591, %593 : vector<1x256xi1>, vector<1x256xf32>
    %595 = arith.addf %583, %594 : vector<1x256xf32>
    %c0_206 = arith.constant 0 : index
    %c40 = arith.constant 40 : index
    %596 = memref.load %arg1[%c0_206, %c40] : memref<2x49xf32, #tpu.memory_space<smem>>
    %c1_207 = arith.constant 1 : index
    %c40_208 = arith.constant 40 : index
    %597 = memref.load %arg1[%c1_207, %c40_208] : memref<2x49xf32, #tpu.memory_space<smem>>
    %598 = vector.broadcast %596 : f32 to vector<1x256xf32>
    %599 = arith.mulf %598, %113 : vector<1x256xf32>
    %600 = vector.broadcast %597 : f32 to vector<1x256xf32>
    %601 = arith.mulf %600, %115 : vector<1x256xf32>
    %602 = arith.addf %599, %601 : vector<1x256xf32>
    %c222_i32 = arith.constant 222 : i32
    %603 = tpu.dynamic_rotate %602 by %c222_i32 dim 1 : vector<1x256xf32>, i32 -> vector<1x256xf32>
    %604 = arith.andi %36, %71 : vector<1x256xi1>
    %cst_209 = arith.constant 0.000000e+00 : f32
    %605 = vector.broadcast %cst_209 : f32 to vector<1x256xf32>
    %606 = arith.select %604, %603, %605 : vector<1x256xi1>, vector<1x256xf32>
    %607 = arith.addf %595, %606 : vector<1x256xf32>
    %c0_210 = arith.constant 0 : index
    %c41 = arith.constant 41 : index
    %608 = memref.load %arg1[%c0_210, %c41] : memref<2x49xf32, #tpu.memory_space<smem>>
    %c1_211 = arith.constant 1 : index
    %c41_212 = arith.constant 41 : index
    %609 = memref.load %arg1[%c1_211, %c41_212] : memref<2x49xf32, #tpu.memory_space<smem>>
    %610 = vector.broadcast %608 : f32 to vector<1x256xf32>
    %611 = arith.mulf %610, %113 : vector<1x256xf32>
    %612 = vector.broadcast %609 : f32 to vector<1x256xf32>
    %613 = arith.mulf %612, %115 : vector<1x256xf32>
    %614 = arith.addf %611, %613 : vector<1x256xf32>
    %c221_i32 = arith.constant 221 : i32
    %615 = tpu.dynamic_rotate %614 by %c221_i32 dim 1 : vector<1x256xf32>, i32 -> vector<1x256xf32>
    %616 = arith.andi %36, %76 : vector<1x256xi1>
    %cst_213 = arith.constant 0.000000e+00 : f32
    %617 = vector.broadcast %cst_213 : f32 to vector<1x256xf32>
    %618 = arith.select %616, %615, %617 : vector<1x256xi1>, vector<1x256xf32>
    %619 = arith.addf %607, %618 : vector<1x256xf32>
    %c0_214 = arith.constant 0 : index
    %c42 = arith.constant 42 : index
    %620 = memref.load %arg1[%c0_214, %c42] : memref<2x49xf32, #tpu.memory_space<smem>>
    %c1_215 = arith.constant 1 : index
    %c42_216 = arith.constant 42 : index
    %621 = memref.load %arg1[%c1_215, %c42_216] : memref<2x49xf32, #tpu.memory_space<smem>>
    %622 = vector.broadcast %620 : f32 to vector<1x256xf32>
    %623 = arith.mulf %622, %113 : vector<1x256xf32>
    %624 = vector.broadcast %621 : f32 to vector<1x256xf32>
    %625 = arith.mulf %624, %115 : vector<1x256xf32>
    %626 = arith.addf %623, %625 : vector<1x256xf32>
    %c211_i32 = arith.constant 211 : i32
    %627 = tpu.dynamic_rotate %626 by %c211_i32 dim 1 : vector<1x256xf32>, i32 -> vector<1x256xf32>
    %628 = arith.andi %41, %46 : vector<1x256xi1>
    %cst_217 = arith.constant 0.000000e+00 : f32
    %629 = vector.broadcast %cst_217 : f32 to vector<1x256xf32>
    %630 = arith.select %628, %627, %629 : vector<1x256xi1>, vector<1x256xf32>
    %631 = arith.addf %619, %630 : vector<1x256xf32>
    %c0_218 = arith.constant 0 : index
    %c43 = arith.constant 43 : index
    %632 = memref.load %arg1[%c0_218, %c43] : memref<2x49xf32, #tpu.memory_space<smem>>
    %c1_219 = arith.constant 1 : index
    %c43_220 = arith.constant 43 : index
    %633 = memref.load %arg1[%c1_219, %c43_220] : memref<2x49xf32, #tpu.memory_space<smem>>
    %634 = vector.broadcast %632 : f32 to vector<1x256xf32>
    %635 = arith.mulf %634, %113 : vector<1x256xf32>
    %636 = vector.broadcast %633 : f32 to vector<1x256xf32>
    %637 = arith.mulf %636, %115 : vector<1x256xf32>
    %638 = arith.addf %635, %637 : vector<1x256xf32>
    %c210_i32 = arith.constant 210 : i32
    %639 = tpu.dynamic_rotate %638 by %c210_i32 dim 1 : vector<1x256xf32>, i32 -> vector<1x256xf32>
    %640 = arith.andi %41, %51 : vector<1x256xi1>
    %cst_221 = arith.constant 0.000000e+00 : f32
    %641 = vector.broadcast %cst_221 : f32 to vector<1x256xf32>
    %642 = arith.select %640, %639, %641 : vector<1x256xi1>, vector<1x256xf32>
    %643 = arith.addf %631, %642 : vector<1x256xf32>
    %c0_222 = arith.constant 0 : index
    %c44 = arith.constant 44 : index
    %644 = memref.load %arg1[%c0_222, %c44] : memref<2x49xf32, #tpu.memory_space<smem>>
    %c1_223 = arith.constant 1 : index
    %c44_224 = arith.constant 44 : index
    %645 = memref.load %arg1[%c1_223, %c44_224] : memref<2x49xf32, #tpu.memory_space<smem>>
    %646 = vector.broadcast %644 : f32 to vector<1x256xf32>
    %647 = arith.mulf %646, %113 : vector<1x256xf32>
    %648 = vector.broadcast %645 : f32 to vector<1x256xf32>
    %649 = arith.mulf %648, %115 : vector<1x256xf32>
    %650 = arith.addf %647, %649 : vector<1x256xf32>
    %c209_i32 = arith.constant 209 : i32
    %651 = tpu.dynamic_rotate %650 by %c209_i32 dim 1 : vector<1x256xf32>, i32 -> vector<1x256xf32>
    %652 = arith.andi %41, %56 : vector<1x256xi1>
    %cst_225 = arith.constant 0.000000e+00 : f32
    %653 = vector.broadcast %cst_225 : f32 to vector<1x256xf32>
    %654 = arith.select %652, %651, %653 : vector<1x256xi1>, vector<1x256xf32>
    %655 = arith.addf %643, %654 : vector<1x256xf32>
    %c0_226 = arith.constant 0 : index
    %c45 = arith.constant 45 : index
    %656 = memref.load %arg1[%c0_226, %c45] : memref<2x49xf32, #tpu.memory_space<smem>>
    %c1_227 = arith.constant 1 : index
    %c45_228 = arith.constant 45 : index
    %657 = memref.load %arg1[%c1_227, %c45_228] : memref<2x49xf32, #tpu.memory_space<smem>>
    %658 = vector.broadcast %656 : f32 to vector<1x256xf32>
    %659 = arith.mulf %658, %113 : vector<1x256xf32>
    %660 = vector.broadcast %657 : f32 to vector<1x256xf32>
    %661 = arith.mulf %660, %115 : vector<1x256xf32>
    %662 = arith.addf %659, %661 : vector<1x256xf32>
    %c208_i32 = arith.constant 208 : i32
    %663 = tpu.dynamic_rotate %662 by %c208_i32 dim 1 : vector<1x256xf32>, i32 -> vector<1x256xf32>
    %664 = arith.andi %41, %61 : vector<1x256xi1>
    %cst_229 = arith.constant 0.000000e+00 : f32
    %665 = vector.broadcast %cst_229 : f32 to vector<1x256xf32>
    %666 = arith.select %664, %663, %665 : vector<1x256xi1>, vector<1x256xf32>
    %667 = arith.addf %655, %666 : vector<1x256xf32>
    %c0_230 = arith.constant 0 : index
    %c46 = arith.constant 46 : index
    %668 = memref.load %arg1[%c0_230, %c46] : memref<2x49xf32, #tpu.memory_space<smem>>
    %c1_231 = arith.constant 1 : index
    %c46_232 = arith.constant 46 : index
    %669 = memref.load %arg1[%c1_231, %c46_232] : memref<2x49xf32, #tpu.memory_space<smem>>
    %670 = vector.broadcast %668 : f32 to vector<1x256xf32>
    %671 = arith.mulf %670, %113 : vector<1x256xf32>
    %672 = vector.broadcast %669 : f32 to vector<1x256xf32>
    %673 = arith.mulf %672, %115 : vector<1x256xf32>
    %674 = arith.addf %671, %673 : vector<1x256xf32>
    %c207_i32 = arith.constant 207 : i32
    %675 = tpu.dynamic_rotate %674 by %c207_i32 dim 1 : vector<1x256xf32>, i32 -> vector<1x256xf32>
    %676 = arith.andi %41, %66 : vector<1x256xi1>
    %cst_233 = arith.constant 0.000000e+00 : f32
    %677 = vector.broadcast %cst_233 : f32 to vector<1x256xf32>
    %678 = arith.select %676, %675, %677 : vector<1x256xi1>, vector<1x256xf32>
    %679 = arith.addf %667, %678 : vector<1x256xf32>
    %c0_234 = arith.constant 0 : index
    %c47 = arith.constant 47 : index
    %680 = memref.load %arg1[%c0_234, %c47] : memref<2x49xf32, #tpu.memory_space<smem>>
    %c1_235 = arith.constant 1 : index
    %c47_236 = arith.constant 47 : index
    %681 = memref.load %arg1[%c1_235, %c47_236] : memref<2x49xf32, #tpu.memory_space<smem>>
    %682 = vector.broadcast %680 : f32 to vector<1x256xf32>
    %683 = arith.mulf %682, %113 : vector<1x256xf32>
    %684 = vector.broadcast %681 : f32 to vector<1x256xf32>
    %685 = arith.mulf %684, %115 : vector<1x256xf32>
    %686 = arith.addf %683, %685 : vector<1x256xf32>
    %c206_i32 = arith.constant 206 : i32
    %687 = tpu.dynamic_rotate %686 by %c206_i32 dim 1 : vector<1x256xf32>, i32 -> vector<1x256xf32>
    %688 = arith.andi %41, %71 : vector<1x256xi1>
    %cst_237 = arith.constant 0.000000e+00 : f32
    %689 = vector.broadcast %cst_237 : f32 to vector<1x256xf32>
    %690 = arith.select %688, %687, %689 : vector<1x256xi1>, vector<1x256xf32>
    %691 = arith.addf %679, %690 : vector<1x256xf32>
    %c0_238 = arith.constant 0 : index
    %c48 = arith.constant 48 : index
    %692 = memref.load %arg1[%c0_238, %c48] : memref<2x49xf32, #tpu.memory_space<smem>>
    %c1_239 = arith.constant 1 : index
    %c48_240 = arith.constant 48 : index
    %693 = memref.load %arg1[%c1_239, %c48_240] : memref<2x49xf32, #tpu.memory_space<smem>>
    %694 = vector.broadcast %692 : f32 to vector<1x256xf32>
    %695 = arith.mulf %694, %113 : vector<1x256xf32>
    %696 = vector.broadcast %693 : f32 to vector<1x256xf32>
    %697 = arith.mulf %696, %115 : vector<1x256xf32>
    %698 = arith.addf %695, %697 : vector<1x256xf32>
    %c205_i32 = arith.constant 205 : i32
    %699 = tpu.dynamic_rotate %698 by %c205_i32 dim 1 : vector<1x256xf32>, i32 -> vector<1x256xf32>
    %700 = arith.andi %41, %76 : vector<1x256xi1>
    %cst_241 = arith.constant 0.000000e+00 : f32
    %701 = vector.broadcast %cst_241 : f32 to vector<1x256xf32>
    %702 = arith.select %700, %699, %701 : vector<1x256xi1>, vector<1x256xf32>
    %703 = arith.addf %691, %702 : vector<1x256xf32>
    %cst_242 = arith.constant 0.000000e+00 : f32
    %704 = vector.broadcast %cst_242 : f32 to vector<1x256xf32>
    %705 = arith.subf %704, %703 : vector<1x256xf32>
    %706 = math.exp %705 : vector<1x256xf32>
    %cst_243 = arith.constant 1.000000e+00 : f32
    %707 = vector.broadcast %cst_243 : f32 to vector<1x256xf32>
    %708 = arith.addf %707, %706 : vector<1x256xf32>
    %cst_244 = arith.constant 1.000000e+00 : f32
    %709 = vector.broadcast %cst_244 : f32 to vector<1x256xf32>
    %710 = arith.divf %709, %708 : vector<1x256xf32>
    %711 = vector.broadcast %710 : vector<1x256xf32> to vector<32x256xf32>
    %712 = arith.mulf %109, %711 : vector<32x256xf32>
    %c0_245 = arith.constant 0 : index
    %c0_246 = arith.constant 0 : index
    %c0_247 = arith.constant 0 : index
    %713 = vector.load %arg5[%c0_245, %c0_246, %c0_247] : memref<2x32x256xf32, #tpu.memory_space<vmem>>, vector<1x32x256xf32>
    %714 = vector.shape_cast %713 : vector<1x32x256xf32> to vector<32x256xf32>
    %715 = vector.shape_cast %712 : vector<32x256xf32> to vector<1x32x256xf32>
    tpu.vector_store %arg5[%c0_245, %c0_246, %c0_247], %715 {strides = array<i32>} : memref<2x32x256xf32, #tpu.memory_space<vmem>>, vector<1x32x256xf32>,
    %c1_248 = arith.constant 1 : index
    %c0_249 = arith.constant 0 : index
    %c0_250 = arith.constant 0 : index
    %716 = vector.load %arg2[%c1_248, %c0_249, %c0_250] : memref<2x32x256xf32, #tpu.memory_space<vmem>>, vector<1x32x256xf32>
    %717 = vector.shape_cast %716 : vector<1x32x256xf32> to vector<32x256xf32>
    %cst_251 = arith.constant dense<0.000000e+00> : vector<32xf32>
    %718 = vector.multi_reduction <add>, %717, %cst_251 [1] : vector<32x256xf32> to vector<32xf32>
    %719 = vector.shape_cast %718 : vector<32xf32> to vector<32x1xf32>
    %cst_252 = arith.constant 2.560000e+02 : f32
    %720 = vector.broadcast %cst_252 : f32 to vector<32x1xf32>
    %721 = arith.divf %719, %720 : vector<32x1xf32>
    %cst_253 = arith.constant dense<0xFF800000> : vector<32xf32>
    %722 = vector.multi_reduction <maximumf>, %717, %cst_253 [1] : vector<32x256xf32> to vector<32xf32>
    %723 = vector.shape_cast %722 : vector<32xf32> to vector<32x1xf32>
    %c0_i32_254 = arith.constant 0 : i32
    %724 = vector.broadcast %c0_i32_254 : i32 to vector<1x2xi32>
    %725 = arith.cmpi eq, %77, %724 : vector<1x2xi32>
    %726 = vector.shape_cast %725 : vector<1x2xi1> to vector<1x2xi1>
    %727 = vector.broadcast %726 : vector<1x2xi1> to vector<32x2xi1>
    %728 = vector.shape_cast %721 : vector<32x1xf32> to vector<32x1xf32>
    %729 = vector.broadcast %728 : vector<32x1xf32> to vector<32x2xf32>
    %730 = vector.shape_cast %723 : vector<32x1xf32> to vector<32x1xf32>
    %731 = vector.broadcast %730 : vector<32x1xf32> to vector<32x2xf32>
    %732 = arith.select %727, %729, %731 : vector<32x2xi1>, vector<32x2xf32>
    %cst_255 = arith.constant dense<0.000000e+00> : vector<2x2xf32>
    %733 = tpu.matmul %0, %732, %cst_255 {dimension_numbers = #tpu.dot_dimension_numbers<[1], [0], [0], [1], [0, 0, 1, 1], [], []>} : vector<2x32xf32>, vector<32x2xf32>, vector<2x2xf32> -> vector<2x2xf32>
    %cst_256 = arith.constant 0.000000e+00 : f32
    %734 = vector.broadcast %cst_256 : f32 to vector<2x2xf32>
    %735 = arith.maximumf %733, %734 : vector<2x2xf32>
    %cst_257 = arith.constant dense<0.000000e+00> : vector<32x2xf32>
    %736 = tpu.matmul %1, %735, %cst_257 {dimension_numbers = #tpu.dot_dimension_numbers<[1], [0], [0], [1], [0, 0, 1, 1], [], []>} : vector<32x2xf32>, vector<2x2xf32>, vector<32x2xf32> -> vector<32x2xf32>
    %cst_258 = arith.constant dense<0.000000e+00> : vector<32xf32>
    %737 = vector.multi_reduction <add>, %736, %cst_258 [1] : vector<32x2xf32> to vector<32xf32>
    %738 = vector.shape_cast %737 : vector<32xf32> to vector<32x1xf32>
    %cst_259 = arith.constant 0.000000e+00 : f32
    %739 = vector.broadcast %cst_259 : f32 to vector<32x1xf32>
    %740 = arith.subf %739, %738 : vector<32x1xf32>
    %741 = math.exp %740 : vector<32x1xf32>
    %cst_260 = arith.constant 1.000000e+00 : f32
    %742 = vector.broadcast %cst_260 : f32 to vector<32x1xf32>
    %743 = arith.addf %742, %741 : vector<32x1xf32>
    %cst_261 = arith.constant 1.000000e+00 : f32
    %744 = vector.broadcast %cst_261 : f32 to vector<32x1xf32>
    %745 = arith.divf %744, %743 : vector<32x1xf32>
    %746 = vector.broadcast %745 : vector<32x1xf32> to vector<32x256xf32>
    %747 = arith.mulf %717, %746 : vector<32x256xf32>
    %cst_262 = arith.constant dense<0.000000e+00> : vector<256xf32>
    %748 = vector.multi_reduction <add>, %747, %cst_262 [0] : vector<32x256xf32> to vector<256xf32>
    %749 = vector.shape_cast %748 : vector<256xf32> to vector<1x256xf32>
    %cst_263 = arith.constant 3.200000e+01 : f32
    %750 = vector.broadcast %cst_263 : f32 to vector<1x256xf32>
    %751 = arith.divf %749, %750 : vector<1x256xf32>
    %cst_264 = arith.constant dense<0xFF800000> : vector<256xf32>
    %752 = vector.multi_reduction <maximumf>, %747, %cst_264 [0] : vector<32x256xf32> to vector<256xf32>
    %753 = vector.shape_cast %752 : vector<256xf32> to vector<1x256xf32>
    %cst_265 = arith.constant 0.000000e+00 : f32
    %754 = vector.broadcast %cst_265 : f32 to vector<1x256xf32>
    %c0_266 = arith.constant 0 : index
    %c0_267 = arith.constant 0 : index
    %755 = memref.load %arg1[%c0_266, %c0_267] : memref<2x49xf32, #tpu.memory_space<smem>>
    %c1_268 = arith.constant 1 : index
    %c0_269 = arith.constant 0 : index
    %756 = memref.load %arg1[%c1_268, %c0_269] : memref<2x49xf32, #tpu.memory_space<smem>>
    %757 = vector.broadcast %755 : f32 to vector<1x256xf32>
    %758 = arith.mulf %757, %751 : vector<1x256xf32>
    %759 = vector.broadcast %756 : f32 to vector<1x256xf32>
    %760 = arith.mulf %759, %753 : vector<1x256xf32>
    %761 = arith.addf %758, %760 : vector<1x256xf32>
    %c51_i32_270 = arith.constant 51 : i32
    %762 = tpu.dynamic_rotate %761 by %c51_i32_270 dim 1 : vector<1x256xf32>, i32 -> vector<1x256xf32>
    %763 = arith.andi %11, %46 : vector<1x256xi1>
    %cst_271 = arith.constant 0.000000e+00 : f32
    %764 = vector.broadcast %cst_271 : f32 to vector<1x256xf32>
    %765 = arith.select %763, %762, %764 : vector<1x256xi1>, vector<1x256xf32>
    %766 = arith.addf %754, %765 : vector<1x256xf32>
    %c0_272 = arith.constant 0 : index
    %c1_273 = arith.constant 1 : index
    %767 = memref.load %arg1[%c0_272, %c1_273] : memref<2x49xf32, #tpu.memory_space<smem>>
    %c1_274 = arith.constant 1 : index
    %c1_275 = arith.constant 1 : index
    %768 = memref.load %arg1[%c1_274, %c1_275] : memref<2x49xf32, #tpu.memory_space<smem>>
    %769 = vector.broadcast %767 : f32 to vector<1x256xf32>
    %770 = arith.mulf %769, %751 : vector<1x256xf32>
    %771 = vector.broadcast %768 : f32 to vector<1x256xf32>
    %772 = arith.mulf %771, %753 : vector<1x256xf32>
    %773 = arith.addf %770, %772 : vector<1x256xf32>
    %c50_i32_276 = arith.constant 50 : i32
    %774 = tpu.dynamic_rotate %773 by %c50_i32_276 dim 1 : vector<1x256xf32>, i32 -> vector<1x256xf32>
    %775 = arith.andi %11, %51 : vector<1x256xi1>
    %cst_277 = arith.constant 0.000000e+00 : f32
    %776 = vector.broadcast %cst_277 : f32 to vector<1x256xf32>
    %777 = arith.select %775, %774, %776 : vector<1x256xi1>, vector<1x256xf32>
    %778 = arith.addf %766, %777 : vector<1x256xf32>
    %c0_278 = arith.constant 0 : index
    %c2_279 = arith.constant 2 : index
    %779 = memref.load %arg1[%c0_278, %c2_279] : memref<2x49xf32, #tpu.memory_space<smem>>
    %c1_280 = arith.constant 1 : index
    %c2_281 = arith.constant 2 : index
    %780 = memref.load %arg1[%c1_280, %c2_281] : memref<2x49xf32, #tpu.memory_space<smem>>
    %781 = vector.broadcast %779 : f32 to vector<1x256xf32>
    %782 = arith.mulf %781, %751 : vector<1x256xf32>
    %783 = vector.broadcast %780 : f32 to vector<1x256xf32>
    %784 = arith.mulf %783, %753 : vector<1x256xf32>
    %785 = arith.addf %782, %784 : vector<1x256xf32>
    %c49_i32_282 = arith.constant 49 : i32
    %786 = tpu.dynamic_rotate %785 by %c49_i32_282 dim 1 : vector<1x256xf32>, i32 -> vector<1x256xf32>
    %787 = arith.andi %11, %56 : vector<1x256xi1>
    %cst_283 = arith.constant 0.000000e+00 : f32
    %788 = vector.broadcast %cst_283 : f32 to vector<1x256xf32>
    %789 = arith.select %787, %786, %788 : vector<1x256xi1>, vector<1x256xf32>
    %790 = arith.addf %778, %789 : vector<1x256xf32>
    %c0_284 = arith.constant 0 : index
    %c3_285 = arith.constant 3 : index
    %791 = memref.load %arg1[%c0_284, %c3_285] : memref<2x49xf32, #tpu.memory_space<smem>>
    %c1_286 = arith.constant 1 : index
    %c3_287 = arith.constant 3 : index
    %792 = memref.load %arg1[%c1_286, %c3_287] : memref<2x49xf32, #tpu.memory_space<smem>>
    %793 = vector.broadcast %791 : f32 to vector<1x256xf32>
    %794 = arith.mulf %793, %751 : vector<1x256xf32>
    %795 = vector.broadcast %792 : f32 to vector<1x256xf32>
    %796 = arith.mulf %795, %753 : vector<1x256xf32>
    %797 = arith.addf %794, %796 : vector<1x256xf32>
    %c48_i32_288 = arith.constant 48 : i32
    %798 = tpu.dynamic_rotate %797 by %c48_i32_288 dim 1 : vector<1x256xf32>, i32 -> vector<1x256xf32>
    %799 = arith.andi %11, %61 : vector<1x256xi1>
    %cst_289 = arith.constant 0.000000e+00 : f32
    %800 = vector.broadcast %cst_289 : f32 to vector<1x256xf32>
    %801 = arith.select %799, %798, %800 : vector<1x256xi1>, vector<1x256xf32>
    %802 = arith.addf %790, %801 : vector<1x256xf32>
    %c0_290 = arith.constant 0 : index
    %c4_291 = arith.constant 4 : index
    %803 = memref.load %arg1[%c0_290, %c4_291] : memref<2x49xf32, #tpu.memory_space<smem>>
    %c1_292 = arith.constant 1 : index
    %c4_293 = arith.constant 4 : index
    %804 = memref.load %arg1[%c1_292, %c4_293] : memref<2x49xf32, #tpu.memory_space<smem>>
    %805 = vector.broadcast %803 : f32 to vector<1x256xf32>
    %806 = arith.mulf %805, %751 : vector<1x256xf32>
    %807 = vector.broadcast %804 : f32 to vector<1x256xf32>
    %808 = arith.mulf %807, %753 : vector<1x256xf32>
    %809 = arith.addf %806, %808 : vector<1x256xf32>
    %c47_i32_294 = arith.constant 47 : i32
    %810 = tpu.dynamic_rotate %809 by %c47_i32_294 dim 1 : vector<1x256xf32>, i32 -> vector<1x256xf32>
    %811 = arith.andi %11, %66 : vector<1x256xi1>
    %cst_295 = arith.constant 0.000000e+00 : f32
    %812 = vector.broadcast %cst_295 : f32 to vector<1x256xf32>
    %813 = arith.select %811, %810, %812 : vector<1x256xi1>, vector<1x256xf32>
    %814 = arith.addf %802, %813 : vector<1x256xf32>
    %c0_296 = arith.constant 0 : index
    %c5_297 = arith.constant 5 : index
    %815 = memref.load %arg1[%c0_296, %c5_297] : memref<2x49xf32, #tpu.memory_space<smem>>
    %c1_298 = arith.constant 1 : index
    %c5_299 = arith.constant 5 : index
    %816 = memref.load %arg1[%c1_298, %c5_299] : memref<2x49xf32, #tpu.memory_space<smem>>
    %817 = vector.broadcast %815 : f32 to vector<1x256xf32>
    %818 = arith.mulf %817, %751 : vector<1x256xf32>
    %819 = vector.broadcast %816 : f32 to vector<1x256xf32>
    %820 = arith.mulf %819, %753 : vector<1x256xf32>
    %821 = arith.addf %818, %820 : vector<1x256xf32>
    %c46_i32_300 = arith.constant 46 : i32
    %822 = tpu.dynamic_rotate %821 by %c46_i32_300 dim 1 : vector<1x256xf32>, i32 -> vector<1x256xf32>
    %823 = arith.andi %11, %71 : vector<1x256xi1>
    %cst_301 = arith.constant 0.000000e+00 : f32
    %824 = vector.broadcast %cst_301 : f32 to vector<1x256xf32>
    %825 = arith.select %823, %822, %824 : vector<1x256xi1>, vector<1x256xf32>
    %826 = arith.addf %814, %825 : vector<1x256xf32>
    %c0_302 = arith.constant 0 : index
    %c6_303 = arith.constant 6 : index
    %827 = memref.load %arg1[%c0_302, %c6_303] : memref<2x49xf32, #tpu.memory_space<smem>>
    %c1_304 = arith.constant 1 : index
    %c6_305 = arith.constant 6 : index
    %828 = memref.load %arg1[%c1_304, %c6_305] : memref<2x49xf32, #tpu.memory_space<smem>>
    %829 = vector.broadcast %827 : f32 to vector<1x256xf32>
    %830 = arith.mulf %829, %751 : vector<1x256xf32>
    %831 = vector.broadcast %828 : f32 to vector<1x256xf32>
    %832 = arith.mulf %831, %753 : vector<1x256xf32>
    %833 = arith.addf %830, %832 : vector<1x256xf32>
    %c45_i32_306 = arith.constant 45 : i32
    %834 = tpu.dynamic_rotate %833 by %c45_i32_306 dim 1 : vector<1x256xf32>, i32 -> vector<1x256xf32>
    %835 = arith.andi %11, %76 : vector<1x256xi1>
    %cst_307 = arith.constant 0.000000e+00 : f32
    %836 = vector.broadcast %cst_307 : f32 to vector<1x256xf32>
    %837 = arith.select %835, %834, %836 : vector<1x256xi1>, vector<1x256xf32>
    %838 = arith.addf %826, %837 : vector<1x256xf32>
    %c0_308 = arith.constant 0 : index
    %c7_309 = arith.constant 7 : index
    %839 = memref.load %arg1[%c0_308, %c7_309] : memref<2x49xf32, #tpu.memory_space<smem>>
    %c1_310 = arith.constant 1 : index
    %c7_311 = arith.constant 7 : index
    %840 = memref.load %arg1[%c1_310, %c7_311] : memref<2x49xf32, #tpu.memory_space<smem>>
    %841 = vector.broadcast %839 : f32 to vector<1x256xf32>
    %842 = arith.mulf %841, %751 : vector<1x256xf32>
    %843 = vector.broadcast %840 : f32 to vector<1x256xf32>
    %844 = arith.mulf %843, %753 : vector<1x256xf32>
    %845 = arith.addf %842, %844 : vector<1x256xf32>
    %c35_i32_312 = arith.constant 35 : i32
    %846 = tpu.dynamic_rotate %845 by %c35_i32_312 dim 1 : vector<1x256xf32>, i32 -> vector<1x256xf32>
    %847 = arith.andi %16, %46 : vector<1x256xi1>
    %cst_313 = arith.constant 0.000000e+00 : f32
    %848 = vector.broadcast %cst_313 : f32 to vector<1x256xf32>
    %849 = arith.select %847, %846, %848 : vector<1x256xi1>, vector<1x256xf32>
    %850 = arith.addf %838, %849 : vector<1x256xf32>
    %c0_314 = arith.constant 0 : index
    %c8_315 = arith.constant 8 : index
    %851 = memref.load %arg1[%c0_314, %c8_315] : memref<2x49xf32, #tpu.memory_space<smem>>
    %c1_316 = arith.constant 1 : index
    %c8_317 = arith.constant 8 : index
    %852 = memref.load %arg1[%c1_316, %c8_317] : memref<2x49xf32, #tpu.memory_space<smem>>
    %853 = vector.broadcast %851 : f32 to vector<1x256xf32>
    %854 = arith.mulf %853, %751 : vector<1x256xf32>
    %855 = vector.broadcast %852 : f32 to vector<1x256xf32>
    %856 = arith.mulf %855, %753 : vector<1x256xf32>
    %857 = arith.addf %854, %856 : vector<1x256xf32>
    %c34_i32_318 = arith.constant 34 : i32
    %858 = tpu.dynamic_rotate %857 by %c34_i32_318 dim 1 : vector<1x256xf32>, i32 -> vector<1x256xf32>
    %859 = arith.andi %16, %51 : vector<1x256xi1>
    %cst_319 = arith.constant 0.000000e+00 : f32
    %860 = vector.broadcast %cst_319 : f32 to vector<1x256xf32>
    %861 = arith.select %859, %858, %860 : vector<1x256xi1>, vector<1x256xf32>
    %862 = arith.addf %850, %861 : vector<1x256xf32>
    %c0_320 = arith.constant 0 : index
    %c9_321 = arith.constant 9 : index
    %863 = memref.load %arg1[%c0_320, %c9_321] : memref<2x49xf32, #tpu.memory_space<smem>>
    %c1_322 = arith.constant 1 : index
    %c9_323 = arith.constant 9 : index
    %864 = memref.load %arg1[%c1_322, %c9_323] : memref<2x49xf32, #tpu.memory_space<smem>>
    %865 = vector.broadcast %863 : f32 to vector<1x256xf32>
    %866 = arith.mulf %865, %751 : vector<1x256xf32>
    %867 = vector.broadcast %864 : f32 to vector<1x256xf32>
    %868 = arith.mulf %867, %753 : vector<1x256xf32>
    %869 = arith.addf %866, %868 : vector<1x256xf32>
    %c33_i32_324 = arith.constant 33 : i32
    %870 = tpu.dynamic_rotate %869 by %c33_i32_324 dim 1 : vector<1x256xf32>, i32 -> vector<1x256xf32>
    %871 = arith.andi %16, %56 : vector<1x256xi1>
    %cst_325 = arith.constant 0.000000e+00 : f32
    %872 = vector.broadcast %cst_325 : f32 to vector<1x256xf32>
    %873 = arith.select %871, %870, %872 : vector<1x256xi1>, vector<1x256xf32>
    %874 = arith.addf %862, %873 : vector<1x256xf32>
    %c0_326 = arith.constant 0 : index
    %c10_327 = arith.constant 10 : index
    %875 = memref.load %arg1[%c0_326, %c10_327] : memref<2x49xf32, #tpu.memory_space<smem>>
    %c1_328 = arith.constant 1 : index
    %c10_329 = arith.constant 10 : index
    %876 = memref.load %arg1[%c1_328, %c10_329] : memref<2x49xf32, #tpu.memory_space<smem>>
    %877 = vector.broadcast %875 : f32 to vector<1x256xf32>
    %878 = arith.mulf %877, %751 : vector<1x256xf32>
    %879 = vector.broadcast %876 : f32 to vector<1x256xf32>
    %880 = arith.mulf %879, %753 : vector<1x256xf32>
    %881 = arith.addf %878, %880 : vector<1x256xf32>
    %c32_i32_330 = arith.constant 32 : i32
    %882 = tpu.dynamic_rotate %881 by %c32_i32_330 dim 1 : vector<1x256xf32>, i32 -> vector<1x256xf32>
    %883 = arith.andi %16, %61 : vector<1x256xi1>
    %cst_331 = arith.constant 0.000000e+00 : f32
    %884 = vector.broadcast %cst_331 : f32 to vector<1x256xf32>
    %885 = arith.select %883, %882, %884 : vector<1x256xi1>, vector<1x256xf32>
    %886 = arith.addf %874, %885 : vector<1x256xf32>
    %c0_332 = arith.constant 0 : index
    %c11_333 = arith.constant 11 : index
    %887 = memref.load %arg1[%c0_332, %c11_333] : memref<2x49xf32, #tpu.memory_space<smem>>
    %c1_334 = arith.constant 1 : index
    %c11_335 = arith.constant 11 : index
    %888 = memref.load %arg1[%c1_334, %c11_335] : memref<2x49xf32, #tpu.memory_space<smem>>
    %889 = vector.broadcast %887 : f32 to vector<1x256xf32>
    %890 = arith.mulf %889, %751 : vector<1x256xf32>
    %891 = vector.broadcast %888 : f32 to vector<1x256xf32>
    %892 = arith.mulf %891, %753 : vector<1x256xf32>
    %893 = arith.addf %890, %892 : vector<1x256xf32>
    %c31_i32_336 = arith.constant 31 : i32
    %894 = tpu.dynamic_rotate %893 by %c31_i32_336 dim 1 : vector<1x256xf32>, i32 -> vector<1x256xf32>
    %895 = arith.andi %16, %66 : vector<1x256xi1>
    %cst_337 = arith.constant 0.000000e+00 : f32
    %896 = vector.broadcast %cst_337 : f32 to vector<1x256xf32>
    %897 = arith.select %895, %894, %896 : vector<1x256xi1>, vector<1x256xf32>
    %898 = arith.addf %886, %897 : vector<1x256xf32>
    %c0_338 = arith.constant 0 : index
    %c12_339 = arith.constant 12 : index
    %899 = memref.load %arg1[%c0_338, %c12_339] : memref<2x49xf32, #tpu.memory_space<smem>>
    %c1_340 = arith.constant 1 : index
    %c12_341 = arith.constant 12 : index
    %900 = memref.load %arg1[%c1_340, %c12_341] : memref<2x49xf32, #tpu.memory_space<smem>>
    %901 = vector.broadcast %899 : f32 to vector<1x256xf32>
    %902 = arith.mulf %901, %751 : vector<1x256xf32>
    %903 = vector.broadcast %900 : f32 to vector<1x256xf32>
    %904 = arith.mulf %903, %753 : vector<1x256xf32>
    %905 = arith.addf %902, %904 : vector<1x256xf32>
    %c30_i32_342 = arith.constant 30 : i32
    %906 = tpu.dynamic_rotate %905 by %c30_i32_342 dim 1 : vector<1x256xf32>, i32 -> vector<1x256xf32>
    %907 = arith.andi %16, %71 : vector<1x256xi1>
    %cst_343 = arith.constant 0.000000e+00 : f32
    %908 = vector.broadcast %cst_343 : f32 to vector<1x256xf32>
    %909 = arith.select %907, %906, %908 : vector<1x256xi1>, vector<1x256xf32>
    %910 = arith.addf %898, %909 : vector<1x256xf32>
    %c0_344 = arith.constant 0 : index
    %c13_345 = arith.constant 13 : index
    %911 = memref.load %arg1[%c0_344, %c13_345] : memref<2x49xf32, #tpu.memory_space<smem>>
    %c1_346 = arith.constant 1 : index
    %c13_347 = arith.constant 13 : index
    %912 = memref.load %arg1[%c1_346, %c13_347] : memref<2x49xf32, #tpu.memory_space<smem>>
    %913 = vector.broadcast %911 : f32 to vector<1x256xf32>
    %914 = arith.mulf %913, %751 : vector<1x256xf32>
    %915 = vector.broadcast %912 : f32 to vector<1x256xf32>
    %916 = arith.mulf %915, %753 : vector<1x256xf32>
    %917 = arith.addf %914, %916 : vector<1x256xf32>
    %c29_i32_348 = arith.constant 29 : i32
    %918 = tpu.dynamic_rotate %917 by %c29_i32_348 dim 1 : vector<1x256xf32>, i32 -> vector<1x256xf32>
    %919 = arith.andi %16, %76 : vector<1x256xi1>
    %cst_349 = arith.constant 0.000000e+00 : f32
    %920 = vector.broadcast %cst_349 : f32 to vector<1x256xf32>
    %921 = arith.select %919, %918, %920 : vector<1x256xi1>, vector<1x256xf32>
    %922 = arith.addf %910, %921 : vector<1x256xf32>
    %c0_350 = arith.constant 0 : index
    %c14_351 = arith.constant 14 : index
    %923 = memref.load %arg1[%c0_350, %c14_351] : memref<2x49xf32, #tpu.memory_space<smem>>
    %c1_352 = arith.constant 1 : index
    %c14_353 = arith.constant 14 : index
    %924 = memref.load %arg1[%c1_352, %c14_353] : memref<2x49xf32, #tpu.memory_space<smem>>
    %925 = vector.broadcast %923 : f32 to vector<1x256xf32>
    %926 = arith.mulf %925, %751 : vector<1x256xf32>
    %927 = vector.broadcast %924 : f32 to vector<1x256xf32>
    %928 = arith.mulf %927, %753 : vector<1x256xf32>
    %929 = arith.addf %926, %928 : vector<1x256xf32>
    %c19_i32_354 = arith.constant 19 : i32
    %930 = tpu.dynamic_rotate %929 by %c19_i32_354 dim 1 : vector<1x256xf32>, i32 -> vector<1x256xf32>
    %931 = arith.andi %21, %46 : vector<1x256xi1>
    %cst_355 = arith.constant 0.000000e+00 : f32
    %932 = vector.broadcast %cst_355 : f32 to vector<1x256xf32>
    %933 = arith.select %931, %930, %932 : vector<1x256xi1>, vector<1x256xf32>
    %934 = arith.addf %922, %933 : vector<1x256xf32>
    %c0_356 = arith.constant 0 : index
    %c15_357 = arith.constant 15 : index
    %935 = memref.load %arg1[%c0_356, %c15_357] : memref<2x49xf32, #tpu.memory_space<smem>>
    %c1_358 = arith.constant 1 : index
    %c15_359 = arith.constant 15 : index
    %936 = memref.load %arg1[%c1_358, %c15_359] : memref<2x49xf32, #tpu.memory_space<smem>>
    %937 = vector.broadcast %935 : f32 to vector<1x256xf32>
    %938 = arith.mulf %937, %751 : vector<1x256xf32>
    %939 = vector.broadcast %936 : f32 to vector<1x256xf32>
    %940 = arith.mulf %939, %753 : vector<1x256xf32>
    %941 = arith.addf %938, %940 : vector<1x256xf32>
    %c18_i32_360 = arith.constant 18 : i32
    %942 = tpu.dynamic_rotate %941 by %c18_i32_360 dim 1 : vector<1x256xf32>, i32 -> vector<1x256xf32>
    %943 = arith.andi %21, %51 : vector<1x256xi1>
    %cst_361 = arith.constant 0.000000e+00 : f32
    %944 = vector.broadcast %cst_361 : f32 to vector<1x256xf32>
    %945 = arith.select %943, %942, %944 : vector<1x256xi1>, vector<1x256xf32>
    %946 = arith.addf %934, %945 : vector<1x256xf32>
    %c0_362 = arith.constant 0 : index
    %c16_363 = arith.constant 16 : index
    %947 = memref.load %arg1[%c0_362, %c16_363] : memref<2x49xf32, #tpu.memory_space<smem>>
    %c1_364 = arith.constant 1 : index
    %c16_365 = arith.constant 16 : index
    %948 = memref.load %arg1[%c1_364, %c16_365] : memref<2x49xf32, #tpu.memory_space<smem>>
    %949 = vector.broadcast %947 : f32 to vector<1x256xf32>
    %950 = arith.mulf %949, %751 : vector<1x256xf32>
    %951 = vector.broadcast %948 : f32 to vector<1x256xf32>
    %952 = arith.mulf %951, %753 : vector<1x256xf32>
    %953 = arith.addf %950, %952 : vector<1x256xf32>
    %c17_i32_366 = arith.constant 17 : i32
    %954 = tpu.dynamic_rotate %953 by %c17_i32_366 dim 1 : vector<1x256xf32>, i32 -> vector<1x256xf32>
    %955 = arith.andi %21, %56 : vector<1x256xi1>
    %cst_367 = arith.constant 0.000000e+00 : f32
    %956 = vector.broadcast %cst_367 : f32 to vector<1x256xf32>
    %957 = arith.select %955, %954, %956 : vector<1x256xi1>, vector<1x256xf32>
    %958 = arith.addf %946, %957 : vector<1x256xf32>
    %c0_368 = arith.constant 0 : index
    %c17_369 = arith.constant 17 : index
    %959 = memref.load %arg1[%c0_368, %c17_369] : memref<2x49xf32, #tpu.memory_space<smem>>
    %c1_370 = arith.constant 1 : index
    %c17_371 = arith.constant 17 : index
    %960 = memref.load %arg1[%c1_370, %c17_371] : memref<2x49xf32, #tpu.memory_space<smem>>
    %961 = vector.broadcast %959 : f32 to vector<1x256xf32>
    %962 = arith.mulf %961, %751 : vector<1x256xf32>
    %963 = vector.broadcast %960 : f32 to vector<1x256xf32>
    %964 = arith.mulf %963, %753 : vector<1x256xf32>
    %965 = arith.addf %962, %964 : vector<1x256xf32>
    %c16_i32_372 = arith.constant 16 : i32
    %966 = tpu.dynamic_rotate %965 by %c16_i32_372 dim 1 : vector<1x256xf32>, i32 -> vector<1x256xf32>
    %967 = arith.andi %21, %61 : vector<1x256xi1>
    %cst_373 = arith.constant 0.000000e+00 : f32
    %968 = vector.broadcast %cst_373 : f32 to vector<1x256xf32>
    %969 = arith.select %967, %966, %968 : vector<1x256xi1>, vector<1x256xf32>
    %970 = arith.addf %958, %969 : vector<1x256xf32>
    %c0_374 = arith.constant 0 : index
    %c18_375 = arith.constant 18 : index
    %971 = memref.load %arg1[%c0_374, %c18_375] : memref<2x49xf32, #tpu.memory_space<smem>>
    %c1_376 = arith.constant 1 : index
    %c18_377 = arith.constant 18 : index
    %972 = memref.load %arg1[%c1_376, %c18_377] : memref<2x49xf32, #tpu.memory_space<smem>>
    %973 = vector.broadcast %971 : f32 to vector<1x256xf32>
    %974 = arith.mulf %973, %751 : vector<1x256xf32>
    %975 = vector.broadcast %972 : f32 to vector<1x256xf32>
    %976 = arith.mulf %975, %753 : vector<1x256xf32>
    %977 = arith.addf %974, %976 : vector<1x256xf32>
    %c15_i32_378 = arith.constant 15 : i32
    %978 = tpu.dynamic_rotate %977 by %c15_i32_378 dim 1 : vector<1x256xf32>, i32 -> vector<1x256xf32>
    %979 = arith.andi %21, %66 : vector<1x256xi1>
    %cst_379 = arith.constant 0.000000e+00 : f32
    %980 = vector.broadcast %cst_379 : f32 to vector<1x256xf32>
    %981 = arith.select %979, %978, %980 : vector<1x256xi1>, vector<1x256xf32>
    %982 = arith.addf %970, %981 : vector<1x256xf32>
    %c0_380 = arith.constant 0 : index
    %c19_381 = arith.constant 19 : index
    %983 = memref.load %arg1[%c0_380, %c19_381] : memref<2x49xf32, #tpu.memory_space<smem>>
    %c1_382 = arith.constant 1 : index
    %c19_383 = arith.constant 19 : index
    %984 = memref.load %arg1[%c1_382, %c19_383] : memref<2x49xf32, #tpu.memory_space<smem>>
    %985 = vector.broadcast %983 : f32 to vector<1x256xf32>
    %986 = arith.mulf %985, %751 : vector<1x256xf32>
    %987 = vector.broadcast %984 : f32 to vector<1x256xf32>
    %988 = arith.mulf %987, %753 : vector<1x256xf32>
    %989 = arith.addf %986, %988 : vector<1x256xf32>
    %c14_i32_384 = arith.constant 14 : i32
    %990 = tpu.dynamic_rotate %989 by %c14_i32_384 dim 1 : vector<1x256xf32>, i32 -> vector<1x256xf32>
    %991 = arith.andi %21, %71 : vector<1x256xi1>
    %cst_385 = arith.constant 0.000000e+00 : f32
    %992 = vector.broadcast %cst_385 : f32 to vector<1x256xf32>
    %993 = arith.select %991, %990, %992 : vector<1x256xi1>, vector<1x256xf32>
    %994 = arith.addf %982, %993 : vector<1x256xf32>
    %c0_386 = arith.constant 0 : index
    %c20_387 = arith.constant 20 : index
    %995 = memref.load %arg1[%c0_386, %c20_387] : memref<2x49xf32, #tpu.memory_space<smem>>
    %c1_388 = arith.constant 1 : index
    %c20_389 = arith.constant 20 : index
    %996 = memref.load %arg1[%c1_388, %c20_389] : memref<2x49xf32, #tpu.memory_space<smem>>
    %997 = vector.broadcast %995 : f32 to vector<1x256xf32>
    %998 = arith.mulf %997, %751 : vector<1x256xf32>
    %999 = vector.broadcast %996 : f32 to vector<1x256xf32>
    %1000 = arith.mulf %999, %753 : vector<1x256xf32>
    %1001 = arith.addf %998, %1000 : vector<1x256xf32>
    %c13_i32_390 = arith.constant 13 : i32
    %1002 = tpu.dynamic_rotate %1001 by %c13_i32_390 dim 1 : vector<1x256xf32>, i32 -> vector<1x256xf32>
    %1003 = arith.andi %21, %76 : vector<1x256xi1>
    %cst_391 = arith.constant 0.000000e+00 : f32
    %1004 = vector.broadcast %cst_391 : f32 to vector<1x256xf32>
    %1005 = arith.select %1003, %1002, %1004 : vector<1x256xi1>, vector<1x256xf32>
    %1006 = arith.addf %994, %1005 : vector<1x256xf32>
    %c0_392 = arith.constant 0 : index
    %c21_393 = arith.constant 21 : index
    %1007 = memref.load %arg1[%c0_392, %c21_393] : memref<2x49xf32, #tpu.memory_space<smem>>
    %c1_394 = arith.constant 1 : index
    %c21_395 = arith.constant 21 : index
    %1008 = memref.load %arg1[%c1_394, %c21_395] : memref<2x49xf32, #tpu.memory_space<smem>>
    %1009 = vector.broadcast %1007 : f32 to vector<1x256xf32>
    %1010 = arith.mulf %1009, %751 : vector<1x256xf32>
    %1011 = vector.broadcast %1008 : f32 to vector<1x256xf32>
    %1012 = arith.mulf %1011, %753 : vector<1x256xf32>
    %1013 = arith.addf %1010, %1012 : vector<1x256xf32>
    %c3_i32_396 = arith.constant 3 : i32
    %1014 = tpu.dynamic_rotate %1013 by %c3_i32_396 dim 1 : vector<1x256xf32>, i32 -> vector<1x256xf32>
    %1015 = arith.andi %26, %46 : vector<1x256xi1>
    %cst_397 = arith.constant 0.000000e+00 : f32
    %1016 = vector.broadcast %cst_397 : f32 to vector<1x256xf32>
    %1017 = arith.select %1015, %1014, %1016 : vector<1x256xi1>, vector<1x256xf32>
    %1018 = arith.addf %1006, %1017 : vector<1x256xf32>
    %c0_398 = arith.constant 0 : index
    %c22_399 = arith.constant 22 : index
    %1019 = memref.load %arg1[%c0_398, %c22_399] : memref<2x49xf32, #tpu.memory_space<smem>>
    %c1_400 = arith.constant 1 : index
    %c22_401 = arith.constant 22 : index
    %1020 = memref.load %arg1[%c1_400, %c22_401] : memref<2x49xf32, #tpu.memory_space<smem>>
    %1021 = vector.broadcast %1019 : f32 to vector<1x256xf32>
    %1022 = arith.mulf %1021, %751 : vector<1x256xf32>
    %1023 = vector.broadcast %1020 : f32 to vector<1x256xf32>
    %1024 = arith.mulf %1023, %753 : vector<1x256xf32>
    %1025 = arith.addf %1022, %1024 : vector<1x256xf32>
    %c2_i32_402 = arith.constant 2 : i32
    %1026 = tpu.dynamic_rotate %1025 by %c2_i32_402 dim 1 : vector<1x256xf32>, i32 -> vector<1x256xf32>
    %1027 = arith.andi %26, %51 : vector<1x256xi1>
    %cst_403 = arith.constant 0.000000e+00 : f32
    %1028 = vector.broadcast %cst_403 : f32 to vector<1x256xf32>
    %1029 = arith.select %1027, %1026, %1028 : vector<1x256xi1>, vector<1x256xf32>
    %1030 = arith.addf %1018, %1029 : vector<1x256xf32>
    %c0_404 = arith.constant 0 : index
    %c23_405 = arith.constant 23 : index
    %1031 = memref.load %arg1[%c0_404, %c23_405] : memref<2x49xf32, #tpu.memory_space<smem>>
    %c1_406 = arith.constant 1 : index
    %c23_407 = arith.constant 23 : index
    %1032 = memref.load %arg1[%c1_406, %c23_407] : memref<2x49xf32, #tpu.memory_space<smem>>
    %1033 = vector.broadcast %1031 : f32 to vector<1x256xf32>
    %1034 = arith.mulf %1033, %751 : vector<1x256xf32>
    %1035 = vector.broadcast %1032 : f32 to vector<1x256xf32>
    %1036 = arith.mulf %1035, %753 : vector<1x256xf32>
    %1037 = arith.addf %1034, %1036 : vector<1x256xf32>
    %c1_i32_408 = arith.constant 1 : i32
    %1038 = tpu.dynamic_rotate %1037 by %c1_i32_408 dim 1 : vector<1x256xf32>, i32 -> vector<1x256xf32>
    %1039 = arith.andi %26, %56 : vector<1x256xi1>
    %cst_409 = arith.constant 0.000000e+00 : f32
    %1040 = vector.broadcast %cst_409 : f32 to vector<1x256xf32>
    %1041 = arith.select %1039, %1038, %1040 : vector<1x256xi1>, vector<1x256xf32>
    %1042 = arith.addf %1030, %1041 : vector<1x256xf32>
    %c0_410 = arith.constant 0 : index
    %c24_411 = arith.constant 24 : index
    %1043 = memref.load %arg1[%c0_410, %c24_411] : memref<2x49xf32, #tpu.memory_space<smem>>
    %c1_412 = arith.constant 1 : index
    %c24_413 = arith.constant 24 : index
    %1044 = memref.load %arg1[%c1_412, %c24_413] : memref<2x49xf32, #tpu.memory_space<smem>>
    %1045 = vector.broadcast %1043 : f32 to vector<1x256xf32>
    %1046 = arith.mulf %1045, %751 : vector<1x256xf32>
    %1047 = vector.broadcast %1044 : f32 to vector<1x256xf32>
    %1048 = arith.mulf %1047, %753 : vector<1x256xf32>
    %1049 = arith.addf %1046, %1048 : vector<1x256xf32>
    %1050 = arith.andi %26, %61 : vector<1x256xi1>
    %cst_414 = arith.constant 0.000000e+00 : f32
    %1051 = vector.broadcast %cst_414 : f32 to vector<1x256xf32>
    %1052 = arith.select %1050, %1049, %1051 : vector<1x256xi1>, vector<1x256xf32>
    %1053 = arith.addf %1042, %1052 : vector<1x256xf32>
    %c0_415 = arith.constant 0 : index
    %c25_416 = arith.constant 25 : index
    %1054 = memref.load %arg1[%c0_415, %c25_416] : memref<2x49xf32, #tpu.memory_space<smem>>
    %c1_417 = arith.constant 1 : index
    %c25_418 = arith.constant 25 : index
    %1055 = memref.load %arg1[%c1_417, %c25_418] : memref<2x49xf32, #tpu.memory_space<smem>>
    %1056 = vector.broadcast %1054 : f32 to vector<1x256xf32>
    %1057 = arith.mulf %1056, %751 : vector<1x256xf32>
    %1058 = vector.broadcast %1055 : f32 to vector<1x256xf32>
    %1059 = arith.mulf %1058, %753 : vector<1x256xf32>
    %1060 = arith.addf %1057, %1059 : vector<1x256xf32>
    %c255_i32_419 = arith.constant 255 : i32
    %1061 = tpu.dynamic_rotate %1060 by %c255_i32_419 dim 1 : vector<1x256xf32>, i32 -> vector<1x256xf32>
    %1062 = arith.andi %26, %66 : vector<1x256xi1>
    %cst_420 = arith.constant 0.000000e+00 : f32
    %1063 = vector.broadcast %cst_420 : f32 to vector<1x256xf32>
    %1064 = arith.select %1062, %1061, %1063 : vector<1x256xi1>, vector<1x256xf32>
    %1065 = arith.addf %1053, %1064 : vector<1x256xf32>
    %c0_421 = arith.constant 0 : index
    %c26_422 = arith.constant 26 : index
    %1066 = memref.load %arg1[%c0_421, %c26_422] : memref<2x49xf32, #tpu.memory_space<smem>>
    %c1_423 = arith.constant 1 : index
    %c26_424 = arith.constant 26 : index
    %1067 = memref.load %arg1[%c1_423, %c26_424] : memref<2x49xf32, #tpu.memory_space<smem>>
    %1068 = vector.broadcast %1066 : f32 to vector<1x256xf32>
    %1069 = arith.mulf %1068, %751 : vector<1x256xf32>
    %1070 = vector.broadcast %1067 : f32 to vector<1x256xf32>
    %1071 = arith.mulf %1070, %753 : vector<1x256xf32>
    %1072 = arith.addf %1069, %1071 : vector<1x256xf32>
    %c254_i32_425 = arith.constant 254 : i32
    %1073 = tpu.dynamic_rotate %1072 by %c254_i32_425 dim 1 : vector<1x256xf32>, i32 -> vector<1x256xf32>
    %1074 = arith.andi %26, %71 : vector<1x256xi1>
    %cst_426 = arith.constant 0.000000e+00 : f32
    %1075 = vector.broadcast %cst_426 : f32 to vector<1x256xf32>
    %1076 = arith.select %1074, %1073, %1075 : vector<1x256xi1>, vector<1x256xf32>
    %1077 = arith.addf %1065, %1076 : vector<1x256xf32>
    %c0_427 = arith.constant 0 : index
    %c27_428 = arith.constant 27 : index
    %1078 = memref.load %arg1[%c0_427, %c27_428] : memref<2x49xf32, #tpu.memory_space<smem>>
    %c1_429 = arith.constant 1 : index
    %c27_430 = arith.constant 27 : index
    %1079 = memref.load %arg1[%c1_429, %c27_430] : memref<2x49xf32, #tpu.memory_space<smem>>
    %1080 = vector.broadcast %1078 : f32 to vector<1x256xf32>
    %1081 = arith.mulf %1080, %751 : vector<1x256xf32>
    %1082 = vector.broadcast %1079 : f32 to vector<1x256xf32>
    %1083 = arith.mulf %1082, %753 : vector<1x256xf32>
    %1084 = arith.addf %1081, %1083 : vector<1x256xf32>
    %c253_i32_431 = arith.constant 253 : i32
    %1085 = tpu.dynamic_rotate %1084 by %c253_i32_431 dim 1 : vector<1x256xf32>, i32 -> vector<1x256xf32>
    %1086 = arith.andi %26, %76 : vector<1x256xi1>
    %cst_432 = arith.constant 0.000000e+00 : f32
    %1087 = vector.broadcast %cst_432 : f32 to vector<1x256xf32>
    %1088 = arith.select %1086, %1085, %1087 : vector<1x256xi1>, vector<1x256xf32>
    %1089 = arith.addf %1077, %1088 : vector<1x256xf32>
    %c0_433 = arith.constant 0 : index
    %c28_434 = arith.constant 28 : index
    %1090 = memref.load %arg1[%c0_433, %c28_434] : memref<2x49xf32, #tpu.memory_space<smem>>
    %c1_435 = arith.constant 1 : index
    %c28_436 = arith.constant 28 : index
    %1091 = memref.load %arg1[%c1_435, %c28_436] : memref<2x49xf32, #tpu.memory_space<smem>>
    %1092 = vector.broadcast %1090 : f32 to vector<1x256xf32>
    %1093 = arith.mulf %1092, %751 : vector<1x256xf32>
    %1094 = vector.broadcast %1091 : f32 to vector<1x256xf32>
    %1095 = arith.mulf %1094, %753 : vector<1x256xf32>
    %1096 = arith.addf %1093, %1095 : vector<1x256xf32>
    %c243_i32_437 = arith.constant 243 : i32
    %1097 = tpu.dynamic_rotate %1096 by %c243_i32_437 dim 1 : vector<1x256xf32>, i32 -> vector<1x256xf32>
    %1098 = arith.andi %31, %46 : vector<1x256xi1>
    %cst_438 = arith.constant 0.000000e+00 : f32
    %1099 = vector.broadcast %cst_438 : f32 to vector<1x256xf32>
    %1100 = arith.select %1098, %1097, %1099 : vector<1x256xi1>, vector<1x256xf32>
    %1101 = arith.addf %1089, %1100 : vector<1x256xf32>
    %c0_439 = arith.constant 0 : index
    %c29_440 = arith.constant 29 : index
    %1102 = memref.load %arg1[%c0_439, %c29_440] : memref<2x49xf32, #tpu.memory_space<smem>>
    %c1_441 = arith.constant 1 : index
    %c29_442 = arith.constant 29 : index
    %1103 = memref.load %arg1[%c1_441, %c29_442] : memref<2x49xf32, #tpu.memory_space<smem>>
    %1104 = vector.broadcast %1102 : f32 to vector<1x256xf32>
    %1105 = arith.mulf %1104, %751 : vector<1x256xf32>
    %1106 = vector.broadcast %1103 : f32 to vector<1x256xf32>
    %1107 = arith.mulf %1106, %753 : vector<1x256xf32>
    %1108 = arith.addf %1105, %1107 : vector<1x256xf32>
    %c242_i32_443 = arith.constant 242 : i32
    %1109 = tpu.dynamic_rotate %1108 by %c242_i32_443 dim 1 : vector<1x256xf32>, i32 -> vector<1x256xf32>
    %1110 = arith.andi %31, %51 : vector<1x256xi1>
    %cst_444 = arith.constant 0.000000e+00 : f32
    %1111 = vector.broadcast %cst_444 : f32 to vector<1x256xf32>
    %1112 = arith.select %1110, %1109, %1111 : vector<1x256xi1>, vector<1x256xf32>
    %1113 = arith.addf %1101, %1112 : vector<1x256xf32>
    %c0_445 = arith.constant 0 : index
    %c30_446 = arith.constant 30 : index
    %1114 = memref.load %arg1[%c0_445, %c30_446] : memref<2x49xf32, #tpu.memory_space<smem>>
    %c1_447 = arith.constant 1 : index
    %c30_448 = arith.constant 30 : index
    %1115 = memref.load %arg1[%c1_447, %c30_448] : memref<2x49xf32, #tpu.memory_space<smem>>
    %1116 = vector.broadcast %1114 : f32 to vector<1x256xf32>
    %1117 = arith.mulf %1116, %751 : vector<1x256xf32>
    %1118 = vector.broadcast %1115 : f32 to vector<1x256xf32>
    %1119 = arith.mulf %1118, %753 : vector<1x256xf32>
    %1120 = arith.addf %1117, %1119 : vector<1x256xf32>
    %c241_i32_449 = arith.constant 241 : i32
    %1121 = tpu.dynamic_rotate %1120 by %c241_i32_449 dim 1 : vector<1x256xf32>, i32 -> vector<1x256xf32>
    %1122 = arith.andi %31, %56 : vector<1x256xi1>
    %cst_450 = arith.constant 0.000000e+00 : f32
    %1123 = vector.broadcast %cst_450 : f32 to vector<1x256xf32>
    %1124 = arith.select %1122, %1121, %1123 : vector<1x256xi1>, vector<1x256xf32>
    %1125 = arith.addf %1113, %1124 : vector<1x256xf32>
    %c0_451 = arith.constant 0 : index
    %c31_452 = arith.constant 31 : index
    %1126 = memref.load %arg1[%c0_451, %c31_452] : memref<2x49xf32, #tpu.memory_space<smem>>
    %c1_453 = arith.constant 1 : index
    %c31_454 = arith.constant 31 : index
    %1127 = memref.load %arg1[%c1_453, %c31_454] : memref<2x49xf32, #tpu.memory_space<smem>>
    %1128 = vector.broadcast %1126 : f32 to vector<1x256xf32>
    %1129 = arith.mulf %1128, %751 : vector<1x256xf32>
    %1130 = vector.broadcast %1127 : f32 to vector<1x256xf32>
    %1131 = arith.mulf %1130, %753 : vector<1x256xf32>
    %1132 = arith.addf %1129, %1131 : vector<1x256xf32>
    %c240_i32_455 = arith.constant 240 : i32
    %1133 = tpu.dynamic_rotate %1132 by %c240_i32_455 dim 1 : vector<1x256xf32>, i32 -> vector<1x256xf32>
    %1134 = arith.andi %31, %61 : vector<1x256xi1>
    %cst_456 = arith.constant 0.000000e+00 : f32
    %1135 = vector.broadcast %cst_456 : f32 to vector<1x256xf32>
    %1136 = arith.select %1134, %1133, %1135 : vector<1x256xi1>, vector<1x256xf32>
    %1137 = arith.addf %1125, %1136 : vector<1x256xf32>
    %c0_457 = arith.constant 0 : index
    %c32_458 = arith.constant 32 : index
    %1138 = memref.load %arg1[%c0_457, %c32_458] : memref<2x49xf32, #tpu.memory_space<smem>>
    %c1_459 = arith.constant 1 : index
    %c32_460 = arith.constant 32 : index
    %1139 = memref.load %arg1[%c1_459, %c32_460] : memref<2x49xf32, #tpu.memory_space<smem>>
    %1140 = vector.broadcast %1138 : f32 to vector<1x256xf32>
    %1141 = arith.mulf %1140, %751 : vector<1x256xf32>
    %1142 = vector.broadcast %1139 : f32 to vector<1x256xf32>
    %1143 = arith.mulf %1142, %753 : vector<1x256xf32>
    %1144 = arith.addf %1141, %1143 : vector<1x256xf32>
    %c239_i32_461 = arith.constant 239 : i32
    %1145 = tpu.dynamic_rotate %1144 by %c239_i32_461 dim 1 : vector<1x256xf32>, i32 -> vector<1x256xf32>
    %1146 = arith.andi %31, %66 : vector<1x256xi1>
    %cst_462 = arith.constant 0.000000e+00 : f32
    %1147 = vector.broadcast %cst_462 : f32 to vector<1x256xf32>
    %1148 = arith.select %1146, %1145, %1147 : vector<1x256xi1>, vector<1x256xf32>
    %1149 = arith.addf %1137, %1148 : vector<1x256xf32>
    %c0_463 = arith.constant 0 : index
    %c33_464 = arith.constant 33 : index
    %1150 = memref.load %arg1[%c0_463, %c33_464] : memref<2x49xf32, #tpu.memory_space<smem>>
    %c1_465 = arith.constant 1 : index
    %c33_466 = arith.constant 33 : index
    %1151 = memref.load %arg1[%c1_465, %c33_466] : memref<2x49xf32, #tpu.memory_space<smem>>
    %1152 = vector.broadcast %1150 : f32 to vector<1x256xf32>
    %1153 = arith.mulf %1152, %751 : vector<1x256xf32>
    %1154 = vector.broadcast %1151 : f32 to vector<1x256xf32>
    %1155 = arith.mulf %1154, %753 : vector<1x256xf32>
    %1156 = arith.addf %1153, %1155 : vector<1x256xf32>
    %c238_i32_467 = arith.constant 238 : i32
    %1157 = tpu.dynamic_rotate %1156 by %c238_i32_467 dim 1 : vector<1x256xf32>, i32 -> vector<1x256xf32>
    %1158 = arith.andi %31, %71 : vector<1x256xi1>
    %cst_468 = arith.constant 0.000000e+00 : f32
    %1159 = vector.broadcast %cst_468 : f32 to vector<1x256xf32>
    %1160 = arith.select %1158, %1157, %1159 : vector<1x256xi1>, vector<1x256xf32>
    %1161 = arith.addf %1149, %1160 : vector<1x256xf32>
    %c0_469 = arith.constant 0 : index
    %c34_470 = arith.constant 34 : index
    %1162 = memref.load %arg1[%c0_469, %c34_470] : memref<2x49xf32, #tpu.memory_space<smem>>
    %c1_471 = arith.constant 1 : index
    %c34_472 = arith.constant 34 : index
    %1163 = memref.load %arg1[%c1_471, %c34_472] : memref<2x49xf32, #tpu.memory_space<smem>>
    %1164 = vector.broadcast %1162 : f32 to vector<1x256xf32>
    %1165 = arith.mulf %1164, %751 : vector<1x256xf32>
    %1166 = vector.broadcast %1163 : f32 to vector<1x256xf32>
    %1167 = arith.mulf %1166, %753 : vector<1x256xf32>
    %1168 = arith.addf %1165, %1167 : vector<1x256xf32>
    %c237_i32_473 = arith.constant 237 : i32
    %1169 = tpu.dynamic_rotate %1168 by %c237_i32_473 dim 1 : vector<1x256xf32>, i32 -> vector<1x256xf32>
    %1170 = arith.andi %31, %76 : vector<1x256xi1>
    %cst_474 = arith.constant 0.000000e+00 : f32
    %1171 = vector.broadcast %cst_474 : f32 to vector<1x256xf32>
    %1172 = arith.select %1170, %1169, %1171 : vector<1x256xi1>, vector<1x256xf32>
    %1173 = arith.addf %1161, %1172 : vector<1x256xf32>
    %c0_475 = arith.constant 0 : index
    %c35_476 = arith.constant 35 : index
    %1174 = memref.load %arg1[%c0_475, %c35_476] : memref<2x49xf32, #tpu.memory_space<smem>>
    %c1_477 = arith.constant 1 : index
    %c35_478 = arith.constant 35 : index
    %1175 = memref.load %arg1[%c1_477, %c35_478] : memref<2x49xf32, #tpu.memory_space<smem>>
    %1176 = vector.broadcast %1174 : f32 to vector<1x256xf32>
    %1177 = arith.mulf %1176, %751 : vector<1x256xf32>
    %1178 = vector.broadcast %1175 : f32 to vector<1x256xf32>
    %1179 = arith.mulf %1178, %753 : vector<1x256xf32>
    %1180 = arith.addf %1177, %1179 : vector<1x256xf32>
    %c227_i32_479 = arith.constant 227 : i32
    %1181 = tpu.dynamic_rotate %1180 by %c227_i32_479 dim 1 : vector<1x256xf32>, i32 -> vector<1x256xf32>
    %1182 = arith.andi %36, %46 : vector<1x256xi1>
    %cst_480 = arith.constant 0.000000e+00 : f32
    %1183 = vector.broadcast %cst_480 : f32 to vector<1x256xf32>
    %1184 = arith.select %1182, %1181, %1183 : vector<1x256xi1>, vector<1x256xf32>
    %1185 = arith.addf %1173, %1184 : vector<1x256xf32>
    %c0_481 = arith.constant 0 : index
    %c36_482 = arith.constant 36 : index
    %1186 = memref.load %arg1[%c0_481, %c36_482] : memref<2x49xf32, #tpu.memory_space<smem>>
    %c1_483 = arith.constant 1 : index
    %c36_484 = arith.constant 36 : index
    %1187 = memref.load %arg1[%c1_483, %c36_484] : memref<2x49xf32, #tpu.memory_space<smem>>
    %1188 = vector.broadcast %1186 : f32 to vector<1x256xf32>
    %1189 = arith.mulf %1188, %751 : vector<1x256xf32>
    %1190 = vector.broadcast %1187 : f32 to vector<1x256xf32>
    %1191 = arith.mulf %1190, %753 : vector<1x256xf32>
    %1192 = arith.addf %1189, %1191 : vector<1x256xf32>
    %c226_i32_485 = arith.constant 226 : i32
    %1193 = tpu.dynamic_rotate %1192 by %c226_i32_485 dim 1 : vector<1x256xf32>, i32 -> vector<1x256xf32>
    %1194 = arith.andi %36, %51 : vector<1x256xi1>
    %cst_486 = arith.constant 0.000000e+00 : f32
    %1195 = vector.broadcast %cst_486 : f32 to vector<1x256xf32>
    %1196 = arith.select %1194, %1193, %1195 : vector<1x256xi1>, vector<1x256xf32>
    %1197 = arith.addf %1185, %1196 : vector<1x256xf32>
    %c0_487 = arith.constant 0 : index
    %c37_488 = arith.constant 37 : index
    %1198 = memref.load %arg1[%c0_487, %c37_488] : memref<2x49xf32, #tpu.memory_space<smem>>
    %c1_489 = arith.constant 1 : index
    %c37_490 = arith.constant 37 : index
    %1199 = memref.load %arg1[%c1_489, %c37_490] : memref<2x49xf32, #tpu.memory_space<smem>>
    %1200 = vector.broadcast %1198 : f32 to vector<1x256xf32>
    %1201 = arith.mulf %1200, %751 : vector<1x256xf32>
    %1202 = vector.broadcast %1199 : f32 to vector<1x256xf32>
    %1203 = arith.mulf %1202, %753 : vector<1x256xf32>
    %1204 = arith.addf %1201, %1203 : vector<1x256xf32>
    %c225_i32_491 = arith.constant 225 : i32
    %1205 = tpu.dynamic_rotate %1204 by %c225_i32_491 dim 1 : vector<1x256xf32>, i32 -> vector<1x256xf32>
    %1206 = arith.andi %36, %56 : vector<1x256xi1>
    %cst_492 = arith.constant 0.000000e+00 : f32
    %1207 = vector.broadcast %cst_492 : f32 to vector<1x256xf32>
    %1208 = arith.select %1206, %1205, %1207 : vector<1x256xi1>, vector<1x256xf32>
    %1209 = arith.addf %1197, %1208 : vector<1x256xf32>
    %c0_493 = arith.constant 0 : index
    %c38_494 = arith.constant 38 : index
    %1210 = memref.load %arg1[%c0_493, %c38_494] : memref<2x49xf32, #tpu.memory_space<smem>>
    %c1_495 = arith.constant 1 : index
    %c38_496 = arith.constant 38 : index
    %1211 = memref.load %arg1[%c1_495, %c38_496] : memref<2x49xf32, #tpu.memory_space<smem>>
    %1212 = vector.broadcast %1210 : f32 to vector<1x256xf32>
    %1213 = arith.mulf %1212, %751 : vector<1x256xf32>
    %1214 = vector.broadcast %1211 : f32 to vector<1x256xf32>
    %1215 = arith.mulf %1214, %753 : vector<1x256xf32>
    %1216 = arith.addf %1213, %1215 : vector<1x256xf32>
    %c224_i32_497 = arith.constant 224 : i32
    %1217 = tpu.dynamic_rotate %1216 by %c224_i32_497 dim 1 : vector<1x256xf32>, i32 -> vector<1x256xf32>
    %1218 = arith.andi %36, %61 : vector<1x256xi1>
    %cst_498 = arith.constant 0.000000e+00 : f32
    %1219 = vector.broadcast %cst_498 : f32 to vector<1x256xf32>
    %1220 = arith.select %1218, %1217, %1219 : vector<1x256xi1>, vector<1x256xf32>
    %1221 = arith.addf %1209, %1220 : vector<1x256xf32>
    %c0_499 = arith.constant 0 : index
    %c39_500 = arith.constant 39 : index
    %1222 = memref.load %arg1[%c0_499, %c39_500] : memref<2x49xf32, #tpu.memory_space<smem>>
    %c1_501 = arith.constant 1 : index
    %c39_502 = arith.constant 39 : index
    %1223 = memref.load %arg1[%c1_501, %c39_502] : memref<2x49xf32, #tpu.memory_space<smem>>
    %1224 = vector.broadcast %1222 : f32 to vector<1x256xf32>
    %1225 = arith.mulf %1224, %751 : vector<1x256xf32>
    %1226 = vector.broadcast %1223 : f32 to vector<1x256xf32>
    %1227 = arith.mulf %1226, %753 : vector<1x256xf32>
    %1228 = arith.addf %1225, %1227 : vector<1x256xf32>
    %c223_i32_503 = arith.constant 223 : i32
    %1229 = tpu.dynamic_rotate %1228 by %c223_i32_503 dim 1 : vector<1x256xf32>, i32 -> vector<1x256xf32>
    %1230 = arith.andi %36, %66 : vector<1x256xi1>
    %cst_504 = arith.constant 0.000000e+00 : f32
    %1231 = vector.broadcast %cst_504 : f32 to vector<1x256xf32>
    %1232 = arith.select %1230, %1229, %1231 : vector<1x256xi1>, vector<1x256xf32>
    %1233 = arith.addf %1221, %1232 : vector<1x256xf32>
    %c0_505 = arith.constant 0 : index
    %c40_506 = arith.constant 40 : index
    %1234 = memref.load %arg1[%c0_505, %c40_506] : memref<2x49xf32, #tpu.memory_space<smem>>
    %c1_507 = arith.constant 1 : index
    %c40_508 = arith.constant 40 : index
    %1235 = memref.load %arg1[%c1_507, %c40_508] : memref<2x49xf32, #tpu.memory_space<smem>>
    %1236 = vector.broadcast %1234 : f32 to vector<1x256xf32>
    %1237 = arith.mulf %1236, %751 : vector<1x256xf32>
    %1238 = vector.broadcast %1235 : f32 to vector<1x256xf32>
    %1239 = arith.mulf %1238, %753 : vector<1x256xf32>
    %1240 = arith.addf %1237, %1239 : vector<1x256xf32>
    %c222_i32_509 = arith.constant 222 : i32
    %1241 = tpu.dynamic_rotate %1240 by %c222_i32_509 dim 1 : vector<1x256xf32>, i32 -> vector<1x256xf32>
    %1242 = arith.andi %36, %71 : vector<1x256xi1>
    %cst_510 = arith.constant 0.000000e+00 : f32
    %1243 = vector.broadcast %cst_510 : f32 to vector<1x256xf32>
    %1244 = arith.select %1242, %1241, %1243 : vector<1x256xi1>, vector<1x256xf32>
    %1245 = arith.addf %1233, %1244 : vector<1x256xf32>
    %c0_511 = arith.constant 0 : index
    %c41_512 = arith.constant 41 : index
    %1246 = memref.load %arg1[%c0_511, %c41_512] : memref<2x49xf32, #tpu.memory_space<smem>>
    %c1_513 = arith.constant 1 : index
    %c41_514 = arith.constant 41 : index
    %1247 = memref.load %arg1[%c1_513, %c41_514] : memref<2x49xf32, #tpu.memory_space<smem>>
    %1248 = vector.broadcast %1246 : f32 to vector<1x256xf32>
    %1249 = arith.mulf %1248, %751 : vector<1x256xf32>
    %1250 = vector.broadcast %1247 : f32 to vector<1x256xf32>
    %1251 = arith.mulf %1250, %753 : vector<1x256xf32>
    %1252 = arith.addf %1249, %1251 : vector<1x256xf32>
    %c221_i32_515 = arith.constant 221 : i32
    %1253 = tpu.dynamic_rotate %1252 by %c221_i32_515 dim 1 : vector<1x256xf32>, i32 -> vector<1x256xf32>
    %1254 = arith.andi %36, %76 : vector<1x256xi1>
    %cst_516 = arith.constant 0.000000e+00 : f32
    %1255 = vector.broadcast %cst_516 : f32 to vector<1x256xf32>
    %1256 = arith.select %1254, %1253, %1255 : vector<1x256xi1>, vector<1x256xf32>
    %1257 = arith.addf %1245, %1256 : vector<1x256xf32>
    %c0_517 = arith.constant 0 : index
    %c42_518 = arith.constant 42 : index
    %1258 = memref.load %arg1[%c0_517, %c42_518] : memref<2x49xf32, #tpu.memory_space<smem>>
    %c1_519 = arith.constant 1 : index
    %c42_520 = arith.constant 42 : index
    %1259 = memref.load %arg1[%c1_519, %c42_520] : memref<2x49xf32, #tpu.memory_space<smem>>
    %1260 = vector.broadcast %1258 : f32 to vector<1x256xf32>
    %1261 = arith.mulf %1260, %751 : vector<1x256xf32>
    %1262 = vector.broadcast %1259 : f32 to vector<1x256xf32>
    %1263 = arith.mulf %1262, %753 : vector<1x256xf32>
    %1264 = arith.addf %1261, %1263 : vector<1x256xf32>
    %c211_i32_521 = arith.constant 211 : i32
    %1265 = tpu.dynamic_rotate %1264 by %c211_i32_521 dim 1 : vector<1x256xf32>, i32 -> vector<1x256xf32>
    %1266 = arith.andi %41, %46 : vector<1x256xi1>
    %cst_522 = arith.constant 0.000000e+00 : f32
    %1267 = vector.broadcast %cst_522 : f32 to vector<1x256xf32>
    %1268 = arith.select %1266, %1265, %1267 : vector<1x256xi1>, vector<1x256xf32>
    %1269 = arith.addf %1257, %1268 : vector<1x256xf32>
    %c0_523 = arith.constant 0 : index
    %c43_524 = arith.constant 43 : index
    %1270 = memref.load %arg1[%c0_523, %c43_524] : memref<2x49xf32, #tpu.memory_space<smem>>
    %c1_525 = arith.constant 1 : index
    %c43_526 = arith.constant 43 : index
    %1271 = memref.load %arg1[%c1_525, %c43_526] : memref<2x49xf32, #tpu.memory_space<smem>>
    %1272 = vector.broadcast %1270 : f32 to vector<1x256xf32>
    %1273 = arith.mulf %1272, %751 : vector<1x256xf32>
    %1274 = vector.broadcast %1271 : f32 to vector<1x256xf32>
    %1275 = arith.mulf %1274, %753 : vector<1x256xf32>
    %1276 = arith.addf %1273, %1275 : vector<1x256xf32>
    %c210_i32_527 = arith.constant 210 : i32
    %1277 = tpu.dynamic_rotate %1276 by %c210_i32_527 dim 1 : vector<1x256xf32>, i32 -> vector<1x256xf32>
    %1278 = arith.andi %41, %51 : vector<1x256xi1>
    %cst_528 = arith.constant 0.000000e+00 : f32
    %1279 = vector.broadcast %cst_528 : f32 to vector<1x256xf32>
    %1280 = arith.select %1278, %1277, %1279 : vector<1x256xi1>, vector<1x256xf32>
    %1281 = arith.addf %1269, %1280 : vector<1x256xf32>
    %c0_529 = arith.constant 0 : index
    %c44_530 = arith.constant 44 : index
    %1282 = memref.load %arg1[%c0_529, %c44_530] : memref<2x49xf32, #tpu.memory_space<smem>>
    %c1_531 = arith.constant 1 : index
    %c44_532 = arith.constant 44 : index
    %1283 = memref.load %arg1[%c1_531, %c44_532] : memref<2x49xf32, #tpu.memory_space<smem>>
    %1284 = vector.broadcast %1282 : f32 to vector<1x256xf32>
    %1285 = arith.mulf %1284, %751 : vector<1x256xf32>
    %1286 = vector.broadcast %1283 : f32 to vector<1x256xf32>
    %1287 = arith.mulf %1286, %753 : vector<1x256xf32>
    %1288 = arith.addf %1285, %1287 : vector<1x256xf32>
    %c209_i32_533 = arith.constant 209 : i32
    %1289 = tpu.dynamic_rotate %1288 by %c209_i32_533 dim 1 : vector<1x256xf32>, i32 -> vector<1x256xf32>
    %1290 = arith.andi %41, %56 : vector<1x256xi1>
    %cst_534 = arith.constant 0.000000e+00 : f32
    %1291 = vector.broadcast %cst_534 : f32 to vector<1x256xf32>
    %1292 = arith.select %1290, %1289, %1291 : vector<1x256xi1>, vector<1x256xf32>
    %1293 = arith.addf %1281, %1292 : vector<1x256xf32>
    %c0_535 = arith.constant 0 : index
    %c45_536 = arith.constant 45 : index
    %1294 = memref.load %arg1[%c0_535, %c45_536] : memref<2x49xf32, #tpu.memory_space<smem>>
    %c1_537 = arith.constant 1 : index
    %c45_538 = arith.constant 45 : index
    %1295 = memref.load %arg1[%c1_537, %c45_538] : memref<2x49xf32, #tpu.memory_space<smem>>
    %1296 = vector.broadcast %1294 : f32 to vector<1x256xf32>
    %1297 = arith.mulf %1296, %751 : vector<1x256xf32>
    %1298 = vector.broadcast %1295 : f32 to vector<1x256xf32>
    %1299 = arith.mulf %1298, %753 : vector<1x256xf32>
    %1300 = arith.addf %1297, %1299 : vector<1x256xf32>
    %c208_i32_539 = arith.constant 208 : i32
    %1301 = tpu.dynamic_rotate %1300 by %c208_i32_539 dim 1 : vector<1x256xf32>, i32 -> vector<1x256xf32>
    %1302 = arith.andi %41, %61 : vector<1x256xi1>
    %cst_540 = arith.constant 0.000000e+00 : f32
    %1303 = vector.broadcast %cst_540 : f32 to vector<1x256xf32>
    %1304 = arith.select %1302, %1301, %1303 : vector<1x256xi1>, vector<1x256xf32>
    %1305 = arith.addf %1293, %1304 : vector<1x256xf32>
    %c0_541 = arith.constant 0 : index
    %c46_542 = arith.constant 46 : index
    %1306 = memref.load %arg1[%c0_541, %c46_542] : memref<2x49xf32, #tpu.memory_space<smem>>
    %c1_543 = arith.constant 1 : index
    %c46_544 = arith.constant 46 : index
    %1307 = memref.load %arg1[%c1_543, %c46_544] : memref<2x49xf32, #tpu.memory_space<smem>>
    %1308 = vector.broadcast %1306 : f32 to vector<1x256xf32>
    %1309 = arith.mulf %1308, %751 : vector<1x256xf32>
    %1310 = vector.broadcast %1307 : f32 to vector<1x256xf32>
    %1311 = arith.mulf %1310, %753 : vector<1x256xf32>
    %1312 = arith.addf %1309, %1311 : vector<1x256xf32>
    %c207_i32_545 = arith.constant 207 : i32
    %1313 = tpu.dynamic_rotate %1312 by %c207_i32_545 dim 1 : vector<1x256xf32>, i32 -> vector<1x256xf32>
    %1314 = arith.andi %41, %66 : vector<1x256xi1>
    %cst_546 = arith.constant 0.000000e+00 : f32
    %1315 = vector.broadcast %cst_546 : f32 to vector<1x256xf32>
    %1316 = arith.select %1314, %1313, %1315 : vector<1x256xi1>, vector<1x256xf32>
    %1317 = arith.addf %1305, %1316 : vector<1x256xf32>
    %c0_547 = arith.constant 0 : index
    %c47_548 = arith.constant 47 : index
    %1318 = memref.load %arg1[%c0_547, %c47_548] : memref<2x49xf32, #tpu.memory_space<smem>>
    %c1_549 = arith.constant 1 : index
    %c47_550 = arith.constant 47 : index
    %1319 = memref.load %arg1[%c1_549, %c47_550] : memref<2x49xf32, #tpu.memory_space<smem>>
    %1320 = vector.broadcast %1318 : f32 to vector<1x256xf32>
    %1321 = arith.mulf %1320, %751 : vector<1x256xf32>
    %1322 = vector.broadcast %1319 : f32 to vector<1x256xf32>
    %1323 = arith.mulf %1322, %753 : vector<1x256xf32>
    %1324 = arith.addf %1321, %1323 : vector<1x256xf32>
    %c206_i32_551 = arith.constant 206 : i32
    %1325 = tpu.dynamic_rotate %1324 by %c206_i32_551 dim 1 : vector<1x256xf32>, i32 -> vector<1x256xf32>
    %1326 = arith.andi %41, %71 : vector<1x256xi1>
    %cst_552 = arith.constant 0.000000e+00 : f32
    %1327 = vector.broadcast %cst_552 : f32 to vector<1x256xf32>
    %1328 = arith.select %1326, %1325, %1327 : vector<1x256xi1>, vector<1x256xf32>
    %1329 = arith.addf %1317, %1328 : vector<1x256xf32>
    %c0_553 = arith.constant 0 : index
    %c48_554 = arith.constant 48 : index
    %1330 = memref.load %arg1[%c0_553, %c48_554] : memref<2x49xf32, #tpu.memory_space<smem>>
    %c1_555 = arith.constant 1 : index
    %c48_556 = arith.constant 48 : index
    %1331 = memref.load %arg1[%c1_555, %c48_556] : memref<2x49xf32, #tpu.memory_space<smem>>
    %1332 = vector.broadcast %1330 : f32 to vector<1x256xf32>
    %1333 = arith.mulf %1332, %751 : vector<1x256xf32>
    %1334 = vector.broadcast %1331 : f32 to vector<1x256xf32>
    %1335 = arith.mulf %1334, %753 : vector<1x256xf32>
    %1336 = arith.addf %1333, %1335 : vector<1x256xf32>
    %c205_i32_557 = arith.constant 205 : i32
    %1337 = tpu.dynamic_rotate %1336 by %c205_i32_557 dim 1 : vector<1x256xf32>, i32 -> vector<1x256xf32>
    %1338 = arith.andi %41, %76 : vector<1x256xi1>
    %cst_558 = arith.constant 0.000000e+00 : f32
    %1339 = vector.broadcast %cst_558 : f32 to vector<1x256xf32>
    %1340 = arith.select %1338, %1337, %1339 : vector<1x256xi1>, vector<1x256xf32>
    %1341 = arith.addf %1329, %1340 : vector<1x256xf32>
    %cst_559 = arith.constant 0.000000e+00 : f32
    %1342 = vector.broadcast %cst_559 : f32 to vector<1x256xf32>
    %1343 = arith.subf %1342, %1341 : vector<1x256xf32>
    %1344 = math.exp %1343 : vector<1x256xf32>
    %cst_560 = arith.constant 1.000000e+00 : f32
    %1345 = vector.broadcast %cst_560 : f32 to vector<1x256xf32>
    %1346 = arith.addf %1345, %1344 : vector<1x256xf32>
    %cst_561 = arith.constant 1.000000e+00 : f32
    %1347 = vector.broadcast %cst_561 : f32 to vector<1x256xf32>
    %1348 = arith.divf %1347, %1346 : vector<1x256xf32>
    %1349 = vector.broadcast %1348 : vector<1x256xf32> to vector<32x256xf32>
    %1350 = arith.mulf %747, %1349 : vector<32x256xf32>
    %c1_562 = arith.constant 1 : index
    %c0_563 = arith.constant 0 : index
    %c0_564 = arith.constant 0 : index
    %1351 = vector.load %arg5[%c1_562, %c0_563, %c0_564] : memref<2x32x256xf32, #tpu.memory_space<vmem>>, vector<1x32x256xf32>
    %1352 = vector.shape_cast %1351 : vector<1x32x256xf32> to vector<32x256xf32>
    %1353 = vector.shape_cast %1350 : vector<32x256xf32> to vector<1x32x256xf32>
    tpu.vector_store %arg5[%c1_562, %c0_563, %c0_564], %1353 {strides = array<i32>} : memref<2x32x256xf32, #tpu.memory_space<vmem>>, vector<1x32x256xf32>,
    return
  }
  func.func @transform_0(%arg0: i32, %arg1: memref<2x49xf32, #tpu.memory_space<smem>>) -> (i32, i32, i32) {
    %c0_i32 = arith.constant 0 : i32
    %c0_i32_0 = arith.constant 0 : i32
    %c0_i32_1 = arith.constant 0 : i32
    return %arg0, %c0_i32, %c0_i32_0 : i32, i32, i32
  }
  func.func @transform_1(%arg0: i32, %arg1: memref<2x49xf32, #tpu.memory_space<smem>>) -> (i32, i32) {
    %c0_i32 = arith.constant 0 : i32
    %c0_i32_0 = arith.constant 0 : i32
    %c0_i32_1 = arith.constant 0 : i32
    return %c0_i32, %c0_i32_0 : i32, i32
  }
  func.func @transform_2(%arg0: i32, %arg1: memref<2x49xf32, #tpu.memory_space<smem>>) -> (i32, i32) {
    %c0_i32 = arith.constant 0 : i32
    %c0_i32_0 = arith.constant 0 : i32
    %c0_i32_1 = arith.constant 0 : i32
    return %c0_i32, %c0_i32_0 : i32, i32
  }
  func.func @transform_3(%arg0: i32, %arg1: memref<2x49xf32, #tpu.memory_space<smem>>) -> (i32, i32, i32) {
    %c0_i32 = arith.constant 0 : i32
    %c0_i32_0 = arith.constant 0 : i32
    %c0_i32_1 = arith.constant 0 : i32
    return %arg0, %c0_i32, %c0_i32_0 : i32, i32, i32
  }
}

</mosaic_0001>

<bundles_post_ra>
// kernel: tpu_custom_call.1
= control target key start
LH: loop header
LB: loop body
LE: loop exit
PB: predicated region body
PF: predicated region fallthrough
CT: control target
= control target key end

     0   :  { %s7095_s0 = inlined_call_operand.vmem [shape: f32[2,49], index: 0, kind: input, shape index: {}]   ;;  %s7096_s1 = inlined_call_operand.hbm [shape: f32[2,32,256], index: 1, kind: input, shape index: {}]   ;;  %s7097_s2 = inlined_call_operand.vmem [shape: f32[2,32], index: 2, kind: input, shape index: {}]   ;;  %s7098_s3 = inlined_call_operand.vmem [shape: f32[32,2], index: 3, kind: input, shape index: {}]   ;;  %s7099_s4 = inlined_call_operand.hbm [shape: f32[2,32,256], index: 4, kind: output, shape index: {}]  }
   0x1   :  { %s9_s17 = sshll.u32 %s7095_s0, 4  ;;  %s10_s17 = int_to_ptr.vmem [resolvable:$true] %s9_s17 }
   0x2   :  { %s3291_s18 = scalar_lea.vmem %s10_s17, 32  ;;  %p3296_p1 = scmp.lt.s32.totalorder %s10_s17, %s10_s17 }
   0x3   :  { %p3292_p0 = scmp.ne.s32.totalorder %s10_s17, %s3291_s18  ;;  %p3297_p2 = scmp.lt.s32.totalorder %s3291_s18, %s3291_s18 }
   0x5   :  { %p3298_p3 = por %p3297_p2, %p3296_p1 }
   0x7   :  { %p3299_p4 = pnand %p3298_p3, %p3292_p0 }
   0x9   :  { %3302 = shalt.err (!%p3299_p4)  }
   0xa   :  { %s3353_s19 = smov [#allocation3]  }
   0xb   :  { %12 = dma.vmem_to_smem %s10_s17, 32, %s3353_s19, [#allocation2] }
   0xc   :  { %3347 = dma.done.wait [#allocation2], 32 }
   0xd   :  { %3348 = vsyncadd [#allocation2], 4294967264 }
   0xe   :  { %14 = sfence }
   0xf   :  { %15 = vsyncpa [#allocation5], 0 }
  0x10   :  { %16 = vsyncpa [#allocation6], 0  ;;  %s3354_s20 = smov [#allocation4]   ;;  %s3303_s23 = scalar_lea.hbm %s7096_s1, 2048 }
  0x11   :  { %s22_s21 = sshll.u32 %s3354_s20, 4  ;;  %p3304_p5 = scmp.ne.s32.totalorder %s7096_s1, %s3303_s23  ;;  %s23_s21 = int_to_ptr.vmem [resolvable:$true] %s22_s21 }
  0x12   :  { %p3307_p6 = scmp.lt.u32.totalorder %s3303_s23, %s7096_s1 }
  0x14   :  { %p3309_p7 = pnand %p3307_p6, %p3304_p5 }
  0x16   :  { %3312 = shalt.err (!%p3309_p7)
}
  0x17   :  { %s3313_s28 = scalar_lea.vmem %s23_s21, 2048  ;;  %p3318_p9 = scmp.lt.s32.totalorder %s23_s21, %s23_s21 }
  0x18   :  { %p3314_p8 = scmp.ne.s32.totalorder %s23_s21, %s3313_s28  ;;  %p3319_p10 = scmp.lt.s32.totalorder %s3313_s28, %s3313_s28 }
  0x1a   :  { %p3320_p11 = por %p3319_p10, %p3318_p9 }
  0x1c   :  { %p3321_p12 = pnand %p3320_p11, %p3314_p8 }
  0x1e   :  { %3324 = shalt.err (!%p3321_p12)
}
  0x1f   :  { %s7100_s29 = smov 256   ;;  %s7111_s30 = smov 16  }
  0x20   :  { %28 = dma.hbm_to_vmem [thread:$0]  %s7096_s1, 2048, %s23_s21, [#allocation5], %s7100_s29, %s7100_s29, %s7111_s30  }
  0x21   :  { %3349 = dma.done.wait [#allocation5], 2048  }
  0x22   :  { %3350 = vsyncadd [#allocation5], 4294965248  ;;  %v3451_v0 = vld [vmem:[#allocation4] sm:$0xff]  ;;  %v3453_v1 = vld [vmem:[#allocation4 + $0x8] sm:$0xff]  ;;  %v3357_v16 = vmov 0.0|0.0   ;;  %vm3358_vm0 = vmmov 0   ;;  %v7157_v18 = vlaneseq }
  0x23   :  { %v3455_v2 = vld [vmem:[#allocation4 + $0x10] sm:$0xff]  ;;  %v157_v3 = vmax.f32 %v3451_v0, %v3453_v1  ;;  %v140_v4 = vadd.f32 %v3453_v1, %v3451_v0  ;;  %v3461_v5 = vld [vmem:[#allocation4 + $0x18] sm:$0xff]  ;;  %v3471_v10 = vld [vmem:[#allocation4 + $0x20] sm:$0xff]  ;;  %3166 = vmatprep.subr.bf16.mxu0 %v3357_v16  ;;  %v3359_v17 = vmov 0.0   ;;  %vm176_vm2 = vcmask 261120   ;;  %s3592_s15 = sld [smem:[#allocation3 + $0x80]] }
  0x24   :  { %v160_v6 = vmax.f32 %v3455_v2, %v3461_v5  ;;  %v143_v7 = vadd.f32 %v3461_v5, %v3455_v2  ;;  %v3467_v8 = vld [vmem:[#allocation4 + $0x30] sm:$0xff]  ;;  %v3469_v9 = vld [vmem:[#allocation4 + $0x38] sm:$0xff]  ;;  %v3473_v11 = vld [vmem:[#allocation4 + $0x28] sm:$0xff]  ;;  %3136 = vmatprep.mubr.msk.f32.mxu0 %vm3358_vm0, %v3359_v17  ;;  %v3487_v21 = vand.u32 127, %v7157_v18  ;;  %vm7177_vm3 = vcmask 15360   ;;  %s3594_s16 = sld [smem:[#allocation3 + $0x1]] }
  0x25   :  { %158 = vmax.xlane.f32.xlu1 %v157_v3  ;;  %141 = vadd.xlane.f32.xlu0 %v140_v4  ;;  %v149_v12 = vadd.f32 %v3469_v9, %v3467_v8  ;;  %v146_v13 = vadd.f32 %v3473_v11, %v3471_v10  ;;  %v166_v14 = vmax.f32 %v3467_v8, %v3469_v9  ;;  %v3502_v38 = vld [vmem:[%s7097_s2] sm:$0x3]  ;;  %v1595_v40 = vld [vmem:[#allocation4 + $0x50] sm:$0xff]  ;;  %v1596_v41 = vld [vmem:[#allocation4 + $0x58] sm:$0xff]  ;;  %vm264_vm4 = vcmask 1041408   ;;  %s3596_s17 = sld [smem:[#allocation3 + $0x2]] }
  0x26   :  { %v163_v15 = vmax.f32 %v3471_v10, %v3473_v11  ;;  %vm169_vm1 = vcmp.eq.s32.totalorder %v3487_v21, 0  ;;  %v37_v39 = vld [vmem:[%s7098_s3] sm:$0xff]  ;;  %v1604_v43 = vadd.f32 %v1596_v41, %v1595_v40  ;;  %v1594_v44 = vld [vmem:[#allocation4 + $0x48] sm:$0xff]  ;;  %v1620_v46 = vmax.f32 %v1595_v40, %v1596_v41  ;;  %v1599_v48 = vld [vmem:[#allocation4 + $0x70] sm:$0xff]  ;;  %s3598_s18 = sld [smem:[#allocation3 + $0x81]]  ;;  %s3600_s19 = sld [smem:[#allocation3 + $0x82]] }
  0x27   :  { %3141 = vmatprep.mubr.msk.f32.mxu1 %vm7177_vm3, %v37_v39  ;;  %v1593_v42 = vld [vmem:[#allocation4 + $0x40] sm:$0xff]  ;;  %v1600_v49 = vld [vmem:[#allocation4 + $0x78] sm:$0xff]  ;;  %v1598_v51 = vld [vmem:[#allocation4 + $0x68] sm:$0xff]  ;;  %s3602_s20 = sld [smem:[#allocation3 + $0x3]]  ;;  %s3618_s22 = sld [smem:[#allocation3 + $0x4]]  ;;  %vm7187_vm14 = vcmp.lt.s32.totalorder %v3487_v21, 51 }
  0x28   :  { %v1601_v45 = vadd.f32 %v1594_v44, %v1593_v42  ;;  %v1617_v47 = vmax.f32 %v1593_v42, %v1594_v44  ;;  %v1597_v50 = vld [vmem:[#allocation4 + $0x60] sm:$0xff]  ;;  %v1610_v52 = vadd.f32 %v1600_v49, %v1599_v48  ;;  %v1626_v54 = vmax.f32 %v1599_v48, %v1600_v49  ;;  %v38_v59 = vld [vmem:[%s7098_s3 + $0x8] sm:$0xff]  ;;  %v39_v60 = vld [vmem:[%s7098_s3 + $0x10] sm:$0xff]  ;;  %s3610_s21 = sld [smem:[#allocation3 + $0x83]]  ;;  %s3626_s0 = sld [smem:[#allocation3 + $0x84]] }
  0x29   :  { %161 = vmax.xlane.f32.xlu1 %v160_v6  ;;  %144 = vadd.xlane.f32.xlu0 %v143_v7  ;;  %v1607_v53 = vadd.f32 %v1598_v51, %v1597_v50  ;;  %v1623_v55 = vmax.f32 %v1597_v50, %v1598_v51  ;;  %v40_v61 = vld [vmem:[%s7098_s3 + $0x18] sm:$0xff]  ;;  %s3590_s3 = sld [smem:[#allocation3]]  ;;  %s3631_s23 = sld [smem:[#allocation3 + $0x5]]  ;;  %vm7180_vm15 = vcmp.lt.s32.totalorder %v3487_v21, 50 }
  0x2a   :  { %s3360_s24 = smov 51   ;;  %s3637_s25 = sld [smem:[#allocation3 + $0x85]] }
  0x2b   :  { %s3643_s26 = sld [smem:[#allocation3 + $0x6]]  ;;  %s3361_s27 = smov 50  }
  0x2c   :  { %s3362_s28 = smov 49   ;;  %s3650_s5 = sld [smem:[#allocation3 + $0x86]] }
  0x2d   :  { %150 = vadd.xlane.f32.xlu1 %v149_v12  ;;  %147 = vadd.xlane.f32.xlu0 %v146_v13  ;;  %s3655_s6 = sld [smem:[#allocation3 + $0x7]]  ;;  %s3363_s1 = smov 48  }
  0x2e   :  { %s3662_s7 = sld [smem:[#allocation3 + $0x87]]  ;;  %s3667_s8 = sld [smem:[#allocation3 + $0x8]] }
  0x2f   :  { %s3364_s9 = smov 47   ;;  %s3674_s2 = sld [smem:[#allocation3 + $0x88]] }
  0x30   :  { %s3679_s10 = sld [smem:[#allocation3 + $0x9]]  ;;  %s3365_s11 = smov 46  }
  0x31   :  { %167 = vmax.xlane.f32.xlu1 %v166_v14  ;;  %164 = vmax.xlane.f32.xlu0 %v163_v15  ;;  %s3686_s12 = sld [smem:[#allocation3 + $0x89]]  ;;  %s3691_s13 = sld [smem:[#allocation3 + $0xa]] }
  0x32   :  { %s3366_s14 = smov 45   ;;  %s7113_s29 = smov 1  }
  0x35   :  { %1605 = vadd.xlane.f32.xlu1 %v1604_v43  ;;  %1602 = vadd.xlane.f32.xlu0 %v1601_v45 }
  0x39   :  { %1621 = vmax.xlane.f32.xlu1 %v1620_v46  ;;  %1618 = vmax.xlane.f32.xlu0 %v1617_v47 }
  0x3d   :  { %1611 = vadd.xlane.f32.xlu1 %v1610_v52  ;;  %1608 = vadd.xlane.f32.xlu0 %v1607_v53 }
  0x41   :  { %1627 = vmax.xlane.f32.xlu1 %v1626_v54  ;;  %1624 = vmax.xlane.f32.xlu0 %v1623_v55 }
  0xb2   :  { %v159_v19 = vpop.xlane.xlu1 %158  ;;  %v142_v20 = vpop.xlane.xlu0 %141 }
  0xb3   :  { %v153_v22 = vmul.f32 0.00390625, %v142_v20 }
  0xb5   :  { %v172_v26 = vsel %vm169_vm1, %v153_v22, %v159_v19 }
  0xb6   :  { %v162_v23 = vpop.xlane.xlu1 %161  ;;  %v145_v24 = vpop.xlane.xlu0 %144 }
  0xb7   :  { %v154_v25 = vmul.f32 0.00390625, %v145_v24 }
  0xb9   :  { %v173_v27 = vsel %vm169_vm1, %v154_v25, %v162_v23 }
  0xba   :  { %v151_v28 = vpop.xlane.xlu1 %150  ;;  %v148_v29 = vpop.xlane.xlu0 %147  ;;  %v3167_v30 = vpack.c.bf16 %v173_v27, %v172_v26 }
  0xbb   :  { %v156_v31 = vmul.f32 0.00390625, %v151_v28  ;;  %v155_v32 = vmul.f32 0.00390625, %v148_v29 }
  0xbc   :  { %3168 = vmatpush3.bf16.msra.mxu0 %v3167_v30 }
  0xbd   :  { %3169 = vmatprep.subr.bf16.mxu0 %v3357_v16 }
  0xbe   :  { %v168_v33 = vpop.xlane.xlu1 %167  ;;  %v165_v34 = vpop.xlane.xlu0 %164 }
  0xbf   :  { %v175_v35 = vsel %vm169_vm1, %v156_v31, %v168_v33  ;;  %v174_v36 = vsel %vm169_vm1, %v155_v32, %v165_v34 }
  0xc0   :  { %v3170_v37 = vpack.c.bf16 %v175_v35, %v174_v36 }
  0xc2   :  { %3171 = vmatpush3.bf16.msra.mxu0 %v3170_v37  ;;  %v1606_v62 = vpop.xlane.xlu1 %1605  ;;  %v1603_v3 = vpop.xlane.xlu0 %1602 }
  0xc3   :  { %v1614_v63 = vmul.f32 0.00390625, %v1606_v62  ;;  %v1613_v4 = vmul.f32 0.00390625, %v1603_v3 }
  0xc5   :  { %3137 = vmatmul.mubr.msk.f32.vlgmr.msra.gmra.mrb[0].mxu0 %vm176_vm2, %v3502_v38 }
  0xc6   :  { %3160 = vmatprep.mubr.msk.f32.mxu0 %vm7177_vm3, %v37_v39  ;;  %v1622_v6 = vpop.xlane.xlu1 %1621  ;;  %v1619_v12 = vpop.xlane.xlu0 %1618 }
  0xc7   :  { %v1630_v7 = vsel %vm169_vm1, %v1614_v63, %v1622_v6  ;;  %v1629_v13 = vsel %vm169_vm1, %v1613_v4, %v1619_v12 }
  0xc8   :  { %v3173_v14 = vpack.c.bf16 %v1630_v7, %v1629_v13 }
  0xca   :  { %v1612_v15 = vpop.xlane.xlu1 %1611  ;;  %v1609_v20 = vpop.xlane.xlu0 %1608 }
  0xcb   :  { %v1616_v19 = vmul.f32 0.00390625, %v1612_v15  ;;  %v1615_v22 = vmul.f32 0.00390625, %v1609_v20 }
  0xce   :  { %v1625_v24 = vpop.xlane.xlu0 %1624 }
  0xcf   :  { %v1631_v25 = vsel %vm169_vm1, %v1615_v22, %v1625_v24 }
 0x198   :  { %v246_v56 = vpop.f32.mrb[0].mxu0 }
 0x199   :  { %v250_v57 = vmax.f32 %v246_v56, 0.0  ;;  %v3138_v58 = vpop.f32.mrb[1].mxu0 }
 0x19b   :  { %3139 = vmatprep.subr.msk.mxu1 %vm264_vm4, %v250_v57 }
 0x19c   :  { %3140 = vmatpush3.msk.msra.mxu1 %vm264_vm4, %v250_v57 }
 0x19d   :  { %3142 = vmatmul.mubr.msk.f32.vlgmr.msra.gmra.mrb[0].mxu1 %vm7177_vm3, %v38_v59  ;;  %3172 = vmatprep.subr.bf16.mxu1 %v3357_v16 }
 0x19e   :  { %3144 = vmatprep.mubr.msk.f32.mxu1 %vm7177_vm3, %v39_v60  ;;  %3174 = vmatpush3.bf16.msra.mxu1 %v3173_v14 }
 0x19f   :  { %3175 = vmatprep.subr.bf16.mxu1 %v3357_v16 }
 0x1a1   :  { %3145 = vmatmul.mubr.msk.f32.gmra.mrb[2].mxu1 %vm7177_vm3, %v40_v61 }
 0x1a2   :  { %3155 = vmatprep.mubr.msk.f32.mxu1 %vm3358_vm0, %v3359_v17  ;;  %v1628_v17 = vpop.xlane.xlu1 %1627 }
 0x1a3   :  { %v1632_v23 = vsel %vm169_vm1, %v1616_v19, %v1628_v17 }
 0x1a4   :  { %v3176_v26 = vpack.c.bf16 %v1632_v23, %v1631_v25 }
 0x1a6   :  { %3177 = vmatpush3.bf16.msra.mxu1 %v3176_v26 }
 0x1a9   :  { %3156 = vmatmul.mubr.msk.f32.vlgmr.msra.gmra.mrb[4].mxu1 %vm176_vm2, %v3502_v38  ;;  %vm7188_vm2 = vcmp.lt.s32.totalorder %v3487_v21, 49 }
 0x1aa   :  { %3163 = vmatprep.mubr.msk.f32.mxu1 %vm7177_vm3, %v39_v60 }
 0x270   :  { %v3143_v27 = vpop.f32.mrb[0].mxu1 }
 0x271   :  { %v334_v28 = vpop.f32.mrb[1].mxu1  ;;  %v356_v29 = vsel %vm7177_vm3, %v3143_v27, 0.0 }
 0x272   :  { %357 = vadd.xlane.f32.xlu1 %v356_v29  ;;  %v353_v16 = vsel %vm7177_vm3, %v334_v28, 0.0 }
 0x273   :  { %354 = vadd.xlane.f32.xlu0 %v353_v16 }
 0x274   :  { %v3146_v30 = vpop.f32.mrb[2].mxu1 }
 0x275   :  { %v344_v31 = vpop.f32.mrb[3].mxu1  ;;  %v362_v32 = vsel %vm7177_vm3, %v3146_v30, 0.0 }
 0x276   :  { %363 = vadd.xlane.f32.xlu1 %v362_v32  ;;  %v359_v33 = vsel %vm7177_vm3, %v344_v31, 0.0 }
 0x277   :  { %360 = vadd.xlane.f32.xlu0 %v359_v33 }
 0x27c   :  { %v1699_v34 = vpop.f32.mrb[4].mxu1 }
 0x27d   :  { %v1703_v35 = vmax.f32 %v1699_v34, 0.0  ;;  %v3157_v36 = vpop.f32.mrb[5].mxu1 }
 0x27f   :  { %3178 = vmatprep.subr.msk.mxu1 %vm264_vm4, %v1703_v35  ;;  %3158 = vmatprep.subr.msk.mxu0 %vm264_vm4, %v1703_v35 }
 0x280   :  { %3179 = vmatpush3.msk.msra.mxu1 %vm264_vm4, %v1703_v35  ;;  %3159 = vmatpush3.msk.msra.mxu0 %vm264_vm4, %v1703_v35 }
 0x281   :  { %3164 = vmatmul.mubr.msk.f32.vlgmr.msra.gmra.mrb[6].mxu1 %vm7177_vm3, %v40_v61  ;;  %3161 = vmatmul.mubr.msk.f32.vlgmr.msra.gmra.mrb[2].mxu0 %vm7177_vm3, %v38_v59 }
 0x2ff   :  { %v358_v37 = vpop.xlane.xlu1 %357 }
 0x300   :  { %v366_v38 = vsub.f32 0.0, %v358_v37  ;;  %v355_v39 = vpop.xlane.xlu0 %354 }
 0x301   :  { %v365_v40 = vsub.f32 0.0, %v355_v39 }
 0x302   :  { %v371_v41 = vmul.f32 1.442695, %v366_v38 }
 0x303   :  { %v369_v42 = vmul.f32 1.442695, %v365_v40  ;;  %v364_v43 = vpop.xlane.xlu1 %363 }
 0x304   :  { %3235 = vpow2.f32 %v371_v41  ;;  %v368_v44 = vsub.f32 0.0, %v364_v43  ;;  %v361_v45 = vpop.xlane.xlu0 %360  ;;  %v438_v43 = vstv %s3590_s3  ;;  %s3698_s3 = sld [smem:[#allocation3 + $0x8a]] }
 0x305   :  { %3237 = vpow2.f32 %v369_v42  ;;  %v367_v46 = vsub.f32 0.0, %v361_v45 }
 0x306   :  { %v375_v47 = vmul.f32 1.442695, %v368_v44  ;;  %v441_v44 = vstv %s3592_s15  ;;  %s3703_s15 = sld [smem:[#allocation3 + $0xb]] }
 0x307   :  { %v373_v48 = vmul.f32 1.442695, %v367_v46 }
 0x308   :  { %3239 = vpow2.f32 %v375_v47  ;;  %v461_v47 = vstv %s3594_s16  ;;  %s3367_s16 = smov 35  }
 0x309   :  { %3241 = vpow2.f32 %v373_v48  ;;  %v484_v48 = vstv %s3596_s17  ;;  %s3710_s17 = sld [smem:[#allocation3 + $0x8b]] }
 0x30e   :  { %v3236_v49 = vpop.eup %3235 }
 0x30f   :  { %v3238_v50 = vpop.eup %3237  ;;  %v378_v51 = vadd.f32 1.0, %v3236_v49 }
 0x310   :  { %v377_v52 = vadd.f32 1.0, %v3238_v50 }
 0x311   :  { %3243 = vrcp.f32 %v378_v51 }
 0x312   :  { %v3240_v53 = vpop.eup %3239  ;;  %3245 = vrcp.f32 %v377_v52 }
 0x313   :  { %v3242_v54 = vpop.eup %3241  ;;  %v380_v55 = vadd.f32 1.0, %v3240_v53  ;;  %v464_v53 = vstv %s3598_s18  ;;  %s3715_s18 = sld [smem:[#allocation3 + $0xc]] }
 0x314   :  { %v379_v56 = vadd.f32 1.0, %v3242_v54  ;;  %v487_v54 = vstv %s3600_s19  ;;  %s3368_s19 = smov 34  }
 0x315   :  { %3247 = vrcp.f32 %v380_v55 }
 0x316   :  { %3249 = vrcp.f32 %v379_v56 }
 0x31b   :  { %v3244_v57 = vpop.eup %3243 }
 0x31c   :  { %v3246_v58 = vpop.eup %3245  ;;  %v3551_v59 = vmul.f32 %v3244_v57, %v3455_v2  ;;  %v3554_v60 = vmul.f32 %v3244_v57, %v3461_v5 }
 0x31d   :  { %v3557_v61 = vmul.f32 %v3246_v58, %v3451_v0  ;;  %v3560_v62 = vmul.f32 %v3246_v58, %v3453_v1 }
 0x31e   :  { %7364 = vst [vmem:[#allocation11_spill] sm:$0xff] %v3551_v59  ;;  %7365 = vst [vmem:[#allocation12_spill] sm:$0xff] %v3554_v60 }
 0x31f   :  { %7366 = vst [vmem:[#allocation13_spill] sm:$0xff] %v3557_v61  ;;  %7367 = vst [vmem:[#allocation14_spill] sm:$0xff] %v3560_v62  ;;  %v3248_v63 = vpop.eup %3247  ;;  %v397_v2 = vadd.f32 %v3551_v59, %v3557_v61  ;;  %v406_v5 = vadd.f32 %v3554_v60, %v3560_v62 }
 0x320   :  { %v3250_v3 = vpop.eup %3249  ;;  %v3563_v4 = vmul.f32 %v3248_v63, %v3467_v8  ;;  %v3566_v6 = vmul.f32 %v3248_v63, %v3469_v9  ;;  %v507_v63 = vstv %s3602_s20  ;;  %s3722_s20 = sld [smem:[#allocation3 + $0x8c]] }
 0x321   :  { %v3573_v0 = vmul.f32 %v3250_v3, %v3471_v10  ;;  %v3576_v1 = vmul.f32 %v3250_v3, %v3473_v11 }
 0x322   :  { %7368 = vst [vmem:[#allocation15_spill] sm:$0xff] %v3563_v4  ;;  %7369 = vst [vmem:[#allocation16_spill] sm:$0xff] %v3566_v6  ;;  %v419_v7 = vmax.f32 %v3551_v59, %v3563_v4  ;;  %v428_v8 = vmax.f32 %v3554_v60, %v3566_v6 }
 0x323   :  { %7370 = vst [vmem:[#allocation17_spill] sm:$0xff] %v3573_v0  ;;  %7371 = vst [vmem:[#allocation18_spill] sm:$0xff] %v3576_v1  ;;  %v398_v9 = vadd.f32 %v397_v2, %v3573_v0  ;;  %v407_v12 = vadd.f32 %v406_v5, %v3576_v1  ;;  %v418_v13 = vmax.f32 %v3557_v61, %v3573_v0  ;;  %v510_v5 = vstv %s3610_s21  ;;  %s3727_s21 = sld [smem:[#allocation3 + $0xd]] }
 0x324   :  { %v427_v10 = vmax.f32 %v3560_v62, %v3576_v1 }
 0x325   :  { %v399_v14 = vadd.f32 %v398_v9, %v3563_v4  ;;  %v408_v11 = vadd.f32 %v407_v12, %v3566_v6  ;;  %v420_v15 = vmax.f32 %v418_v13, %v419_v7  ;;  %v530_v13 = vstv %s3618_s22  ;;  %s3369_s22 = smov 33  }
 0x326   :  { %v429_v19 = vmax.f32 %v427_v10, %v428_v8 }
 0x327   :  { %v400_v20 = vrot.slane %v399_v14, 4  ;;  %v409_v22 = vrot.slane %v408_v11, 4  ;;  %v421_v17 = vrot.slane %v420_v15, 4 }
 0x328   :  { %v430_v23 = vrot.slane %v429_v19, 4 }
 0x329   :  { %v401_v24 = vadd.f32 %v400_v20, %v399_v14  ;;  %v410_v25 = vadd.f32 %v409_v22, %v408_v11  ;;  %v422_v26 = vmax.f32 %v420_v15, %v421_v17  ;;  %v533_v11 = vstv %s3626_s0  ;;  %s3734_s0 = sld [smem:[#allocation3 + $0x8d]] }
 0x32a   :  { %v431_v27 = vmax.f32 %v429_v19, %v430_v23  ;;  %v553_v17 = vstv %s3631_s23  ;;  %s3739_s23 = sld [smem:[#allocation3 + $0xe]] }
 0x32b   :  { %v402_v28 = vrot.slane %v401_v24, 2  ;;  %v411_v29 = vrot.slane %v410_v25, 2  ;;  %v423_v16 = vrot.slane %v422_v26, 2 }
 0x32c   :  { %v432_v30 = vrot.slane %v431_v27, 2 }
 0x32d   :  { %v403_v31 = vadd.f32 %v402_v28, %v401_v24  ;;  %v412_v32 = vadd.f32 %v411_v29, %v410_v25  ;;  %v424_v33 = vmax.f32 %v422_v26, %v423_v16  ;;  %v556_v25 = vstv %s3637_s25  ;;  %s7131_s25 = smov 32  }
 0x32e   :  { %v433_v34 = vmax.f32 %v431_v27, %v432_v30  ;;  %v576_v16 = vstv %s3643_s26  ;;  %s3746_s26 = sld [smem:[#allocation3 + $0x8e]] }
 0x32f   :  { %v404_v35 = vrot.slane %v403_v31, 1  ;;  %v413_v36 = vrot.slane %v412_v32, 1  ;;  %v425_v37 = vrot.slane %v424_v33, 1 }
 0x330   :  { %v434_v38 = vrot.slane %v433_v34, 1 }
 0x331   :  { %v405_v39 = vadd.f32 %v404_v35, %v403_v31  ;;  %v414_v40 = vadd.f32 %v413_v36, %v412_v32  ;;  %v3604_v41 = vmax.f32 %v424_v33, %v425_v37  ;;  %v579_v32 = vstv %s3650_s5  ;;  %s3751_s5 = sld [smem:[#allocation3 + $0xf]] }
 0x332   :  { %v3606_v42 = vmax.f32 %v433_v34, %v434_v38  ;;  %v599_v37 = vstv %s3655_s6  ;;  %s7129_s6 = smov 31  }
 0x333   :  { %7372 = vst [vmem:[#allocation19_spill] sm:$0xff] %v3604_v41  ;;  %v3612_v45 = vmul.f32 0.03125, %v405_v39  ;;  %v3614_v46 = vmul.f32 0.03125, %v414_v40  ;;  %v442_v52 = vmul.f32 %v441_v44, %v3604_v41  ;;  %v465_v3 = vmul.f32 %v464_v53, %v3604_v41 }
 0x334   :  { %7373 = vst [vmem:[#allocation20_spill] sm:$0xff] %v3606_v42  ;;  %v443_v50 = vmul.f32 %v441_v44, %v3606_v42  ;;  %v488_v2 = vmul.f32 %v487_v54, %v3604_v41  ;;  %v466_v10 = vmul.f32 %v464_v53, %v3606_v42  ;;  %v511_v14 = vmul.f32 %v510_v5, %v3604_v41 }
 0x335   :  { %7374 = vst [vmem:[#allocation21_spill] sm:$0xff] %v3612_v45  ;;  %7375 = vst [vmem:[#allocation22_spill] sm:$0xff] %v3614_v46  ;;  %v440_v49 = vmul.f32 %v438_v43, %v3614_v46  ;;  %v439_v51 = vmul.f32 %v438_v43, %v3612_v45  ;;  %v462_v57 = vmul.f32 %v461_v47, %v3612_v45  ;;  %v602_v40 = vstv %s3662_s7  ;;  %s3758_s7 = sld [smem:[#allocation3 + $0x8f]] }
 0x336   :  { %v485_v58 = vmul.f32 %v484_v48, %v3612_v45  ;;  %v463_v9 = vmul.f32 %v461_v47, %v3614_v46  ;;  %v508_v12 = vmul.f32 %v507_v63, %v3612_v45  ;;  %v486_v20 = vmul.f32 %v484_v48, %v3614_v46 }
 0x337   :  { %v445_v55 = vadd.f32 %v443_v50, %v440_v49  ;;  %v444_v56 = vadd.f32 %v442_v52, %v439_v51  ;;  %v467_v7 = vadd.f32 %v465_v3, %v462_v57  ;;  %v531_v22 = vmul.f32 %v530_v13, %v3612_v45 }
 0x338   :  { %v490_v8 = vadd.f32 %v488_v2, %v485_v58  ;;  %v468_v15 = vadd.f32 %v466_v10, %v463_v9  ;;  %v513_v19 = vadd.f32 %v511_v14, %v508_v12  ;;  %v489_v23 = vmul.f32 %v487_v54, %v3606_v42 }
 0x339   :  { %448 = vrot.lane.b32.xlu1 %v445_v55, %s3360_s24  ;;  %446 = vrot.lane.b32.xlu0 %v444_v56, %s3360_s24  ;;  %v534_v24 = vmul.f32 %v533_v11, %v3604_v41  ;;  %v509_v28 = vmul.f32 %v507_v63, %v3614_v46  ;;  %v554_v29 = vmul.f32 %v553_v17, %v3612_v45  ;;  %v622_v49 = vstv %s3667_s8  ;;  %s3763_s8 = sld [smem:[#allocation3 + $0x10]] }
 0x33a   :  { %v491_v26 = vadd.f32 %v489_v23, %v486_v20  ;;  %v512_v30 = vmul.f32 %v510_v5, %v3606_v42  ;;  %v557_v31 = vmul.f32 %v556_v25, %v3604_v41  ;;  %v532_v35 = vmul.f32 %v530_v13, %v3614_v46 }
 0x33b   :  { %v536_v27 = vadd.f32 %v534_v24, %v531_v22  ;;  %v577_v36 = vmul.f32 %v576_v16, %v3612_v45  ;;  %v535_v38 = vmul.f32 %v533_v11, %v3606_v42  ;;  %v580_v39 = vmul.f32 %v579_v32, %v3604_v41 }
 0x33c   :  { %v514_v33 = vadd.f32 %v512_v30, %v509_v28  ;;  %v559_v34 = vadd.f32 %v557_v31, %v554_v29  ;;  %v555_v47 = vmul.f32 %v553_v17, %v3614_v46  ;;  %v600_v48 = vmul.f32 %v599_v37, %v3612_v45 }
 0x33d   :  { %469 = vrot.lane.b32.xlu1 %v467_v7, %s3361_s27  ;;  %492 = vrot.lane.b32.xlu0 %v490_v8, %s3362_s28  ;;  %v537_v43 = vadd.f32 %v535_v38, %v532_v35  ;;  %v582_v44 = vadd.f32 %v580_v39, %v577_v36  ;;  %v558_v50 = vmul.f32 %v556_v25, %v3606_v42  ;;  %v625_v52 = vstv %s3674_s2  ;;  %s7127_s2 = smov 30  }
 0x33e   :  { %v603_v51 = vmul.f32 %v602_v40, %v3604_v41  ;;  %v578_v55 = vmul.f32 %v576_v16, %v3614_v46  ;;  %v623_v56 = vmul.f32 %v622_v49, %v3612_v45  ;;  %v645_v57 = vstv %s3679_s10  ;;  %s3770_s10 = sld [smem:[#allocation3 + $0x90]] }
 0x33f   :  { %v560_v53 = vadd.f32 %v558_v50, %v555_v47  ;;  %v581_v58 = vmul.f32 %v579_v32, %v3606_v42  ;;  %v626_v63 = vmul.f32 %v625_v52, %v3604_v41  ;;  %v648_v3 = vstv %s3686_s12  ;;  %s3775_s12 = sld [smem:[#allocation3 + $0x11]] }
 0x340   :  { %v605_v54 = vadd.f32 %v603_v51, %v600_v48  ;;  %v601_v7 = vmul.f32 %v599_v37, %v3614_v46  ;;  %v646_v8 = vmul.f32 %v645_v57, %v3612_v45  ;;  %v668_v9 = vstv %s3691_s13  ;;  %s7125_s13 = smov 29  }
 0x341   :  { %471 = vrot.lane.b32.xlu1 %v468_v15, %s3361_s27  ;;  %515 = vrot.lane.b32.xlu0 %v513_v19, %s3363_s1  ;;  %v583_v2 = vadd.f32 %v581_v58, %v578_v55  ;;  %v628_v5 = vadd.f32 %v626_v63, %v623_v56  ;;  %v604_v12 = vmul.f32 %v602_v40, %v3606_v42  ;;  %v671_v10 = vstv %s3698_s3  ;;  %s3782_s3 = sld [smem:[#allocation3 + $0x91]] }
 0x342   :  { %v649_v13 = vmul.f32 %v648_v3, %v3604_v41  ;;  %v624_v15 = vmul.f32 %v622_v49, %v3614_v46  ;;  %v669_v19 = vmul.f32 %v668_v9, %v3612_v45  ;;  %v691_v20 = vstv %s3703_s15  ;;  %s3787_s15 = sld [smem:[#allocation3 + $0x12]] }
 0x343   :  { %v606_v14 = vadd.f32 %v604_v12, %v601_v7  ;;  %v627_v22 = vmul.f32 %v625_v52, %v3606_v42  ;;  %v672_v17 = vmul.f32 %v671_v10, %v3604_v41  ;;  %v694_v23 = vstv %s3710_s17  ;;  %s7123_s17 = smov 19  }
 0x344   :  { %v651_v11 = vadd.f32 %v649_v13, %v646_v8  ;;  %v714_v28 = vstv %s3715_s18  ;;  %v650_v29 = vmul.f32 %v648_v3, %v3606_v42  ;;  %v695_v16 = vmul.f32 %v694_v23, %v3604_v41  ;;  %s3794_s18 = sld [smem:[#allocation3 + $0x92]] }
 0x345   :  { %494 = vrot.lane.b32.xlu1 %v491_v26, %s3362_s28  ;;  %538 = vrot.lane.b32.xlu0 %v536_v27, %s3364_s9  ;;  %v629_v24 = vadd.f32 %v627_v22, %v624_v15  ;;  %v674_v25 = vadd.f32 %v672_v17, %v669_v19  ;;  %v647_v26 = vmul.f32 %v645_v57, %v3614_v46  ;;  %v717_v30 = vstv %s3722_s20  ;;  %s3799_s20 = sld [smem:[#allocation3 + $0x13]] }
 0x346   :  { %v692_v27 = vmul.f32 %v691_v20, %v3612_v45  ;;  %v737_v35 = vstv %s3727_s21  ;;  %v673_v36 = vmul.f32 %v671_v10, %v3606_v42  ;;  %v718_v37 = vmul.f32 %v717_v30, %v3604_v41  ;;  %s7117_s21 = smov 18  }
 0x347   :  { %v652_v31 = vadd.f32 %v650_v29, %v647_v26  ;;  %v740_v38 = vstv %s3734_s0  ;;  %v760_v47 = vstv %s3739_s23  ;;  %v696_v48 = vmul.f32 %v694_v23, %v3606_v42  ;;  %s3806_s0 = sld [smem:[#allocation3 + $0x93]]  ;;  %s3811_s23 = sld [smem:[#allocation3 + $0x14]] }
 0x348   :  { %v697_v32 = vadd.f32 %v695_v16, %v692_v27  ;;  %v741_v49 = vmul.f32 %v740_v38, %v3604_v41  ;;  %v763_v50 = vstv %s3746_s26  ;;  %v783_v55 = vstv %s3751_s5  ;;  %s7115_s26 = smov 17   ;;  %s3818_s5 = sld [smem:[#allocation3 + $0x94]] }
 0x349   :  { %517 = vrot.lane.b32.xlu1 %v514_v33, %s3363_s1  ;;  %561 = vrot.lane.b32.xlu0 %v559_v34, %s3365_s11  ;;  %v670_v33 = vmul.f32 %v668_v9, %v3614_v46  ;;  %v715_v34 = vmul.f32 %v714_v28, %v3612_v45  ;;  %v719_v56 = vmul.f32 %v717_v30, %v3606_v42  ;;  %v786_v58 = vstv %s3758_s7  ;;  %s3823_s7 = sld [smem:[#allocation3 + $0x15]] }
 0x34a   :  { %v764_v57 = vmul.f32 %v763_v50, %v3604_v41  ;;  %v806_v7 = vstv %s3763_s8  ;;  %v742_v8 = vmul.f32 %v740_v38, %v3606_v42  ;;  %v787_v9 = vmul.f32 %v786_v58, %v3604_v41  ;;  %s3830_s8 = sld [smem:[#allocation3 + $0x95]] }
 0x34b   :  { %v675_v39 = vadd.f32 %v673_v36, %v670_v33  ;;  %v720_v40 = vadd.f32 %v718_v37, %v715_v34  ;;  %v809_v12 = vstv %s3770_s10  ;;  %v829_v15 = vstv %s3775_s12  ;;  %s3835_s10 = sld [smem:[#allocation3 + $0x16]]  ;;  %s7109_s12 = smov 15  }
 0x34c   :  { %v765_v19 = vmul.f32 %v763_v50, %v3606_v42  ;;  %v832_v22 = vstv %s3782_s3  ;;  %v852_v26 = vstv %s3787_s15  ;;  %v788_v27 = vmul.f32 %v786_v58, %v3606_v42  ;;  %s3842_s3 = sld [smem:[#allocation3 + $0x96]]  ;;  %s3847_s15 = sld [smem:[#allocation3 + $0x17]] }
 0x34d   :  { %540 = vrot.lane.b32.xlu1 %v537_v43, %s3364_s9  ;;  %584 = vrot.lane.b32.xlu0 %v582_v44, %s3366_s14  ;;  %v693_v43 = vmul.f32 %v691_v20, %v3614_v46  ;;  %v738_v44 = vmul.f32 %v737_v35, %v3612_v45  ;;  %v810_v20 = vmul.f32 %v809_v12, %v3604_v41  ;;  %v855_v29 = vstv %s3794_s18  ;;  %s7105_s18 = smov 14  }
 0x34e   :  { %v875_v33 = vstv %s3799_s20  ;;  %v811_v34 = vmul.f32 %v809_v12, %v3606_v42  ;;  %v878_v36 = vstv %s3806_s0  ;;  %s3854_s20 = sld [smem:[#allocation3 + $0x97]]  ;;  %s3859_s0 = sld [smem:[#allocation3 + $0x19]] }
 0x34f   :  { %v698_v51 = vadd.f32 %v696_v48, %v693_v43  ;;  %v743_v52 = vadd.f32 %v741_v49, %v738_v44  ;;  %v898_v43 = vstv %s3811_s23  ;;  %v834_v44 = vmul.f32 %v832_v22, %v3606_v42  ;;  %s7103_s23 = smov 13  }
 0x350   :  { %v901_v48 = vstv %s3818_s5  ;;  %s3866_s5 = sld [smem:[#allocation3 + $0x99]] }
 0x351   :  { %563 = vrot.lane.b32.xlu1 %v560_v53, %s3365_s11  ;;  %607 = vrot.lane.b32.xlu0 %v605_v54, %s3367_s16  ;;  %v716_v53 = vmul.f32 %v714_v28, %v3614_v46  ;;  %v761_v54 = vmul.f32 %v760_v47, %v3612_v45  ;;  %v833_v28 = vmul.f32 %v832_v22, %v3604_v41 }
 0x353   :  { %v721_v63 = vadd.f32 %v719_v56, %v716_v53  ;;  %v766_v3 = vadd.f32 %v764_v57, %v761_v54  ;;  %v921_v53 = vstv %s3823_s7  ;;  %v857_v54 = vmul.f32 %v855_v29, %v3606_v42  ;;  %s3871_s7 = sld [smem:[#allocation3 + $0x1a]] }
 0x354   :  { %v924_v56 = vstv %s3830_s8  ;;  %s7101_s8 = smov 3  }
 0x355   :  { %586 = vrot.lane.b32.xlu1 %v583_v2, %s3366_s14  ;;  %630 = vrot.lane.b32.xlu0 %v628_v5, %s3368_s19  ;;  %v739_v2 = vmul.f32 %v737_v35, %v3614_v46  ;;  %v784_v5 = vmul.f32 %v783_v55, %v3612_v45  ;;  %v856_v35 = vmul.f32 %v855_v29, %v3604_v41 }
 0x357   :  { %v744_v13 = vadd.f32 %v742_v8, %v739_v2  ;;  %v789_v10 = vadd.f32 %v787_v9, %v784_v5  ;;  %v944_v2 = vstv %s3835_s10  ;;  %v880_v5 = vmul.f32 %v878_v36, %v3606_v42  ;;  %s3878_s10 = sld [smem:[#allocation3 + $0x9a]] }
 0x358   :  { %v947_v8 = vstv %s3842_s3  ;;  %s3883_s3 = sld [smem:[#allocation3 + $0x1c]] }
 0x359   :  { %609 = vrot.lane.b32.xlu1 %v606_v14, %s3367_s16  ;;  %653 = vrot.lane.b32.xlu0 %v651_v11, %s3369_s22  ;;  %v762_v14 = vmul.f32 %v760_v47, %v3614_v46  ;;  %v807_v11 = vmul.f32 %v806_v7, %v3612_v45  ;;  %v879_v47 = vmul.f32 %v878_v36, %v3604_v41 }
 0x35b   :  { %v767_v17 = vadd.f32 %v765_v19, %v762_v14  ;;  %v812_v23 = vadd.f32 %v810_v20, %v807_v11  ;;  %v967_v14 = vstv %s3847_s15  ;;  %v903_v11 = vmul.f32 %v901_v48, %v3606_v42  ;;  %s7107_s15 = smov 2  }
 0x35c   :  { %v970_v19 = vstv %s3854_s20  ;;  %s3890_s20 = sld [smem:[#allocation3 + $0x9c]] }
 0x35d   :  { %632 = vrot.lane.b32.xlu1 %v629_v24, %s3368_s19  ;;  %676 = vrot.lane.b32.xlu0 %v674_v25, %s7131_s25  ;;  %v785_v24 = vmul.f32 %v783_v55, %v3614_v46  ;;  %v830_v25 = vmul.f32 %v829_v15, %v3612_v45  ;;  %v902_v55 = vmul.f32 %v901_v48, %v3604_v41 }
 0x35f   :  { %v790_v16 = vadd.f32 %v788_v27, %v785_v24  ;;  %v835_v30 = vadd.f32 %v833_v28, %v830_v25  ;;  %v1006_v24 = vstv %s3859_s0  ;;  %v926_v25 = vmul.f32 %v924_v56, %v3606_v42  ;;  %s3895_s0 = sld [smem:[#allocation3 + $0x1d]] }
 0x360   :  { %v1009_v27 = vstv %s3866_s5  ;;  %s3904_s5 = sld [smem:[#allocation3 + $0x9d]] }
 0x361   :  { %655 = vrot.lane.b32.xlu1 %v652_v31, %s3369_s22  ;;  %699 = vrot.lane.b32.xlu0 %v697_v32, %s7129_s6  ;;  %v808_v31 = vmul.f32 %v806_v7, %v3614_v46  ;;  %v853_v32 = vmul.f32 %v852_v26, %v3612_v45  ;;  %v925_v7 = vmul.f32 %v924_v56, %v3604_v41 }
 0x362   :  { %v1011_v56 = vmul.f32 %v1009_v27, %v3606_v42 }
 0x363   :  { %v813_v37 = vadd.f32 %v811_v34, %v808_v31  ;;  %v858_v38 = vadd.f32 %v856_v35, %v853_v32  ;;  %v1029_v31 = vstv %s3871_s7  ;;  %v3897_v32 = vpop.f32.mrb[6].mxu1  ;;  %v1010_v34 = vmul.f32 %v1009_v27, %v3604_v41  ;;  %s3909_s7 = sld [smem:[#allocation3 + $0x1b]] }
 0x364   :  { %v1032_v35 = vstv %s3878_s10  ;;  %s7119_s10 = smov 127  }
 0x365   :  { %678 = vrot.lane.b32.xlu1 %v675_v39, %s7131_s25  ;;  %722 = vrot.lane.b32.xlu0 %v720_v40, %s7127_s2  ;;  %v831_v39 = vmul.f32 %v829_v15, %v3614_v46  ;;  %v876_v40 = vmul.f32 %v875_v33, %v3612_v45  ;;  %v948_v15 = vmul.f32 %v947_v8, %v3604_v41  ;;  %s7141_s25 = smov 112  }
 0x367   :  { %v836_v49 = vadd.f32 %v834_v44, %v831_v39  ;;  %v881_v50 = vadd.f32 %v879_v47, %v876_v40  ;;  %v1030_v39 = vmul.f32 %v1029_v31, %v3612_v45  ;;  %v1075_v40 = vstv %s3883_s3  ;;  %s4012_s3 = sld [smem:[#allocation3 + $0xa3]] }
 0x368   :  { %v972_v44 = vmul.f32 %v970_v19, %v3606_v42  ;;  %v1033_v47 = vmul.f32 %v1032_v35, %v3604_v41 }
 0x369   :  { %701 = vrot.lane.b32.xlu1 %v698_v51, %s7129_s6  ;;  %745 = vrot.lane.b32.xlu0 %v743_v52, %s7125_s13  ;;  %v854_v51 = vmul.f32 %v852_v26, %v3614_v46  ;;  %v899_v52 = vmul.f32 %v898_v43, %v3612_v45  ;;  %v971_v26 = vmul.f32 %v970_v19, %v3604_v41  ;;  %s4001_s6 = sld [smem:[#allocation3 + $0x23]] }
 0x36b   :  { %v859_v57 = vadd.f32 %v857_v54, %v854_v51  ;;  %v904_v58 = vadd.f32 %v902_v55, %v899_v52  ;;  %v1035_v51 = vadd.f32 %v1033_v47, %v1030_v39  ;;  %v1008_v52 = vmul.f32 %v1006_v24, %v3614_v46  ;;  %v3930_v54 = vpop.f32.mrb[7].mxu1 }
 0x36c   :  { %v1098_v55 = vstv %s3895_s0  ;;  %s4036_s0 = sld [smem:[#allocation3 + $0xa4]] }
 0x36d   :  { %724 = vrot.lane.b32.xlu1 %v721_v63, %s7127_s2  ;;  %768 = vrot.lane.b32.xlu0 %v766_v3, %s7123_s17  ;;  %v877_v63 = vmul.f32 %v875_v33, %v3614_v46  ;;  %v922_v3 = vmul.f32 %v921_v53, %v3612_v45  ;;  %v949_v33 = vmul.f32 %v947_v8, %v3606_v42  ;;  %s3992_s2 = sld [smem:[#allocation3 + $0xa2]] }
 0x36f   :  { %v882_v9 = vadd.f32 %v880_v5, %v877_v63  ;;  %v927_v12 = vadd.f32 %v925_v7, %v922_v3  ;;  %v1013_v63 = vadd.f32 %v1011_v56, %v1008_v52  ;;  %v1099_v5 = vmul.f32 %v1098_v55, %v3612_v45 }
 0x370   :  { %v1052_v7 = vstv %s3909_s7  ;;  %s3967_s7 = sld [smem:[#allocation3 + $0x21]] }
 0x371   :  { %747 = vrot.lane.b32.xlu1 %v744_v13, %s7125_s13  ;;  %791 = vrot.lane.b32.xlu0 %v789_v10, %s7117_s21  ;;  %v900_v13 = vmul.f32 %v898_v43, %v3614_v46  ;;  %v945_v10 = vmul.f32 %v944_v2, %v3612_v45  ;;  %v3913_v43 = vpop.f32.mrb[2].mxu0  ;;  %s7139_s13 = smov 113  }
 0x372   :  { %v3921_v48 = vpop.f32.mrb[3].mxu0 }
 0x373   :  { %v905_v20 = vadd.f32 %v903_v11, %v900_v13  ;;  %v950_v22 = vadd.f32 %v948_v15, %v945_v10  ;;  %v1053_v15 = vmul.f32 %v1052_v7, %v3612_v45  ;;  %v1216_v56 = vstv %s3992_s2  ;;  %s4169_s2 = sld [smem:[#allocation3 + $0x2a]] }
 0x375   :  { %770 = vrot.lane.b32.xlu1 %v767_v17, %s7123_s17  ;;  %814 = vrot.lane.b32.xlu0 %v812_v23, %s7115_s26  ;;  %v923_v17 = vmul.f32 %v921_v53, %v3614_v46  ;;  %v968_v23 = vmul.f32 %v967_v14, %v3612_v45  ;;  %v1076_v53 = vmul.f32 %v1075_v40, %v3612_v45  ;;  %s7133_s17 = smov 125  }
 0x377   :  { %v928_v28 = vadd.f32 %v926_v25, %v923_v17  ;;  %v973_v29 = vadd.f32 %v971_v26, %v968_v23  ;;  %v1054_v26 = vmul.f32 %v1052_v7, %v3614_v46  ;;  %v1236_v7 = vstv %s4001_s6  ;;  %s4180_s6 = sld [smem:[#allocation3 + $0xaa]] }
 0x379   :  { %793 = vrot.lane.b32.xlu1 %v790_v16, %s7117_s21  ;;  %837 = vrot.lane.b32.xlu0 %v835_v30, %s7111_s30  ;;  %v946_v16 = vmul.f32 %v944_v2, %v3614_v46  ;;  %v1007_v30 = vmul.f32 %v1006_v24, %v3612_v45  ;;  %v1031_v2 = vmul.f32 %v1029_v31, %v3614_v46  ;;  %s3960_s21 = sld [smem:[#allocation3 + $0xa0]] }
 0x37b   :  { %v951_v36 = vadd.f32 %v949_v33, %v946_v16 }
 0x37d   :  { %816 = vrot.lane.b32.xlu1 %v813_v37, %s7115_s26  ;;  %860 = vrot.lane.b32.xlu0 %v858_v38, %s7109_s12  ;;  %v1012_v37 = vadd.f32 %v1010_v34, %v1007_v30  ;;  %v969_v38 = vmul.f32 %v967_v14, %v3614_v46  ;;  %s7135_s26 = smov 115   ;;  %v1077_v34 = vmul.f32 %v1075_v40, %v3614_v46 }
 0x37f   :  { %v1170_v30 = vstv %s3960_s21  ;;  %s4121_s21 = sld [smem:[#allocation3 + $0x28]] }
 0x381   :  { %839 = vrot.lane.b32.xlu1 %v836_v49, %s7111_s30  ;;  %883 = vrot.lane.b32.xlu0 %v881_v50, %s7105_s18  ;;  %v1078_v49 = vstv %s3890_s20  ;;  %v974_v50 = vadd.f32 %v972_v44, %v969_v38  ;;  %s3942_s30 = sld [smem:[#allocation3 + $0x9f]]  ;;  %v1171_v38 = vmul.f32 %v1170_v30, %v3604_v41  ;;  %s4025_s20 = sld [smem:[#allocation3 + $0x24]] }
 0x385   :  { %862 = vrot.lane.b32.xlu1 %v859_v57, %s7109_s12  ;;  %906 = vrot.lane.b32.xlu0 %v904_v58, %s7103_s23  ;;  %s7121_s12 = smov 126   ;;  %v1079_v57 = vmul.f32 %v1078_v49, %v3604_v41  ;;  %v1101_v58 = vstv %s3904_s5  ;;  %s4049_s5 = sld [smem:[#allocation3 + $0x25]] }
 0x387   :  { %v1081_v3 = vadd.f32 %v1079_v57, %v1076_v53  ;;  %v1147_v23 = vstv %s3942_s30  ;;  %v1103_v53 = vmul.f32 %v1101_v58, %v3606_v42  ;;  %s4097_s30 = sld [smem:[#allocation3 + $0x27]] }
 0x388   :  { %v1148_v16 = vmul.f32 %v1147_v23, %v3604_v41 }
 0x389   :  { %885 = vrot.lane.b32.xlu1 %v882_v9, %s7105_s18  ;;  %929 = vrot.lane.b32.xlu0 %v927_v12, %s7101_s8  ;;  %s3924_s18 = sld [smem:[#allocation3 + $0x9e]]  ;;  %v1034_v9 = vmul.f32 %v1032_v35, %v3606_v42  ;;  %v1102_v12 = vmul.f32 %v1101_v58, %v3604_v41 }
 0x38b   :  { %v1036_v14 = vadd.f32 %v1034_v9, %v1031_v2  ;;  %v1104_v11 = vadd.f32 %v1102_v12, %v1099_v5  ;;  %v1239_v12 = vstv %s4012_s3  ;;  %s4193_s3 = sld [smem:[#allocation3 + $0x2b]] }
 0x38d   :  { %908 = vrot.lane.b32.xlu1 %v905_v20, %s7103_s23  ;;  %952 = vrot.lane.b32.xlu0 %v950_v22, %s7107_s15  ;;  %s3919_s23 = sld [smem:[#allocation3 + $0x9b]] }
 0x38f   :  { %v1124_v10 = vstv %s3924_s18  ;;  %s4073_s18 = sld [smem:[#allocation3 + $0x26]] }
 0x390   :  { %v1125_v17 = vmul.f32 %v1124_v10, %v3604_v41  ;;  %v1126_v9 = vmul.f32 %v1124_v10, %v3606_v42  ;;  %v1237_v10 = vmul.f32 %v1236_v7, %v3612_v45 }
 0x391   :  { %931 = vrot.lane.b32.xlu1 %v928_v28, %s7101_s8  ;;  %975 = vrot.lane.b32.xlu0 %v973_v29, %s7113_s29  ;;  %s3911_s8 = sld [smem:[#allocation3 + $0x1e]] }
 0x393   :  { %v1055_v13 = vstv %s3919_s23  ;;  %s3975_s23 = sld [smem:[#allocation3 + $0xa1]] }
 0x394   :  { %v1056_v22 = vmul.f32 %v1055_v13, %v3604_v41  ;;  %v1057_v29 = vmul.f32 %v1055_v13, %v3606_v42 }
 0x395   :  { %954 = vrot.lane.b32.xlu1 %v951_v36, %s7107_s15  ;;  %1014 = vrot.lane.b32.xlu0 %v1012_v37, %s7119_s10  ;;  %s3933_s15 = sld [smem:[#allocation3 + $0x1f]]  ;;  %v1190_v36 = vstv %s3967_s7  ;;  %v1080_v37 = vmul.f32 %v1078_v49, %v3606_v42  ;;  %s4132_s7 = sld [smem:[#allocation3 + $0xa8]] }
 0x396   :  { %v1058_v24 = vadd.f32 %v1056_v22, %v1053_v15  ;;  %v1059_v31 = vadd.f32 %v1057_v29, %v1054_v26  ;;  %v1191_v49 = vmul.f32 %v1190_v36, %v3612_v45  ;;  %v1259_v22 = vstv %s4025_s20  ;;  %s4204_s20 = sld [smem:[#allocation3 + $0xab]] }
 0x397   :  { %v1121_v8 = vstv %s3911_s8  ;;  %v1082_v47 = vadd.f32 %v1080_v37, %v1077_v34  ;;  %s4060_s8 = sld [smem:[#allocation3 + $0xa5]] }
 0x398   :  { %v1122_v19 = vmul.f32 %v1121_v8, %v3612_v45  ;;  %v1123_v5 = vmul.f32 %v1121_v8, %v3614_v46  ;;  %v1217_v8 = vmul.f32 %v1216_v56, %v3604_v41 }
 0x399   :  { %977 = vrot.lane.b32.xlu1 %v974_v50, %s7113_s29  ;;  %1037 = vrot.lane.b32.xlu0 %v1035_v51, %s7121_s12  ;;  %s3950_s29 = sld [smem:[#allocation3 + $0x20]]  ;;  %v1193_v39 = vstv %s3975_s23  ;;  %v1100_v51 = vmul.f32 %v1098_v55, %v3614_v46  ;;  %s4145_s23 = sld [smem:[#allocation3 + $0x29]] }
 0x39a   :  { %v1127_v25 = vadd.f32 %v1125_v17, %v1122_v19  ;;  %v1194_v55 = vmul.f32 %v1193_v39, %v3604_v41  ;;  %v1149_v17 = vmul.f32 %v1147_v23, %v3606_v42  ;;  %v1260_v23 = vmul.f32 %v1259_v22, %v3612_v45 }
 0x39b   :  { %v1144_v20 = vstv %s3933_s15  ;;  %s4084_s15 = sld [smem:[#allocation3 + $0xa6]] }
 0x39c   :  { %v1145_v27 = vmul.f32 %v1144_v20, %v3612_v45  ;;  %v1196_v2 = vadd.f32 %v1194_v55, %v1191_v49  ;;  %v1146_v19 = vmul.f32 %v1144_v20, %v3614_v46  ;;  %v1240_v20 = vmul.f32 %v1239_v12, %v3604_v41 }
 0x39d   :  { %1016 = vrot.lane.b32.xlu1 %v1013_v63, %s7119_s10  ;;  %1083 = vrot.lane.b32.xlu0 %v1081_v3, %s7135_s26  ;;  %s7137_s10 = smov 114   ;;  %v1105_v3 = vadd.f32 %v1103_v53, %v1100_v51  ;;  %v1285_v34 = vstv %s4060_s8  ;;  %v1305_v51 = vstv %s4073_s18  ;;  %v1195_v49 = vmul.f32 %v1193_v39, %v3606_v42  ;;  %s4241_s8 = sld [smem:[#allocation3 + $0x2d]] }
 0x39e   :  { %v1150_v33 = vadd.f32 %v1148_v16, %v1145_v27  ;;  %v1151_v27 = vadd.f32 %v1149_v17, %v1146_v19  ;;  %v1242_v29 = vadd.f32 %v1240_v20, %v1237_v10  ;;  %v1306_v39 = vmul.f32 %v1305_v51, %v3612_v45  ;;  %s3399_s18 = smov 93  }
 0x39f   :  { %v1167_v28 = vstv %s3950_s29  ;;  %s4108_s29 = sld [smem:[#allocation3 + $0xa7]]  ;;  %v1238_v20 = vmul.f32 %v1236_v7, %v3614_v46 }
 0x3a0   :  { %v1168_v35 = vmul.f32 %v1167_v28, %v3612_v45  ;;  %v1169_v16 = vmul.f32 %v1167_v28, %v3614_v46 }
 0x3a1   :  { %1039 = vrot.lane.b32.xlu1 %v1036_v14, %s7121_s12  ;;  %1106 = vrot.lane.b32.xlu0 %v1104_v11, %s7137_s10  ;;  %s3983_s12 = sld [smem:[#allocation3 + $0x22]]  ;;  %v1128_v11 = vadd.f32 %v1126_v9, %v1123_v5  ;;  %v1308_v53 = vstv %s4084_s15  ;;  %v1328_v9 = vstv %s4097_s30  ;;  %s4265_s15 = sld [smem:[#allocation3 + $0x2e]] }
 0x3a2   :  { %v1173_v50 = vadd.f32 %v1171_v38, %v1168_v35  ;;  %s3400_s30 = smov 83  }
 0x3a5   :  { %1060 = vrot.lane.b32.xlu1 %v1058_v24, %s7133_s17  ;;  %1129 = vrot.lane.b32.xlu0 %v1127_v25, %s7139_s13  ;;  %v1262_v24 = vstv %s4036_s0  ;;  %s4217_s0 = sld [smem:[#allocation3 + $0x2c]] }
 0x3a6   :  { %v1263_v28 = vmul.f32 %v1262_v24, %v3604_v41 }
 0x3a7   :  { %v1213_v52 = vstv %s3983_s12  ;;  %s4156_s12 = sld [smem:[#allocation3 + $0xa9]] }
 0x3a8   :  { %v1214_v58 = vmul.f32 %v1213_v52, %v3612_v45 }
 0x3a9   :  { %1062 = vrot.lane.b32.xlu1 %v1059_v31, %s7133_s17  ;;  %1152 = vrot.lane.b32.xlu0 %v1150_v33, %s7141_s25  ;;  %s7143_s17 = smov 111   ;;  %v1282_v31 = vstv %s4049_s5  ;;  %v1172_v33 = vmul.f32 %v1170_v30, %v3606_v42  ;;  %s4228_s5 = sld [smem:[#allocation3 + $0xac]] }
 0x3aa   :  { %v1219_v15 = vadd.f32 %v1217_v8, %v1214_v58  ;;  %v1283_v30 = vmul.f32 %v1282_v31, %v3612_v45  ;;  %v1215_v58 = vmul.f32 %v1213_v52, %v3614_v46  ;;  %v1218_v8 = vmul.f32 %v1216_v56, %v3606_v42 }
 0x3ab   :  { %v4014_v40 = vpop.permute.xlu1 %448  ;;  %v4016_v44 = vpop.permute.xlu0 %446  ;;  %v1174_v38 = vadd.f32 %v1172_v33, %v1169_v16  ;;  %v1309_v52 = vmul.f32 %v1308_v53, %v3604_v41  ;;  %v1329_v56 = vmul.f32 %v1328_v9, %v3612_v45  ;;  %v1354_v16 = vstv %s4132_s7  ;;  %s4313_s7 = sld [smem:[#allocation3 + $0x30]] }
 0x3ac   :  { %v1220_v10 = vadd.f32 %v1218_v8, %v1215_v58  ;;  %v1397_v8 = vstv %s4169_s2  ;;  %s3406_s2 = smov 77  }
 0x3ad   :  { %1085 = vrot.lane.b32.xlu1 %v1082_v47, %s7135_s26  ;;  %1175 = vrot.lane.b32.xlu0 %v1173_v50, %s7143_s17  ;;  %s7145_s26 = smov 110   ;;  %v1265_v47 = vadd.f32 %v1263_v28, %v1260_v23  ;;  %v1192_v50 = vmul.f32 %v1190_v36, %v3614_v46  ;;  %v1286_v36 = vmul.f32 %v1285_v34, %v3604_v41 }
 0x3ae   :  { %v1311_v17 = vadd.f32 %v1309_v52, %v1306_v39  ;;  %v1284_v39 = vmul.f32 %v1282_v31, %v3614_v46  ;;  %v1287_v52 = vmul.f32 %v1285_v34, %v3606_v42  ;;  %v1398_v34 = vmul.f32 %v1397_v8, %v3612_v45 }
 0x3af   :  { %v4038_v57 = vpop.permute.xlu1 %469  ;;  %v4040_v63 = vpop.permute.xlu0 %492  ;;  %v1288_v5 = vadd.f32 %v1286_v36, %v1283_v30  ;;  %v1264_v30 = vmul.f32 %v1262_v24, %v3606_v42 }
 0x3b1   :  { %1108 = vrot.lane.b32.xlu1 %v1105_v3, %s7137_s10  ;;  %1198 = vrot.lane.b32.xlu0 %v1196_v2, %s7145_s26  ;;  %s7147_s10 = smov 109   ;;  %v1197_v2 = vadd.f32 %v1195_v49, %v1192_v50  ;;  %v1374_v50 = vstv %s4145_s23  ;;  %v1377_v49 = vstv %s4156_s12  ;;  %s4322_s23 = sld [smem:[#allocation3 + $0xb0]] }
 0x3b2   :  { %v1375_v24 = vmul.f32 %v1374_v50, %v3612_v45  ;;  %v1378_v31 = vmul.f32 %v1377_v49, %v3604_v41  ;;  %s3404_s12 = smov 79  }
 0x3b3   :  { %v4062_v13 = vpop.permute.xlu1 %471  ;;  %v4064_v14 = vpop.permute.xlu0 %515 }
 0x3b5   :  { %1131 = vrot.lane.b32.xlu1 %v1128_v11, %s7139_s13  ;;  %1221 = vrot.lane.b32.xlu0 %v1219_v15, %s7147_s10  ;;  %s7149_s13 = smov 99   ;;  %v1331_v11 = vstv %s4108_s29  ;;  %s4289_s29 = sld [smem:[#allocation3 + $0x2f]] }
 0x3b6   :  { %v1332_v7 = vmul.f32 %v1331_v11, %v3604_v41 }
 0x3b7   :  { %v4086_v25 = vpop.permute.xlu1 %494  ;;  %v4088_v26 = vpop.permute.xlu0 %538  ;;  %v1538_v1 = vstv %s4322_s23  ;;  %s6002_s23 = sld [smem:[#allocation3 + $0x83]] }
 0x3b8   :  { %v1539_v62 = vmul.f32 %v1538_v1, %v3604_v41 }
 0x3b9   :  { %1154 = vrot.lane.b32.xlu1 %v1151_v27, %s7141_s25  ;;  %1244 = vrot.lane.b32.xlu0 %v1242_v29, %s7149_s13  ;;  %s7151_s25 = smov 98   ;;  %v1351_v27 = vstv %s4121_s21  ;;  %v1241_v29 = vmul.f32 %v1239_v12, %v3606_v42  ;;  %s3401_s21 = smov 82  }
 0x3ba   :  { %v1352_v12 = vmul.f32 %v1351_v27, %v3612_v45 }
 0x3bb   :  { %v4110_v35 = vpop.permute.xlu1 %517  ;;  %v4112_v37 = vpop.permute.xlu0 %561  ;;  %v1243_v28 = vadd.f32 %v1241_v29, %v1238_v20  ;;  %v1289_v29 = vadd.f32 %v1287_v52, %v1284_v39  ;;  %v7160_v39 = vstv %s4217_s0  ;;  %v7159_v52 = vstv %s4228_s5 }
 0x3bd   :  { %1177 = vrot.lane.b32.xlu1 %v1174_v38, %s7143_s17  ;;  %1267 = vrot.lane.b32.xlu0 %v1265_v47, %s7151_s25  ;;  %s7153_s17 = smov 97   ;;  %v1334_v38 = vadd.f32 %v1332_v7, %v1329_v56  ;;  %v1261_v47 = vmul.f32 %v1259_v22, %v3614_v46  ;;  %v1355_v22 = vmul.f32 %v1354_v16, %v3604_v41 }
 0x3be   :  { %v1380_v7 = vadd.f32 %v1378_v31, %v1375_v24  ;;  %v1333_v24 = vmul.f32 %v1331_v11, %v3606_v42  ;;  %v1353_v31 = vmul.f32 %v1351_v27, %v3614_v46  ;;  %v1447_v27 = vmul.f32 %v7159_v52, %v3604_v41 }
 0x3bf   :  { %v4134_v55 = vpop.permute.xlu1 %540  ;;  %v4136_v3 = vpop.permute.xlu0 %584  ;;  %v1357_v58 = vadd.f32 %v1355_v22, %v1352_v12  ;;  %v1330_v12 = vmul.f32 %v1328_v9, %v3614_v46 }
 0x3c1   :  { %1200 = vrot.lane.b32.xlu1 %v1197_v2, %s7145_s26  ;;  %1290 = vrot.lane.b32.xlu0 %v1288_v5, %s7153_s17  ;;  %s7155_s26 = smov 96   ;;  %v1266_v5 = vadd.f32 %v1264_v30, %v1261_v47  ;;  %v1423_v47 = vstv %s4204_s20  ;;  %s1874_s20 = sld [smem:[#allocation3]] }
 0x3c2   :  { %v1424_v9 = vmul.f32 %v1423_v47, %v3604_v41 }
 0x3c3   :  { %v4158_v15 = vpop.permute.xlu1 %563  ;;  %v4160_v19 = vpop.permute.xlu0 %607 }
 0x3c5   :  { %1223 = vrot.lane.b32.xlu1 %v1220_v10, %s7147_s10  ;;  %1313 = vrot.lane.b32.xlu0 %v1311_v17, %s7155_s26  ;;  %s3397_s10 = smov 95   ;;  %v1400_v10 = vstv %s4180_s6  ;;  %v1307_v17 = vmul.f32 %v1305_v51, %v3614_v46  ;;  %s5004_s6 = sld [smem:[#allocation3 + $0x18]] }
 0x3c6   :  { %v1401_v51 = vmul.f32 %v1400_v10, %v3604_v41 }
 0x3c7   :  { %v4182_v23 = vpop.permute.xlu1 %586  ;;  %v4184_v33 = vpop.permute.xlu0 %630 }
 0x3c9   :  { %1246 = vrot.lane.b32.xlu1 %v1243_v28, %s7149_s13  ;;  %1336 = vrot.lane.b32.xlu0 %v1334_v38, %s3397_s10  ;;  %s3398_s13 = smov 94   ;;  %v1420_v28 = vstv %s4193_s3  ;;  %v1310_v38 = vmul.f32 %v1308_v53, %v3606_v42  ;;  %s5039_s3 = sld [smem:[#allocation3 + $0x98]] }
 0x3cb   :  { %v4206_v36 = vpop.permute.xlu1 %609  ;;  %v4208_v2 = vpop.permute.xlu0 %653  ;;  %v1312_v22 = vadd.f32 %v1310_v38, %v1307_v17  ;;  %v7158_v38 = vstv %s4241_s8 }
 0x3cd   :  { %1269 = vrot.lane.b32.xlu1 %v1266_v5, %s7151_s25  ;;  %1359 = vrot.lane.b32.xlu0 %v1357_v58, %s3398_s13  ;;  %s4252_s25 = sld [smem:[#allocation3 + $0xad]]  ;;  %v1403_v5 = vadd.f32 %v1401_v51, %v1398_v34  ;;  %v1421_v58 = vmul.f32 %v1420_v28, %v3612_v45  ;;  %v1444_v34 = vmul.f32 %v7160_v39, %v3612_v45 }
 0x3ce   :  { %v1356_v51 = vmul.f32 %v1354_v16, %v3606_v42 }
 0x3cf   :  { %v4233_v20 = vpop.permute.xlu1 %632  ;;  %v4235_v56 = vpop.permute.xlu0 %676 }
 0x3d0   :  { %v1358_v16 = vadd.f32 %v1356_v51, %v1353_v31 }
 0x3d1   :  { %1292 = vrot.lane.b32.xlu1 %v1289_v29, %s7153_s17  ;;  %1382 = vrot.lane.b32.xlu0 %v1380_v7, %s3399_s18  ;;  %s4276_s17 = sld [smem:[#allocation3 + $0xae]]  ;;  %v1335_v29 = vadd.f32 %v1333_v24, %v1330_v12  ;;  %v1426_v7 = vadd.f32 %v1424_v9, %v1421_v58  ;;  %v1449_v24 = vadd.f32 %v1447_v27, %v1444_v34 }
 0x3d2   :  { %v1467_v9 = vmul.f32 %v7158_v38, %v3612_v45  ;;  %v1402_v38 = vmul.f32 %v1400_v10, %v3606_v42  ;;  %v1425_v10 = vmul.f32 %v1423_v47, %v3606_v42  ;;  %v7377_v47 = vstv %s4228_s5  ;;  %s3012_s5 = sld [smem:[#allocation3 + $0x1]] }
 0x3d3   :  { %v4257_v30 = vpop.permute.xlu1 %655  ;;  %v4259_v53 = vpop.permute.xlu0 %699  ;;  %v1469_v12 = vstv %s4252_s25  ;;  %s3402_s25 = smov 81  }
 0x3d5   :  { %1315 = vrot.lane.b32.xlu1 %v1312_v22, %s7155_s26  ;;  %1405 = vrot.lane.b32.xlu0 %v1403_v5, %s3400_s30  ;;  %s4300_s26 = sld [smem:[#allocation3 + $0xaf]]  ;;  %v1376_v22 = vmul.f32 %v1374_v50, %v3614_v46  ;;  %v1470_v50 = vmul.f32 %v1469_v12, %v3604_v41 }
 0x3d7   :  { %v4281_v17 = vpop.permute.xlu1 %678  ;;  %v4283_v11 = vpop.permute.xlu0 %722  ;;  %v1492_v31 = vstv %s4276_s17  ;;  %v1472_v18 = vadd.f32 %v1470_v50, %v1467_v9  ;;  %s3403_s17 = smov 80  }
 0x3d9   :  { %1338 = vrot.lane.b32.xlu1 %v1335_v29, %s3397_s10  ;;  %1428 = vrot.lane.b32.xlu0 %v1426_v7, %s3401_s21  ;;  %v1489_v29 = vstv %s4265_s15  ;;  %v1379_v7 = vmul.f32 %v1377_v49, %v3606_v42  ;;  %v1399_v49 = vmul.f32 %v1397_v8, %v3614_v46  ;;  %s5984_s15 = sld [smem:[#allocation3 + $0x2]] }
 0x3da   :  { %v1491_v59 = vmul.f32 %v1489_v29, %v3614_v46 }
 0x3db   :  { %v4305_v5 = vpop.permute.xlu1 %701  ;;  %v4307_v58 = vpop.permute.xlu0 %745  ;;  %v1381_v27 = vadd.f32 %v1379_v7, %v1376_v22  ;;  %v1493_v22 = vmul.f32 %v1492_v31, %v3604_v41  ;;  %v1515_v9 = vstv %s4300_s26  ;;  %v1404_v8 = vadd.f32 %v1402_v38, %v1399_v49  ;;  %s3405_s26 = smov 78  }
 0x3dc   :  { %v1516_v6 = vmul.f32 %v1515_v9, %v3604_v41  ;;  %v7394_v41 = vmov 0 }
 0x3dd   :  { %1361 = vrot.lane.b32.xlu1 %v1358_v16, %s3398_s13  ;;  %1451 = vrot.lane.b32.xlu0 %v1449_v24, %s3402_s25  ;;  %v1490_v16 = vmul.f32 %v1489_v29, %v3612_v45  ;;  %v1512_v24 = vstv %s4289_s29  ;;  %s5990_s29 = sld [smem:[#allocation3 + $0x82]] }
 0x3de   :  { %v1513_v39 = vmul.f32 %v1512_v24, %v3612_v45 }
 0x3df   :  { %v4324_v34 = vpop.permute.xlu1 %724  ;;  %v4326_v51 = vpop.permute.xlu0 %768  ;;  %v1495_v52 = vadd.f32 %v1493_v22, %v1490_v16  ;;  %v7376_v22 = vstv %s4217_s0  ;;  %s3011_s0 = sld [smem:[#allocation3 + $0x80]] }
 0x3e0   :  { %v1518_v16 = vadd.f32 %v1516_v6, %v1513_v39  ;;  %v1445_v60 = vmul.f32 %v7376_v22, %v3614_v46 }
 0x3e1   :  { %1384 = vrot.lane.b32.xlu1 %v1381_v27, %s3399_s18  ;;  %1474 = vrot.lane.b32.xlu0 %v1472_v18, %s3403_s17  ;;  %v1422_v27 = vmul.f32 %v1420_v28, %v3614_v46  ;;  %v1535_v18 = vstv %s4313_s7  ;;  %s5996_s7 = sld [smem:[#allocation3 + $0x3]] }
 0x3e3   :  { %v4340_v7 = vpop.permute.xlu1 %747  ;;  %v4342_v50 = vpop.permute.xlu0 %791  ;;  %v1427_v28 = vadd.f32 %v1425_v10, %v1422_v27  ;;  %v7378_v27 = vstv %s4241_s8  ;;  %s3013_s8 = sld [smem:[#allocation3 + $0x81]] }
 0x3e4   :  { %v1468_v10 = vmul.f32 %v7378_v27, %v3614_v46 }
 0x3e5   :  { %1407 = vrot.lane.b32.xlu1 %v1404_v8, %s3400_s30  ;;  %1497 = vrot.lane.b32.xlu0 %v1495_v52, %s3404_s12  ;;  %v1536_v8 = vmul.f32 %v1535_v18, %v3612_v45  ;;  %v1448_v52 = vmul.f32 %v7377_v47, %v3606_v42 }
 0x3e7   :  { %v4356_v38 = vpop.permute.xlu1 %770  ;;  %v4358_v49 = vpop.permute.xlu0 %814  ;;  %v1450_v6 = vadd.f32 %v1448_v52, %v1445_v60  ;;  %v1541_v39 = vadd.f32 %v1539_v62, %v1536_v8  ;;  %v1494_v60 = vmul.f32 %v1492_v31, %v3606_v42  ;;  %v1540_v31 = vmul.f32 %v1538_v1, %v3606_v42 }
 0x3e8   :  { %v4417_v1 = vand.u32 15, %v3487_v21 }
 0x3e9   :  { %1430 = vrot.lane.b32.xlu1 %v1427_v28, %s3401_s21  ;;  %1520 = vrot.lane.b32.xlu0 %v1518_v16, %s3405_s26  ;;  %v1471_v28 = vmul.f32 %v1469_v12, %v3606_v42  ;;  %v1496_v52 = vadd.f32 %v1494_v60, %v1491_v59  ;;  %v1517_v12 = vmul.f32 %v1515_v9, %v3606_v42  ;;  %v4408_v9 = vshra.s32 %v3487_v21, 4 }
 0x3ea   :  { %vm7170_vm10 = vcmp.ge.s32.totalorder %v4417_v1, 3  ;;  %vm7175_vm13 = vcmp.ge.s32.totalorder %v4417_v1, 2  ;;  %v1801_v42 = vsel %vm7177_vm3, %v3897_v32, 0.0  ;;  %v475_v32 = vsel %vm7180_vm15, %v4062_v13, %v4038_v57 }
 0x3eb   :  { %v4370_v4 = vpop.permute.xlu1 %793  ;;  %v4372_v0 = vpop.permute.xlu0 %837  ;;  %v1473_v47 = vadd.f32 %v1471_v28, %v1468_v10  ;;  %v1537_v10 = vmul.f32 %v1535_v18, %v3614_v46  ;;  %vm48_vm5 = vcmp.ge.s32.totalorder %v4408_v9, 3  ;;  %vm50_vm6 = vcmp.lt.s32.totalorder %v4408_v9, 19 }
 0x3ec   :  { %vm4429_vm9 = vmand %vm48_vm5, %vm50_vm6 }
 0x3ed   :  { %1453 = vrot.lane.b32.xlu1 %v1450_v6, %s3402_s25  ;;  %1543 = vrot.lane.b32.xlu0 %v1541_v39, %s3406_s2  ;;  %v1514_v6 = vmul.f32 %v1512_v24, %v3614_v46  ;;  %v1542_v24 = vadd.f32 %v1540_v31, %v1537_v10  ;;  %v7383_v10 = vmov 0  ;;  %v7385_v31 = vmov 0  ;;  %vm4450_vm0 = vmand %vm4429_vm9, %vm7170_vm10 }
 0x3ee   :  { %v7384_v10 = vsel %vm4429_vm9, 4294967295, %v7383_v10  ;;  %vm4475_vm5 = vmand %vm4429_vm9, %vm7175_vm13  ;;  %v7397_v46 = vmov 0 }
 0x3ef   :  { %v4380_v16 = vpop.permute.xlu1 %816  ;;  %v4382_v22 = vpop.permute.xlu0 %860  ;;  %v1519_v29 = vadd.f32 %v1517_v12, %v1514_v6  ;;  %v7395_v41 = vsel %vm4475_vm5, 4294967295, %v7394_v41 }
 0x3f0   :  { %7396 = vst [vmem:[#allocation30_spill] sm:$0xff] %v7395_v41 }
 0x3f1   :  { %1476 = vrot.lane.b32.xlu1 %v1473_v47, %s3403_s17  ;;  %v43_v47 = vadd.s32 128, %v3487_v21 }
 0x3f3   :  { %v4387_v62 = vpop.permute.xlu1 %839  ;;  %v4389_v8 = vpop.permute.xlu0 %883  ;;  %v4414_v18 = vshra.s32 %v43_v47, 4  ;;  %v4421_v6 = vand.u32 15, %v43_v47 }
 0x3f5   :  { %1499 = vrot.lane.b32.xlu1 %v1496_v52, %s3404_s12  ;;  %vm49_vm7 = vcmp.ge.s32.totalorder %v4414_v18, 3  ;;  %vm51_vm8 = vcmp.lt.s32.totalorder %v4414_v18, 19  ;;  %vm7173_vm12 = vcmp.ge.s32.totalorder %v4421_v6, 3  ;;  %vm7181_vm1 = vcmp.ge.s32.totalorder %v4421_v6, 2 }
 0x3f6   :  { %vm4434_vm11 = vmand %vm49_vm7, %vm51_vm8  ;;  %vm7185_vm7 = vcmp.ge.s32.totalorder %v4417_v1, 1  ;;  %vm56_vm8 = vcmp.lt.s32.totalorder %v4408_v9, 18  ;;  %vm55_vm4 = vcmp.ge.s32.totalorder %v4414_v18, 2  ;;  %vm57_vm3 = vcmp.lt.s32.totalorder %v4414_v18, 18 }
 0x3f7   :  { %v4394_v39 = vpop.permute.xlu1 %862  ;;  %v4396_v27 = vpop.permute.xlu0 %906  ;;  %v7386_v31 = vsel %vm4434_vm11, 4294967295, %v7385_v31  ;;  %vm4462_vm6 = vmand %vm4434_vm11, %vm7173_vm12  ;;  %vm7189_vm12 = vcmp.ge.s32.totalorder %v4421_v6, 1 }
 0x3f8   :  { %vm4494_vm13 = vmand %vm4434_vm11, %vm7181_vm1  ;;  %vm7411_vm1 = vcmask 15360  }
 0x3f9   :  { %1522 = vrot.lane.b32.xlu1 %v1519_v29, %s3405_s26  ;;  %v7398_v46 = vsel %vm4494_vm13, 4294967295, %v7397_v46 }
 0x3fa   :  { %7399 = vst [vmem:[#allocation31_spill] sm:$0xff] %v7398_v46 }
 0x3fb   :  { %v4401_v28 = vpop.permute.xlu1 %885  ;;  %v4403_v59 = vpop.permute.xlu0 %929 }
 0x3fc   :  { %7379 = vst [vmem:[#allocation23_spill] sm:$0xff] %v4403_v59  ;;  %v7405_v59 = vmov 0 }
 0x3fd   :  { %1545 = vrot.lane.b32.xlu1 %v1542_v24, %s3406_s2 }
 0x3ff   :  { %v4410_v60 = vpop.permute.xlu1 %908  ;;  %v4412_v52 = vpop.permute.xlu0 %952 }
 0x400   :  { %7380 = vst [vmem:[#allocation24_spill] sm:$0xff] %v4412_v52 }
 0x403   :  { %v4425_v12 = vpop.permute.xlu1 %931  ;;  %v4427_v29 = vpop.permute.xlu0 %975 }
 0x404   :  { %7381 = vst [vmem:[#allocation25_spill] sm:$0xff] %v4425_v12  ;;  %7382 = vst [vmem:[#allocation26_spill] sm:$0xff] %v4427_v29  ;;  %v474_v29 = vsel %vm7180_vm15, %v4038_v57, %v4062_v13  ;;  %v7402_v57 = vmov 0  ;;  %v451_v13 = vsel %vm7187_vm14, %v4016_v44, %v4014_v40 }
 0x405   :  { %vm4508_vm15 = vmand %vm4429_vm9, %vm7185_vm7 }
 0x406   :  { %v7403_v57 = vsel %vm4508_vm15, 4294967295, %v7402_v57  ;;  %vm4534_vm7 = vmand %vm4434_vm11, %vm7189_vm12  ;;  %vm7412_vm12 = vcmp.lt.s32.totalorder %v3487_v21, 48 }
 0x407   :  { %v4442_v24 = vpop.permute.xlu1 %954  ;;  %v4444_v47 = vpop.permute.xlu0 %1014  ;;  %7404 = vst [vmem:[#allocation34_spill] sm:$0xff] %v7403_v57  ;;  %v7406_v59 = vsel %vm4534_vm7, 4294967295, %v7405_v59 }
 0x408   :  { %7387 = vst [vmem:[#allocation27_spill] sm:$0xff] %v4442_v24  ;;  %7388 = vst [vmem:[#allocation28_spill] sm:$0xff] %v4444_v47  ;;  %v7391_v47 = vmov 0  ;;  %v498_v24 = vsel %vm7188_vm2, %v4086_v25, %v4040_v63 }
 0x409   :  { %v7392_v47 = vsel %vm4462_vm6, 4294967295, %v7391_v47  ;;  %7407 = vst [vmem:[#allocation35_spill] sm:$0xff] %v7406_v59  ;;  %v7423_v59 = vmov 0 }
 0x40a   :  { %7393 = vst [vmem:[#allocation29_spill] sm:$0xff] %v7392_v47 }
 0x40b   :  { %v4500_v45 = vpop.permute.xlu1 %977  ;;  %v4502_v52 = vpop.permute.xlu0 %1037 }
 0x40c   :  { %7400 = vst [vmem:[#allocation32_spill] sm:$0xff] %v4500_v45  ;;  %7401 = vst [vmem:[#allocation33_spill] sm:$0xff] %v4502_v52  ;;  %v452_v52 = vsel %vm7187_vm14, %v4014_v40, %v4016_v44  ;;  %v497_v45 = vsel %vm7188_vm2, %v4040_v63, %v4086_v25  ;;  %1802 = vadd.xlane.f32.xlu0 %v1801_v42  ;;  %vm7408_vm14 = vcmp.ge.s32.totalorder %v4408_v9, 2  ;;  %v7409_v40 = vmov 0 }
 0x40d   :  { %vm4542_vm10 = vmand %vm7408_vm14, %vm56_vm8  ;;  %v1792_v44 = vsel %vm7411_vm1, %v3921_v48, 0.0  ;;  %v478_v42 = vsel %vm4475_vm5, %v475_v32, 0.0  ;;  %v479_v63 = vsel %vm4494_vm13, %v474_v29, 0.0  ;;  %v520_v25 = vsel %vm7412_vm12, %v4064_v14, %v4110_v35 }
 0x40e   :  { %v7410_v40 = vsel %vm4542_vm10, 4294967295, %v7409_v40  ;;  %vm7413_vm14 = vmmov %vm7412_vm12  ;;  %v7414_v48 = vmov 0  ;;  %v455_v46 = vsel %vm4450_vm0, %v452_v52, 0.0  ;;  %v502_v41 = vsel %vm4534_vm7, %v497_v45, 0.0 }
 0x40f   :  { %v521_v12 = vsel %vm7413_vm14, %v4110_v35, %v4064_v14  ;;  %vm4565_vm1 = vmand %vm55_vm4, %vm57_vm3  ;;  %v4571_v29 = vpop.permute.xlu1 %1016  ;;  %v4573_v32 = vpop.permute.xlu0 %1083  ;;  %v456_v14 = vsel %vm4462_vm6, %v451_v13, 0.0  ;;  %v501_v35 = vsel %vm4508_vm15, %v498_v24, 0.0  ;;  %vm7417_vm3 = vcmp.lt.s32.totalorder %v4417_v1, 15 }
 0x410   :  { %v7415_v48 = vsel %vm4565_vm1, 4294967295, %v7414_v48  ;;  %7416 = vst [vmem:[#allocation36_spill] sm:$0xff] %v4571_v29  ;;  %vm4587_vm12 = vmand %vm4429_vm9, %vm7417_vm3  ;;  %v7418_v29 = vmov 0  ;;  %vm7420_vm4 = vcmp.lt.s32.totalorder %v3487_v21, 47  ;;  %1793 = vadd.xlane.f32.xlu0 %v1792_v44  ;;  %v480_v45 = vadd.f32 %v478_v42, %v455_v46 }
 0x411   :  { %v7419_v29 = vsel %vm4587_vm12, 4294967295, %v7418_v29  ;;  %v543_v52 = vsel %vm7420_vm4, %v4088_v26, %v4134_v55  ;;  %vm7421_vm14 = vmmov %vm7420_vm4  ;;  %v481_v13 = vadd.f32 %v479_v63, %v456_v14  ;;  %vm7422_vm2 = vcmp.lt.s32.totalorder %v4421_v6, 15 }
 0x412   :  { %v544_v24 = vsel %vm7421_vm14, %v4134_v55, %v4088_v26  ;;  %vm4603_vm3 = vmand %vm4434_vm11, %vm7422_vm2  ;;  %v524_v57 = vsel %vm4429_vm9, %v521_v12, 0.0  ;;  %v525_v47 = vsel %vm4434_vm11, %v520_v25, 0.0  ;;  %vm7425_vm4 = vcmask 15360  }
 0x413   :  { %v7424_v59 = vsel %vm4603_vm3, 4294967295, %v7423_v59  ;;  %v1798_v26 = vsel %vm7425_vm4, %v3930_v54, 0.0  ;;  %vm7426_vm14 = vcmp.lt.s32.totalorder %v4417_v1, 14  ;;  %v7427_v46 = vmov 0  ;;  %v4640_v63 = vpop.permute.xlu1 %1039  ;;  %v4642_v25 = vpop.permute.xlu0 %1106 }
 0x414   :  { %vm4617_vm8 = vmand %vm4429_vm9, %vm7426_vm14  ;;  %vm7429_vm7 = vcmp.lt.s32.totalorder %v3487_v21, 46  ;;  %v503_v12 = vadd.f32 %v501_v35, %v480_v45  ;;  %v504_v44 = vadd.f32 %v502_v41, %v481_v13  ;;  %vm7431_vm4 = vcmp.lt.s32.totalorder %v4421_v6, 14  ;;  %1799 = vadd.xlane.f32.xlu0 %v1798_v26 }
 0x415   :  { %v7428_v46 = vsel %vm4617_vm8, 4294967295, %v7427_v46  ;;  %v566_v55 = vsel %vm7429_vm7, %v4112_v37, %v4158_v15  ;;  %vm7430_vm15 = vmmov %vm7429_vm7  ;;  %v7432_v42 = vmov 0  ;;  %v548_v41 = vsel %vm4603_vm3, %v543_v52, 0.0 }
 0x416   :  { %v567_v54 = vsel %vm7430_vm15, %v4158_v15, %v4112_v37  ;;  %vm4634_vm14 = vmand %vm4434_vm11, %vm7431_vm4  ;;  %v547_v37 = vsel %vm4587_vm12, %v544_v24, 0.0  ;;  %vm7434_vm15 = vcmp.lt.s32.totalorder %v4417_v1, 13  ;;  %v7435_v15 = vmov 0 }
 0x417   :  { %v7433_v42 = vsel %vm4634_vm14, 4294967295, %v7432_v42  ;;  %vm4652_vm7 = vmand %vm4429_vm9, %vm7434_vm15  ;;  %vm7437_vm4 = vcmp.lt.s32.totalorder %v3487_v21, 45  ;;  %v526_v52 = vadd.f32 %v524_v57, %v503_v12  ;;  %v527_v24 = vadd.f32 %v525_v47, %v504_v44  ;;  %v4704_v12 = vpop.permute.xlu1 %1060  ;;  %v4706_v44 = vpop.permute.xlu0 %1129 }
 0x418   :  { %v7436_v15 = vsel %vm4652_vm7, 4294967295, %v7435_v15  ;;  %v589_v14 = vsel %vm7437_vm4, %v4136_v3, %v4182_v23  ;;  %vm7438_vm13 = vmmov %vm7437_vm4  ;;  %vm7439_vm2 = vcmp.lt.s32.totalorder %v4421_v6, 13  ;;  %v7440_v45 = vmov 0 }
 0x419   :  { %v590_v35 = vsel %vm7438_vm13, %v4182_v23, %v4136_v3  ;;  %vm4668_vm15 = vmand %vm4434_vm11, %vm7439_vm2  ;;  %v570_v13 = vsel %vm4617_vm8, %v567_v54, 0.0  ;;  %v571_v3 = vsel %vm4634_vm14, %v566_v55, 0.0  ;;  %vm7443_vm13 = vcmp.ge.s32.totalorder %v4417_v1, 3 }
 0x41a   :  { %v7441_v45 = vsel %vm4668_vm15, 4294967295, %v7440_v45  ;;  %vm4682_vm12 = vmand %vm4542_vm10, %vm7443_vm13  ;;  %v7444_v23 = vmov 0  ;;  %vm7446_vm2 = vcmp.lt.s32.totalorder %v3487_v21, 35  ;;  %v549_v26 = vadd.f32 %v547_v37, %v526_v52 }
 0x41b   :  { %7442 = vst [vmem:[#allocation37_spill] sm:$0xff] %v7441_v45  ;;  %v7445_v23 = vsel %vm4682_vm12, 4294967295, %v7444_v23  ;;  %v612_v47 = vsel %vm7446_vm2, %v4160_v19, %v4206_v36  ;;  %vm7447_vm4 = vmmov %vm7446_vm2  ;;  %v550_v55 = vadd.f32 %v548_v41, %v527_v24  ;;  %vm7448_vm3 = vcmp.ge.s32.totalorder %v4421_v6, 3 }
 0x41c   :  { %v613_v57 = vsel %vm7447_vm4, %v4206_v36, %v4160_v19  ;;  %vm4698_vm13 = vmand %vm4565_vm1, %vm7448_vm3  ;;  %v7449_v54 = vmov 0  ;;  %v593_v19 = vsel %vm4652_vm7, %v590_v35, 0.0  ;;  %v594_v36 = vsel %vm4668_vm15, %v589_v14, 0.0 }
 0x41d   :  { %v7450_v54 = vsel %vm4698_vm13, 4294967295, %v7449_v54  ;;  %vm7452_vm4 = vcmp.ge.s32.totalorder %v4417_v1, 2  ;;  %v7453_v37 = vmov 0  ;;  %vm7456_vm2 = vcmp.lt.s32.totalorder %v3487_v21, 34 }
 0x41e   :  { %7451 = vst [vmem:[#allocation38_spill] sm:$0xff] %v7450_v54  ;;  %vm4716_vm3 = vmand %vm4542_vm10, %vm7452_vm4  ;;  %v635_v41 = vsel %vm7456_vm2, %v4184_v33, %v4233_v20  ;;  %v572_v52 = vadd.f32 %v570_v13, %v549_v26  ;;  %v573_v14 = vadd.f32 %v571_v3, %v550_v55  ;;  %vm7458_vm8 = vcmp.ge.s32.totalorder %v4421_v6, 2 }
 0x41f   :  { %v7454_v37 = vsel %vm4716_vm3, 4294967295, %v7453_v37  ;;  %vm7457_vm14 = vmmov %vm7456_vm2  ;;  %v7459_v24 = vmov 0  ;;  %v616_v45 = vsel %vm4682_vm12, %v613_v57, 0.0  ;;  %vm7468_vm7 = vcmp.ge.s32.totalorder %v4421_v6, 1 }
 0x420   :  { %7455 = vst [vmem:[#allocation39_spill] sm:$0xff] %v7454_v37  ;;  %v636_v35 = vsel %vm7457_vm14, %v4233_v20, %v4184_v33  ;;  %vm4732_vm4 = vmand %vm4565_vm1, %vm7458_vm8  ;;  %v617_v33 = vsel %vm4698_vm13, %v612_v47, 0.0  ;;  %vm7462_vm14 = vcmp.ge.s32.totalorder %v4417_v1, 1  ;;  %v7463_v20 = vmov 0 }
 0x421   :  { %v7460_v24 = vsel %vm4732_vm4, 4294967295, %v7459_v24  ;;  %vm4746_vm2 = vmand %vm4542_vm10, %vm7462_vm14  ;;  %vm7466_vm8 = vcmp.lt.s32.totalorder %v3487_v21, 33  ;;  %v595_v57 = vadd.f32 %v593_v19, %v572_v52  ;;  %v596_v47 = vadd.f32 %v594_v36, %v573_v14 }
 0x422   :  { %7461 = vst [vmem:[#allocation40_spill] sm:$0xff] %v7460_v24  ;;  %v7464_v20 = vsel %vm4746_vm2, 4294967295, %v7463_v20  ;;  %v658_v13 = vsel %vm7466_vm8, %v4208_v2, %v4257_v30  ;;  %vm7467_vm15 = vmmov %vm7466_vm8  ;;  %v7469_v26 = vmov 0  ;;  %vm7472_vm12 = vcmp.lt.s32.totalorder %v4408_v9, 17 }
 0x423   :  { %7465 = vst [vmem:[#allocation41_spill] sm:$0xff] %v7464_v20  ;;  %v659_v3 = vsel %vm7467_vm15, %v4257_v30, %v4208_v2  ;;  %vm4762_vm14 = vmand %vm4565_vm1, %vm7468_vm7  ;;  %vm7473_vm8 = vcmp.ge.s32.totalorder %v4408_v9, 1  ;;  %v7474_v55 = vmov 0  ;;  %v4775_v2 = vpop.permute.xlu1 %1062  ;;  %v4777_v30 = vpop.permute.xlu0 %1152  ;;  %v639_v19 = vsel %vm4716_vm3, %v636_v35, 0.0 }
 0x424   :  { %v7470_v26 = vsel %vm4762_vm14, 4294967295, %v7469_v26  ;;  %vm4771_vm11 = vmand %vm7473_vm8, %vm7472_vm12  ;;  %v640_v36 = vsel %vm4732_vm4, %v635_v41, 0.0  ;;  %vm7477_vm7 = vcmp.lt.s32.totalorder %v3487_v21, 32  ;;  %vm7479_vm15 = vcmp.lt.s32.totalorder %v4414_v18, 17 }
 0x425   :  { %7471 = vst [vmem:[#allocation42_spill] sm:$0xff] %v7470_v26  ;;  %v7475_v55 = vsel %vm4771_vm11, 4294967295, %v7474_v55  ;;  %v681_v52 = vsel %vm7477_vm7, %v4235_v56, %v4281_v17  ;;  %vm7478_vm12 = vmmov %vm7477_vm7  ;;  %vm7480_vm8 = vcmp.ge.s32.totalorder %v4414_v18, 1  ;;  %v7481_v37 = vmov 0 }
 0x426   :  { %7476 = vst [vmem:[#allocation43_spill] sm:$0xff] %v7475_v55  ;;  %v682_v14 = vsel %vm7478_vm12, %v4281_v17, %v4235_v56  ;;  %vm4795_vm13 = vmand %vm7480_vm8, %vm7479_vm15  ;;  %v618_v35 = vadd.f32 %v616_v45, %v595_v57  ;;  %v619_v41 = vadd.f32 %v617_v33, %v596_v47  ;;  %v662_v24 = vsel %vm4746_vm2, %v659_v3, 0.0 }
 0x427   :  { %v7482_v37 = vsel %vm4795_vm13, 4294967295, %v7481_v37  ;;  %v663_v54 = vsel %vm4762_vm14, %v658_v13, 0.0  ;;  %vm7484_vm7 = vcmp.lt.s32.totalorder %v4417_v1, 15  ;;  %v7485_v56 = vmov 0 }
 0x428   :  { %7483 = vst [vmem:[#allocation44_spill] sm:$0xff] %v7482_v37  ;;  %vm4808_vm12 = vmand %vm4542_vm10, %vm7484_vm7  ;;  %vm7487_vm15 = vcmp.lt.s32.totalorder %v3487_v21, 31  ;;  %v641_v33 = vadd.f32 %v639_v19, %v618_v35  ;;  %v642_v13 = vadd.f32 %v640_v36, %v619_v41  ;;  %vm7489_vm4 = vcmp.lt.s32.totalorder %v4421_v6, 15  ;;  %v4837_v19 = vpop.permute.xlu0 %1175 }
 0x429   :  { %v7486_v56 = vsel %vm4808_vm12, 4294967295, %v7485_v56  ;;  %v704_v17 = vsel %vm7487_vm15, %v4259_v53, %v4305_v5  ;;  %vm7488_vm8 = vmmov %vm7487_vm15  ;;  %v7490_v3 = vmov 0  ;;  %v685_v57 = vsel %vm4542_vm10, %v682_v14, 0.0 }
 0x42a   :  { %v705_v45 = vsel %vm7488_vm8, %v4305_v5, %v4259_v53  ;;  %vm4824_vm7 = vmand %vm4565_vm1, %vm7489_vm4  ;;  %v686_v47 = vsel %vm4565_vm1, %v681_v52, 0.0  ;;  %vm7492_vm8 = vcmask 15360   ;;  %v4835_v5 = vpop.permute.xlu1 %1085  ;;  %vm7493_vm4 = vcmp.lt.s32.totalorder %v4417_v1, 14 }
 0x42b   :  { %v7491_v3 = vsel %vm4824_vm7, 4294967295, %v7490_v3  ;;  %v1795_v53 = vsel %vm7492_vm8, %v3913_v43, 0.0  ;;  %vm4843_vm14 = vmand %vm4542_vm10, %vm7493_vm4  ;;  %v7494_v36 = vmov 0  ;;  %vm7497_vm2 = vcmp.lt.s32.totalorder %v3487_v21, 30 }
 0x42c   :  { %v7495_v36 = vsel %vm4843_vm14, 4294967295, %v7494_v36  ;;  %v727_v52 = vsel %vm7497_vm2, %v4283_v11, %v4324_v34  ;;  %vm7498_vm8 = vmmov %vm7497_vm2  ;;  %v664_v14 = vadd.f32 %v662_v24, %v641_v33  ;;  %v665_v35 = vadd.f32 %v663_v54, %v642_v13  ;;  %1796 = vadd.xlane.f32.xlu1 %v1795_v53  ;;  %v4896_v13 = vpop.permute.xlu0 %1198 }
 0x42d   :  { %7496 = vst [vmem:[#allocation45_spill] sm:$0xff] %v7495_v36  ;;  %v728_v43 = vsel %vm7498_vm8, %v4324_v34, %v4283_v11  ;;  %vm7499_vm15 = vcmp.lt.s32.totalorder %v4421_v6, 14  ;;  %v7500_v41 = vmov 0  ;;  %v708_v26 = vsel %vm4808_vm12, %v705_v45, 0.0 }
 0x42e   :  { %vm4859_vm4 = vmand %vm4565_vm1, %vm7499_vm15  ;;  %v709_v20 = vsel %vm4824_vm7, %v704_v17, 0.0  ;;  %vm7503_vm2 = vcmp.lt.s32.totalorder %v4417_v1, 13  ;;  %v7504_v11 = vmov 0  ;;  %vm7507_vm3 = vcmp.lt.s32.totalorder %v3487_v21, 29  ;;  %v4894_v33 = vpop.permute.xlu1 %1108 }
 0x42f   :  { %v7501_v41 = vsel %vm4859_vm4, 4294967295, %v7500_v41  ;;  %vm4872_vm8 = vmand %vm4542_vm10, %vm7503_vm2  ;;  %v750_v34 = vsel %vm7507_vm3, %v4307_v58, %v4340_v7  ;;  %v687_v24 = vadd.f32 %v685_v57, %v664_v14  ;;  %v688_v17 = vadd.f32 %v686_v47, %v665_v35 }
 0x430   :  { %7502 = vst [vmem:[#allocation46_spill] sm:$0xff] %v7501_v41  ;;  %v7505_v11 = vsel %vm4872_vm8, 4294967295, %v7504_v11  ;;  %vm7508_vm12 = vmmov %vm7507_vm3  ;;  %vm7509_vm7 = vcmp.lt.s32.totalorder %v4421_v6, 13  ;;  %v7510_v45 = vmov 0  ;;  %v731_v53 = vsel %vm4843_vm14, %v728_v43, 0.0 }
 0x431   :  { %7506 = vst [vmem:[#allocation47_spill] sm:$0xff] %v7505_v11  ;;  %v751_v54 = vsel %vm7508_vm12, %v4340_v7, %v4307_v58  ;;  %vm4889_vm2 = vmand %vm4565_vm1, %vm7509_vm7  ;;  %v732_v58 = vsel %vm4859_vm4, %v727_v52, 0.0  ;;  %vm7513_vm3 = vcmp.ge.s32.totalorder %v4417_v1, 3  ;;  %v7514_v7 = vmov 0 }
 0x432   :  { %v7511_v45 = vsel %vm4889_vm2, 4294967295, %v7510_v45  ;;  %vm4906_vm12 = vmand %vm4771_vm11, %vm7513_vm3  ;;  %vm7517_vm15 = vcmp.lt.s32.totalorder %v3487_v21, 19  ;;  %v710_v52 = vadd.f32 %v708_v26, %v687_v24  ;;  %v711_v43 = vadd.f32 %v709_v20, %v688_v17  ;;  %v4958_v24 = vpop.permute.xlu1 %1131  ;;  %v4960_v17 = vpop.permute.xlu0 %1221 }
 0x433   :  { %7512 = vst [vmem:[#allocation48_spill] sm:$0xff] %v7511_v45  ;;  %v7515_v7 = vsel %vm4906_vm12, 4294967295, %v7514_v7  ;;  %v773_v57 = vsel %vm7517_vm15, %v4326_v51, %v4356_v38  ;;  %vm7518_vm14 = vmmov %vm7517_vm15  ;;  %vm7519_vm4 = vcmp.ge.s32.totalorder %v4421_v6, 3  ;;  %v7520_v14 = vmov 0 }
 0x434   :  { %7516 = vst [vmem:[#allocation49_spill] sm:$0xff] %v7515_v7  ;;  %v774_v47 = vsel %vm7518_vm14, %v4356_v38, %v4326_v51  ;;  %vm4923_vm3 = vmand %vm4795_vm13, %vm7519_vm4  ;;  %v754_v35 = vsel %vm4872_vm8, %v751_v54, 0.0  ;;  %v755_v41 = vsel %vm4889_vm2, %v750_v34, 0.0  ;;  %vm7523_vm14 = vcmp.ge.s32.totalorder %v4417_v1, 2 }
 0x435   :  { %v7521_v14 = vsel %vm4923_vm3, 4294967295, %v7520_v14  ;;  %vm4936_vm15 = vmand %vm4771_vm11, %vm7523_vm14  ;;  %v7524_v51 = vmov 0  ;;  %vm7527_vm7 = vcmp.lt.s32.totalorder %v3487_v21, 18  ;;  %v733_v26 = vadd.f32 %v731_v53, %v710_v52 }
 0x436   :  { %7522 = vst [vmem:[#allocation50_spill] sm:$0xff] %v7521_v14  ;;  %v7525_v51 = vsel %vm4936_vm15, 4294967295, %v7524_v51  ;;  %v796_v38 = vsel %vm7527_vm7, %v4342_v50, %v4370_v4  ;;  %vm7528_vm8 = vmmov %vm7527_vm7  ;;  %v734_v34 = vadd.f32 %v732_v58, %v711_v43  ;;  %vm7529_vm2 = vcmp.ge.s32.totalorder %v4421_v6, 2 }
 0x437   :  { %7526 = vst [vmem:[#allocation51_spill] sm:$0xff] %v7525_v51  ;;  %v797_v20 = vsel %vm7528_vm8, %v4370_v4, %v4342_v50  ;;  %vm4953_vm14 = vmand %vm4795_vm13, %vm7529_vm2  ;;  %v7530_v54 = vmov 0  ;;  %v777_v45 = vsel %vm4906_vm12, %v774_v47, 0.0  ;;  %v778_v4 = vsel %vm4923_vm3, %v773_v57, 0.0 }
 0x438   :  { %v7531_v54 = vsel %vm4953_vm14, 4294967295, %v7530_v54  ;;  %vm7533_vm8 = vcmp.ge.s32.totalorder %v4417_v1, 1  ;;  %v7534_v50 = vmov 0  ;;  %vm7537_vm4 = vcmp.lt.s32.totalorder %v3487_v21, 17 }
 0x439   :  { %7532 = vst [vmem:[#allocation52_spill] sm:$0xff] %v7531_v54  ;;  %vm4970_vm2 = vmand %vm4771_vm11, %vm7533_vm8  ;;  %v819_v53 = vsel %vm7537_vm4, %v4358_v49, %v4380_v16  ;;  %v756_v57 = vadd.f32 %v754_v35, %v733_v26  ;;  %v757_v47 = vadd.f32 %v755_v41, %v734_v34  ;;  %vm7539_vm3 = vcmp.ge.s32.totalorder %v4421_v6, 1  ;;  %v5023_v26 = vpop.permute.xlu1 %1154  ;;  %v5025_v34 = vpop.permute.xlu0 %1244 }
 0x43a   :  { %v7535_v50 = vsel %vm4970_vm2, 4294967295, %v7534_v50  ;;  %vm7538_vm12 = vmmov %vm7537_vm4  ;;  %v7540_v52 = vmov 0  ;;  %v800_v43 = vsel %vm4936_vm15, %v797_v20, 0.0  ;;  %v801_v14 = vsel %vm4953_vm14, %v796_v38, 0.0 }
 0x43b   :  { %7536 = vst [vmem:[#allocation53_spill] sm:$0xff] %v7535_v50  ;;  %v820_v58 = vsel %vm7538_vm12, %v4380_v16, %v4358_v49  ;;  %vm4987_vm8 = vmand %vm4795_vm13, %vm7539_vm3  ;;  %vm7543_vm12 = vcmp.lt.s32.totalorder %v4408_v9, 16  ;;  %vm7544_vm4 = vcmp.ge.s32.totalorder %v4408_v9, 0  ;;  %v7545_v49 = vmov 0 }
 0x43c   :  { %v7541_v52 = vsel %vm4987_vm8, 4294967295, %v7540_v52  ;;  %vm5000_vm1 = vmand %vm7544_vm4, %vm7543_vm12  ;;  %vm7547_vm3 = vcmp.lt.s32.totalorder %v3487_v21, 16  ;;  %v779_v35 = vadd.f32 %v777_v45, %v756_v57  ;;  %v780_v38 = vadd.f32 %v778_v4, %v757_v47 }
 0x43d   :  { %7542 = vst [vmem:[#allocation54_spill] sm:$0xff] %v7541_v52  ;;  %v7546_v49 = vsel %vm5000_vm1, 4294967295, %v7545_v49  ;;  %v842_v16 = vsel %vm7547_vm3, %v4372_v0, %v4387_v62  ;;  %vm7548_vm7 = vmmov %vm7547_vm3  ;;  %vm7549_vm14 = vcmp.lt.s32.totalorder %v4414_v18, 16  ;;  %vm7550_vm12 = vcmp.ge.s32.totalorder %v4414_v18, 0 }
 0x43e   :  { %v843_v41 = vsel %vm7548_vm7, %v4387_v62, %v4372_v0  ;;  %vm5018_vm4 = vmand %vm7550_vm12, %vm7549_vm14  ;;  %v7551_v20 = vmov 0  ;;  %v823_v54 = vsel %vm4970_vm2, %v820_v58, 0.0  ;;  %v824_v0 = vsel %vm4987_vm8, %v819_v53, 0.0 }
 0x43f   :  { %v7552_v20 = vsel %vm5018_vm4, 4294967295, %v7551_v20  ;;  %vm7553_vm7 = vcmp.lt.s32.totalorder %v4417_v1, 15  ;;  %v7554_v62 = vmov 0  ;;  %vm7557_vm3 = vcmp.lt.s32.totalorder %v3487_v21, 15 }
 0x440   :  { %vm5035_vm14 = vmand %vm4771_vm11, %vm7553_vm7  ;;  %v865_v45 = vsel %vm7557_vm3, %v4382_v22, %v4394_v39  ;;  %v802_v53 = vadd.f32 %v800_v43, %v779_v35  ;;  %v803_v58 = vadd.f32 %v801_v14, %v780_v38  ;;  %vm7559_vm15 = vcmp.lt.s32.totalorder %v4421_v6, 15  ;;  %v5087_v35 = vpop.permute.xlu1 %1177  ;;  %v5089_v38 = vpop.permute.xlu0 %1267 }
 0x441   :  { %v7555_v62 = vsel %vm5035_vm14, 4294967295, %v7554_v62  ;;  %vm7558_vm12 = vmmov %vm7557_vm3  ;;  %v7560_v57 = vmov 0  ;;  %v846_v47 = vsel %vm4771_vm11, %v843_v41, 0.0  ;;  %v847_v52 = vsel %vm4795_vm13, %v842_v16, 0.0 }
 0x442   :  { %7556 = vst [vmem:[#allocation55_spill] sm:$0xff] %v7555_v62  ;;  %v866_v4 = vsel %vm7558_vm12, %v4394_v39, %v4382_v22  ;;  %vm5053_vm7 = vmand %vm4795_vm13, %vm7559_vm15  ;;  %vm7563_vm12 = vcmp.lt.s32.totalorder %v4417_v1, 14  ;;  %v7564_v22 = vmov 0  ;;  %vm7567_vm15 = vcmp.lt.s32.totalorder %v3487_v21, 14 }
 0x443   :  { %v7561_v57 = vsel %vm5053_vm7, 4294967295, %v7560_v57  ;;  %vm5066_vm8 = vmand %vm4771_vm11, %vm7563_vm12  ;;  %v888_v39 = vsel %vm7567_vm15, %v4389_v8, %v4401_v28  ;;  %v825_v43 = vadd.f32 %v823_v54, %v802_v53  ;;  %v826_v16 = vadd.f32 %v824_v0, %v803_v58 }
 0x444   :  { %7562 = vst [vmem:[#allocation56_spill] sm:$0xff] %v7561_v57  ;;  %v7565_v22 = vsel %vm5066_vm8, 4294967295, %v7564_v22  ;;  %vm7568_vm2 = vmmov %vm7567_vm15  ;;  %vm7569_vm3 = vcmp.lt.s32.totalorder %v4421_v6, 14  ;;  %v7570_v41 = vmov 0  ;;  %v7574_v54 = vmov 0  ;;  %v5154_v37 = vpop.permute.xlu0 %1290 }
 0x445   :  { %7566 = vst [vmem:[#allocation57_spill] sm:$0xff] %v7565_v22  ;;  %v889_v14 = vsel %vm7568_vm2, %v4401_v28, %v4389_v8  ;;  %vm5082_vm12 = vmand %vm4795_vm13, %vm7569_vm3  ;;  %v869_v8 = vsel %vm5035_vm14, %v866_v4, 0.0  ;;  %v870_v28 = vsel %vm5053_vm7, %v865_v45, 0.0  ;;  %vm7573_vm2 = vcmp.lt.s32.totalorder %v4417_v1, 13  ;;  %v5152_v22 = vpop.permute.xlu1 %1200 }
 0x446   :  { %v7571_v41 = vsel %vm5082_vm12, 4294967295, %v7570_v41  ;;  %vm5099_vm3 = vmand %vm4771_vm11, %vm7573_vm2  ;;  %vm7577_vm15 = vcmp.lt.s32.totalorder %v3487_v21, 13  ;;  %v848_v53 = vadd.f32 %v846_v47, %v825_v43  ;;  %v849_v45 = vadd.f32 %v847_v52, %v826_v16  ;;  %v7588_v52 = vld [vmem:[#allocation25_spill] sm:$0xff]  ;;  %v7589_v47 = vld [vmem:[#allocation23_spill] sm:$0xff] }
 0x447   :  { %7572 = vst [vmem:[#allocation58_spill] sm:$0xff] %v7571_v41  ;;  %v7575_v54 = vsel %vm5099_vm3, 4294967295, %v7574_v54  ;;  %v911_v0 = vsel %vm7577_vm15, %v4396_v27, %v4410_v60  ;;  %vm7578_vm10 = vmmov %vm7577_vm15  ;;  %vm7579_vm7 = vcmp.lt.s32.totalorder %v4421_v6, 13  ;;  %v7580_v58 = vmov 0 }
 0x448   :  { %7576 = vst [vmem:[#allocation59_spill] sm:$0xff] %v7575_v54  ;;  %v912_v4 = vsel %vm7578_vm10, %v4410_v60, %v4396_v27  ;;  %vm5115_vm2 = vmand %vm4795_vm13, %vm7579_vm7  ;;  %v892_v57 = vsel %vm5066_vm8, %v889_v14, 0.0  ;;  %v893_v62 = vsel %vm5082_vm12, %v888_v39, 0.0  ;;  %vm7583_vm10 = vcmp.ge.s32.totalorder %v4417_v1, 3 }
 0x449   :  { %v7581_v58 = vsel %vm5115_vm2, 4294967295, %v7580_v58  ;;  %vm5128_vm15 = vmand %vm5000_vm1, %vm7583_vm10  ;;  %v7584_v27 = vmov 0  ;;  %v5133_v60 = vstv %s5004_s6  ;;  %vm7590_vm7 = vcmp.lt.s32.totalorder %v3487_v21, 3  ;;  %s6007_s6 = sld [smem:[#allocation3 + $0x4]] }
 0x44a   :  { %7582 = vst [vmem:[#allocation60_spill] sm:$0xff] %v7581_v58  ;;  %v7585_v27 = vsel %vm5128_vm15, 4294967295, %v7584_v27  ;;  %7587 = vst [vmem:[#allocation62_spill] sm:$0xff] %v5133_v60  ;;  %v934_v43 = vsel %vm7590_vm7, %v7589_v47, %v7588_v52  ;;  %v871_v14 = vadd.f32 %v869_v8, %v848_v53  ;;  %v872_v16 = vadd.f32 %v870_v28, %v849_v45  ;;  %v7601_v45 = vld [vmem:[#allocation27_spill] sm:$0xff] }
 0x44b   :  { %7586 = vst [vmem:[#allocation61_spill] sm:$0xff] %v7585_v27  ;;  %vm7591_vm14 = vmmov %vm7590_vm7  ;;  %vm7592_vm12 = vcmp.ge.s32.totalorder %v4421_v6, 3  ;;  %v7593_v41 = vmov 0  ;;  %v915_v55 = vsel %vm5099_vm3, %v912_v4, 0.0  ;;  %v916_v8 = vsel %vm5115_vm2, %v911_v0, 0.0  ;;  %v7616_v27 = vld [vmem:[#allocation26_spill] sm:$0xff] }
 0x44c   :  { %v935_v39 = vsel %vm7591_vm14, %v7588_v52, %v7589_v47  ;;  %vm5147_vm10 = vmand %vm5018_vm4, %vm7592_vm12  ;;  %vm7596_vm14 = vcmp.ge.s32.totalorder %v4417_v1, 2  ;;  %v7597_v28 = vmov 0  ;;  %v5169_v53 = vstv %s5039_s3  ;;  %v7602_v52 = vld [vmem:[#allocation24_spill] sm:$0xff]  ;;  %s6014_s3 = sld [smem:[#allocation3 + $0x84]] }
 0x44d   :  { %v7594_v41 = vsel %vm5147_vm10, 4294967295, %v7593_v41  ;;  %vm5164_vm12 = vmand %vm5000_vm1, %vm7596_vm14  ;;  %7600 = vst [vmem:[#allocation63_spill] sm:$0xff] %v5169_v53  ;;  %vm7603_vm7 = vcmp.lt.s32.totalorder %v3487_v21, 2  ;;  %v894_v4 = vadd.f32 %v892_v57, %v871_v14  ;;  %v895_v58 = vadd.f32 %v893_v62, %v872_v16  ;;  %v7613_v57 = vld [vmem:[#allocation21_spill] sm:$0xff]  ;;  %v7614_v16 = vld [vmem:[#allocation22_spill] sm:$0xff] }
 0x44e   :  { %7595 = vst [vmem:[#allocation25_spill] sm:$0xff] %v7594_v41  ;;  %v7598_v28 = vsel %vm5164_vm12, 4294967295, %v7597_v28  ;;  %v957_v47 = vsel %vm7603_vm7, %v7602_v52, %v7601_v45  ;;  %vm7604_vm8 = vmmov %vm7603_vm7  ;;  %vm7605_vm2 = vcmp.ge.s32.totalorder %v4421_v6, 2  ;;  %v7606_v54 = vmov 0 }
 0x44f   :  { %7599 = vst [vmem:[#allocation23_spill] sm:$0xff] %v7598_v28  ;;  %v958_v0 = vsel %vm7604_vm8, %v7601_v45, %v7602_v52  ;;  %vm5183_vm14 = vmand %vm5018_vm4, %vm7605_vm2  ;;  %v938_v50 = vsel %vm5128_vm15, %v935_v39, 0.0  ;;  %v939_v51 = vsel %vm5147_vm10, %v934_v43, 0.0  ;;  %vm7609_vm7 = vcmp.ge.s32.totalorder %v4417_v1, 1  ;;  %v7615_v52 = vld [vmem:[#allocation32_spill] sm:$0xff] }
 0x450   :  { %v7607_v54 = vsel %vm5183_vm14, 4294967295, %v7606_v54  ;;  %vm5195_vm8 = vmand %vm5000_vm1, %vm7609_vm7  ;;  %v7610_v62 = vmov 0  ;;  %v991_v14 = vmul.f32 %v5133_v60, %v7613_v57  ;;  %v992_v45 = vmul.f32 %v5133_v60, %v7614_v16  ;;  %v5219_v16 = vpop.permute.xlu1 %1223  ;;  %v5221_v60 = vpop.permute.xlu0 %1313 }
 0x451   :  { %7608 = vst [vmem:[#allocation27_spill] sm:$0xff] %v7607_v54  ;;  %v7611_v62 = vsel %vm5195_vm8, 4294967295, %v7610_v62  ;;  %vm7617_vm2 = vcmp.lt.s32.totalorder %v3487_v21, 1  ;;  %v917_v41 = vadd.f32 %v915_v55, %v894_v4  ;;  %v918_v7 = vadd.f32 %v916_v8, %v895_v58  ;;  %v7623_v55 = vld [vmem:[#allocation19_spill] sm:$0xff]  ;;  %v7624_v8 = vld [vmem:[#allocation20_spill] sm:$0xff] }
 0x452   :  { %7612 = vst [vmem:[#allocation24_spill] sm:$0xff] %v7611_v62  ;;  %v980_v39 = vsel %vm7617_vm2, %v7616_v27, %v7615_v52  ;;  %vm7618_vm10 = vmmov %vm7617_vm2  ;;  %vm7619_vm7 = vcmp.ge.s32.totalorder %v4421_v6, 1  ;;  %v7620_v57 = vmov 0  ;;  %v961_v11 = vsel %vm5164_vm12, %v958_v0, 0.0 }
 0x453   :  { %v981_v43 = vsel %vm7618_vm10, %v7615_v52, %v7616_v27  ;;  %vm5215_vm15 = vmand %vm5018_vm4, %vm7619_vm7  ;;  %v962_v27 = vsel %vm5183_vm14, %v957_v47, 0.0  ;;  %v994_v58 = vmul.f32 %v5169_v53, %v7623_v55  ;;  %v995_v4 = vmul.f32 %v5169_v53, %v7624_v8 }
 0x454   :  { %v7621_v57 = vsel %vm5215_vm15, 4294967295, %v7620_v57  ;;  %vm72_vm10 = vcmp.ge.s32.totalorder %v4408_v9, 4294967295  ;;  %vm74_vm2 = vcmp.lt.s32.totalorder %v4408_v9, 15  ;;  %v940_v52 = vadd.f32 %v938_v50, %v917_v41  ;;  %v5244_v50 = vpop.permute.xlu1 %1246 }
 0x455   :  { %7622 = vst [vmem:[#allocation21_spill] sm:$0xff] %v7621_v57  ;;  %v941_v36 = vadd.f32 %v939_v51, %v918_v7  ;;  %vm73_vm7 = vcmp.ge.s32.totalorder %v4414_v18, 4294967295  ;;  %vm75_vm3 = vcmp.lt.s32.totalorder %v4414_v18, 15  ;;  %v984_v0 = vsel %vm5195_vm8, %v981_v43, 0.0  ;;  %vm5240_vm12 = vmand %vm72_vm10, %vm74_vm2  ;;  %v5246_v7 = vpop.permute.xlu0 %1336 }
 0x456   :  { %v985_v47 = vsel %vm5215_vm15, %v980_v39, 0.0  ;;  %v963_v55 = vadd.f32 %v961_v11, %v940_v52  ;;  %v996_v51 = vadd.f32 %v994_v58, %v991_v14  ;;  %v997_v41 = vadd.f32 %v995_v4, %v992_v45  ;;  %vm5248_vm13 = vmand %vm73_vm7, %vm75_vm3  ;;  %v7632_v11 = vld [vmem:[#allocation36_spill] sm:$0xff] }
 0x457   :  { %v964_v54 = vadd.f32 %v962_v27, %v941_v36  ;;  %v7627_v53 = vmov 0  ;;  %vm7629_vm14 = vcmp.lt.s32.totalorder %v4417_v1, 15  ;;  %v7630_v36 = vmov 0  ;;  %v7633_v27 = vld [vmem:[#allocation28_spill] sm:$0xff] }
 0x458   :  { %v7628_v53 = vsel %vm5248_vm13, 4294967295, %v7627_v53  ;;  %v986_v43 = vadd.f32 %v984_v0, %v963_v55  ;;  %vm5257_vm10 = vmand %vm5000_vm1, %vm7629_vm14  ;;  %vm7634_vm2 = vcmp.lt.s32.totalorder %v3487_v21, 127  ;;  %vm7636_vm7 = vcmp.lt.s32.totalorder %v4421_v6, 15  ;;  %v5278_v58 = vpop.permute.xlu1 %1269  ;;  %v7644_v55 = vld [vmem:[#allocation33_spill] sm:$0xff] }
 0x459   :  { %v987_v39 = vadd.f32 %v985_v47, %v964_v54  ;;  %v7631_v36 = vsel %vm5257_vm10, 4294967295, %v7630_v36  ;;  %v1019_v14 = vsel %vm7634_vm2, %v7633_v27, %v7632_v11  ;;  %vm7635_vm3 = vmmov %vm7634_vm2  ;;  %v7637_v45 = vmov 0  ;;  %v5280_v4 = vpop.permute.xlu0 %1359 }
 0x45a   :  { %v1020_v54 = vsel %vm7635_vm3, %v7632_v11, %v7633_v27  ;;  %vm5273_vm15 = vmand %vm5018_vm4, %vm7636_vm7  ;;  %v1000_v52 = vsel %vm5000_vm1, %v996_v51, 0.0  ;;  %v1001_v0 = vsel %vm5018_vm4, %v997_v41, 0.0  ;;  %vm7640_vm2 = vcmp.lt.s32.totalorder %v4417_v1, 14 }
 0x45b   :  { %v7638_v45 = vsel %vm5273_vm15, 4294967295, %v7637_v45  ;;  %vm5290_vm3 = vmand %vm5000_vm1, %vm7640_vm2  ;;  %v7641_v47 = vmov 0  ;;  %vm7645_vm7 = vcmp.lt.s32.totalorder %v3487_v21, 126  ;;  %v1002_v27 = vadd.f32 %v1000_v52, %v986_v43 }
 0x45c   :  { %7639 = vst [vmem:[#allocation22_spill] sm:$0xff] %v7638_v45  ;;  %v7642_v47 = vsel %vm5290_vm3, 4294967295, %v7641_v47  ;;  %v1042_v11 = vsel %vm7645_vm7, %v7644_v55, %v4640_v63  ;;  %vm7646_vm14 = vmmov %vm7645_vm7  ;;  %v1003_v41 = vadd.f32 %v1001_v0, %v987_v39  ;;  %vm7647_vm8 = vcmp.lt.s32.totalorder %v4421_v6, 14 }
 0x45d   :  { %7643 = vst [vmem:[#allocation32_spill] sm:$0xff] %v7642_v47  ;;  %v1043_v51 = vsel %vm7646_vm14, %v4640_v63, %v7644_v55  ;;  %vm5306_vm2 = vmand %vm5018_vm4, %vm7647_vm8  ;;  %v7648_v57 = vmov 0  ;;  %v1023_v62 = vsel %vm5257_vm10, %v1019_v14, 0.0  ;;  %v1024_v28 = vsel %vm5273_vm15, %v1020_v54, 0.0  ;;  %v5342_v54 = vpop.permute.xlu1 %1292  ;;  %v5372_v47 = vpop.permute.xlu0 %1382 }
 0x45e   :  { %v7649_v57 = vsel %vm5306_vm2, 4294967295, %v7648_v57  ;;  %vm7651_vm14 = vcmp.lt.s32.totalorder %v4417_v1, 13  ;;  %v7652_v63 = vmov 0  ;;  %vm7654_vm8 = vcmp.lt.s32.totalorder %v3487_v21, 125 }
 0x45f   :  { %7650 = vst [vmem:[#allocation26_spill] sm:$0xff] %v7649_v57  ;;  %vm5319_vm7 = vmand %vm5000_vm1, %vm7651_vm14  ;;  %v1065_v43 = vsel %vm7654_vm8, %v4704_v12, %v4775_v2  ;;  %vm7656_vm10 = vcmp.lt.s32.totalorder %v4421_v6, 13  ;;  %v7657_v14 = vmov 0  ;;  %v1046_v52 = vsel %vm5290_vm3, %v1042_v11, 0.0 }
 0x460   :  { %v7653_v63 = vsel %vm5319_vm7, 4294967295, %v7652_v63  ;;  %vm7655_vm11 = vmmov %vm7654_vm8  ;;  %vm7663_vm8 = vcmp.lt.s32.totalorder %v3487_v21, 115  ;;  %v1025_v11 = vadd.f32 %v1023_v62, %v1002_v27  ;;  %vm7665_vm1 = vcmp.ge.s32.totalorder %v4421_v6, 3 }
 0x461   :  { %v1066_v39 = vsel %vm7655_vm11, %v4775_v2, %v4704_v12  ;;  %vm5336_vm14 = vmand %vm5018_vm4, %vm7656_vm10  ;;  %v1047_v12 = vsel %vm5306_vm2, %v1043_v51, 0.0  ;;  %vm7660_vm11 = vcmp.ge.s32.totalorder %v4417_v1, 3  ;;  %v7661_v2 = vmov 0 }
 0x462   :  { %v7658_v14 = vsel %vm5336_vm14, 4294967295, %v7657_v14  ;;  %vm5352_vm10 = vmand %vm5240_vm12, %vm7660_vm11  ;;  %v1088_v0 = vsel %vm7663_vm8, %v4573_v32, %v4835_v5  ;;  %v1026_v51 = vadd.f32 %v1024_v28, %v1003_v41  ;;  %v7666_v57 = vmov 0 }
 0x463   :  { %7659 = vst [vmem:[#allocation19_spill] sm:$0xff] %v7658_v14  ;;  %v7662_v2 = vsel %vm5352_vm10, 4294967295, %v7661_v2  ;;  %vm7664_vm9 = vmmov %vm7663_vm8  ;;  %v1069_v45 = vsel %vm5319_vm7, %v1065_v43, 0.0  ;;  %vm7672_vm15 = vcmp.lt.s32.totalorder %v3487_v21, 114  ;;  %v1048_v27 = vadd.f32 %v1046_v52, %v1025_v11 }
 0x464   :  { %v1089_v55 = vsel %vm7664_vm9, %v4835_v5, %v4573_v32  ;;  %vm5368_vm11 = vmand %vm5248_vm13, %vm7665_vm1  ;;  %v1070_v32 = vsel %vm5336_vm14, %v1066_v39, 0.0  ;;  %vm7668_vm9 = vcmp.ge.s32.totalorder %v4417_v1, 2  ;;  %v7669_v5 = vmov 0  ;;  %v5406_v39 = vpop.permute.xlu1 %1315 }
 0x465   :  { %v7667_v57 = vsel %vm5368_vm11, 4294967295, %v7666_v57  ;;  %vm5384_vm1 = vmand %vm5240_vm12, %vm7668_vm9  ;;  %v1111_v28 = vsel %vm7672_vm15, %v4642_v25, %v4894_v33  ;;  %v1049_v41 = vadd.f32 %v1047_v12, %v1026_v51  ;;  %vm7674_vm14 = vcmp.ge.s32.totalorder %v4421_v6, 2 }
 0x466   :  { %v7670_v5 = vsel %vm5384_vm1, 4294967295, %v7669_v5  ;;  %vm7673_vm8 = vmmov %vm7672_vm15  ;;  %v7675_v43 = vmov 0  ;;  %v1092_v14 = vsel %vm5352_vm10, %v1088_v0, 0.0  ;;  %vm7678_vm15 = vcmp.ge.s32.totalorder %v4417_v1, 1 }
 0x467   :  { %7671 = vst [vmem:[#allocation20_spill] sm:$0xff] %v7670_v5  ;;  %v1112_v62 = vsel %vm7673_vm8, %v4894_v33, %v4642_v25  ;;  %vm5400_vm9 = vmand %vm5248_vm13, %vm7674_vm14  ;;  %v1093_v25 = vsel %vm5368_vm11, %v1089_v55, 0.0  ;;  %v7679_v33 = vmov 0  ;;  %vm7681_vm8 = vcmp.lt.s32.totalorder %v3487_v21, 113 }
 0x468   :  { %v7676_v43 = vsel %vm5400_vm9, 4294967295, %v7675_v43  ;;  %vm5416_vm14 = vmand %vm5240_vm12, %vm7678_vm15  ;;  %v1134_v52 = vsel %vm7681_vm8, %v4706_v44, %v4958_v24  ;;  %v1071_v0 = vadd.f32 %v1069_v45, %v1048_v27  ;;  %v1072_v55 = vadd.f32 %v1070_v32, %v1049_v41  ;;  %v5466_v41 = vpop.permute.xlu0 %1405 }
 0x469   :  { %7677 = vst [vmem:[#allocation36_spill] sm:$0xff] %v7676_v43  ;;  %v7680_v33 = vsel %vm5416_vm14, 4294967295, %v7679_v33  ;;  %vm7682_vm7 = vmmov %vm7681_vm8  ;;  %vm7683_vm2 = vcmp.ge.s32.totalorder %v4421_v6, 1  ;;  %v7684_v11 = vmov 0  ;;  %vm7687_vm10 = vcmp.lt.s32.totalorder %v4408_v9, 14  ;;  %v5468_v43 = vpop.permute.xlu1 %1338 }
 0x46a   :  { %v1135_v12 = vsel %vm7682_vm7, %v4958_v24, %v4706_v44  ;;  %vm5432_vm15 = vmand %vm5248_vm13, %vm7683_vm2  ;;  %vm7688_vm8 = vcmp.ge.s32.totalorder %v4408_v9, 4294967294  ;;  %v7689_v51 = vmov 0  ;;  %v1115_v44 = vsel %vm5384_vm1, %v1111_v28, 0.0 }
 0x46b   :  { %v7685_v11 = vsel %vm5432_vm15, 4294967295, %v7684_v11  ;;  %vm5441_vm3 = vmand %vm7688_vm8, %vm7687_vm10  ;;  %v1116_v24 = vsel %vm5400_vm9, %v1112_v62, 0.0  ;;  %vm7692_vm2 = vcmp.lt.s32.totalorder %v3487_v21, 112  ;;  %vm7694_vm10 = vcmp.lt.s32.totalorder %v4414_v18, 14 }
 0x46c   :  { %7686 = vst [vmem:[#allocation28_spill] sm:$0xff] %v7685_v11  ;;  %v7690_v51 = vsel %vm5441_vm3, 4294967295, %v7689_v51  ;;  %v1157_v45 = vsel %vm7692_vm2, %v4777_v30, %v5023_v26  ;;  %vm7693_vm7 = vmmov %vm7692_vm2  ;;  %vm7695_vm8 = vcmp.ge.s32.totalorder %v4414_v18, 4294967294  ;;  %v7696_v27 = vmov 0 }
 0x46d   :  { %7691 = vst [vmem:[#allocation33_spill] sm:$0xff] %v7690_v51  ;;  %v1158_v32 = vsel %vm7693_vm7, %v5023_v26, %v4777_v30  ;;  %vm5461_vm11 = vmand %vm7695_vm8, %vm7694_vm10  ;;  %v1094_v28 = vadd.f32 %v1092_v14, %v1071_v0  ;;  %v1095_v62 = vadd.f32 %v1093_v25, %v1072_v55  ;;  %v1138_v5 = vsel %vm5416_vm14, %v1134_v52, 0.0  ;;  %v7988_v51 = vld [vmem:[#allocation54_spill] sm:$0xff] }
 0x46e   :  { %v7697_v27 = vsel %vm5461_vm11, 4294967295, %v7696_v27  ;;  %v1139_v30 = vsel %vm5432_vm15, %v1135_v12, 0.0  ;;  %vm7699_vm2 = vcmp.lt.s32.totalorder %v4417_v1, 15  ;;  %v7700_v26 = vmov 0 }
 0x46f   :  { %7698 = vst [vmem:[#allocation64_spill] sm:$0xff] %v7697_v27  ;;  %vm5478_vm7 = vmand %vm5240_vm12, %vm7699_vm2  ;;  %vm7702_vm10 = vcmp.lt.s32.totalorder %v3487_v21, 111  ;;  %v1117_v52 = vadd.f32 %v1115_v44, %v1094_v28  ;;  %v1118_v12 = vadd.f32 %v1116_v24, %v1095_v62  ;;  %vm7704_vm9 = vcmp.lt.s32.totalorder %v4421_v6, 15  ;;  %v5529_v28 = vpop.permute.xlu1 %1361 }
 0x470   :  { %v7701_v26 = vsel %vm5478_vm7, 4294967295, %v7700_v26  ;;  %v1180_v14 = vsel %vm7702_vm10, %v4837_v19, %v5087_v35  ;;  %vm7703_vm8 = vmmov %vm7702_vm10  ;;  %v7705_v0 = vmov 0  ;;  %v1161_v55 = vsel %vm5240_vm12, %v1157_v45, 0.0 }
 0x471   :  { %v1181_v25 = vsel %vm7703_vm8, %v5087_v35, %v4837_v19  ;;  %vm5494_vm2 = vmand %vm5248_vm13, %vm7704_vm9  ;;  %v1162_v11 = vsel %vm5248_vm13, %v1158_v32, 0.0  ;;  %vm7708_vm8 = vcmp.lt.s32.totalorder %v4417_v1, 14  ;;  %v7709_v19 = vmov 0 }
 0x472   :  { %v7706_v0 = vsel %vm5494_vm2, 4294967295, %v7705_v0  ;;  %vm5507_vm15 = vmand %vm5240_vm12, %vm7708_vm8  ;;  %vm7711_vm9 = vcmp.lt.s32.totalorder %v3487_v21, 110  ;;  %v1140_v24 = vadd.f32 %v1138_v5, %v1117_v52  ;;  %v1141_v45 = vadd.f32 %v1139_v30, %v1118_v12  ;;  %v5561_v12 = vpop.permute.xlu0 %1428 }
 0x473   :  { %7707 = vst [vmem:[#allocation65_spill] sm:$0xff] %v7706_v0  ;;  %v7710_v19 = vsel %vm5507_vm15, 4294967295, %v7709_v19  ;;  %v1203_v35 = vsel %vm7711_vm9, %v4896_v13, %v5152_v22  ;;  %vm7712_vm14 = vmmov %vm7711_vm9  ;;  %vm7713_vm10 = vcmp.lt.s32.totalorder %v4421_v6, 14  ;;  %v7714_v32 = vmov 0 }
 0x474   :  { %v1204_v44 = vsel %vm7712_vm14, %v5152_v22, %v4896_v13  ;;  %vm5523_vm8 = vmand %vm5248_vm13, %vm7713_vm10  ;;  %v1184_v62 = vsel %vm5478_vm7, %v1180_v14, 0.0  ;;  %v1185_v13 = vsel %vm5494_vm2, %v1181_v25, 0.0  ;;  %vm7717_vm14 = vcmp.lt.s32.totalorder %v4417_v1, 13 }
 0x475   :  { %v7715_v32 = vsel %vm5523_vm8, 4294967295, %v7714_v32  ;;  %vm5539_vm10 = vmand %vm5240_vm12, %vm7717_vm14  ;;  %v7718_v22 = vmov 0  ;;  %vm7720_vm9 = vcmp.lt.s32.totalorder %v3487_v21, 109  ;;  %v1163_v14 = vadd.f32 %v1161_v55, %v1140_v24 }
 0x476   :  { %7716 = vst [vmem:[#allocation66_spill] sm:$0xff] %v7715_v32  ;;  %v7719_v22 = vsel %vm5539_vm10, 4294967295, %v7718_v22  ;;  %v1226_v5 = vsel %vm7720_vm9, %v4960_v17, %v5219_v16  ;;  %vm7721_vm4 = vmmov %vm7720_vm9  ;;  %v1164_v25 = vadd.f32 %v1162_v11, %v1141_v45  ;;  %vm7722_vm1 = vcmp.lt.s32.totalorder %v4421_v6, 13  ;;  %v1385_v45 = vpop.permute.xlu1 %1384 }
 0x477   :  { %v1227_v30 = vsel %vm7721_vm4, %v5219_v16, %v4960_v17  ;;  %vm5555_vm14 = vmand %vm5248_vm13, %vm7722_vm1  ;;  %v7723_v52 = vmov 0  ;;  %v1207_v0 = vsel %vm5507_vm15, %v1203_v35, 0.0  ;;  %v1208_v17 = vsel %vm5523_vm8, %v1204_v44, 0.0 }
 0x478   :  { %v7724_v52 = vsel %vm5555_vm14, 4294967295, %v7723_v52  ;;  %vm7725_vm4 = vcmp.ge.s32.totalorder %v4417_v1, 3  ;;  %v7726_v16 = vmov 0  ;;  %vm7728_vm9 = vcmp.lt.s32.totalorder %v3487_v21, 99 }
 0x479   :  { %vm5571_vm1 = vmand %vm5441_vm3, %vm7725_vm4  ;;  %v1249_v11 = vsel %vm7728_vm9, %v5025_v34, %v5244_v50  ;;  %v1186_v35 = vadd.f32 %v1184_v62, %v1163_v14  ;;  %v1187_v44 = vadd.f32 %v1185_v13, %v1164_v25  ;;  %vm7730_vm2 = vcmp.ge.s32.totalorder %v4421_v6, 3 }
 0x47a   :  { %v7727_v16 = vsel %vm5571_vm1, 4294967295, %v7726_v16  ;;  %vm7729_vm7 = vmmov %vm7728_vm9  ;;  %v7731_v24 = vmov 0  ;;  %v1230_v32 = vsel %vm5539_vm10, %v1226_v5, 0.0  ;;  %vm7740_vm9 = vcmp.ge.s32.totalorder %v4421_v6, 2  ;;  %v8073_v8 = vld [vmem:[#allocation65_spill] sm:$0xff] }
 0x47b   :  { %v1250_v55 = vsel %vm7729_vm7, %v5244_v50, %v5025_v34  ;;  %vm5587_vm4 = vmand %vm5461_vm11, %vm7730_vm2  ;;  %v1231_v34 = vsel %vm5555_vm14, %v1227_v30, 0.0  ;;  %vm7734_vm7 = vcmp.ge.s32.totalorder %v4417_v1, 2  ;;  %v7735_v50 = vmov 0 }
 0x47c   :  { %v7732_v24 = vsel %vm5587_vm4, 4294967295, %v7731_v24  ;;  %vm5601_vm15 = vmand %vm5441_vm3, %vm7734_vm7  ;;  %vm7738_vm2 = vcmp.lt.s32.totalorder %v3487_v21, 98  ;;  %v1209_v5 = vadd.f32 %v1207_v0, %v1186_v35  ;;  %v1210_v30 = vadd.f32 %v1208_v17, %v1187_v44  ;;  %v5652_v44 = vpop.permute.xlu0 %1451 }
 0x47d   :  { %7733 = vst [vmem:[#allocation67_spill] sm:$0xff] %v7732_v24  ;;  %v7736_v50 = vsel %vm5601_vm15, 4294967295, %v7735_v50  ;;  %v1272_v62 = vsel %vm7738_vm2, %v5089_v38, %v5278_v58  ;;  %vm7739_vm8 = vmmov %vm7738_vm2  ;;  %v7741_v14 = vmov 0  ;;  %v1253_v25 = vsel %vm5571_vm1, %v1249_v11, 0.0  ;;  %v1408_v24 = vpop.permute.xlu1 %1407 }
 0x47e   :  { %7737 = vst [vmem:[#allocation68_spill] sm:$0xff] %v7736_v50  ;;  %v1273_v13 = vsel %vm7739_vm8, %v5278_v58, %v5089_v38  ;;  %vm5617_vm7 = vmand %vm5461_vm11, %vm7740_vm9  ;;  %v1254_v38 = vsel %vm5587_vm4, %v1250_v55, 0.0  ;;  %vm7744_vm8 = vcmp.ge.s32.totalorder %v4417_v1, 1  ;;  %v7745_v58 = vmov 0 }
 0x47f   :  { %v7742_v14 = vsel %vm5617_vm7, 4294967295, %v7741_v14  ;;  %vm5631_vm2 = vmand %vm5441_vm3, %vm7744_vm8  ;;  %vm7748_vm9 = vcmp.lt.s32.totalorder %v3487_v21, 97  ;;  %v1232_v11 = vadd.f32 %v1230_v32, %v1209_v5  ;;  %v1233_v55 = vadd.f32 %v1231_v34, %v1210_v30 }
 0x480   :  { %7743 = vst [vmem:[#allocation69_spill] sm:$0xff] %v7742_v14  ;;  %v7746_v58 = vsel %vm5631_vm2, 4294967295, %v7745_v58  ;;  %v1295_v0 = vsel %vm7748_vm9, %v5154_v37, %v5342_v54  ;;  %vm7749_vm14 = vmmov %vm7748_vm9  ;;  %vm7750_vm10 = vcmp.ge.s32.totalorder %v4421_v6, 1  ;;  %v7751_v35 = vmov 0 }
 0x481   :  { %7747 = vst [vmem:[#allocation70_spill] sm:$0xff] %v7746_v58  ;;  %v1296_v17 = vsel %vm7749_vm14, %v5342_v54, %v5154_v37  ;;  %vm5647_vm8 = vmand %vm5461_vm11, %vm7750_vm10  ;;  %vm7754_vm9 = vcmp.lt.s32.totalorder %v4408_v9, 13  ;;  %vm7755_vm1 = vcmp.ge.s32.totalorder %v4408_v9, 4294967293  ;;  %v7756_v37 = vmov 0 }
 0x482   :  { %v7752_v35 = vsel %vm5647_vm8, 4294967295, %v7751_v35  ;;  %vm5658_vm14 = vmand %vm7755_vm1, %vm7754_vm9  ;;  %v1276_v54 = vsel %vm5601_vm15, %v1272_v62, 0.0  ;;  %v1277_v32 = vsel %vm5617_vm7, %v1273_v13, 0.0  ;;  %vm7759_vm10 = vcmp.lt.s32.totalorder %v3487_v21, 96 }
 0x483   :  { %7753 = vst [vmem:[#allocation71_spill] sm:$0xff] %v7752_v35  ;;  %v7757_v37 = vsel %vm5658_vm14, 4294967295, %v7756_v37  ;;  %v1318_v34 = vsel %vm7759_vm10, %v5221_v60, %v5406_v39  ;;  %vm7760_vm4 = vmmov %vm7759_vm10  ;;  %vm7761_vm1 = vcmp.lt.s32.totalorder %v4414_v18, 13  ;;  %vm7762_vm9 = vcmp.ge.s32.totalorder %v4414_v18, 4294967293 }
 0x484   :  { %7758 = vst [vmem:[#allocation72_spill] sm:$0xff] %v7757_v37  ;;  %v1319_v9 = vsel %vm7760_vm4, %v5406_v39, %v5221_v60  ;;  %vm5678_vm13 = vmand %vm7762_vm9, %vm7761_vm1  ;;  %v7763_v5 = vmov 0  ;;  %v1255_v62 = vadd.f32 %v1253_v25, %v1232_v11  ;;  %v1256_v13 = vadd.f32 %v1254_v38, %v1233_v55  ;;  %v1431_v55 = vpop.permute.xlu1 %1430 }
 0x485   :  { %v7764_v5 = vsel %vm5678_vm13, 4294967295, %v7763_v5  ;;  %v1299_v30 = vsel %vm5631_vm2, %v1295_v0, 0.0  ;;  %v1300_v14 = vsel %vm5647_vm8, %v1296_v17, 0.0  ;;  %vm7766_vm4 = vcmp.lt.s32.totalorder %v4417_v1, 15 }
 0x486   :  { %7765 = vst [vmem:[#allocation73_spill] sm:$0xff] %v7764_v5  ;;  %vm5691_vm10 = vmand %vm5441_vm3, %vm7766_vm4  ;;  %v7767_v18 = vmov 0  ;;  %vm7770_vm1 = vcmp.lt.s32.totalorder %v3487_v21, 95  ;;  %v1278_v25 = vadd.f32 %v1276_v54, %v1255_v62  ;;  %v1279_v38 = vadd.f32 %v1277_v32, %v1256_v13  ;;  %v1475_v62 = vpop.permute.xlu0 %1474 }
 0x487   :  { %v7768_v18 = vsel %vm5691_vm10, 4294967295, %v7767_v18  ;;  %v1341_v60 = vsel %vm7770_vm1, %v5246_v7, %v5468_v43  ;;  %vm7771_vm9 = vmmov %vm7770_vm1  ;;  %vm7772_vm7 = vcmp.lt.s32.totalorder %v4421_v6, 15  ;;  %v7773_v0 = vmov 0 }
 0x488   :  { %7769 = vst [vmem:[#allocation74_spill] sm:$0xff] %v7768_v18  ;;  %v1342_v39 = vsel %vm7771_vm9, %v5468_v43, %v5246_v7  ;;  %vm5707_vm4 = vmand %vm5461_vm11, %vm7772_vm7  ;;  %v1322_v17 = vsel %vm5441_vm3, %v1318_v34, 0.0  ;;  %v1323_v11 = vsel %vm5461_vm11, %v1319_v9, 0.0  ;;  %vm7776_vm9 = vcmp.lt.s32.totalorder %v4417_v1, 14 }
 0x489   :  { %v7774_v0 = vsel %vm5707_vm4, 4294967295, %v7773_v0  ;;  %vm5720_vm8 = vmand %vm5441_vm3, %vm7776_vm9  ;;  %v7777_v7 = vmov 0  ;;  %vm7780_vm7 = vcmp.lt.s32.totalorder %v3487_v21, 94  ;;  %v1301_v32 = vadd.f32 %v1299_v30, %v1278_v25  ;;  %v1454_v25 = vpop.permute.xlu1 %1453 }
 0x48a   :  { %7775 = vst [vmem:[#allocation75_spill] sm:$0xff] %v7774_v0  ;;  %v7778_v7 = vsel %vm5720_vm8, 4294967295, %v7777_v7  ;;  %v1364_v43 = vsel %vm7780_vm7, %v5280_v4, %v5529_v28  ;;  %vm7781_vm2 = vmmov %vm7780_vm7  ;;  %v1302_v34 = vadd.f32 %v1300_v14, %v1279_v38  ;;  %vm7782_vm1 = vcmp.lt.s32.totalorder %v4421_v6, 14 }
 0x48b   :  { %7779 = vst [vmem:[#allocation76_spill] sm:$0xff] %v7778_v7  ;;  %v1365_v54 = vsel %vm7781_vm2, %v5529_v28, %v5280_v4  ;;  %vm5736_vm9 = vmand %vm5461_vm11, %vm7782_vm1  ;;  %v7783_v9 = vmov 0  ;;  %v1345_v13 = vsel %vm5691_vm10, %v1341_v60, 0.0  ;;  %v1346_v35 = vsel %vm5707_vm4, %v1342_v39, 0.0 }
 0x48c   :  { %v7784_v9 = vsel %vm5736_vm9, 4294967295, %v7783_v9  ;;  %vm7786_vm2 = vcmp.lt.s32.totalorder %v4417_v1, 13  ;;  %v7787_v4 = vmov 0  ;;  %vm7790_vm1 = vcmp.lt.s32.totalorder %v3487_v21, 93 }
 0x48d   :  { %7785 = vst [vmem:[#allocation77_spill] sm:$0xff] %v7784_v9  ;;  %vm5749_vm7 = vmand %vm5441_vm3, %vm7786_vm2  ;;  %v1387_v28 = vsel %vm7790_vm1, %v5372_v47, %v1385_v45  ;;  %v1324_v30 = vadd.f32 %v1322_v17, %v1301_v32  ;;  %v1325_v60 = vadd.f32 %v1323_v11, %v1302_v34  ;;  %vm7792_vm4 = vcmp.lt.s32.totalorder %v4421_v6, 13  ;;  %v7982_v9 = vld [vmem:[#allocation52_spill] sm:$0xff] }
 0x48e   :  { %v7788_v4 = vsel %vm5749_vm7, 4294967295, %v7787_v4  ;;  %vm7791_vm15 = vmmov %vm7790_vm1  ;;  %v7793_v39 = vmov 0  ;;  %v1368_v38 = vsel %vm5720_vm8, %v1364_v43, 0.0  ;;  %v1369_v0 = vsel %vm5736_vm9, %v1365_v54, 0.0 }
 0x48f   :  { %7789 = vst [vmem:[#allocation78_spill] sm:$0xff] %v7788_v4  ;;  %v1388_v14 = vsel %vm7791_vm15, %v1385_v45, %v5372_v47  ;;  %vm5763_vm10 = vmand %vm5461_vm11, %vm7792_vm4  ;;  %vm7796_vm15 = vcmp.ge.s32.totalorder %v4417_v1, 3  ;;  %v7797_v47 = vmov 0  ;;  %vm7800_vm4 = vcmp.lt.s32.totalorder %v3487_v21, 83 }
 0x490   :  { %v7794_v39 = vsel %vm5763_vm10, 4294967295, %v7793_v39  ;;  %vm5776_vm1 = vmand %vm5658_vm14, %vm7796_vm15  ;;  %v1410_v45 = vsel %vm7800_vm4, %v5466_v41, %v1408_v24  ;;  %v1347_v11 = vadd.f32 %v1345_v13, %v1324_v30  ;;  %v1348_v43 = vadd.f32 %v1346_v35, %v1325_v60  ;;  %v1498_v30 = vpop.permute.xlu0 %1497  ;;  %v1477_v60 = vpop.permute.xlu1 %1476 }
 0x491   :  { %7795 = vst [vmem:[#allocation79_spill] sm:$0xff] %v7794_v39  ;;  %v7798_v47 = vsel %vm5776_vm1, 4294967295, %v7797_v47  ;;  %vm7801_vm2 = vmmov %vm7800_vm4  ;;  %vm7802_vm9 = vcmp.ge.s32.totalorder %v4421_v6, 3  ;;  %v7803_v54 = vmov 0  ;;  %v1391_v32 = vsel %vm5749_vm7, %v1387_v28, 0.0 }
 0x492   :  { %7799 = vst [vmem:[#allocation80_spill] sm:$0xff] %v7798_v47  ;;  %v1411_v17 = vsel %vm7801_vm2, %v1408_v24, %v5466_v41  ;;  %vm5790_vm8 = vmand %vm5678_vm13, %vm7802_vm9  ;;  %v1392_v34 = vsel %vm5763_vm10, %v1388_v14, 0.0  ;;  %vm7806_vm2 = vcmp.ge.s32.totalorder %v4417_v1, 2  ;;  %v7807_v41 = vmov 0 }
 0x493   :  { %v7804_v54 = vsel %vm5790_vm8, 4294967295, %v7803_v54  ;;  %vm5803_vm4 = vmand %vm5658_vm14, %vm7806_vm2  ;;  %vm7810_vm9 = vcmp.lt.s32.totalorder %v3487_v21, 82  ;;  %v1370_v13 = vadd.f32 %v1368_v38, %v1347_v11  ;;  %v1371_v28 = vadd.f32 %v1369_v0, %v1348_v43 }
 0x494   :  { %7805 = vst [vmem:[#allocation81_spill] sm:$0xff] %v7804_v54  ;;  %v7808_v41 = vsel %vm5803_vm4, 4294967295, %v7807_v41  ;;  %v1433_v24 = vsel %vm7810_vm9, %v5561_v12, %v1431_v55  ;;  %vm7811_vm15 = vmmov %vm7810_vm9  ;;  %vm7812_vm10 = vcmp.ge.s32.totalorder %v4421_v6, 2  ;;  %v7813_v14 = vmov 0 }
 0x495   :  { %7809 = vst [vmem:[#allocation82_spill] sm:$0xff] %v7808_v41  ;;  %v1434_v35 = vsel %vm7811_vm15, %v1431_v55, %v5561_v12  ;;  %vm5817_vm7 = vmand %vm5678_vm13, %vm7812_vm10  ;;  %v1414_v39 = vsel %vm5776_vm1, %v1410_v45, 0.0  ;;  %v1415_v12 = vsel %vm5790_vm8, %v1411_v17, 0.0  ;;  %vm7816_vm15 = vcmp.ge.s32.totalorder %v4417_v1, 1  ;;  %v7980_v41 = vld [vmem:[#allocation51_spill] sm:$0xff] }
 0x496   :  { %v7814_v14 = vsel %vm5817_vm7, 4294967295, %v7813_v14  ;;  %vm5830_vm9 = vmand %vm5658_vm14, %vm7816_vm15  ;;  %v7817_v0 = vmov 0  ;;  %vm7820_vm10 = vcmp.lt.s32.totalorder %v3487_v21, 81  ;;  %v1393_v45 = vadd.f32 %v1391_v32, %v1370_v13  ;;  %v1500_v13 = vpop.permute.xlu1 %1499 }
 0x497   :  { %7815 = vst [vmem:[#allocation83_spill] sm:$0xff] %v7814_v14  ;;  %v7818_v0 = vsel %vm5830_vm9, 4294967295, %v7817_v0  ;;  %v1456_v55 = vsel %vm7820_vm10, %v5652_v44, %v1454_v25  ;;  %vm7821_vm2 = vmmov %vm7820_vm10  ;;  %v1394_v11 = vadd.f32 %v1392_v34, %v1371_v28  ;;  %vm7822_vm8 = vcmp.ge.s32.totalorder %v4421_v6, 1 }
 0x498   :  { %7819 = vst [vmem:[#allocation84_spill] sm:$0xff] %v7818_v0  ;;  %v1457_v38 = vsel %vm7821_vm2, %v1454_v25, %v5652_v44  ;;  %vm5844_vm1 = vmand %vm5678_vm13, %vm7822_vm8  ;;  %v7823_v17 = vmov 0  ;;  %v1437_v43 = vsel %vm5803_vm4, %v1433_v24, 0.0  ;;  %v1438_v54 = vsel %vm5817_vm7, %v1434_v35, 0.0 }
 0x499   :  { %v7824_v17 = vsel %vm5844_vm1, 4294967295, %v7823_v17  ;;  %vm7826_vm2 = vcmp.lt.s32.totalorder %v3487_v21, 80  ;;  %v1416_v32 = vadd.f32 %v1414_v39, %v1393_v45  ;;  %v1417_v34 = vadd.f32 %v1415_v12, %v1394_v11 }
 0x49a   :  { %7825 = vst [vmem:[#allocation85_spill] sm:$0xff] %v7824_v17  ;;  %v1479_v44 = vsel %vm7826_vm2, %v1475_v62, %v1477_v60  ;;  %vm7827_vm10 = vmmov %vm7826_vm2  ;;  %v1460_v28 = vsel %vm5830_vm9, %v1456_v55, 0.0  ;;  %v1461_v47 = vsel %vm5844_vm1, %v1457_v38, 0.0  ;;  %vm7828_vm8 = vcmp.lt.s32.totalorder %v4417_v1, 15  ;;  %v1521_v55 = vpop.permute.xlu0 %1520 }
 0x49b   :  { %v1480_v25 = vsel %vm7827_vm10, %v1477_v60, %v1475_v62  ;;  %vm5865_vm15 = vmand %vm5658_vm14, %vm7828_vm8  ;;  %v7829_v24 = vmov 0  ;;  %vm7832_vm2 = vcmp.lt.s32.totalorder %v3487_v21, 79  ;;  %v1439_v35 = vadd.f32 %v1437_v43, %v1416_v32 }
 0x49c   :  { %v7830_v24 = vsel %vm5865_vm15, 4294967295, %v7829_v24  ;;  %v1502_v62 = vsel %vm7832_vm2, %v1498_v30, %v1500_v13  ;;  %vm7833_vm10 = vmmov %vm7832_vm2  ;;  %v1440_v60 = vadd.f32 %v1438_v54, %v1417_v34  ;;  %vm7834_vm9 = vcmp.lt.s32.totalorder %v4421_v6, 15 }
 0x49d   :  { %7831 = vst [vmem:[#allocation86_spill] sm:$0xff] %v7830_v24  ;;  %v1503_v39 = vsel %vm7833_vm10, %v1500_v13, %v1498_v30  ;;  %vm5877_vm1 = vmand %vm5678_vm13, %vm7834_vm9  ;;  %v7835_v12 = vmov 0  ;;  %v1483_v38 = vsel %vm5658_vm14, %v1479_v44, 0.0  ;;  %v1484_v45 = vsel %vm5678_vm13, %v1480_v25, 0.0  ;;  %v1523_v44 = vpop.permute.xlu1 %1522 }
 0x49e   :  { %v7836_v12 = vsel %vm5877_vm1, 4294967295, %v7835_v12  ;;  %vm7331_vm8 = vcmp.lt.s32.totalorder %v3487_v21, 78  ;;  %vm7838_vm2 = vcmp.lt.s32.totalorder %v4417_v1, 14  ;;  %v7839_v54 = vmov 0 }
 0x49f   :  { %7837 = vst [vmem:[#allocation87_spill] sm:$0xff] %v7836_v12  ;;  %vm5890_vm10 = vmand %vm5658_vm14, %vm7838_vm2  ;;  %v1462_v30 = vadd.f32 %v1460_v28, %v1439_v35  ;;  %v1463_v11 = vadd.f32 %v1461_v47, %v1440_v60  ;;  %vm7842_vm9 = vcmp.lt.s32.totalorder %v4421_v6, 14  ;;  %v7843_v43 = vmov 0 }
 0x4a0   :  { %v7840_v54 = vsel %vm5890_vm10, 4294967295, %v7839_v54  ;;  %vm5898_vm7 = vmand %vm5678_vm13, %vm7842_vm9  ;;  %v1506_v25 = vsel %vm5865_vm15, %v1502_v62, 0.0  ;;  %v1507_v32 = vsel %vm5877_vm1, %v1503_v39, 0.0  ;;  %v1525_v34 = vsel %vm7331_vm8, %v1521_v55, %v1523_v44 }
 0x4a1   :  { %7841 = vst [vmem:[#allocation88_spill] sm:$0xff] %v7840_v54  ;;  %v7844_v43 = vsel %vm5898_vm7, 4294967295, %v7843_v43  ;;  %v1526_v47 = vsel %vm7331_vm8, %v1523_v44, %v1521_v55  ;;  %v1485_v13 = vadd.f32 %v1483_v38, %v1462_v30  ;;  %v1486_v28 = vadd.f32 %v1484_v45, %v1463_v11  ;;  %v1544_v45 = vpop.permute.xlu0 %1543  ;;  %v1546_v30 = vpop.permute.xlu1 %1545 }
 0x4a2   :  { %7845 = vst [vmem:[#allocation89_spill] sm:$0xff] %v7844_v43  ;;  %v1529_v35 = vsel %vm5890_vm10, %v1525_v34, 0.0  ;;  %v1530_v60 = vsel %vm5898_vm7, %v1526_v47, 0.0  ;;  %vm7846_vm9 = vcmp.lt.s32.totalorder %v4417_v1, 13  ;;  %v7847_v62 = vmov 0 }
 0x4a3   :  { %vm5919_vm1 = vmand %vm5658_vm14, %vm7846_vm9  ;;  %v1508_v39 = vadd.f32 %v1506_v25, %v1485_v13  ;;  %v1509_v55 = vadd.f32 %v1507_v32, %v1486_v28  ;;  %vm7850_vm8 = vcmp.lt.s32.totalorder %v4421_v6, 13  ;;  %v7851_v38 = vmov 0 }
 0x4a4   :  { %v7848_v62 = vsel %vm5919_vm1, 4294967295, %v7847_v62  ;;  %vm5927_vm2 = vmand %vm5678_vm13, %vm7850_vm8  ;;  %vm7854_vm7 = vcmp.lt.s32.totalorder %v3487_v21, 77 }
 0x4a5   :  { %7849 = vst [vmem:[#allocation90_spill] sm:$0xff] %v7848_v62  ;;  %v7852_v38 = vsel %vm5927_vm2, 4294967295, %v7851_v38  ;;  %v1548_v1 = vsel %vm7854_vm7, %v1544_v45, %v1546_v30  ;;  %vm7855_vm9 = vmmov %vm7854_vm7  ;;  %v1531_v44 = vadd.f32 %v1529_v35, %v1508_v39  ;;  %v1532_v34 = vadd.f32 %v1530_v60, %v1509_v55 }
 0x4a6   :  { %7853 = vst [vmem:[#allocation91_spill] sm:$0xff] %v7852_v38  ;;  %v1549_v11 = vsel %vm7855_vm9, %v1546_v30, %v1544_v45  ;;  %v1552_v25 = vsel %vm5919_vm1, %v1548_v1, 0.0  ;;  %v7856_v35 = vlaneseq  ;;  %vm7893_vm7 = vcmp.lt.s32.totalorder %v3487_v21, 51 }
 0x4a7   :  { %v1553_v6 = vsel %vm5927_vm2, %v1549_v11, 0.0  ;;  %v1554_v32 = vadd.f32 %v1552_v25, %v1531_v44  ;;  %v7858_v44 = vld [vmem:[#allocation13_spill] sm:$0xff]  ;;  %vm7894_vm8 = vmmov %vm7893_vm7  ;;  %vm7896_vm9 = vcmp.lt.s32.totalorder %v3487_v21, 50 }
 0x4a8   :  { %v1555_v47 = vadd.f32 %v1553_v6, %v1532_v34  ;;  %v1569_v60 = vshrl.u32 %v7856_v35, 7  ;;  %v7860_v25 = vld [vmem:[#allocation17_spill] sm:$0xff]  ;;  %v7865_v35 = vld [vmem:[#allocation16_spill] sm:$0xff] }
 0x4a9   :  { %v1556_v13 = vsub.f32 0.0, %v1554_v32 }
 0x4aa   :  { %v1557_v28 = vsub.f32 0.0, %v1555_v47  ;;  %v5940_v39 = vsub.s32 0, %v1569_v60  ;;  %v7863_v47 = vld [vmem:[#allocation12_spill] sm:$0xff] }
 0x4ab   :  { %v1558_v43 = vmul.f32 1.442695, %v1556_v13 }
 0x4ac   :  { %v1560_v54 = vmul.f32 1.442695, %v1557_v28  ;;  %7857 = vst [vmem:[#allocation92_spill] sm:$0xff] %v5940_v39  ;;  %v7864_v28 = vld [vmem:[#allocation18_spill] sm:$0xff] }
 0x4ad   :  { %3251 = vpow2.f32 %v1558_v43  ;;  %v7859_v43 = vld [vmem:[#allocation11_spill] sm:$0xff] }
 0x4ae   :  { %3253 = vpow2.f32 %v1560_v54 }
 0x4b7   :  { %v3252_v12 = vpop.eup %3251 }
 0x4b8   :  { %v3254_v24 = vpop.eup %3253  ;;  %v1562_v5 = vadd.f32 1.0, %v3252_v12  ;;  %v7861_v12 = vld [vmem:[#allocation15_spill] sm:$0xff] }
 0x4b9   :  { %v1563_v45 = vadd.f32 1.0, %v3254_v24 }
 0x4ba   :  { %3255 = vrcp.f32 %v1562_v5  ;;  %v7862_v5 = vld [vmem:[#allocation14_spill] sm:$0xff] }
 0x4bb   :  { %3257 = vrcp.f32 %v1563_v45 }
 0x4c4   :  { %v3256_v55 = vpop.eup %3255 }
 0x4c5   :  { %v3258_v30 = vpop.eup %3257  ;;  %v1571_v1 = vrot.slane %v3256_v55, %v5940_v39  ;;  %v1803_v55 = vpop.xlane.xlu0 %1802 }
 0x4c6   :  { %v1575_v11 = vrot.slane %v3258_v30, %v5940_v39 }
 0x4c7   :  { %v1576_v34 = vmul.f32 %v1571_v1, %v7858_v44  ;;  %v1578_v54 = vmul.f32 %v1571_v1, %v7859_v43  ;;  %v1580_v6 = vmul.f32 %v1571_v1, %v7860_v25  ;;  %v1582_v24 = vmul.f32 %v1571_v1, %v7861_v12 }
 0x4c8   :  { %v1577_v32 = vmul.f32 %v1575_v11, %v7862_v5  ;;  %v1579_v13 = vmul.f32 %v1575_v11, %v7863_v47  ;;  %v1581_v45 = vmul.f32 %v1575_v11, %v7864_v28  ;;  %v1583_v60 = vmul.f32 %v1575_v11, %v7865_v35  ;;  %v1797_v11 = vpop.xlane.xlu1 %1796 }
 0x4c9   :  { %1584 = vst [vmem:[#allocation7] sm:$0xff] %v1576_v34  ;;  %1586 = vst [vmem:[#allocation7 + $0x10] sm:$0xff] %v1578_v54  ;;  %v1794_v30 = vpop.xlane.xlu0 %1793  ;;  %v1807_v25 = vsub.f32 0.0, %v1803_v55  ;;  %v1805_v34 = vsub.f32 0.0, %v1797_v11  ;;  %v3286_v11 = vld [vmem:[#allocation4 + $0x68] sm:$0xff] }
 0x4ca   :  { %1588 = vst [vmem:[#allocation7 + $0x20] sm:$0xff] %v1580_v6  ;;  %1590 = vst [vmem:[#allocation7 + $0x30] sm:$0xff] %v1582_v24  ;;  %v1804_v1 = vsub.f32 0.0, %v1794_v30 }
 0x4cb   :  { %1585 = vst [vmem:[#allocation7 + $0x8] sm:$0xff] %v1577_v32  ;;  %1587 = vst [vmem:[#allocation7 + $0x18] sm:$0xff] %v1579_v13  ;;  %v1814_v47 = vmul.f32 1.442695, %v1807_v25  ;;  %v1810_v54 = vmul.f32 1.442695, %v1805_v34 }
 0x4cc   :  { %1589 = vst [vmem:[#allocation7 + $0x28] sm:$0xff] %v1581_v45  ;;  %1591 = vst [vmem:[#allocation7 + $0x38] sm:$0xff] %v1583_v60  ;;  %v1808_v12 = vmul.f32 1.442695, %v1804_v1  ;;  %v3283_v1 = vld [vmem:[#allocation4 + $0x40] sm:$0xff]  ;;  %v3284_v25 = vld [vmem:[#allocation4 + $0x48] sm:$0xff] }
 0x4cd   :  { %v1800_v44 = vpop.xlane.xlu0 %1799 }
 0x4ce   :  { %v1806_v43 = vsub.f32 0.0, %v1800_v44  ;;  %3259 = vpow2.f32 %v1808_v12 }
 0x4d0   :  { %v1812_v5 = vmul.f32 1.442695, %v1806_v43 }
 0x4d2   :  { %3261 = vpow2.f32 %v1812_v5  ;;  %v3285_v5 = vld [vmem:[#allocation4 + $0x60] sm:$0xff] }
 0x4d3   :  { %3263 = vpow2.f32 %v1814_v47 }
 0x4d4   :  { %3265 = vpow2.f32 %v1810_v54 }
 0x4d8   :  { %v3260_v6 = vpop.eup %3259 }
 0x4d9   :  { %v1816_v32 = vadd.f32 1.0, %v3260_v6  ;;  %v3287_v6 = vld [vmem:[#allocation4 + $0x70] sm:$0xff] }
 0x4db   :  { %3267 = vrcp.f32 %v1816_v32  ;;  %v3288_v32 = vld [vmem:[#allocation4 + $0x78] sm:$0xff] }
 0x4dc   :  { %v3262_v24 = vpop.eup %3261 }
 0x4dd   :  { %v3264_v13 = vpop.eup %3263  ;;  %v1818_v28 = vadd.f32 1.0, %v3262_v24 }
 0x4de   :  { %v1819_v45 = vadd.f32 1.0, %v3264_v13  ;;  %v3266_v35 = vpop.eup %3265 }
 0x4df   :  { %3269 = vrcp.f32 %v1818_v28  ;;  %v1817_v60 = vadd.f32 1.0, %v3266_v35  ;;  %v3289_v28 = vld [vmem:[#allocation4 + $0x50] sm:$0xff]  ;;  %v3290_v35 = vld [vmem:[#allocation4 + $0x58] sm:$0xff] }
 0x4e0   :  { %3271 = vrcp.f32 %v1819_v45 }
 0x4e1   :  { %3273 = vrcp.f32 %v1817_v60 }
 0x4e5   :  { %v3268_v55 = vpop.eup %3267 }
 0x4e6   :  { %v5952_v43 = vmul.f32 %v3283_v1, %v3268_v55  ;;  %v5954_v12 = vmul.f32 %v3284_v25, %v3268_v55 }
 0x4e8   :  { %7866 = vst [vmem:[#allocation13_spill] sm:$0xff] %v5952_v43  ;;  %7867 = vst [vmem:[#allocation11_spill] sm:$0xff] %v5954_v12 }
 0x4e9   :  { %v3270_v30 = vpop.eup %3269 }
 0x4ea   :  { %v3272_v44 = vpop.eup %3271  ;;  %v5956_v47 = vmul.f32 %v3285_v5, %v3270_v30  ;;  %v5958_v34 = vmul.f32 %v3286_v11, %v3270_v30 }
 0x4eb   :  { %v3274_v54 = vpop.eup %3273  ;;  %v5960_v24 = vmul.f32 %v3287_v6, %v3272_v44  ;;  %v5962_v13 = vmul.f32 %v3288_v32, %v3272_v44 }
 0x4ec   :  { %7868 = vst [vmem:[#allocation17_spill] sm:$0xff] %v5956_v47  ;;  %7869 = vst [vmem:[#allocation15_spill] sm:$0xff] %v5958_v34  ;;  %v5964_v45 = vmul.f32 %v3289_v28, %v3274_v54  ;;  %v5966_v60 = vmul.f32 %v3290_v35, %v3274_v54  ;;  %v1856_v55 = vmax.f32 %v5952_v43, %v5956_v47 }
 0x4ed   :  { %7870 = vst [vmem:[#allocation14_spill] sm:$0xff] %v5960_v24  ;;  %7871 = vst [vmem:[#allocation12_spill] sm:$0xff] %v5962_v13  ;;  %v1865_v30 = vmax.f32 %v5954_v12, %v5958_v34 }
 0x4ee   :  { %7872 = vst [vmem:[#allocation18_spill] sm:$0xff] %v5964_v45  ;;  %7873 = vst [vmem:[#allocation16_spill] sm:$0xff] %v5966_v60  ;;  %v1836_v1 = vadd.f32 %v5964_v45, %v5952_v43  ;;  %v1845_v25 = vadd.f32 %v5966_v60, %v5954_v12  ;;  %v1857_v44 = vmax.f32 %v5964_v45, %v5960_v24 }
 0x4ef   :  { %v1866_v5 = vmax.f32 %v5966_v60, %v5962_v13 }
 0x4f0   :  { %v1837_v11 = vadd.f32 %v1836_v1, %v5956_v47  ;;  %v1846_v54 = vadd.f32 %v1845_v25, %v5958_v34  ;;  %v1858_v6 = vmax.f32 %v1856_v55, %v1857_v44 }
 0x4f1   :  { %v1867_v32 = vmax.f32 %v1865_v30, %v1866_v5 }
 0x4f2   :  { %v1838_v28 = vadd.f32 %v1837_v11, %v5960_v24  ;;  %v1847_v35 = vadd.f32 %v1846_v54, %v5962_v13  ;;  %v1859_v43 = vrot.slane %v1858_v6, 4 }
 0x4f3   :  { %v1868_v39 = vrot.slane %v1867_v32, 4 }
 0x4f4   :  { %v1839_v38 = vrot.slane %v1838_v28, 4  ;;  %v1848_v12 = vrot.slane %v1847_v35, 4  ;;  %v1860_v62 = vmax.f32 %v1858_v6, %v1859_v43  ;;  %v1876_v6 = vstv %s1874_s20  ;;  %s6019_s20 = sld [smem:[#allocation3 + $0x5]] }
 0x4f5   :  { %v1869_v37 = vmax.f32 %v1867_v32, %v1868_v39  ;;  %v1879_v32 = vstv %s3011_s0  ;;  %s6031_s0 = sld [smem:[#allocation3 + $0x6]] }
 0x4f6   :  { %v1840_v45 = vadd.f32 %v1839_v38, %v1838_v28  ;;  %v1849_v17 = vadd.f32 %v1848_v12, %v1847_v35  ;;  %v1861_v0 = vrot.slane %v1860_v62, 2 }
 0x4f7   :  { %v1870_v60 = vrot.slane %v1869_v37, 2 }
 0x4f8   :  { %v1841_v1 = vrot.slane %v1840_v45, 2  ;;  %v1850_v25 = vrot.slane %v1849_v17, 2  ;;  %v1862_v55 = vmax.f32 %v1860_v62, %v1861_v0 }
 0x4f9   :  { %v1871_v30 = vmax.f32 %v1869_v37, %v1870_v60  ;;  %v1899_v60 = vstv %s3013_s8  ;;  %s6055_s8 = sld [smem:[#allocation3 + $0x8]] }
 0x4fa   :  { %v1842_v44 = vadd.f32 %v1841_v1, %v1840_v45  ;;  %v1851_v5 = vadd.f32 %v1850_v25, %v1849_v17  ;;  %v1863_v11 = vrot.slane %v1862_v55, 1  ;;  %v1896_v17 = vstv %s3012_s5  ;;  %s6043_s5 = sld [smem:[#allocation3 + $0x7]] }
 0x4fb   :  { %v1872_v54 = vrot.slane %v1871_v30, 1 }
 0x4fc   :  { %v1843_v13 = vrot.slane %v1842_v44, 1  ;;  %v1852_v34 = vrot.slane %v1851_v5, 1  ;;  %v5986_v43 = vmax.f32 %v1862_v55, %v1863_v11  ;;  %v1916_v55 = vstv %s5984_s15  ;;  %s6067_s15 = sld [smem:[#allocation3 + $0x9]] }
 0x4fd   :  { %v5988_v12 = vmax.f32 %v1871_v30, %v1872_v54 }
 0x4fe   :  { %v1844_v38 = vadd.f32 %v1843_v13, %v1842_v44  ;;  %v1853_v39 = vadd.f32 %v1852_v34, %v1851_v5  ;;  %v1880_v45 = vmul.f32 %v1879_v32, %v5986_v43  ;;  %v1900_v44 = vmul.f32 %v1899_v60, %v5986_v43 }
 0x4ff   :  { %v1881_v34 = vmul.f32 %v1879_v32, %v5988_v12  ;;  %v1901_v30 = vmul.f32 %v1899_v60, %v5988_v12  ;;  %v1919_v5 = vstv %s5990_s29  ;;  %s6079_s29 = sld [smem:[#allocation3 + $0xa]] }
 0x500   :  { %v5992_v37 = vmul.f32 0.03125, %v1844_v38  ;;  %v5994_v0 = vmul.f32 0.03125, %v1853_v39  ;;  %v1921_v32 = vmul.f32 %v1919_v5, %v5988_v12 }
 0x502   :  { %v1878_v62 = vmul.f32 %v1876_v6, %v5994_v0  ;;  %v1877_v13 = vmul.f32 %v1876_v6, %v5992_v37  ;;  %v1898_v1 = vmul.f32 %v1896_v17, %v5994_v0  ;;  %v1897_v25 = vmul.f32 %v1896_v17, %v5992_v37 }
 0x503   :  { %v1918_v38 = vmul.f32 %v1916_v55, %v5994_v0  ;;  %v1917_v39 = vmul.f32 %v1916_v55, %v5992_v37  ;;  %v1936_v6 = vstv %s5996_s7  ;;  %v1920_v17 = vmul.f32 %v1919_v5, %v5986_v43  ;;  %s6091_s7 = sld [smem:[#allocation3 + $0xb]] }
 0x504   :  { %v1883_v28 = vadd.f32 %v1881_v34, %v1878_v62  ;;  %v1882_v35 = vadd.f32 %v1880_v45, %v1877_v13  ;;  %v1903_v11 = vadd.f32 %v1901_v30, %v1898_v1  ;;  %v1902_v54 = vadd.f32 %v1900_v44, %v1897_v25 }
 0x505   :  { %v1939_v62 = vstv %s6002_s23  ;;  %v1923_v34 = vadd.f32 %v1921_v32, %v1918_v38  ;;  %v1922_v13 = vadd.f32 %v1920_v17, %v1917_v39  ;;  %v1938_v45 = vmul.f32 %v1936_v6, %v5994_v0  ;;  %s6103_s23 = sld [smem:[#allocation3 + $0xc]] }
 0x506   :  { %1886 = vrot.lane.b32.xlu1 %v1883_v28, %s3360_s24  ;;  %1884 = vrot.lane.b32.xlu0 %v1882_v35, %s3360_s24  ;;  %s6026_s24 = sld [smem:[#allocation3 + $0x85]]  ;;  %v1937_v60 = vmul.f32 %v1936_v6, %v5992_v37  ;;  %v1956_v28 = vstv %s6007_s6  ;;  %v1941_v35 = vmul.f32 %v1939_v62, %v5988_v12  ;;  %v1940_v1 = vmul.f32 %v1939_v62, %v5986_v43 }
 0x507   :  { %v1959_v25 = vstv %s6014_s3  ;;  %v1958_v44 = vmul.f32 %v1956_v28, %v5994_v0  ;;  %v1957_v5 = vmul.f32 %v1956_v28, %v5992_v37  ;;  %s6115_s6 = sld [smem:[#allocation3 + $0xd]]  ;;  %s6127_s3 = sld [smem:[#allocation3 + $0xe]] }
 0x508   :  { %v1943_v55 = vadd.f32 %v1941_v35, %v1938_v45  ;;  %v1942_v30 = vadd.f32 %v1940_v1, %v1937_v60  ;;  %v1960_v38 = vmul.f32 %v1959_v25, %v5986_v43 }
 0x50a   :  { %1906 = vrot.lane.b32.xlu1 %v1903_v11, %s3361_s27  ;;  %1904 = vrot.lane.b32.xlu0 %v1902_v54, %s3361_s27  ;;  %s6038_s27 = sld [smem:[#allocation3 + $0x86]]  ;;  %v1976_v11 = vstv %s6019_s20  ;;  %v1961_v54 = vmul.f32 %v1959_v25, %v5988_v12  ;;  %v1962_v32 = vadd.f32 %v1960_v38, %v1957_v5  ;;  %s7874_s20 = smov 32  }
 0x50b   :  { %v1978_v17 = vmul.f32 %v1976_v11, %v5994_v0  ;;  %v1977_v62 = vmul.f32 %v1976_v11, %v5992_v37 }
 0x50c   :  { %v1979_v39 = vstv %s6026_s24  ;;  %v1963_v6 = vadd.f32 %v1961_v54, %v1958_v44  ;;  %s6139_s24 = sld [smem:[#allocation3 + $0xf]] }
 0x50d   :  { %v1980_v45 = vmul.f32 %v1979_v39, %v5986_v43 }
 0x50e   :  { %1926 = vrot.lane.b32.xlu1 %v1923_v34, %s3362_s28  ;;  %1924 = vrot.lane.b32.xlu0 %v1922_v13, %s3362_s28  ;;  %s6050_s28 = sld [smem:[#allocation3 + $0x87]]  ;;  %v1996_v34 = vstv %s6031_s0  ;;  %v1981_v13 = vmul.f32 %v1979_v39, %v5988_v12  ;;  %s7875_s0 = smov 31  }
 0x50f   :  { %v1982_v35 = vadd.f32 %v1980_v45, %v1977_v62  ;;  %v1998_v1 = vmul.f32 %v1996_v34, %v5994_v0  ;;  %v1997_v25 = vmul.f32 %v1996_v34, %v5992_v37 }
 0x510   :  { %v1999_v60 = vstv %s6038_s27  ;;  %v1983_v28 = vadd.f32 %v1981_v13, %v1978_v17  ;;  %s6146_s27 = sld [smem:[#allocation3 + $0x8f]] }
 0x511   :  { %v2000_v44 = vmul.f32 %v1999_v60, %v5986_v43 }
 0x512   :  { %1946 = vrot.lane.b32.xlu1 %v1943_v55, %s3363_s1  ;;  %1944 = vrot.lane.b32.xlu0 %v1942_v30, %s3363_s1  ;;  %s6062_s1 = sld [smem:[#allocation3 + $0x88]]  ;;  %v2016_v55 = vstv %s6043_s5  ;;  %v2001_v30 = vmul.f32 %v1999_v60, %v5988_v12 }
 0x513   :  { %v2002_v54 = vadd.f32 %v2000_v44, %v1997_v25  ;;  %v2018_v38 = vmul.f32 %v2016_v55, %v5994_v0  ;;  %v2017_v39 = vmul.f32 %v2016_v55, %v5992_v37  ;;  %s6151_s5 = sld [smem:[#allocation3 + $0x10]] }
 0x514   :  { %v2019_v5 = vstv %s6050_s28  ;;  %v2003_v11 = vadd.f32 %v2001_v30, %v1998_v1  ;;  %s7876_s28 = smov 30  }
 0x515   :  { %v2020_v17 = vmul.f32 %v2019_v5, %v5986_v43 }
 0x516   :  { %1966 = vrot.lane.b32.xlu1 %v1963_v6, %s3364_s9  ;;  %1964 = vrot.lane.b32.xlu0 %v1962_v32, %s3364_s9  ;;  %s6074_s9 = sld [smem:[#allocation3 + $0x89]]  ;;  %v2036_v6 = vstv %s6055_s8  ;;  %v2021_v32 = vmul.f32 %v2019_v5, %v5988_v12  ;;  %s6158_s8 = sld [smem:[#allocation3 + $0x90]] }
 0x517   :  { %v2022_v13 = vadd.f32 %v2020_v17, %v2017_v39  ;;  %v2038_v45 = vmul.f32 %v2036_v6, %v5994_v0  ;;  %v2037_v60 = vmul.f32 %v2036_v6, %v5992_v37 }
 0x518   :  { %v2039_v62 = vstv %s6062_s1  ;;  %v2023_v34 = vadd.f32 %v2021_v32, %v2018_v38  ;;  %s6163_s1 = sld [smem:[#allocation3 + $0x11]] }
 0x519   :  { %v2040_v1 = vmul.f32 %v2039_v62, %v5986_v43 }
 0x51a   :  { %1986 = vrot.lane.b32.xlu1 %v1983_v28, %s3365_s11  ;;  %1984 = vrot.lane.b32.xlu0 %v1982_v35, %s3365_s11  ;;  %s6086_s11 = sld [smem:[#allocation3 + $0x8a]]  ;;  %v2056_v28 = vstv %s6067_s15  ;;  %v2041_v35 = vmul.f32 %v2039_v62, %v5988_v12  ;;  %s7877_s15 = smov 29  }
 0x51b   :  { %v2042_v30 = vadd.f32 %v2040_v1, %v2037_v60  ;;  %v2058_v44 = vmul.f32 %v2056_v28, %v5994_v0  ;;  %v2057_v5 = vmul.f32 %v2056_v28, %v5992_v37 }
 0x51c   :  { %v2059_v25 = vstv %s6074_s9  ;;  %v2043_v55 = vadd.f32 %v2041_v35, %v2038_v45  ;;  %s6170_s9 = sld [smem:[#allocation3 + $0x91]] }
 0x51d   :  { %v2060_v38 = vmul.f32 %v2059_v25, %v5986_v43 }
 0x51e   :  { %2006 = vrot.lane.b32.xlu1 %v2003_v11, %s3366_s14  ;;  %2004 = vrot.lane.b32.xlu0 %v2002_v54, %s3366_s14  ;;  %s6098_s14 = sld [smem:[#allocation3 + $0x8b]]  ;;  %v2076_v11 = vstv %s6079_s29  ;;  %v2061_v54 = vmul.f32 %v2059_v25, %v5988_v12  ;;  %s6175_s29 = sld [smem:[#allocation3 + $0x12]] }
 0x51f   :  { %v2062_v32 = vadd.f32 %v2060_v38, %v2057_v5  ;;  %v2078_v17 = vmul.f32 %v2076_v11, %v5994_v0  ;;  %v2077_v62 = vmul.f32 %v2076_v11, %v5992_v37 }
 0x520   :  { %v2079_v39 = vstv %s6086_s11  ;;  %v2063_v6 = vadd.f32 %v2061_v54, %v2058_v44  ;;  %s7878_s11 = smov 19  }
 0x521   :  { %v2080_v45 = vmul.f32 %v2079_v39, %v5986_v43 }
 0x522   :  { %2026 = vrot.lane.b32.xlu1 %v2023_v34, %s3367_s16  ;;  %2024 = vrot.lane.b32.xlu0 %v2022_v13, %s3367_s16  ;;  %s6110_s16 = sld [smem:[#allocation3 + $0x8c]]  ;;  %v2096_v34 = vstv %s6091_s7  ;;  %v2081_v13 = vmul.f32 %v2079_v39, %v5988_v12  ;;  %s6182_s7 = sld [smem:[#allocation3 + $0x92]] }
 0x523   :  { %v2082_v35 = vadd.f32 %v2080_v45, %v2077_v62  ;;  %v2098_v1 = vmul.f32 %v2096_v34, %v5994_v0  ;;  %v2097_v25 = vmul.f32 %v2096_v34, %v5992_v37 }
 0x524   :  { %v2099_v60 = vstv %s6098_s14  ;;  %v2083_v28 = vadd.f32 %v2081_v13, %v2078_v17  ;;  %s6187_s14 = sld [smem:[#allocation3 + $0x13]] }
 0x525   :  { %v2100_v44 = vmul.f32 %v2099_v60, %v5986_v43 }
 0x526   :  { %2046 = vrot.lane.b32.xlu1 %v2043_v55, %s3368_s19  ;;  %2044 = vrot.lane.b32.xlu0 %v2042_v30, %s3368_s19  ;;  %s6122_s19 = sld [smem:[#allocation3 + $0x8d]]  ;;  %v2116_v55 = vstv %s6103_s23  ;;  %v2101_v30 = vmul.f32 %v2099_v60, %v5988_v12  ;;  %s7879_s23 = smov 18  }
 0x527   :  { %v2102_v54 = vadd.f32 %v2100_v44, %v2097_v25  ;;  %v2118_v38 = vmul.f32 %v2116_v55, %v5994_v0  ;;  %v2117_v39 = vmul.f32 %v2116_v55, %v5992_v37 }
 0x528   :  { %v2119_v5 = vstv %s6110_s16  ;;  %v2103_v11 = vadd.f32 %v2101_v30, %v2098_v1  ;;  %s6194_s16 = sld [smem:[#allocation3 + $0x93]] }
 0x529   :  { %v2120_v17 = vmul.f32 %v2119_v5, %v5986_v43 }
 0x52a   :  { %2066 = vrot.lane.b32.xlu1 %v2063_v6, %s3369_s22  ;;  %2064 = vrot.lane.b32.xlu0 %v2062_v32, %s3369_s22  ;;  %s6134_s22 = sld [smem:[#allocation3 + $0x8e]]  ;;  %v2136_v6 = vstv %s6115_s6  ;;  %v2121_v32 = vmul.f32 %v2119_v5, %v5988_v12  ;;  %s6199_s6 = sld [smem:[#allocation3 + $0x14]] }
 0x52b   :  { %v2122_v13 = vadd.f32 %v2120_v17, %v2117_v39  ;;  %v2138_v45 = vmul.f32 %v2136_v6, %v5994_v0  ;;  %v2137_v60 = vmul.f32 %v2136_v6, %v5992_v37  ;;  %v2179_v39 = vstv %s6146_s27  ;;  %s7882_s27 = smov 15  }
 0x52c   :  { %v2139_v62 = vstv %s6122_s19  ;;  %v2123_v34 = vadd.f32 %v2121_v32, %v2118_v38  ;;  %s7880_s19 = smov 17  }
 0x52d   :  { %v2140_v1 = vmul.f32 %v2139_v62, %v5986_v43 }
 0x52e   :  { %2086 = vrot.lane.b32.xlu1 %v2083_v28, %s7874_s20  ;;  %2084 = vrot.lane.b32.xlu0 %v2082_v35, %s7874_s20  ;;  %v2156_v28 = vstv %s6127_s3  ;;  %v2141_v35 = vmul.f32 %v2139_v62, %v5988_v12  ;;  %s6206_s3 = sld [smem:[#allocation3 + $0x94]]  ;;  %s6211_s20 = sld [smem:[#allocation3 + $0x15]] }
 0x52f   :  { %v2142_v30 = vadd.f32 %v2140_v1, %v2137_v60  ;;  %v2158_v44 = vmul.f32 %v2156_v28, %v5994_v0  ;;  %v2157_v5 = vmul.f32 %v2156_v28, %v5992_v37  ;;  %v2199_v60 = vstv %s6158_s8  ;;  %s7883_s8 = smov 14  }
 0x530   :  { %v2159_v25 = vstv %s6134_s22  ;;  %v2143_v55 = vadd.f32 %v2141_v35, %v2138_v45  ;;  %v2180_v45 = vmul.f32 %v2179_v39, %v5986_v43  ;;  %s7881_s22 = smov 16  }
 0x531   :  { %v2160_v38 = vmul.f32 %v2159_v25, %v5986_v43 }
 0x532   :  { %2106 = vrot.lane.b32.xlu1 %v2103_v11, %s7875_s0  ;;  %2104 = vrot.lane.b32.xlu0 %v2102_v54, %s7875_s0  ;;  %v2176_v11 = vstv %s6139_s24  ;;  %v2161_v54 = vmul.f32 %v2159_v25, %v5988_v12  ;;  %s6218_s24 = sld [smem:[#allocation3 + $0x95]]  ;;  %s6223_s0 = sld [smem:[#allocation3 + $0x16]] }
 0x533   :  { %v2162_v32 = vadd.f32 %v2160_v38, %v2157_v5  ;;  %v2178_v17 = vmul.f32 %v2176_v11, %v5994_v0  ;;  %v2177_v62 = vmul.f32 %v2176_v11, %v5992_v37  ;;  %v2219_v5 = vstv %s6170_s9  ;;  %s7884_s9 = smov 13  }
 0x534   :  { %v2163_v6 = vadd.f32 %v2161_v54, %v2158_v44  ;;  %v2200_v44 = vmul.f32 %v2199_v60, %v5986_v43 }
 0x535   :  { %v2182_v35 = vadd.f32 %v2180_v45, %v2177_v62  ;;  %v2239_v62 = vstv %s6182_s7  ;;  %s7885_s7 = smov 3  }
 0x536   :  { %2126 = vrot.lane.b32.xlu1 %v2123_v34, %s7876_s28  ;;  %2124 = vrot.lane.b32.xlu0 %v2122_v13, %s7876_s28  ;;  %v2196_v34 = vstv %s6151_s5  ;;  %v2181_v13 = vmul.f32 %v2179_v39, %v5988_v12  ;;  %s6230_s5 = sld [smem:[#allocation3 + $0x96]]  ;;  %s6235_s28 = sld [smem:[#allocation3 + $0x17]] }
 0x537   :  { %v2198_v1 = vmul.f32 %v2196_v34, %v5994_v0  ;;  %v2197_v25 = vmul.f32 %v2196_v34, %v5992_v37 }
 0x538   :  { %v2183_v28 = vadd.f32 %v2181_v13, %v2178_v17  ;;  %v2220_v17 = vmul.f32 %v2219_v5, %v5986_v43 }
 0x539   :  { %v2202_v54 = vadd.f32 %v2200_v44, %v2197_v25  ;;  %v2259_v25 = vstv %s6194_s16  ;;  %s7886_s16 = smov 2  }
 0x53a   :  { %2146 = vrot.lane.b32.xlu1 %v2143_v55, %s7877_s15  ;;  %2144 = vrot.lane.b32.xlu0 %v2142_v30, %s7877_s15  ;;  %v2216_v55 = vstv %s6163_s1  ;;  %v2201_v30 = vmul.f32 %v2199_v60, %v5988_v12  ;;  %s6242_s1 = sld [smem:[#allocation3 + $0x97]]  ;;  %s6247_s15 = sld [smem:[#allocation3 + $0x19]] }
 0x53b   :  { %v2218_v38 = vmul.f32 %v2216_v55, %v5994_v0  ;;  %v2217_v39 = vmul.f32 %v2216_v55, %v5992_v37 }
 0x53c   :  { %v2203_v11 = vadd.f32 %v2201_v30, %v2198_v1  ;;  %v2240_v1 = vmul.f32 %v2239_v62, %v5986_v43 }
 0x53d   :  { %v2222_v13 = vadd.f32 %v2220_v17, %v2217_v39  ;;  %v2279_v39 = vstv %s6206_s3  ;;  %s7887_s3 = smov 1  }
 0x53e   :  { %2166 = vrot.lane.b32.xlu1 %v2163_v6, %s7878_s11  ;;  %2164 = vrot.lane.b32.xlu0 %v2162_v32, %s7878_s11  ;;  %v2236_v6 = vstv %s6175_s29  ;;  %v2221_v32 = vmul.f32 %v2219_v5, %v5988_v12  ;;  %s6254_s29 = sld [smem:[#allocation3 + $0x99]]  ;;  %s6259_s11 = sld [smem:[#allocation3 + $0x1a]] }
 0x53f   :  { %v2238_v45 = vmul.f32 %v2236_v6, %v5994_v0  ;;  %v2237_v60 = vmul.f32 %v2236_v6, %v5992_v37 }
 0x540   :  { %v2223_v34 = vadd.f32 %v2221_v32, %v2218_v38  ;;  %v2260_v38 = vmul.f32 %v2259_v25, %v5986_v43 }
 0x541   :  { %v2242_v30 = vadd.f32 %v2240_v1, %v2237_v60  ;;  %v2299_v60 = vstv %s6218_s24  ;;  %s6295_s24 = sld [smem:[#allocation3 + $0x1d]] }
 0x542   :  { %2186 = vrot.lane.b32.xlu1 %v2183_v28, %s7879_s23  ;;  %2184 = vrot.lane.b32.xlu0 %v2182_v35, %s7879_s23  ;;  %v2256_v28 = vstv %s6187_s14  ;;  %v2241_v35 = vmul.f32 %v2239_v62, %v5988_v12  ;;  %s6266_s14 = sld [smem:[#allocation3 + $0x9a]]  ;;  %s6271_s23 = sld [smem:[#allocation3 + $0x1b]] }
 0x543   :  { %v2258_v44 = vmul.f32 %v2256_v28, %v5994_v0  ;;  %v2257_v5 = vmul.f32 %v2256_v28, %v5992_v37 }
 0x544   :  { %v2243_v55 = vadd.f32 %v2241_v35, %v2238_v45  ;;  %v2280_v45 = vmul.f32 %v2279_v39, %v5986_v43 }
 0x545   :  { %v2262_v32 = vadd.f32 %v2260_v38, %v2257_v5  ;;  %v2319_v5 = vstv %s6230_s5  ;;  %s6307_s5 = sld [smem:[#allocation3 + $0x1e]] }
 0x546   :  { %2206 = vrot.lane.b32.xlu1 %v2203_v11, %s7880_s19  ;;  %2204 = vrot.lane.b32.xlu0 %v2202_v54, %s7880_s19  ;;  %v2276_v11 = vstv %s6199_s6  ;;  %v2261_v54 = vmul.f32 %v2259_v25, %v5988_v12  ;;  %s6278_s6 = sld [smem:[#allocation3 + $0x9b]]  ;;  %s6283_s19 = sld [smem:[#allocation3 + $0x1c]] }
 0x547   :  { %v2278_v17 = vmul.f32 %v2276_v11, %v5994_v0  ;;  %v2277_v62 = vmul.f32 %v2276_v11, %v5992_v37 }
 0x548   :  { %v2263_v6 = vadd.f32 %v2261_v54, %v2258_v44  ;;  %v2300_v44 = vmul.f32 %v2299_v60, %v5986_v43 }
 0x549   :  { %v2282_v35 = vadd.f32 %v2280_v45, %v2277_v62  ;;  %v2339_v62 = vstv %s6242_s1  ;;  %s6319_s1 = sld [smem:[#allocation3 + $0x1f]] }
 0x54a   :  { %2226 = vrot.lane.b32.xlu1 %v2223_v34, %s7881_s22  ;;  %2224 = vrot.lane.b32.xlu0 %v2222_v13, %s7881_s22  ;;  %v2296_v34 = vstv %s6211_s20  ;;  %v2281_v13 = vmul.f32 %v2279_v39, %v5988_v12  ;;  %s6290_s20 = sld [smem:[#allocation3 + $0x9c]] }
 0x54b   :  { %v2298_v1 = vmul.f32 %v2296_v34, %v5994_v0  ;;  %v2297_v25 = vmul.f32 %v2296_v34, %v5992_v37 }
 0x54c   :  { %v2283_v28 = vadd.f32 %v2281_v13, %v2278_v17  ;;  %v2320_v17 = vmul.f32 %v2319_v5, %v5986_v43 }
 0x54d   :  { %v2302_v54 = vadd.f32 %v2300_v44, %v2297_v25  ;;  %v2373_v25 = vstv %s6254_s29  ;;  %s6331_s29 = sld [smem:[#allocation3 + $0x20]] }
 0x54e   :  { %2246 = vrot.lane.b32.xlu1 %v2243_v55, %s7882_s27  ;;  %2244 = vrot.lane.b32.xlu0 %v2242_v30, %s7882_s27  ;;  %v2316_v55 = vstv %s6223_s0  ;;  %v2301_v30 = vmul.f32 %v2299_v60, %v5988_v12  ;;  %s7888_s0 = smov 127   ;;  %s6302_s27 = sld [smem:[#allocation3 + $0x9d]] }
 0x54f   :  { %v2318_v38 = vmul.f32 %v2316_v55, %v5994_v0  ;;  %v2317_v39 = vmul.f32 %v2316_v55, %v5992_v37 }
 0x550   :  { %v2303_v11 = vadd.f32 %v2301_v30, %v2298_v1  ;;  %v2340_v1 = vmul.f32 %v2339_v62, %v5986_v43 }
 0x551   :  { %v2322_v13 = vadd.f32 %v2320_v17, %v2317_v39  ;;  %v2393_v39 = vstv %s6266_s14  ;;  %s6340_s14 = sld [smem:[#allocation3 + $0x21]] }
 0x552   :  { %2266 = vrot.lane.b32.xlu1 %v2263_v6, %s7883_s8  ;;  %2264 = vrot.lane.b32.xlu0 %v2262_v32, %s7883_s8  ;;  %v2336_v6 = vstv %s6235_s28  ;;  %v2321_v32 = vmul.f32 %v2319_v5, %v5988_v12  ;;  %s7889_s28 = smov 126   ;;  %s6314_s8 = sld [smem:[#allocation3 + $0x9e]] }
 0x553   :  { %v2338_v45 = vmul.f32 %v2336_v6, %v5994_v0  ;;  %v2337_v60 = vmul.f32 %v2336_v6, %v5992_v37 }
 0x554   :  { %v2323_v34 = vadd.f32 %v2321_v32, %v2318_v38  ;;  %v2374_v38 = vmul.f32 %v2373_v25, %v5986_v43 }
 0x555   :  { %v2342_v30 = vadd.f32 %v2340_v1, %v2337_v60  ;;  %v2413_v60 = vstv %s6278_s6  ;;  %s6359_s6 = sld [smem:[#allocation3 + $0x22]] }
 0x556   :  { %2286 = vrot.lane.b32.xlu1 %v2283_v28, %s7884_s9  ;;  %2284 = vrot.lane.b32.xlu0 %v2282_v35, %s7884_s9  ;;  %v2370_v28 = vstv %s6247_s15  ;;  %v2341_v35 = vmul.f32 %v2339_v62, %v5988_v12  ;;  %s7890_s15 = smov 125   ;;  %s6326_s9 = sld [smem:[#allocation3 + $0x9f]] }
 0x557   :  { %v2372_v44 = vmul.f32 %v2370_v28, %v5994_v0  ;;  %v2371_v5 = vmul.f32 %v2370_v28, %v5992_v37 }
 0x558   :  { %v2343_v55 = vadd.f32 %v2341_v35, %v2338_v45  ;;  %v2394_v45 = vmul.f32 %v2393_v39, %v5986_v43 }
 0x559   :  { %v2376_v32 = vadd.f32 %v2374_v38, %v2371_v5  ;;  %v2433_v5 = vstv %s6290_s20  ;;  %s6377_s20 = sld [smem:[#allocation3 + $0x23]] }
 0x55a   :  { %2306 = vrot.lane.b32.xlu1 %v2303_v11, %s7885_s7  ;;  %2304 = vrot.lane.b32.xlu0 %v2302_v54, %s7885_s7  ;;  %v2390_v11 = vstv %s6259_s11  ;;  %v2375_v54 = vmul.f32 %v2373_v25, %v5988_v12  ;;  %s7891_s11 = smov 115   ;;  %s6337_s7 = sld [smem:[#allocation3 + $0xa0]] }
 0x55b   :  { %v2392_v17 = vmul.f32 %v2390_v11, %v5994_v0  ;;  %v2391_v62 = vmul.f32 %v2390_v11, %v5992_v37 }
 0x55c   :  { %v2377_v6 = vadd.f32 %v2375_v54, %v2372_v44  ;;  %v2414_v44 = vmul.f32 %v2413_v60, %v5986_v43 }
 0x55d   :  { %v2396_v35 = vadd.f32 %v2394_v45, %v2391_v62  ;;  %v2453_v62 = vstv %s6302_s27  ;;  %s6399_s27 = sld [smem:[#allocation3 + $0x24]] }
 0x55e   :  { %2326 = vrot.lane.b32.xlu1 %v2323_v34, %s7886_s16  ;;  %2324 = vrot.lane.b32.xlu0 %v2322_v13, %s7886_s16  ;;  %v2410_v34 = vstv %s6271_s23  ;;  %v2395_v13 = vmul.f32 %v2393_v39, %v5988_v12  ;;  %s7892_s23 = smov 114   ;;  %s6350_s16 = sld [smem:[#allocation3 + $0xa1]] }
 0x55f   :  { %v2412_v1 = vmul.f32 %v2410_v34, %v5994_v0  ;;  %v2411_v25 = vmul.f32 %v2410_v34, %v5992_v37 }
 0x560   :  { %v2397_v28 = vadd.f32 %v2395_v13, %v2392_v17  ;;  %v2434_v17 = vmul.f32 %v2433_v5, %v5986_v43 }
 0x561   :  { %v2416_v54 = vadd.f32 %v2414_v44, %v2411_v25  ;;  %v2473_v25 = vstv %s6314_s8  ;;  %s6419_s8 = sld [smem:[#allocation3 + $0x25]] }
 0x562   :  { %2346 = vrot.lane.b32.xlu1 %v2343_v55, %s7887_s3  ;;  %2344 = vrot.lane.b32.xlu0 %v2342_v30, %s7887_s3  ;;  %v2430_v55 = vstv %s6283_s19  ;;  %v2415_v30 = vmul.f32 %v2413_v60, %v5988_v12  ;;  %s7895_s19 = smov 113   ;;  %s6367_s3 = sld [smem:[#allocation3 + $0xa2]] }
 0x563   :  { %v2432_v38 = vmul.f32 %v2430_v55, %v5994_v0  ;;  %v2431_v39 = vmul.f32 %v2430_v55, %v5992_v37 }
 0x564   :  { %v2417_v11 = vadd.f32 %v2415_v30, %v2412_v1  ;;  %v2454_v1 = vmul.f32 %v2453_v62, %v5986_v43 }
 0x565   :  { %v2436_v13 = vadd.f32 %v2434_v17, %v2431_v39  ;;  %v2493_v39 = vstv %s6326_s9  ;;  %s6439_s9 = sld [smem:[#allocation3 + $0x26]] }
 0x566   :  { %2380 = vrot.lane.b32.xlu1 %v2377_v6, %s7888_s0  ;;  %2378 = vrot.lane.b32.xlu0 %v2376_v32, %s7888_s0  ;;  %v2450_v6 = vstv %s6295_s24  ;;  %v2435_v32 = vmul.f32 %v2433_v5, %v5988_v12  ;;  %s7902_s24 = smov 112   ;;  %s6390_s0 = sld [smem:[#allocation3 + $0xa3]] }
 0x567   :  { %v2452_v45 = vmul.f32 %v2450_v6, %v5994_v0  ;;  %v2451_v60 = vmul.f32 %v2450_v6, %v5992_v37 }
 0x568   :  { %v2437_v34 = vadd.f32 %v2435_v32, %v2432_v38  ;;  %v2474_v38 = vmul.f32 %v2473_v25, %v5986_v43 }
 0x569   :  { %v2456_v30 = vadd.f32 %v2454_v1, %v2451_v60  ;;  %v2494_v1 = vmul.f32 %v2493_v39, %v5986_v43 }
 0x56a   :  { %2400 = vrot.lane.b32.xlu1 %v2397_v28, %s7889_s28  ;;  %2398 = vrot.lane.b32.xlu0 %v2396_v35, %s7889_s28  ;;  %v2470_v28 = vstv %s6307_s5  ;;  %v2455_v35 = vmul.f32 %v2453_v62, %v5988_v12  ;;  %s7909_s5 = smov 111   ;;  %s6410_s28 = sld [smem:[#allocation3 + $0xa4]] }
 0x56b   :  { %v2472_v44 = vmul.f32 %v2470_v28, %v5994_v0  ;;  %v2471_v5 = vmul.f32 %v2470_v28, %v5992_v37  ;;  %v2510_v28 = vstv %s6331_s29  ;;  %s7919_s29 = smov 109  }
 0x56c   :  { %v2457_v55 = vadd.f32 %v2455_v35, %v2452_v45  ;;  %v2495_v35 = vmul.f32 %v2493_v39, %v5988_v12 }
 0x56d   :  { %v2476_v62 = vadd.f32 %v2474_v38, %v2471_v5  ;;  %v2511_v38 = vmul.f32 %v2510_v28, %v5992_v37 }
 0x56e   :  { %2420 = vrot.lane.b32.xlu1 %v2417_v11, %s7890_s15  ;;  %2418 = vrot.lane.b32.xlu0 %v2416_v54, %s7890_s15  ;;  %v2490_v11 = vstv %s6319_s1  ;;  %v2475_v54 = vmul.f32 %v2473_v25, %v5988_v12  ;;  %v2513_v25 = vstv %s6337_s7  ;;  %s7914_s1 = smov 110   ;;  %s6430_s15 = sld [smem:[#allocation3 + $0xa5]] }
 0x56f   :  { %v2515_v39 = vmul.f32 %v2513_v25, %v5988_v12  ;;  %s6459_s7 = sld [smem:[#allocation3 + $0x27]] }
 0x570   :  { %v2477_v17 = vadd.f32 %v2475_v54, %v2472_v44  ;;  %v2512_v54 = vmul.f32 %v2510_v28, %v5994_v0 }
 0x572   :  { %2440 = vrot.lane.b32.xlu1 %v2437_v34, %s7891_s11  ;;  %2438 = vrot.lane.b32.xlu0 %v2436_v13, %s7891_s11  ;;  %v2492_v34 = vmul.f32 %v2490_v11, %v5994_v0  ;;  %v2491_v13 = vmul.f32 %v2490_v11, %v5992_v37  ;;  %s6450_s11 = sld [smem:[#allocation3 + $0xa6]] }
 0x574   :  { %v2497_v5 = vadd.f32 %v2495_v35, %v2492_v34  ;;  %v2496_v11 = vadd.f32 %v2494_v1, %v2491_v13  ;;  %v7900_v1 = vld [vmem:[#allocation31_spill] sm:$0xff]  ;;  %v2517_v34 = vadd.f32 %v2515_v39, %v2512_v54 }
 0x576   :  { %2460 = vrot.lane.b32.xlu1 %v2457_v55, %s7892_s23  ;;  %2458 = vrot.lane.b32.xlu0 %v2456_v30, %s7892_s23  ;;  %v2530_v55 = vstv %s6340_s14  ;;  %s7924_s14 = smov 99   ;;  %s6470_s23 = sld [smem:[#allocation3 + $0xa7]] }
 0x577   :  { %v2531_v35 = vmul.f32 %v2530_v55, %v5992_v37 }
 0x578   :  { %v1887_v6 = vpop.permute.xlu1 %1886  ;;  %v1885_v32 = vpop.permute.xlu0 %1884 }
 0x579   :  { %v1888_v45 = vsel %vm7893_vm7, %v1885_v32, %v1887_v6  ;;  %v1889_v60 = vsel %vm7894_vm8, %v1887_v6, %v1885_v32  ;;  %vm7897_vm7 = vmmov %vm7896_vm9  ;;  %vm7901_vm8 = vnez %v7900_v1 }
 0x57a   :  { %2480 = vrot.lane.b32.xlu1 %v2477_v17, %s7895_s19  ;;  %2478 = vrot.lane.b32.xlu0 %v2476_v62, %s7895_s19  ;;  %v2514_v17 = vmul.f32 %v2513_v25, %v5986_v43  ;;  %v1890_v62 = vsel %vm4450_vm0, %v1889_v60, 0.0  ;;  %v1891_v13 = vsel %vm4462_vm6, %v1888_v45, 0.0  ;;  %vm7903_vm0 = vcmp.lt.s32.totalorder %v3487_v21, 49  ;;  %s6490_s19 = sld [smem:[#allocation3 + $0xa8]] }
 0x57c   :  { %v1907_v30 = vpop.permute.xlu1 %1906  ;;  %v1905_v44 = vpop.permute.xlu0 %1904  ;;  %v2516_v45 = vadd.f32 %v2514_v17, %v2511_v38 }
 0x57d   :  { %v1908_v6 = vsel %vm7896_vm9, %v1905_v44, %v1907_v30  ;;  %v1909_v32 = vsel %vm7897_vm7, %v1907_v30, %v1905_v44  ;;  %v2533_v44 = vstv %s6350_s16  ;;  %vm7910_vm7 = vcmp.lt.s32.totalorder %v3487_v21, 48  ;;  %s6479_s16 = sld [smem:[#allocation3 + $0x28]] }
 0x57e   :  { %v1910_v28 = vsel %vm4475_vm5, %v1909_v32, 0.0  ;;  %v1911_v24 = vsel %vm7901_vm8, %v1908_v6, 0.0  ;;  %2500 = vrot.lane.b32.xlu1 %v2497_v5, %s7902_s24  ;;  %2498 = vrot.lane.b32.xlu0 %v2496_v11, %s7902_s24  ;;  %v2532_v32 = vmul.f32 %v2530_v55, %v5994_v0  ;;  %vm7904_vm5 = vmmov %vm7903_vm0  ;;  %v2550_v11 = vstv %s6359_s6  ;;  %s7930_s6 = smov 98   ;;  %s6510_s24 = sld [smem:[#allocation3 + $0xa9]] }
 0x57f   :  { %v1912_v25 = vadd.f32 %v1910_v28, %v1890_v62  ;;  %v1913_v30 = vadd.f32 %v1911_v24, %v1891_v13  ;;  %v7905_v24 = vld [vmem:[#allocation34_spill] sm:$0xff]  ;;  %v7907_v13 = vld [vmem:[#allocation35_spill] sm:$0xff]  ;;  %v2535_v55 = vmul.f32 %v2533_v44, %v5988_v12  ;;  %v2534_v38 = vmul.f32 %v2533_v44, %v5986_v43  ;;  %vm7911_vm8 = vmmov %vm7910_vm7 }
 0x580   :  { %v1927_v61 = vpop.permute.xlu1 %1926  ;;  %v1925_v60 = vpop.permute.xlu0 %1924  ;;  %vm7906_vm6 = vnez %v7905_v24  ;;  %vm7908_vm9 = vnez %v7907_v13  ;;  %v2553_v28 = vstv %s6367_s3  ;;  %v2573_v13 = vstv %s6390_s0  ;;  %s6499_s3 = sld [smem:[#allocation3 + $0x29]]  ;;  %s6519_s0 = sld [smem:[#allocation3 + $0x2a]] }
 0x581   :  { %v1928_v6 = vsel %vm7903_vm0, %v1925_v60, %v1927_v61  ;;  %v1929_v5 = vsel %vm7904_vm5, %v1927_v61, %v1925_v60  ;;  %v2537_v60 = vadd.f32 %v2535_v55, %v2532_v32  ;;  %vm7912_vm0 = vnez %v7384_v10 }
 0x582   :  { %v1930_v62 = vsel %vm7906_vm6, %v1929_v5, 0.0  ;;  %v1931_v54 = vsel %vm7908_vm9, %v1928_v6, 0.0  ;;  %2520 = vrot.lane.b32.xlu1 %v2517_v34, %s7909_s5  ;;  %2518 = vrot.lane.b32.xlu0 %v2516_v45, %s7909_s5  ;;  %v2536_v5 = vadd.f32 %v2534_v38, %v2531_v35  ;;  %v2552_v6 = vmul.f32 %v2550_v11, %v5994_v0  ;;  %s6530_s5 = sld [smem:[#allocation3 + $0xaa]] }
 0x583   :  { %v1932_v39 = vadd.f32 %v1930_v62, %v1912_v25  ;;  %v1933_v17 = vadd.f32 %v1931_v54, %v1913_v30  ;;  %v2551_v34 = vmul.f32 %v2550_v11, %v5992_v37  ;;  %v2570_v25 = vstv %s6377_s20  ;;  %s7936_s20 = smov 97  }
 0x584   :  { %v1947_v1 = vpop.permute.xlu1 %1946  ;;  %v1945_v61 = vpop.permute.xlu0 %1944  ;;  %vm7913_vm5 = vnez %v7386_v31  ;;  %v2555_v35 = vmul.f32 %v2553_v28, %v5988_v12  ;;  %v2554_v11 = vmul.f32 %v2553_v28, %v5986_v43  ;;  %v2572_v38 = vmul.f32 %v2570_v25, %v5994_v0 }
 0x585   :  { %v1948_v45 = vsel %vm7910_vm7, %v1945_v61, %v1947_v1  ;;  %v1949_v44 = vsel %vm7911_vm8, %v1947_v1, %v1945_v61  ;;  %v2571_v1 = vmul.f32 %v2570_v25, %v5992_v37  ;;  %vm7915_vm6 = vcmp.lt.s32.totalorder %v3487_v21, 47 }
 0x586   :  { %v1950_v30 = vsel %vm7912_vm0, %v1949_v44, 0.0  ;;  %v1951_v32 = vsel %vm7913_vm5, %v1948_v45, 0.0  ;;  %2540 = vrot.lane.b32.xlu1 %v2537_v60, %s7914_s1  ;;  %2538 = vrot.lane.b32.xlu0 %v2536_v5, %s7914_s1  ;;  %v2557_v55 = vadd.f32 %v2555_v35, %v2552_v6  ;;  %v2556_v31 = vadd.f32 %v2554_v11, %v2551_v34  ;;  %vm7916_vm9 = vmmov %vm7915_vm6  ;;  %s6570_s1 = sld [smem:[#allocation3 + $0xac]] }
 0x587   :  { %v1952_v24 = vadd.f32 %v1950_v30, %v1932_v39  ;;  %v1953_v62 = vadd.f32 %v1951_v32, %v1933_v17  ;;  %v2590_v39 = vstv %s6399_s27  ;;  %vm7917_vm7 = vnez %v7419_v29  ;;  %s7943_s27 = smov 96  }
 0x588   :  { %v1967_v54 = vpop.permute.xlu1 %1966  ;;  %v1965_v10 = vpop.permute.xlu0 %1964  ;;  %vm7918_vm8 = vnez %v7424_v59  ;;  %v2575_v5 = vmul.f32 %v2573_v13, %v5988_v12  ;;  %v2574_v6 = vmul.f32 %v2573_v13, %v5986_v43  ;;  %v2593_v44 = vstv %s6410_s28  ;;  %s6539_s28 = sld [smem:[#allocation3 + $0x2b]] }
 0x589   :  { %v1968_v61 = vsel %vm7915_vm6, %v1965_v10, %v1967_v54  ;;  %v1969_v28 = vsel %vm7916_vm9, %v1967_v54, %v1965_v10  ;;  %v2592_v32 = vmul.f32 %v2590_v39, %v5994_v0  ;;  %v2591_v35 = vmul.f32 %v2590_v39, %v5992_v37 }
 0x58a   :  { %v1970_v17 = vsel %vm7917_vm7, %v1969_v28, 0.0  ;;  %v1971_v60 = vsel %vm7918_vm8, %v1968_v61, 0.0  ;;  %2560 = vrot.lane.b32.xlu1 %v2557_v55, %s7919_s29  ;;  %2558 = vrot.lane.b32.xlu0 %v2556_v31, %s7919_s29  ;;  %v2577_v30 = vadd.f32 %v2575_v5, %v2572_v38  ;;  %v2576_v59 = vadd.f32 %v2574_v6, %v2571_v1  ;;  %s6630_s29 = sld [smem:[#allocation3 + $0xaf]] }
 0x58b   :  { %v1972_v34 = vadd.f32 %v1970_v17, %v1952_v24  ;;  %v1973_v45 = vadd.f32 %v1971_v60, %v1953_v62  ;;  %vm7920_vm0 = vcmp.lt.s32.totalorder %v3487_v21, 46  ;;  %v2610_v24 = vstv %s6419_s8  ;;  %s6550_s8 = sld [smem:[#allocation3 + $0xab]] }
 0x58c   :  { %v1987_v25 = vpop.permute.xlu1 %1986  ;;  %v1985_v29 = vpop.permute.xlu0 %1984  ;;  %vm7921_vm5 = vmmov %vm7920_vm0  ;;  %vm7922_vm6 = vnez %v7428_v46  ;;  %vm7923_vm9 = vnez %v7433_v42  ;;  %v2595_v10 = vmul.f32 %v2593_v44, %v5988_v12  ;;  %v2594_v55 = vmul.f32 %v2593_v44, %v5986_v43 }
 0x58d   :  { %v1988_v11 = vsel %vm7920_vm0, %v1985_v29, %v1987_v25  ;;  %v1989_v13 = vsel %vm7921_vm5, %v1987_v25, %v1985_v29  ;;  %v2613_v1 = vstv %s6430_s15  ;;  %v2612_v39 = vmul.f32 %v2610_v24, %v5994_v0  ;;  %s6590_s15 = sld [smem:[#allocation3 + $0xad]] }
 0x58e   :  { %v1990_v62 = vsel %vm7922_vm6, %v1989_v13, 0.0  ;;  %v1991_v54 = vsel %vm7923_vm9, %v1988_v11, 0.0  ;;  %2580 = vrot.lane.b32.xlu1 %v2577_v30, %s7924_s14  ;;  %2578 = vrot.lane.b32.xlu0 %v2576_v59, %s7924_s14  ;;  %v2597_v28 = vadd.f32 %v2595_v10, %v2592_v32  ;;  %v2596_v42 = vadd.f32 %v2594_v55, %v2591_v35 }
 0x58f   :  { %v1992_v31 = vadd.f32 %v1990_v62, %v1972_v34  ;;  %v1993_v38 = vadd.f32 %v1991_v54, %v1973_v45  ;;  %v2611_v17 = vmul.f32 %v2610_v24, %v5992_v37  ;;  %vm7925_vm7 = vcmp.lt.s32.totalorder %v3487_v21, 45  ;;  %v7928_v45 = vld [vmem:[#allocation37_spill] sm:$0xff] }
 0x590   :  { %v2007_v61 = vpop.permute.xlu1 %2006  ;;  %v2005_v46 = vpop.permute.xlu0 %2004  ;;  %vm7926_vm8 = vmmov %vm7925_vm7  ;;  %v2630_v6 = vstv %s6439_s9  ;;  %vm7927_vm0 = vnez %v7436_v15  ;;  %vm7929_vm5 = vnez %v7928_v45  ;;  %v2615_v25 = vmul.f32 %v2613_v1, %v5988_v12  ;;  %s6610_s9 = sld [smem:[#allocation3 + $0xae]] }
 0x591   :  { %v2008_v60 = vsel %vm7925_vm7, %v2005_v46, %v2007_v61  ;;  %v2009_v5 = vsel %vm7926_vm8, %v2007_v61, %v2005_v46  ;;  %v2614_v29 = vmul.f32 %v2613_v1, %v5986_v43  ;;  %v2633_v32 = vstv %s6450_s11  ;;  %s6654_s11 = sld [smem:[#allocation3 + $0xb0]] }
 0x592   :  { %v2010_v34 = vsel %vm7927_vm0, %v2009_v5, 0.0  ;;  %v2011_v44 = vsel %vm7929_vm5, %v2008_v60, 0.0  ;;  %2600 = vrot.lane.b32.xlu1 %v2597_v28, %s7930_s6  ;;  %2598 = vrot.lane.b32.xlu0 %v2596_v42, %s7930_s6  ;;  %v2617_v11 = vadd.f32 %v2615_v25, %v2612_v39  ;;  %v2632_v24 = vmul.f32 %v2630_v6, %v5994_v0 }
 0x593   :  { %v2012_v30 = vadd.f32 %v2010_v34, %v1992_v31  ;;  %v2013_v59 = vadd.f32 %v2011_v44, %v1993_v38  ;;  %v2616_v13 = vadd.f32 %v2614_v29, %v2611_v17  ;;  %v2631_v62 = vmul.f32 %v2630_v6, %v5992_v37  ;;  %v7934_v38 = vld [vmem:[#allocation38_spill] sm:$0xff]  ;;  %v7939_v29 = vld [vmem:[#allocation39_spill] sm:$0xff] }
 0x594   :  { %v2027_v35 = vpop.permute.xlu1 %2026  ;;  %v2025_v15 = vpop.permute.xlu0 %2024  ;;  %vm7931_vm6 = vcmp.lt.s32.totalorder %v3487_v21, 35  ;;  %v2650_v55 = vstv %s6459_s7  ;;  %vm7933_vm7 = vnez %v7445_v23  ;;  %vm7935_vm8 = vnez %v7934_v38 }
 0x595   :  { %v2028_v54 = vsel %vm7931_vm6, %v2025_v15, %v2027_v35  ;;  %vm7932_vm9 = vmmov %vm7931_vm6  ;;  %v2635_v61 = vmul.f32 %v2633_v32, %v5988_v12  ;;  %v2634_v46 = vmul.f32 %v2633_v32, %v5986_v43  ;;  %v2653_v39 = vstv %s6470_s23 }
 0x596   :  { %v2029_v10 = vsel %vm7932_vm9, %v2027_v35, %v2025_v15  ;;  %v2031_v1 = vsel %vm7935_vm8, %v2028_v54, 0.0  ;;  %2620 = vrot.lane.b32.xlu1 %v2617_v11, %s7936_s20  ;;  %2618 = vrot.lane.b32.xlu0 %v2616_v13, %s7936_s20  ;;  %v2652_v6 = vmul.f32 %v2650_v55, %v5994_v0  ;;  %v2651_v34 = vmul.f32 %v2650_v55, %v5992_v37 }
 0x597   :  { %v2030_v31 = vsel %vm7933_vm7, %v2029_v10, 0.0  ;;  %v2033_v42 = vadd.f32 %v2031_v1, %v2013_v59  ;;  %v2637_v60 = vadd.f32 %v2635_v61, %v2632_v24  ;;  %v2636_v5 = vadd.f32 %v2634_v46, %v2631_v62  ;;  %v7941_v59 = vld [vmem:[#allocation40_spill] sm:$0xff] }
 0x598   :  { %v2032_v28 = vadd.f32 %v2030_v31, %v2012_v30  ;;  %v2047_v17 = vpop.permute.xlu1 %2046  ;;  %v2045_v23 = vpop.permute.xlu0 %2044  ;;  %vm7937_vm0 = vcmp.lt.s32.totalorder %v3487_v21, 34  ;;  %v2670_v25 = vstv %s6479_s16  ;;  %vm7940_vm6 = vnez %v7939_v29 }
 0x599   :  { %v2048_v45 = vsel %vm7937_vm0, %v2045_v23, %v2047_v17  ;;  %vm7938_vm5 = vmmov %vm7937_vm0  ;;  %vm7942_vm9 = vnez %v7941_v59  ;;  %v2655_v35 = vmul.f32 %v2653_v39, %v5988_v12  ;;  %v2654_v15 = vmul.f32 %v2653_v39, %v5986_v43  ;;  %v7948_v39 = vld [vmem:[#allocation42_spill] sm:$0xff] }
 0x59a   :  { %v2049_v44 = vsel %vm7938_vm5, %v2047_v17, %v2045_v23  ;;  %v2051_v32 = vsel %vm7942_vm9, %v2048_v45, 0.0  ;;  %2640 = vrot.lane.b32.xlu1 %v2637_v60, %s7943_s27  ;;  %2638 = vrot.lane.b32.xlu0 %v2636_v5, %s7943_s27  ;;  %v2673_v24 = vstv %s6490_s19  ;;  %v2672_v31 = vmul.f32 %v2670_v25, %v5994_v0 }
 0x59b   :  { %v2050_v30 = vsel %vm7940_vm6, %v2049_v44, 0.0  ;;  %v2053_v13 = vadd.f32 %v2051_v32, %v2033_v42  ;;  %v2657_v10 = vadd.f32 %v2655_v35, %v2652_v6  ;;  %v2656_v55 = vadd.f32 %v2654_v15, %v2651_v34 }
 0x59c   :  { %v2052_v11 = vadd.f32 %v2050_v30, %v2032_v28  ;;  %v2067_v62 = vpop.permute.xlu1 %2066  ;;  %v2065_v54 = vpop.permute.xlu0 %2064  ;;  %v2671_v38 = vmul.f32 %v2670_v25, %v5992_v37  ;;  %vm7944_vm7 = vcmp.lt.s32.totalorder %v3487_v21, 33  ;;  %v2690_v46 = vstv %s6499_s3  ;;  %v7946_v28 = vld [vmem:[#allocation41_spill] sm:$0xff] }
 0x59d   :  { %v2068_v1 = vsel %vm7944_vm7, %v2065_v54, %v2067_v62  ;;  %vm7945_vm8 = vmmov %vm7944_vm7  ;;  %vm7947_vm0 = vnez %v7946_v28  ;;  %vm7949_vm5 = vnez %v7948_v39  ;;  %v2675_v23 = vmul.f32 %v2673_v24, %v5988_v12 }
 0x59e   :  { %v2069_v61 = vsel %vm7945_vm8, %v2067_v62, %v2065_v54  ;;  %v2071_v17 = vsel %vm7949_vm5, %v2068_v1, 0.0  ;;  %2660 = vrot.lane.b32.xlu1 %v2657_v10, %s3397_s10  ;;  %2658 = vrot.lane.b32.xlu0 %v2656_v55, %s3397_s10  ;;  %v2674_v60 = vmul.f32 %v2673_v24, %v5986_v43  ;;  %v2693_v34 = vstv %s6510_s24  ;;  %s6559_s10 = sld [smem:[#allocation3 + $0x2c]] }
 0x59f   :  { %v2070_v42 = vsel %vm7947_vm0, %v2069_v61, 0.0  ;;  %v2073_v6 = vadd.f32 %v2071_v17, %v2053_v13  ;;  %v2677_v25 = vadd.f32 %v2675_v23, %v2672_v31  ;;  %v2692_v30 = vmul.f32 %v2690_v46, %v5994_v0 }
 0x5a0   :  { %v2072_v5 = vadd.f32 %v2070_v42, %v2052_v11  ;;  %v2087_v45 = vpop.permute.xlu1 %2086  ;;  %v2085_v44 = vpop.permute.xlu0 %2084  ;;  %v2676_v29 = vadd.f32 %v2674_v60, %v2671_v38  ;;  %v2691_v59 = vmul.f32 %v2690_v46, %v5992_v37  ;;  %vm7950_vm6 = vcmp.lt.s32.totalorder %v3487_v21, 32 }
 0x5a1   :  { %v2088_v32 = vsel %vm7950_vm6, %v2085_v44, %v2087_v45  ;;  %vm7951_vm9 = vmmov %vm7950_vm6  ;;  %v2710_v15 = vstv %s6519_s0  ;;  %vm7952_vm7 = vnez %v7410_v40  ;;  %vm7953_vm8 = vnez %v7415_v48 }
 0x5a2   :  { %v2089_v35 = vsel %vm7951_vm9, %v2087_v45, %v2085_v44  ;;  %v2091_v13 = vsel %vm7953_vm8, %v2088_v32, 0.0  ;;  %2680 = vrot.lane.b32.xlu1 %v2677_v25, %s3398_s13  ;;  %2678 = vrot.lane.b32.xlu0 %v2676_v29, %s3398_s13  ;;  %v2695_v24 = vmul.f32 %v2693_v34, %v5988_v12  ;;  %v2694_v62 = vmul.f32 %v2693_v34, %v5986_v43  ;;  %s6579_s13 = sld [smem:[#allocation3 + $0x2d]] }
 0x5a3   :  { %v2090_v11 = vsel %vm7952_vm7, %v2089_v35, 0.0  ;;  %v2093_v10 = vadd.f32 %v2091_v13, %v2073_v6  ;;  %v2713_v55 = vstv %s6530_s5  ;;  %v2712_v1 = vmul.f32 %v2710_v15, %v5994_v0  ;;  %v7960_v35 = vld [vmem:[#allocation45_spill] sm:$0xff] }
 0x5a4   :  { %v2092_v54 = vadd.f32 %v2090_v11, %v2072_v5  ;;  %v2107_v31 = vpop.permute.xlu1 %2106  ;;  %v2105_v40 = vpop.permute.xlu0 %2104  ;;  %v2697_v38 = vadd.f32 %v2695_v24, %v2692_v30  ;;  %v2696_v48 = vadd.f32 %v2694_v62, %v2691_v59  ;;  %v2711_v61 = vmul.f32 %v2710_v15, %v5992_v37  ;;  %v7962_v11 = vld [vmem:[#allocation46_spill] sm:$0xff] }
 0x5a5   :  { %vm7954_vm0 = vcmp.lt.s32.totalorder %v3487_v21, 31  ;;  %v2730_v42 = vstv %s6539_s28  ;;  %vm7956_vm6 = vnez %v7486_v56  ;;  %vm7957_vm9 = vnez %v7491_v3 }
 0x5a6   :  { %v2108_v46 = vsel %vm7954_vm0, %v2105_v40, %v2107_v31  ;;  %vm7955_vm5 = vmmov %vm7954_vm0  ;;  %2700 = vrot.lane.b32.xlu1 %v2697_v38, %s3399_s18  ;;  %2698 = vrot.lane.b32.xlu0 %v2696_v48, %s3399_s18  ;;  %v2715_v23 = vmul.f32 %v2713_v55, %v5988_v12  ;;  %v2714_v60 = vmul.f32 %v2713_v55, %v5986_v43  ;;  %v2733_v34 = vstv %s6550_s8  ;;  %s6599_s18 = sld [smem:[#allocation3 + $0x2e]] }
 0x5a7   :  { %v2109_v28 = vsel %vm7955_vm5, %v2107_v31, %v2105_v40  ;;  %v2111_v17 = vsel %vm7957_vm9, %v2108_v46, 0.0  ;;  %v2732_v25 = vmul.f32 %v2730_v42, %v5994_v0  ;;  %v2731_v29 = vmul.f32 %v2730_v42, %v5992_v37 }
 0x5a8   :  { %v2110_v39 = vsel %vm7956_vm6, %v2109_v28, 0.0  ;;  %v2113_v6 = vadd.f32 %v2111_v17, %v2093_v10  ;;  %v2127_v45 = vpop.permute.xlu1 %2126  ;;  %v2125_v56 = vpop.permute.xlu0 %2124  ;;  %v2717_v44 = vadd.f32 %v2715_v23, %v2712_v1  ;;  %v2716_v3 = vadd.f32 %v2714_v60, %v2711_v61  ;;  %v7968_v23 = vld [vmem:[#allocation48_spill] sm:$0xff] }
 0x5a9   :  { %v2112_v5 = vadd.f32 %v2110_v39, %v2092_v54  ;;  %vm7958_vm7 = vcmp.lt.s32.totalorder %v3487_v21, 30  ;;  %v2750_v32 = vstv %s6559_s10  ;;  %vm7961_vm0 = vnez %v7960_v35  ;;  %v7966_v39 = vld [vmem:[#allocation47_spill] sm:$0xff] }
 0x5aa   :  { %v2128_v30 = vsel %vm7958_vm7, %v2125_v56, %v2127_v45  ;;  %vm7959_vm8 = vmmov %vm7958_vm7  ;;  %vm7963_vm5 = vnez %v7962_v11  ;;  %2720 = vrot.lane.b32.xlu1 %v2717_v44, %s3400_s30  ;;  %2718 = vrot.lane.b32.xlu0 %v2716_v3, %s3400_s30  ;;  %v2735_v24 = vmul.f32 %v2733_v34, %v5988_v12  ;;  %v2734_v62 = vmul.f32 %v2733_v34, %v5986_v43  ;;  %s6619_s30 = sld [smem:[#allocation3 + $0x2f]]  ;;  %v7972_v11 = vld [vmem:[#allocation49_spill] sm:$0xff] }
 0x5ab   :  { %v2129_v59 = vsel %vm7959_vm8, %v2127_v45, %v2125_v56  ;;  %v2131_v13 = vsel %vm7963_vm5, %v2128_v30, 0.0  ;;  %v2753_v55 = vstv %s6570_s1  ;;  %v2752_v1 = vmul.f32 %v2750_v32, %v5994_v0 }
 0x5ac   :  { %v2130_v15 = vsel %vm7961_vm0, %v2129_v59, 0.0  ;;  %v2133_v10 = vadd.f32 %v2131_v13, %v2113_v6  ;;  %v2147_v31 = vpop.permute.xlu1 %2146  ;;  %v2145_v40 = vpop.permute.xlu0 %2144  ;;  %v2737_v38 = vadd.f32 %v2735_v24, %v2732_v25  ;;  %v2736_v48 = vadd.f32 %v2734_v62, %v2731_v29  ;;  %v7974_v24 = vld [vmem:[#allocation50_spill] sm:$0xff] }
 0x5ad   :  { %v2132_v54 = vadd.f32 %v2130_v15, %v2112_v5  ;;  %v2751_v61 = vmul.f32 %v2750_v32, %v5992_v37  ;;  %vm7964_vm6 = vcmp.lt.s32.totalorder %v3487_v21, 29  ;;  %v2770_v42 = vstv %s6579_s13 }
 0x5ae   :  { %v2148_v46 = vsel %vm7964_vm6, %v2145_v40, %v2147_v31  ;;  %vm7965_vm9 = vmmov %vm7964_vm6  ;;  %vm7967_vm7 = vnez %v7966_v39  ;;  %vm7969_vm8 = vnez %v7968_v23  ;;  %2740 = vrot.lane.b32.xlu1 %v2737_v38, %s3401_s21  ;;  %2738 = vrot.lane.b32.xlu0 %v2736_v48, %s3401_s21  ;;  %v2755_v5 = vmul.f32 %v2753_v55, %v5988_v12  ;;  %s6639_s21 = sld [smem:[#allocation3 + $0x30]] }
 0x5af   :  { %v2149_v28 = vsel %vm7965_vm9, %v2147_v31, %v2145_v40  ;;  %v2151_v60 = vsel %vm7969_vm8, %v2148_v46, 0.0  ;;  %v2754_v6 = vmul.f32 %v2753_v55, %v5986_v43  ;;  %v2773_v56 = vstv %s6590_s15 }
 0x5b0   :  { %v2150_v17 = vsel %vm7967_vm7, %v2149_v28, 0.0  ;;  %v2153_v45 = vadd.f32 %v2151_v60, %v2133_v10  ;;  %v2167_v44 = vpop.permute.xlu1 %2166  ;;  %v2165_v3 = vpop.permute.xlu0 %2164  ;;  %v2757_v25 = vadd.f32 %v2755_v5, %v2752_v1  ;;  %v2772_v30 = vmul.f32 %v2770_v42, %v5994_v0 }
 0x5b1   :  { %v2152_v34 = vadd.f32 %v2150_v17, %v2132_v54  ;;  %v2756_v29 = vadd.f32 %v2754_v6, %v2751_v61  ;;  %v2771_v59 = vmul.f32 %v2770_v42, %v5992_v37  ;;  %vm7970_vm0 = vcmp.lt.s32.totalorder %v3487_v21, 19 }
 0x5b2   :  { %v2168_v32 = vsel %vm7970_vm0, %v2165_v3, %v2167_v44  ;;  %vm7971_vm5 = vmmov %vm7970_vm0  ;;  %v2790_v15 = vstv %s6599_s18  ;;  %vm7973_vm6 = vnez %v7972_v11  ;;  %vm7975_vm9 = vnez %v7974_v24  ;;  %2760 = vrot.lane.b32.xlu1 %v2757_v25, %s3402_s25 }
 0x5b3   :  { %v2169_v35 = vsel %vm7971_vm5, %v2167_v44, %v2165_v3  ;;  %v2171_v62 = vsel %vm7975_vm9, %v2168_v32, 0.0  ;;  %2758 = vrot.lane.b32.xlu0 %v2756_v29, %s3402_s25  ;;  %v2775_v54 = vmul.f32 %v2773_v56, %v5988_v12  ;;  %v2774_v10 = vmul.f32 %v2773_v56, %v5986_v43  ;;  %s3407_s25 = smov [#allocation7]  }
 0x5b4   :  { %v2170_v13 = vsel %vm7973_vm6, %v2169_v35, 0.0  ;;  %v6651_v31 = vadd.f32 %v2171_v62, %v2153_v45  ;;  %v2793_v40 = vstv %s6610_s9  ;;  %v2187_v38 = vpop.permute.xlu1 %2186  ;;  %v2185_v48 = vpop.permute.xlu0 %2184  ;;  %v2792_v46 = vmul.f32 %v2790_v15, %v5994_v0 }
 0x5b5   :  { %v6649_v55 = vadd.f32 %v2170_v13, %v2152_v34  ;;  %v2777_v1 = vadd.f32 %v2775_v54, %v2772_v30  ;;  %v2776_v61 = vadd.f32 %v2774_v10, %v2771_v59  ;;  %v2791_v28 = vmul.f32 %v2790_v15, %v5992_v37 }
 0x5b6   :  { %v2810_v42 = vstv %s6619_s30  ;;  %v2795_v39 = vmul.f32 %v2793_v40, %v5988_v12  ;;  %v2794_v17 = vmul.f32 %v2793_v40, %v5986_v43  ;;  %v2813_v23 = vstv %s6630_s29 }
 0x5b7   :  { %2780 = vrot.lane.b32.xlu1 %v2777_v1, %s3403_s17  ;;  %2778 = vrot.lane.b32.xlu0 %v2776_v61, %s3403_s17  ;;  %v2812_v45 = vmul.f32 %v2810_v42, %v5994_v0  ;;  %v2811_v56 = vmul.f32 %v2810_v42, %v5992_v37  ;;  %v2830_v44 = vstv %s6639_s21  ;;  %v2815_v3 = vmul.f32 %v2813_v23, %v5988_v12  ;;  %s2890_s17 = sshll.u32 %s3407_s25, 4  ;;  %s2891_s17 = int_to_ptr.vmem [resolvable:$true] %s2890_s17 }
 0x5b8   :  { %v2207_v60 = vpop.permute.xlu1 %2206  ;;  %v2205_v5 = vpop.permute.xlu0 %2204  ;;  %v2797_v6 = vadd.f32 %v2795_v39, %v2792_v46  ;;  %v2796_v34 = vadd.f32 %v2794_v17, %v2791_v28  ;;  %v2814_v25 = vmul.f32 %v2813_v23, %v5986_v43  ;;  %v2833_v29 = vstv %s6654_s11  ;;  %p3330_p0 = scmp.lt.s32.totalorder %s2891_s17, %s2891_s17 }
 0x5b9   :  { %v2817_v32 = vadd.f32 %v2815_v3, %v2812_v45  ;;  %v2832_v15 = vmul.f32 %v2830_v44, %v5994_v0  ;;  %v2831_v11 = vmul.f32 %v2830_v44, %v5992_v37  ;;  %v2835_v13 = vmul.f32 %v2833_v29, %v5988_v12 }
 0x5ba   :  { %v2816_v35 = vadd.f32 %v2814_v25, %v2811_v56  ;;  %v2834_v24 = vmul.f32 %v2833_v29, %v5986_v43  ;;  %vm7976_vm7 = vcmp.lt.s32.totalorder %v3487_v21, 18  ;;  %vm7978_vm0 = vcmp.lt.s32.totalorder %v3487_v21, 17 }
 0x5bb   :  { %2800 = vrot.lane.b32.xlu1 %v2797_v6, %s3404_s12  ;;  %2798 = vrot.lane.b32.xlu0 %v2796_v34, %s3404_s12  ;;  %v2837_v10 = vadd.f32 %v2835_v13, %v2832_v15  ;;  %v2188_v13 = vsel %vm7976_vm7, %v2185_v48, %v2187_v38  ;;  %vm7977_vm8 = vmmov %vm7976_vm7  ;;  %v2208_v47 = vsel %vm7978_vm0, %v2205_v5, %v2207_v60  ;;  %vm7984_vm7 = vcmp.lt.s32.totalorder %v3487_v21, 16  ;;  %s3325_s12 = scalar_lea.vmem %s2891_s17, 2048 }
 0x5bc   :  { %v2227_v30 = vpop.permute.xlu1 %2226  ;;  %v2225_v59 = vpop.permute.xlu0 %2224  ;;  %v2836_v40 = vadd.f32 %v2834_v24, %v2831_v11  ;;  %v2189_v24 = vsel %vm7977_vm8, %v2187_v38, %v2185_v48  ;;  %vm7979_vm5 = vmmov %vm7978_vm0  ;;  %vm7981_vm6 = vnez %v7980_v41  ;;  %vm7983_vm9 = vnez %v7982_v9  ;;  %v7986_v48 = vld [vmem:[#allocation53_spill] sm:$0xff]  ;;  %p3326_p13 = scmp.ne.s32.totalorder %s2891_s17, %s3325_s12  ;;  %p3331_p1 = scmp.lt.s32.totalorder %s3325_s12, %s3325_s12 }
 0x5bd   :  { %v2209_v14 = vsel %vm7979_vm5, %v2207_v60, %v2205_v5  ;;  %v2190_v4 = vsel %vm7981_vm6, %v2189_v24, 0.0  ;;  %v2191_v7 = vsel %vm7983_vm9, %v2188_v13, 0.0  ;;  %v2228_v18 = vsel %vm7984_vm7, %v2225_v59, %v2227_v30  ;;  %vm7985_vm8 = vmmov %vm7984_vm7  ;;  %v7994_v13 = vld [vmem:[#allocation44_spill] sm:$0xff] }
 0x5be   :  { %v2229_v38 = vsel %vm7985_vm8, %v2227_v30, %v2225_v59  ;;  %vm7987_vm2 = vnez %v7986_v48  ;;  %vm7989_vm0 = vnez %v7988_v51  ;;  %v2192_v41 = vadd.f32 %v2190_v4, %v6649_v55  ;;  %v7992_v59 = vld [vmem:[#allocation43_spill] sm:$0xff]  ;;  %p3332_p2 = por %p3331_p1, %p3330_p0 }
 0x5bf   :  { %2820 = vrot.lane.b32.xlu1 %v2817_v32, %s3405_s26  ;;  %2818 = vrot.lane.b32.xlu0 %v2816_v35, %s3405_s26  ;;  %v2210_v27 = vsel %vm7987_vm2, %v2209_v14, 0.0  ;;  %v2211_v58 = vsel %vm7989_vm0, %v2208_v47, 0.0  ;;  %v2193_v9 = vadd.f32 %v2191_v7, %v6651_v31  ;;  %vm7990_vm5 = vcmp.lt.s32.totalorder %v3487_v21, 15  ;;  %v7998_v4 = vld [vmem:[#allocation55_spill] sm:$0xff]  ;;  %v8000_v31 = vld [vmem:[#allocation56_spill] sm:$0xff] }
 0x5c0   :  { %v2247_v62 = vpop.permute.xlu1 %2246  ;;  %v2245_v54 = vpop.permute.xlu0 %2244  ;;  %vm7991_vm6 = vmmov %vm7990_vm5  ;;  %vm7993_vm9 = vnez %v7992_v59  ;;  %vm7995_vm2 = vnez %v7994_v13  ;;  %v2212_v47 = vadd.f32 %v2210_v27, %v2192_v41  ;;  %vm7996_vm7 = vcmp.lt.s32.totalorder %v3487_v21, 14  ;;  %v8004_v41 = vld [vmem:[#allocation57_spill] sm:$0xff]  ;;  %p3333_p3 = pnand %p3332_p2, %p3326_p13 }
 0x5c1   :  { %v2248_v5 = vsel %vm7990_vm5, %v2245_v54, %v2247_v62  ;;  %v2249_v30 = vsel %vm7991_vm6, %v2247_v62, %v2245_v54  ;;  %v2230_v14 = vsel %vm7993_vm9, %v2229_v38, 0.0  ;;  %v2231_v51 = vsel %vm7995_vm2, %v2228_v18, 0.0  ;;  %vm7997_vm8 = vmmov %vm7996_vm7 }
 0x5c2   :  { %v2213_v24 = vadd.f32 %v2211_v58, %v2193_v9  ;;  %vm7999_vm0 = vnez %v7998_v4  ;;  %vm8001_vm5 = vnez %v8000_v31  ;;  %v2232_v59 = vadd.f32 %v2230_v14, %v2212_v47 }
 0x5c3   :  { %2840 = vrot.lane.b32.xlu1 %v2837_v10, %s3406_s2  ;;  %2838 = vrot.lane.b32.xlu0 %v2836_v40, %s3406_s2  ;;  %v2250_v55 = vsel %vm7999_vm0, %v2249_v30, 0.0  ;;  %v2251_v62 = vsel %vm8001_vm5, %v2248_v5, 0.0  ;;  %vm8002_vm6 = vcmp.lt.s32.totalorder %v3487_v21, 13  ;;  %vm8005_vm2 = vnez %v8004_v41 }
 0x5c4   :  { %v2267_v1 = vpop.permute.xlu1 %2266  ;;  %v2265_v61 = vpop.permute.xlu0 %2264  ;;  %v2233_v18 = vadd.f32 %v2231_v51, %v2213_v24  ;;  %vm8003_vm9 = vmmov %vm8002_vm6  ;;  %v2252_v30 = vadd.f32 %v2250_v55, %v2232_v59  ;;  %v8010_v51 = vld [vmem:[#allocation59_spill] sm:$0xff]  ;;  %v8012_v24 = vld [vmem:[#allocation60_spill] sm:$0xff] }
 0x5c5   :  { %v2268_v48 = vsel %vm7996_vm7, %v2265_v61, %v2267_v1  ;;  %v2269_v7 = vsel %vm7997_vm8, %v2267_v1, %v2265_v61  ;;  %v8006_v61 = vld [vmem:[#allocation58_spill] sm:$0xff]  ;;  %vm8008_vm8 = vcmp.lt.s32.totalorder %v3487_v21, 3  ;;  %vm8011_vm5 = vnez %v8010_v51 }
 0x5c6   :  { %v2270_v1 = vsel %vm8005_vm2, %v2269_v7, 0.0  ;;  %vm8007_vm7 = vnez %v8006_v61  ;;  %v2253_v5 = vadd.f32 %v2251_v62, %v2233_v18  ;;  %vm8009_vm0 = vmmov %vm8008_vm8  ;;  %v8016_v62 = vld [vmem:[#allocation61_spill] sm:$0xff] }
 0x5c7   :  { %v2271_v9 = vsel %vm8007_vm7, %v2268_v48, 0.0  ;;  %v2272_v4 = vadd.f32 %v2270_v1, %v2252_v30  ;;  %vm8017_vm7 = vnez %v8016_v62  ;;  %v8022_v1 = vld [vmem:[#allocation23_spill] sm:$0xff] }
 0x5c8   :  { %v2287_v46 = vpop.permute.xlu1 %2286  ;;  %v2285_v28 = vpop.permute.xlu0 %2284  ;;  %v2273_v48 = vadd.f32 %v2271_v9, %v2253_v5  ;;  %v8026_v9 = vld [vmem:[#allocation62_spill] sm:$0xff] }
 0x5c9   :  { %v2288_v27 = vsel %vm8002_vm6, %v2285_v28, %v2287_v46  ;;  %v2289_v58 = vsel %vm8003_vm9, %v2287_v46, %v2285_v28  ;;  %vm8013_vm6 = vnez %v8012_v24  ;;  %vm8014_vm9 = vcmp.lt.s32.totalorder %v3487_v21, 2  ;;  %v8027_v24 = vld [vmem:[#allocation24_spill] sm:$0xff] }
 0x5ca   :  { %v2290_v47 = vsel %vm8011_vm5, %v2289_v58, 0.0  ;;  %v2291_v46 = vsel %vm8013_vm6, %v2288_v27, 0.0  ;;  %vm8015_vm2 = vmmov %vm8014_vm9  ;;  %vm8023_vm6 = vnez %v8022_v1  ;;  %v2357_v30 = vmul.f32 %v5992_v37, %v8026_v9 }
 0x5cb   :  { %v2292_v18 = vadd.f32 %v2290_v47, %v2272_v4  ;;  %v2293_v27 = vadd.f32 %v2291_v46, %v2273_v48  ;;  %v2358_v5 = vmul.f32 %v5994_v0, %v8026_v9  ;;  %v8031_v4 = vld [vmem:[#allocation63_spill] sm:$0xff] }
 0x5cc   :  { %v2307_v42 = vpop.permute.xlu1 %2306  ;;  %v2305_v39 = vpop.permute.xlu0 %2304  ;;  %v2360_v48 = vmul.f32 %v5986_v43, %v8031_v4  ;;  %v2361_v37 = vmul.f32 %v5988_v12, %v8031_v4 }
 0x5cd   :  { %v2308_v13 = vsel %vm8008_vm8, %v2305_v39, %v2307_v42  ;;  %v2309_v14 = vsel %vm8009_vm0, %v2307_v42, %v2305_v39  ;;  %v8018_v39 = vld [vmem:[#allocation25_spill] sm:$0xff]  ;;  %vm8020_vm0 = vcmp.lt.s32.totalorder %v3487_v21, 1 }
 0x5ce   :  { %v2310_v42 = vsel %vm8017_vm7, %v2309_v14, 0.0  ;;  %vm8019_vm8 = vnez %v8018_v39  ;;  %vm8021_vm5 = vmmov %vm8020_vm0  ;;  %v2363_v62 = vadd.f32 %v2361_v37, %v2358_v5  ;;  %v8043_v5 = vld [vmem:[#allocation32_spill] sm:$0xff] }
 0x5cf   :  { %v2311_v59 = vsel %vm8019_vm8, %v2308_v13, 0.0  ;;  %v2312_v51 = vadd.f32 %v2310_v42, %v2292_v18  ;;  %vm8032_vm8 = vcmp.lt.s32.totalorder %v3487_v21, 127 }
 0x5d0   :  { %v2327_v17 = vpop.permute.xlu1 %2326  ;;  %v2325_v23 = vpop.permute.xlu0 %2324  ;;  %v2313_v47 = vadd.f32 %v2311_v59, %v2293_v27 }
 0x5d1   :  { %v2328_v55 = vsel %vm8014_vm9, %v2325_v23, %v2327_v17  ;;  %v2329_v31 = vsel %vm8015_vm2, %v2327_v17, %v2325_v23  ;;  %v8024_v23 = vld [vmem:[#allocation27_spill] sm:$0xff]  ;;  %vm8028_vm2 = vnez %v8027_v24 }
 0x5d2   :  { %v2330_v17 = vsel %vm8023_vm6, %v2329_v31, 0.0  ;;  %vm8025_vm9 = vnez %v8024_v23  ;;  %v2362_v31 = vadd.f32 %v2360_v48, %v2357_v30  ;;  %vm8035_vm6 = vnez %v7552_v20 }
 0x5d3   :  { %v2331_v61 = vsel %vm8025_vm9, %v2328_v55, 0.0  ;;  %v2332_v55 = vadd.f32 %v2330_v17, %v2312_v51  ;;  %vm8036_vm9 = vcmp.lt.s32.totalorder %v3487_v21, 126 }
 0x5d4   :  { %v6680_v6 = vpop.permute.xlu1 %2346  ;;  %v6682_v34 = vpop.permute.xlu0 %2344  ;;  %v2333_v0 = vadd.f32 %v2331_v61, %v2313_v47 }
 0x5d5   :  { %v2348_v58 = vsel %vm8020_vm0, %v6682_v34, %v6680_v6  ;;  %v2349_v41 = vsel %vm8021_vm5, %v6680_v6, %v6682_v34  ;;  %v8029_v34 = vld [vmem:[#allocation21_spill] sm:$0xff]  ;;  %vm8033_vm0 = vmmov %vm8032_vm8  ;;  %vm8034_vm5 = vnez %v7546_v49 }
 0x5d6   :  { %v2350_v6 = vsel %vm8028_vm2, %v2349_v41, 0.0  ;;  %vm8030_vm7 = vnez %v8029_v34  ;;  %v2364_v12 = vsel %vm8034_vm5, %v2362_v31, 0.0  ;;  %vm8037_vm2 = vmmov %vm8036_vm9 }
 0x5d7   :  { %v2351_v46 = vsel %vm8030_vm7, %v2348_v58, 0.0  ;;  %v2352_v59 = vadd.f32 %v2350_v6, %v2332_v55  ;;  %v2365_v58 = vsel %vm8035_vm6, %v2363_v62, 0.0  ;;  %vm8038_vm7 = vnez %v7631_v36 }
 0x5d8   :  { %v6684_v45 = vpop.permute.xlu1 %2380  ;;  %v6686_v56 = vpop.permute.xlu0 %2378  ;;  %v2353_v18 = vadd.f32 %v2351_v46, %v2333_v0  ;;  %vm8044_vm6 = vnez %v8043_v5  ;;  %v8050_v46 = vld [vmem:[#allocation19_spill] sm:$0xff] }
 0x5d9   :  { %v2382_v27 = vsel %vm8032_vm8, %v6686_v56, %v6684_v45  ;;  %v2383_v43 = vsel %vm8033_vm0, %v6684_v45, %v6686_v56  ;;  %v2366_v17 = vadd.f32 %v2364_v12, %v2352_v59  ;;  %v8039_v45 = vld [vmem:[#allocation22_spill] sm:$0xff]  ;;  %vm8041_vm0 = vcmp.lt.s32.totalorder %v3487_v21, 125 }
 0x5da   :  { %v2367_v23 = vadd.f32 %v2365_v58, %v2353_v18  ;;  %v2384_v20 = vsel %vm8038_vm7, %v2382_v27, 0.0  ;;  %vm8040_vm8 = vnez %v8039_v45  ;;  %vm8042_vm5 = vmmov %vm8041_vm0  ;;  %v8060_v27 = vld [vmem:[#allocation36_spill] sm:$0xff] }
 0x5db   :  { %v2385_v56 = vsel %vm8040_vm8, %v2383_v43, 0.0  ;;  %v2386_v24 = vadd.f32 %v2384_v20, %v2366_v17  ;;  %vm8049_vm8 = vnez %v7653_v63 }
 0x5dc   :  { %v6688_v44 = vpop.permute.xlu1 %2400  ;;  %v6690_v3 = vpop.permute.xlu0 %2398  ;;  %v2387_v6 = vadd.f32 %v2385_v56, %v2367_v23 }
 0x5dd   :  { %v2402_v61 = vsel %vm8036_vm9, %v6690_v3, %v6688_v44  ;;  %v2403_v49 = vsel %vm8037_vm2, %v6688_v44, %v6690_v3  ;;  %v8045_v44 = vld [vmem:[#allocation26_spill] sm:$0xff]  ;;  %vm8047_vm2 = vcmp.lt.s32.totalorder %v3487_v21, 115 }
 0x5de   :  { %v2404_v51 = vsel %vm8044_vm6, %v2402_v61, 0.0  ;;  %vm8046_vm9 = vnez %v8045_v44  ;;  %vm8048_vm7 = vmmov %vm8047_vm2 }
 0x5df   :  { %v2405_v36 = vsel %vm8046_vm9, %v2403_v49, 0.0  ;;  %v2406_v48 = vadd.f32 %v2404_v51, %v2386_v24  ;;  %vm8054_vm9 = vnez %v7662_v2 }
 0x5e0   :  { %v6692_v25 = vpop.permute.xlu1 %2420  ;;  %v6694_v29 = vpop.permute.xlu0 %2418  ;;  %v2407_v37 = vadd.f32 %v2405_v36, %v2387_v6 }
 0x5e1   :  { %v2422_v9 = vsel %vm8041_vm0, %v6694_v29, %v6692_v25  ;;  %v2423_v30 = vsel %vm8042_vm5, %v6692_v25, %v6694_v29  ;;  %vm8051_vm0 = vnez %v8050_v46  ;;  %vm8052_vm5 = vcmp.lt.s32.totalorder %v3487_v21, 114 }
 0x5e2   :  { %v2424_v29 = vsel %vm8049_vm8, %v2422_v9, 0.0  ;;  %v2425_v4 = vsel %vm8051_vm0, %v2423_v30, 0.0  ;;  %vm8053_vm6 = vmmov %vm8052_vm5 }
 0x5e3   :  { %v2426_v62 = vadd.f32 %v2424_v29, %v2406_v48  ;;  %v2427_v59 = vadd.f32 %v2425_v4, %v2407_v37 }
 0x5e4   :  { %v6696_v32 = vpop.permute.xlu1 %2440  ;;  %v6698_v35 = vpop.permute.xlu0 %2438 }
 0x5e5   :  { %v2442_v34 = vsel %vm8047_vm2, %v6698_v35, %v6696_v32  ;;  %v2443_v25 = vsel %vm8048_vm7, %v6696_v32, %v6698_v35  ;;  %vm8055_vm2 = vnez %v7667_v57  ;;  %vm8056_vm7 = vcmp.lt.s32.totalorder %v3487_v21, 113 }
 0x5e6   :  { %v2444_v32 = vsel %vm8054_vm9, %v2442_v34, 0.0  ;;  %v2445_v63 = vsel %vm8055_vm2, %v2443_v25, 0.0  ;;  %vm8057_vm8 = vmmov %vm8056_vm7  ;;  %vm8064_vm2 = vnez %v7680_v33 }
 0x5e7   :  { %v2446_v43 = vadd.f32 %v2444_v32, %v2426_v62  ;;  %v2447_v12 = vadd.f32 %v2445_v63, %v2427_v59 }
 0x5e8   :  { %v6700_v15 = vpop.permute.xlu1 %2460  ;;  %v6702_v11 = vpop.permute.xlu0 %2458 }
 0x5e9   :  { %v2462_v55 = vsel %vm8052_vm5, %v6702_v11, %v6700_v15  ;;  %v2463_v0 = vsel %vm8053_vm6, %v6700_v15, %v6702_v11  ;;  %v8058_v11 = vld [vmem:[#allocation20_spill] sm:$0xff]  ;;  %vm8061_vm5 = vnez %v8060_v27  ;;  %vm8062_vm6 = vcmp.lt.s32.totalorder %v3487_v21, 112 }
 0x5ea   :  { %vm8059_vm0 = vnez %v8058_v11  ;;  %v2465_v57 = vsel %vm8061_vm5, %v2463_v0, 0.0  ;;  %vm8063_vm9 = vmmov %vm8062_vm6  ;;  %vm8069_vm5 = vnez %v7628_v53 }
 0x5eb   :  { %v2464_v2 = vsel %vm8059_vm0, %v2462_v55, 0.0  ;;  %v2467_v45 = vadd.f32 %v2465_v57, %v2447_v12  ;;  %v8097_v12 = vld [vmem:[#allocation70_spill] sm:$0xff] }
 0x5ec   :  { %v6708_v10 = vpop.permute.xlu1 %2480  ;;  %v6710_v40 = vpop.permute.xlu0 %2478  ;;  %v2466_v20 = vadd.f32 %v2464_v2, %v2446_v43 }
 0x5ed   :  { %v2482_v18 = vsel %vm8056_vm7, %v6710_v40, %v6708_v10  ;;  %v2483_v15 = vsel %vm8057_vm8, %v6708_v10, %v6710_v40  ;;  %v8065_v40 = vld [vmem:[#allocation28_spill] sm:$0xff]  ;;  %vm8067_vm8 = vcmp.lt.s32.totalorder %v3487_v21, 111 }
 0x5ee   :  { %v2484_v10 = vsel %vm8064_vm2, %v2482_v18, 0.0  ;;  %vm8066_vm7 = vnez %v8065_v40  ;;  %vm8068_vm0 = vmmov %vm8067_vm8  ;;  %vm8072_vm2 = vnez %v7701_v26  ;;  %v8091_v18 = vld [vmem:[#allocation68_spill] sm:$0xff] }
 0x5ef   :  { %v2485_v23 = vsel %vm8066_vm7, %v2483_v15, 0.0  ;;  %v2486_v9 = vadd.f32 %v2484_v10, %v2466_v20  ;;  %vm8075_vm7 = vcmp.lt.s32.totalorder %v3487_v21, 109 }
 0x5f0   :  { %v6728_v50 = vpop.permute.xlu1 %2500  ;;  %v6730_v60 = vpop.permute.xlu0 %2498  ;;  %v2487_v30 = vadd.f32 %v2485_v23, %v2467_v45 }
 0x5f1   :  { %v2502_v58 = vsel %vm8062_vm6, %v6730_v60, %v6728_v50  ;;  %v2503_v17 = vsel %vm8063_vm9, %v6728_v50, %v6730_v60  ;;  %vm8070_vm6 = vcmp.lt.s32.totalorder %v3487_v21, 110 }
 0x5f2   :  { %v2504_v33 = vsel %vm5240_vm12, %v2502_v58, 0.0  ;;  %v2505_v60 = vsel %vm8069_vm5, %v2503_v17, 0.0  ;;  %vm8071_vm9 = vmmov %vm8070_vm6  ;;  %vm8074_vm12 = vnez %v8073_v8 }
 0x5f3   :  { %v2506_v36 = vadd.f32 %v2504_v33, %v2486_v9  ;;  %v2507_v24 = vadd.f32 %v2505_v60, %v2487_v30 }
 0x5f4   :  { %v6750_v54 = vpop.permute.xlu1 %2520  ;;  %v6752_v38 = vpop.permute.xlu0 %2518 }
 0x5f5   :  { %v2522_v56 = vsel %vm8067_vm8, %v6752_v38, %v6750_v54  ;;  %v2523_v50 = vsel %vm8068_vm0, %v6750_v54, %v6752_v38  ;;  %vm8076_vm8 = vmmov %vm8075_vm7  ;;  %vm8077_vm0 = vnez %v7710_v19 }
 0x5f6   :  { %v2524_v54 = vsel %vm8072_vm2, %v2522_v56, 0.0  ;;  %v2525_v38 = vsel %vm8074_vm12, %v2523_v50, 0.0  ;;  %vm8082_vm2 = vnez %v7719_v22  ;;  %vm8083_vm12 = vnez %v7724_v52 }
 0x5f7   :  { %v2526_v25 = vadd.f32 %v2524_v54, %v2506_v36  ;;  %v2527_v29 = vadd.f32 %v2525_v38, %v2507_v24  ;;  %v8113_v24 = vld [vmem:[#allocation76_spill] sm:$0xff] }
 0x5f8   :  { %v6770_v28 = vpop.permute.xlu1 %2540  ;;  %v6772_v7 = vpop.permute.xlu0 %2538 }
 0x5f9   :  { %v2542_v5 = vsel %vm8070_vm6, %v6772_v7, %v6770_v28  ;;  %v2543_v51 = vsel %vm8071_vm9, %v6770_v28, %v6772_v7  ;;  %v8078_v7 = vld [vmem:[#allocation66_spill] sm:$0xff]  ;;  %vm8080_vm6 = vcmp.lt.s32.totalorder %v3487_v21, 99 }
 0x5fa   :  { %v2544_v26 = vsel %vm8077_vm0, %v2542_v5, 0.0  ;;  %vm8079_vm5 = vnez %v8078_v7  ;;  %vm8081_vm9 = vmmov %vm8080_vm6  ;;  %vm8086_vm0 = vnez %v7727_v16  ;;  %v8093_v16 = vld [vmem:[#allocation69_spill] sm:$0xff]  ;;  %v8107_v5 = vld [vmem:[#allocation74_spill] sm:$0xff] }
 0x5fb   :  { %v2545_v34 = vsel %vm8079_vm5, %v2543_v51, 0.0  ;;  %v2546_v37 = vadd.f32 %v2544_v26, %v2526_v25 }
 0x5fc   :  { %v6798_v13 = vpop.permute.xlu1 %2560  ;;  %v6800_v14 = vpop.permute.xlu0 %2558  ;;  %v2547_v55 = vadd.f32 %v2545_v34, %v2527_v29 }
 0x5fd   :  { %v2562_v6 = vsel %vm8075_vm7, %v6800_v14, %v6798_v13  ;;  %v2563_v28 = vsel %vm8076_vm8, %v6798_v13, %v6800_v14  ;;  %vm8084_vm7 = vcmp.lt.s32.totalorder %v3487_v21, 98 }
 0x5fe   :  { %v2564_v13 = vsel %vm8082_vm2, %v2562_v6, 0.0  ;;  %v2565_v19 = vsel %vm8083_vm12, %v2563_v28, 0.0  ;;  %vm8085_vm8 = vmmov %vm8084_vm7  ;;  %vm8092_vm2 = vnez %v8091_v18  ;;  %vm8094_vm12 = vnez %v8093_v16  ;;  %v8115_v28 = vld [vmem:[#allocation77_spill] sm:$0xff] }
 0x5ff   :  { %v2566_v32 = vadd.f32 %v2564_v13, %v2546_v37  ;;  %v2567_v63 = vadd.f32 %v2565_v19, %v2547_v55  ;;  %v8121_v13 = vld [vmem:[#allocation79_spill] sm:$0xff] }
 0x600   :  { %v6810_v39 = vpop.permute.xlu1 %2580  ;;  %v6812_v42 = vpop.permute.xlu0 %2578 }
 0x601   :  { %v2582_v46 = vsel %vm8080_vm6, %v6812_v42, %v6810_v39  ;;  %v2583_v4 = vsel %vm8081_vm9, %v6810_v39, %v6812_v42  ;;  %v8087_v42 = vld [vmem:[#allocation67_spill] sm:$0xff]  ;;  %vm8089_vm6 = vcmp.lt.s32.totalorder %v3487_v21, 97 }
 0x602   :  { %v2584_v22 = vsel %vm8086_vm0, %v2582_v46, 0.0  ;;  %vm8088_vm5 = vnez %v8087_v42  ;;  %vm8090_vm9 = vmmov %vm8089_vm6  ;;  %vm8098_vm0 = vnez %v8097_v12  ;;  %v8119_v46 = vld [vmem:[#allocation78_spill] sm:$0xff] }
 0x603   :  { %v2585_v52 = vsel %vm8088_vm5, %v2583_v4, 0.0  ;;  %v2586_v2 = vadd.f32 %v2584_v22, %v2566_v32  ;;  %v8127_v22 = vld [vmem:[#allocation81_spill] sm:$0xff] }
 0x604   :  { %v6826_v41 = vpop.permute.xlu1 %2600  ;;  %v6828_v1 = vpop.permute.xlu0 %2598  ;;  %v2587_v27 = vadd.f32 %v2585_v52, %v2567_v63 }
 0x605   :  { %v2602_v0 = vsel %vm8084_vm7, %v6828_v1, %v6826_v41  ;;  %v2603_v39 = vsel %vm8085_vm8, %v6826_v41, %v6828_v1  ;;  %vm8095_vm7 = vcmp.lt.s32.totalorder %v3487_v21, 96 }
 0x606   :  { %v2604_v41 = vsel %vm8092_vm2, %v2602_v0, 0.0  ;;  %v2605_v1 = vsel %vm8094_vm12, %v2603_v39, 0.0  ;;  %vm8096_vm8 = vmmov %vm8095_vm7  ;;  %vm8105_vm2 = vcmp.lt.s32.totalorder %v3487_v21, 94  ;;  %v8125_v0 = vld [vmem:[#allocation80_spill] sm:$0xff] }
 0x607   :  { %v2606_v17 = vadd.f32 %v2604_v41, %v2586_v2  ;;  %v2607_v10 = vadd.f32 %v2605_v1, %v2587_v27  ;;  %vm8106_vm12 = vmmov %vm8105_vm2  ;;  %v8132_v1 = vld [vmem:[#allocation83_spill] sm:$0xff] }
 0x608   :  { %v6854_v3 = vpop.permute.xlu1 %2620  ;;  %v6856_v47 = vpop.permute.xlu0 %2618 }
 0x609   :  { %v2622_v62 = vsel %vm8089_vm6, %v6856_v47, %v6854_v3  ;;  %v2623_v59 = vsel %vm8090_vm9, %v6854_v3, %v6856_v47  ;;  %v8099_v3 = vld [vmem:[#allocation71_spill] sm:$0xff]  ;;  %vm8101_vm6 = vcmp.lt.s32.totalorder %v3487_v21, 95 }
 0x60a   :  { %v2624_v58 = vsel %vm8098_vm0, %v2622_v62, 0.0  ;;  %vm8100_vm5 = vnez %v8099_v3  ;;  %vm8102_vm9 = vmmov %vm8101_vm6  ;;  %vm8114_vm0 = vnez %v8113_v24 }
 0x60b   :  { %v2625_v47 = vsel %vm8100_vm5, %v2623_v59, 0.0  ;;  %v2626_v33 = vadd.f32 %v2624_v58, %v2606_v17  ;;  %vm8116_vm5 = vnez %v8115_v28  ;;  %v8138_v58 = vld [vmem:[#allocation85_spill] sm:$0xff] }
 0x60c   :  { %v2641_v35 = vpop.permute.xlu1 %2640  ;;  %v2639_v31 = vpop.permute.xlu0 %2638  ;;  %v2627_v60 = vadd.f32 %v2625_v47, %v2607_v10 }
 0x60d   :  { %v2642_v57 = vsel %vm8095_vm7, %v2639_v31, %v2641_v35  ;;  %v2643_v43 = vsel %vm8096_vm8, %v2641_v35, %v2639_v31  ;;  %vm8108_vm7 = vnez %v8107_v5 }
 0x60e   :  { %v2644_v45 = vsel %vm5441_vm3, %v2642_v57, 0.0  ;;  %v2645_v35 = vsel %vm5461_vm11, %v2643_v43, 0.0  ;;  %vm8111_vm3 = vcmp.lt.s32.totalorder %v3487_v21, 93  ;;  %v8136_v43 = vld [vmem:[#allocation84_spill] sm:$0xff] }
 0x60f   :  { %v2646_v54 = vadd.f32 %v2644_v45, %v2626_v33  ;;  %v2647_v8 = vadd.f32 %v2645_v35, %v2627_v60  ;;  %vm8112_vm11 = vmmov %vm8111_vm3 }
 0x610   :  { %v2661_v61 = vpop.permute.xlu1 %2660  ;;  %v2659_v49 = vpop.permute.xlu0 %2658 }
 0x611   :  { %v2662_v40 = vsel %vm8101_vm6, %v2659_v49, %v2661_v61  ;;  %v2663_v23 = vsel %vm8102_vm9, %v2661_v61, %v2659_v49  ;;  %v8109_v61 = vld [vmem:[#allocation75_spill] sm:$0xff]  ;;  %vm8117_vm6 = vcmp.lt.s32.totalorder %v3487_v21, 83 }
 0x612   :  { %v2664_v51 = vsel %vm8108_vm7, %v2662_v40, 0.0  ;;  %vm8110_vm8 = vnez %v8109_v61  ;;  %vm8118_vm9 = vmmov %vm8117_vm6  ;;  %vm8123_vm7 = vcmp.lt.s32.totalorder %v3487_v21, 82 }
 0x613   :  { %v2665_v49 = vsel %vm8110_vm8, %v2663_v23, 0.0  ;;  %v2666_v7 = vadd.f32 %v2664_v51, %v2646_v54  ;;  %vm8124_vm8 = vmmov %vm8123_vm7 }
 0x614   :  { %v2681_v53 = vpop.permute.xlu1 %2680  ;;  %v2679_v44 = vpop.permute.xlu0 %2678  ;;  %v2667_v34 = vadd.f32 %v2665_v49, %v2647_v8 }
 0x615   :  { %v2682_v9 = vsel %vm8105_vm2, %v2679_v44, %v2681_v53  ;;  %v2683_v30 = vsel %vm8106_vm12, %v2681_v53, %v2679_v44  ;;  %vm8120_vm2 = vnez %v8119_v46  ;;  %vm8122_vm12 = vnez %v8121_v13 }
 0x616   :  { %v2684_v6 = vsel %vm8114_vm0, %v2682_v9, 0.0  ;;  %v2685_v53 = vsel %vm8116_vm5, %v2683_v30, 0.0  ;;  %vm8129_vm0 = vcmp.lt.s32.totalorder %v3487_v21, 81  ;;  %v8145_v30 = vld [vmem:[#allocation87_spill] sm:$0xff] }
 0x617   :  { %vm8130_vm5 = vmmov %vm8129_vm0 }
 0x618   :  { %v2701_v14 = vpop.permute.xlu1 %2700  ;;  %v2699_v48 = vpop.permute.xlu0 %2698 }
 0x619   :  { %v2702_v38 = vsel %vm8111_vm3, %v2699_v48, %v2701_v14  ;;  %v2703_v36 = vsel %vm8112_vm11, %v2701_v14, %v2699_v48  ;;  %v2686_v14 = vadd.f32 %v2684_v6, %v2666_v7  ;;  %v2687_v48 = vadd.f32 %v2685_v53, %v2667_v34  ;;  %v8150_v6 = vld [vmem:[#allocation89_spill] sm:$0xff] }
 0x61a   :  { %v2704_v4 = vsel %vm8120_vm2, %v2702_v38, 0.0  ;;  %v2705_v19 = vsel %vm8122_vm12, %v2703_v36, 0.0  ;;  %vm8126_vm3 = vnez %v8125_v0  ;;  %vm8128_vm11 = vnez %v8127_v22 }
 0x61b   :  { %v2706_v63 = vadd.f32 %v2704_v4, %v2686_v14  ;;  %v2707_v62 = vadd.f32 %v2705_v19, %v2687_v48  ;;  %vm8137_vm12 = vnez %v8136_v43  ;;  %v8155_v19 = vld [vmem:[#allocation91_spill] sm:$0xff] }
 0x61c   :  { %v2721_v15 = vpop.permute.xlu1 %2720  ;;  %v2719_v11 = vpop.permute.xlu0 %2718 }
 0x61d   :  { %v2722_v25 = vsel %vm8117_vm6, %v2719_v11, %v2721_v15  ;;  %v2723_v29 = vsel %vm8118_vm9, %v2721_v15, %v2719_v11  ;;  %vm8133_vm6 = vnez %v8132_v1  ;;  %vm8134_vm9 = vcmp.lt.s32.totalorder %v3487_v21, 80 }
 0x61e   :  { %v2724_v39 = vsel %vm8126_vm3, %v2722_v25, 0.0  ;;  %v2725_v42 = vsel %vm8128_vm11, %v2723_v29, 0.0  ;;  %vm8135_vm2 = vmmov %vm8134_vm9  ;;  %vm8146_vm3 = vnez %v8145_v30  ;;  %vm8147_vm11 = vcmp.lt.s32.totalorder %v3487_v21, 78 }
 0x61f   :  { %v2726_v11 = vadd.f32 %v2724_v39, %v2706_v63  ;;  %v2727_v2 = vadd.f32 %v2725_v42, %v2707_v62 }
 0x620   :  { %v2741_v31 = vpop.permute.xlu1 %2740  ;;  %v2739_v50 = vpop.permute.xlu0 %2738 }
 0x621   :  { %v2742_v37 = vsel %vm8123_vm7, %v2739_v50, %v2741_v31  ;;  %v2743_v55 = vsel %vm8124_vm8, %v2741_v31, %v2739_v50  ;;  %vm8139_vm7 = vnez %v8138_v58 }
 0x622   :  { %v2744_v16 = vsel %vm5803_vm4, %v2742_v37, 0.0  ;;  %v2745_v15 = vsel %vm8133_vm6, %v2743_v55, 0.0  ;;  %vm8140_vm4 = vcmp.lt.s32.totalorder %v3487_v21, 79 }
 0x623   :  { %v2746_v10 = vadd.f32 %v2744_v16, %v2726_v11  ;;  %v2747_v40 = vadd.f32 %v2745_v15, %v2727_v2  ;;  %vm8141_vm8 = vmmov %vm8140_vm4  ;;  %v8158_v16 = vld [vmem:[#allocation13_spill] sm:$0xff]  ;;  %v8159_v15 = vld [vmem:[#allocation18_spill] sm:$0xff] }
 0x624   :  { %v2761_v44 = vpop.permute.xlu1 %2760  ;;  %v8160_v2 = vld [vmem:[#allocation17_spill] sm:$0xff] }
 0x625   :  { %v2759_v26 = vpop.permute.xlu0 %2758 }
 0x626   :  { %v2762_v59 = vsel %vm8129_vm0, %v2759_v26, %v2761_v44  ;;  %v2763_v18 = vsel %vm8130_vm5, %v2761_v44, %v2759_v26 }
 0x627   :  { %v2764_v12 = vsel %vm8137_vm12, %v2762_v59, 0.0  ;;  %v2765_v3 = vsel %vm8139_vm7, %v2763_v18, 0.0  ;;  %v8157_v59 = vld [vmem:[#allocation92_spill] sm:$0xff] }
 0x628   :  { %v2766_v50 = vadd.f32 %v2764_v12, %v2746_v10  ;;  %v2767_v33 = vadd.f32 %v2765_v3, %v2747_v40  ;;  %v8162_v12 = vld [vmem:[#allocation11_spill] sm:$0xff]  ;;  %v8163_v3 = vld [vmem:[#allocation16_spill] sm:$0xff] }
 0x629   :  { %v2781_v52 = vpop.permute.xlu1 %2780  ;;  %v2779_v32 = vpop.permute.xlu0 %2778  ;;  %v8165_v40 = vld [vmem:[#allocation12_spill] sm:$0xff] }
 0x62a   :  { %v2782_v27 = vsel %vm8134_vm9, %v2779_v32, %v2781_v52  ;;  %v2783_v57 = vsel %vm8135_vm2, %v2781_v52, %v2779_v32 }
 0x62b   :  { %v2784_v56 = vsel %vm5658_vm14, %v2782_v27, 0.0  ;;  %v2785_v31 = vsel %vm5678_vm13, %v2783_v57, 0.0  ;;  %vm8148_vm14 = vmmov %vm8147_vm11  ;;  %vm8151_vm13 = vnez %v8150_v6  ;;  %v8161_v57 = vld [vmem:[#allocation14_spill] sm:$0xff] }
 0x62c   :  { %v2786_v49 = vadd.f32 %v2784_v56, %v2766_v50  ;;  %v2787_v54 = vadd.f32 %v2785_v31, %v2767_v33 }
 0x62d   :  { %v2801_v47 = vpop.permute.xlu1 %2800  ;;  %v2799_v17 = vpop.permute.xlu0 %2798 }
 0x62e   :  { %v2802_v23 = vsel %vm8140_vm4, %v2799_v17, %v2801_v47  ;;  %v2803_v20 = vsel %vm8141_vm8, %v2801_v47, %v2799_v17  ;;  %v8164_v17 = vld [vmem:[#allocation15_spill] sm:$0xff] }
 0x62f   :  { %v2804_v9 = vsel %vm5865_vm15, %v2802_v23, 0.0  ;;  %v2805_v5 = vsel %vm8146_vm3, %v2803_v20, 0.0  ;;  %vm8152_vm15 = vcmp.lt.s32.totalorder %v3487_v21, 77 }
 0x630   :  { %v2806_v53 = vadd.f32 %v2804_v9, %v2786_v49  ;;  %v2807_v44 = vadd.f32 %v2805_v5, %v2787_v54  ;;  %vm8153_vm0 = vmmov %vm8152_vm15 }
 0x631   :  { %v2821_v51 = vpop.permute.xlu1 %2820  ;;  %v2819_v61 = vpop.permute.xlu0 %2818 }
 0x632   :  { %v2822_v8 = vsel %vm8147_vm11, %v2819_v61, %v2821_v51  ;;  %v2823_v38 = vsel %vm8148_vm14, %v2821_v51, %v2819_v61 }
 0x633   :  { %v2824_v24 = vsel %vm5890_vm10, %v2822_v8, 0.0  ;;  %v2825_v28 = vsel %vm8151_vm13, %v2823_v38, 0.0  ;;  %vm8156_vm10 = vnez %v8155_v19 }
 0x634   :  { %v2826_v34 = vadd.f32 %v2824_v24, %v2806_v53  ;;  %v2827_v25 = vadd.f32 %v2825_v28, %v2807_v44 }
 0x635   :  { %v2841_v26 = vpop.permute.xlu1 %2840  ;;  %v2839_v7 = vpop.permute.xlu0 %2838 }
 0x636   :  { %v2842_v29 = vsel %vm8152_vm15, %v2839_v7, %v2841_v26  ;;  %v2843_v46 = vsel %vm8153_vm0, %v2841_v26, %v2839_v7 }
 0x637   :  { %v2844_v13 = vsel %vm5919_vm1, %v2842_v29, 0.0  ;;  %v2845_v14 = vsel %vm8156_vm10, %v2843_v46, 0.0 }
 0x638   :  { %v2846_v48 = vadd.f32 %v2844_v13, %v2826_v34  ;;  %v2847_v37 = vadd.f32 %v2845_v14, %v2827_v25 }
 0x63a   :  { %v2848_v55 = vsub.f32 0.0, %v2846_v48  ;;  %v2849_v0 = vsub.f32 0.0, %v2847_v37 }
 0x63c   :  { %v2850_v39 = vmul.f32 1.442695, %v2848_v55  ;;  %v2852_v22 = vmul.f32 1.442695, %v2849_v0 }
 0x63e   :  { %3275 = vpow2.f32 %v2850_v39 }
 0x63f   :  { %3277 = vpow2.f32 %v2852_v22 }
 0x648   :  { %v3276_v42 = vpop.eup %3275 }
 0x649   :  { %v3278_v52 = vpop.eup %3277  ;;  %v2854_v32 = vadd.f32 1.0, %v3276_v42 }
 0x64a   :  { %v2855_v63 = vadd.f32 1.0, %v3278_v52 }
 0x64b   :  { %3279 = vrcp.f32 %v2854_v32 }
 0x64c   :  { %3281 = vrcp.f32 %v2855_v63 }
 0x655   :  { %v3280_v21 = vpop.eup %3279 }
 0x656   :  { %v3282_v62 = vpop.eup %3281  ;;  %v2863_v18 = vrot.slane %v3280_v21, %v8157_v59 }
 0x657   :  { %v2867_v41 = vrot.slane %v3282_v62, %v8157_v59 }
 0x658   :  { %v2868_v1 = vmul.f32 %v2863_v18, %v8158_v16  ;;  %v2870_v11 = vmul.f32 %v2863_v18, %v8159_v15  ;;  %v2872_v27 = vmul.f32 %v2863_v18, %v8160_v2  ;;  %v2874_v43 = vmul.f32 %v2863_v18, %v8161_v57 }
 0x659   :  { %v2869_v58 = vmul.f32 %v2867_v41, %v8162_v12  ;;  %v2871_v47 = vmul.f32 %v2867_v41, %v8163_v3  ;;  %v2873_v10 = vmul.f32 %v2867_v41, %v8164_v17  ;;  %v2875_v23 = vmul.f32 %v2867_v41, %v8165_v40 }
 0x65a   :  { %2877 = vst [vmem:[#allocation7 + $0x40] sm:$0xff] %v2868_v1  ;;  %2879 = vst [vmem:[#allocation7 + $0x50] sm:$0xff] %v2870_v11 }
 0x65b   :  { %2881 = vst [vmem:[#allocation7 + $0x60] sm:$0xff] %v2872_v27  ;;  %2883 = vst [vmem:[#allocation7 + $0x70] sm:$0xff] %v2874_v43 }
 0x65c   :  { %2878 = vst [vmem:[#allocation7 + $0x48] sm:$0xff] %v2869_v58  ;;  %2880 = vst [vmem:[#allocation7 + $0x58] sm:$0xff] %v2871_v47 }
 0x65d   :  { %2882 = vst [vmem:[#allocation7 + $0x68] sm:$0xff] %v2873_v10  ;;  %2884 = vst [vmem:[#allocation7 + $0x78] sm:$0xff] %v2875_v23 }
 0x65e   :  { %3336 = shalt.err (!%p3333_p3)
}
 0x65f   :  { %s3337_s7 = scalar_lea.hbm %s7099_s4, 2048 }
 0x660   :  { %p3338_p4 = scmp.ne.s32.totalorder %s7099_s4, %s3337_s7  ;;  %p3341_p5 = scmp.lt.u32.totalorder %s3337_s7, %s7099_s4 }
 0x662   :  { %p3343_p6 = pnand %p3341_p5, %p3338_p4 }
 0x664   :  { %3346 = shalt.err (!%p3343_p6)
}
 0x665   :  { %s8166_s19 = smov 256  }
 0x666   :  { %2896 = dma.vmem_to_hbm [thread:$0]  %s2891_s17, 2048, %s7099_s4, [#allocation6], %s8166_s19, %s8166_s19, %s7881_s22  }
 0x667   :  { %3351 = dma.done.wait [#allocation6], 2048  }
 0x668   :  { %3352 = vsyncadd [#allocation6], 4294965248 }
 0x669   :  { %2900 = vsyncpa [#allocation5], 1 }
 0x66a   :  { %2901 = vsyncpa [#allocation6], 1 }

</bundles_post_ra>
